<compile_context>
chip_gen: v7x
topology: tpu7x:2x2x1
jax: 0.10.0
libtpu: 0.0.40
codegen_flags: <defaults>
</compile_context>

<pallas_src>
import functools

import jax
import jax.numpy as jnp
from jax.experimental import pallas as pl
from jax.experimental.pallas import tpu as pltpu


def _make_conv_kernel(KH, KW, dilation, WPAD, M):
    def kernel(x_ref, w_ref, o_ref):
        # x_ref: (NFLAT, Cin) bf16      -- whole padded input, flat row-major
        # w_ref: (KH*KW, Cin, Cout) bf16 -- all weight taps, VMEM resident
        # o_ref: (M, Cout) f32          -- output rows (incl. padded columns)
        for kh in range(KH):
            for kw in range(KW):
                k = kh * KW + kw
                # Static offset; even kw*dilation keeps bf16 sublane packing.
                off = kh * dilation * WPAD + kw * dilation
                lhs = x_ref[pl.ds(off, M), :]                     # (M, Cin)
                part = jnp.dot(lhs, w_ref[k],
                               preferred_element_type=jnp.float32)
                if k == 0:
                    o_ref[...] = part        # first tap: overwrite, no zero fill
                else:
                    o_ref[...] += part
    return kernel


def dilated_conv2d_pallas(x_nchw, w_oihw, *, padding=2, dilation=2):
    """Conv2d(stride=1, no bias) with given padding/dilation. NCHW in/out."""
    N, Cin, H, W = x_nchw.shape
    Cout, Cin_w, KH, KW = w_oihw.shape
    assert N == 1 and Cin == Cin_w  # TODO(synk): batching would add a grid axis

    Ho = H + 2 * padding - dilation * (KH - 1)
    Wo = W + 2 * padding - dilation * (KW - 1)

    # Padded geometry: row stride WPAD (multiple of 8) covers the fully padded
    # input width; HP_ALLOC adds one spare zero row so the right-edge taps of
    # the (discarded) padded output columns stay inside the flat buffer.
    WPAD = ((W + 2 * padding + 7) // 8) * 8
    HP = H + 2 * padding
    HP_ALLOC = HP + (1 if (KW - 1) * dilation > 0 else 0)
    NFLAT = HP_ALLOC * WPAD

    pad_top = padding
    pad_bot = HP_ALLOC - H - padding
    pad_left = padding
    pad_right = WPAD - W - padding
    assert pad_bot >= 0 and pad_right >= 0

    M = Ho * WPAD                       # flat output rows (incl. padded cols)
    assert NFLAT % 16 == 0 and M % 16 == 0 and WPAD % 8 == 0
    # Highest flat row read by any tap must stay inside the buffer.
    assert (Ho - 1 + (KH - 1) * dilation) * WPAD + (WPAD - 1) \
        + (KW - 1) * dilation < NFLAT

    # bf16 cast first (halves glue bytes), then NCHW -> HWC, zero-pad, flatten.
    x = jnp.transpose(x_nchw.astype(jnp.bfloat16), (0, 2, 3, 1))[0]
    xp = jnp.pad(x, ((pad_top, pad_bot), (pad_left, pad_right), (0, 0)))
    x_flat = xp.reshape(NFLAT, Cin)

    # weights (Cout, Cin, KH, KW) -> (KH*KW, Cin, Cout), bf16.
    w_taps = jnp.transpose(w_oihw.astype(jnp.bfloat16),
                           (2, 3, 1, 0)).reshape(KH * KW, Cin, Cout)

    kernel = _make_conv_kernel(KH, KW, dilation, WPAD, M)

    flops = 2 * KH * KW * M * Cin * Cout
    bytes_accessed = x_flat.size * 2 + w_taps.size * 2 + M * Cout * 4

    out_flat = pl.pallas_call(
        kernel,
        out_shape=jax.ShapeDtypeStruct((M, Cout), jnp.float32),
        grid_spec=pltpu.PrefetchScalarGridSpec(
            num_scalar_prefetch=0,
            grid=(1,),
            in_specs=[
                pl.BlockSpec((NFLAT, Cin), lambda i: (0, 0)),
                pl.BlockSpec((KH * KW, Cin, Cout), lambda i: (0, 0, 0)),
            ],
            out_specs=pl.BlockSpec((M, Cout), lambda i: (0, 0)),
        ),
        compiler_params=pltpu.CompilerParams(
            dimension_semantics=("arbitrary",),
        ),
        cost_estimate=pl.CostEstimate(
            flops=flops, transcendentals=0, bytes_accessed=bytes_accessed),
    )(x_flat, w_taps)

    # (Ho*WPAD, Cout) -> drop padded columns -> (1, Cout, Ho, Wo) NCHW.
    out = out_flat.reshape(Ho, WPAD, Cout)[:, :Wo, :]
    return jnp.transpose(out, (2, 0, 1))[None]


if __name__ == "__main__":
    key = jax.random.PRNGKey(0)
    kx, kw = jax.random.split(key)

    # Module-implied shapes: input (1, 256, 28, 28), weight (256, 256, 3, 3)
    x = jax.random.normal(kx, (1, 256, 28, 28), dtype=jnp.float32)
    fan_in = 256 * 3 * 3
    w = jax.random.normal(kw, (256, 256, 3, 3), dtype=jnp.float32) * (fan_in ** -0.5)

    conv = jax.jit(functools.partial(dilated_conv2d_pallas, padding=2, dilation=2))
    out = jax.block_until_ready(conv(x, w))

    # Reference computed on the same bf16-rounded operands (kernel uses bf16
    # MXU inputs with f32 accumulation).
    xr = x.astype(jnp.bfloat16).astype(jnp.float32)
    wr = w.astype(jnp.bfloat16).astype(jnp.float32)
    ref = jax.lax.conv_general_dilated(
        xr, wr,
        window_strides=(1, 1),
        padding=((2, 2), (2, 2)),
        rhs_dilation=(2, 2),
        dimension_numbers=("NCHW", "OIHW", "NCHW"),
    )

    assert out.shape == (1, 256, 28, 28), out.shape
    max_err = float(jnp.max(jnp.abs(out - ref)))
    assert jnp.allclose(out, ref, atol=1e-2, rtol=1e-2), max_err

    print("KERNEL_OK")
</pallas_src>

<mosaic_0001>
module attributes {stable_mosaic.version = 11 : i64} {
  func.func @kernel(%arg0: i32, %arg1: memref<1056x256xbf16, #tpu.memory_space<vmem>>, %arg2: memref<9x256x256xbf16, #tpu.memory_space<vmem>>, %arg3: memref<896x256xf32, #tpu.memory_space<vmem>>) attributes {dimension_semantics = [#tpu.dimension_semantics<arbitrary>], iteration_bounds = array<i64: 1>, scalar_prefetch = 0 : i64, scratch_operands = 0 : i64, tpu.core_type = #tpu.core_type<tc>, window_params = [{pipeline_mode = #tpu.pipeline_mode<synchronous>, transform_indices = @transform_0, window_bounds = array<i64: 1056, 256>}, {pipeline_mode = #tpu.pipeline_mode<synchronous>, transform_indices = @transform_1, window_bounds = array<i64: 9, 256, 256>}, {pipeline_mode = #tpu.pipeline_mode<synchronous>, transform_indices = @transform_2, window_bounds = array<i64: 896, 256>}]} {
    %c0 = arith.constant 0 : index
    %c0_0 = arith.constant 0 : index
    %0 = vector.load %arg1[%c0, %c0_0] : memref<1056x256xbf16, #tpu.memory_space<vmem>>, vector<896x256xbf16>
    %c0_1 = arith.constant 0 : index
    %c0_2 = arith.constant 0 : index
    %c0_3 = arith.constant 0 : index
    %1 = vector.load %arg2[%c0_1, %c0_2, %c0_3] : memref<9x256x256xbf16, #tpu.memory_space<vmem>>, vector<1x256x256xbf16>
    %2 = vector.shape_cast %1 : vector<1x256x256xbf16> to vector<256x256xbf16>
    %cst = arith.constant dense<0.000000e+00> : vector<896x256xf32>
    %3 = tpu.matmul %0, %2, %cst {dimension_numbers = #tpu.dot_dimension_numbers<[1], [0], [0], [1], [0, 0, 1, 1], [], []>} : vector<896x256xbf16>, vector<256x256xbf16>, vector<896x256xf32> -> vector<896x256xf32>
    %c0_4 = arith.constant 0 : index
    %c0_5 = arith.constant 0 : index
    %4 = vector.load %arg3[%c0_4, %c0_5] : memref<896x256xf32, #tpu.memory_space<vmem>>, vector<896x256xf32>
    tpu.vector_store %arg3[%c0_4, %c0_5], %3 {strides = array<i32>} : memref<896x256xf32, #tpu.memory_space<vmem>>, vector<896x256xf32>,
    %c2 = arith.constant 2 : index
    %c0_6 = arith.constant 0 : index
    %5 = vector.load %arg1[%c2, %c0_6] : memref<1056x256xbf16, #tpu.memory_space<vmem>>, vector<896x256xbf16>
    %c1 = arith.constant 1 : index
    %c0_7 = arith.constant 0 : index
    %c0_8 = arith.constant 0 : index
    %6 = vector.load %arg2[%c1, %c0_7, %c0_8] : memref<9x256x256xbf16, #tpu.memory_space<vmem>>, vector<1x256x256xbf16>
    %7 = vector.shape_cast %6 : vector<1x256x256xbf16> to vector<256x256xbf16>
    %cst_9 = arith.constant dense<0.000000e+00> : vector<896x256xf32>
    %8 = tpu.matmul %5, %7, %cst_9 {dimension_numbers = #tpu.dot_dimension_numbers<[1], [0], [0], [1], [0, 0, 1, 1], [], []>} : vector<896x256xbf16>, vector<256x256xbf16>, vector<896x256xf32> -> vector<896x256xf32>
    %c0_10 = arith.constant 0 : index
    %c0_11 = arith.constant 0 : index
    %9 = vector.load %arg3[%c0_10, %c0_11] : memref<896x256xf32, #tpu.memory_space<vmem>>, vector<896x256xf32>
    %10 = arith.addf %9, %8 : vector<896x256xf32>
    %c0_12 = arith.constant 0 : index
    %c0_13 = arith.constant 0 : index
    %11 = vector.load %arg3[%c0_12, %c0_13] : memref<896x256xf32, #tpu.memory_space<vmem>>, vector<896x256xf32>
    tpu.vector_store %arg3[%c0_12, %c0_13], %10 {strides = array<i32>} : memref<896x256xf32, #tpu.memory_space<vmem>>, vector<896x256xf32>,
    %c4 = arith.constant 4 : index
    %c0_14 = arith.constant 0 : index
    %12 = vector.load %arg1[%c4, %c0_14] : memref<1056x256xbf16, #tpu.memory_space<vmem>>, vector<896x256xbf16>
    %c2_15 = arith.constant 2 : index
    %c0_16 = arith.constant 0 : index
    %c0_17 = arith.constant 0 : index
    %13 = vector.load %arg2[%c2_15, %c0_16, %c0_17] : memref<9x256x256xbf16, #tpu.memory_space<vmem>>, vector<1x256x256xbf16>
    %14 = vector.shape_cast %13 : vector<1x256x256xbf16> to vector<256x256xbf16>
    %cst_18 = arith.constant dense<0.000000e+00> : vector<896x256xf32>
    %15 = tpu.matmul %12, %14, %cst_18 {dimension_numbers = #tpu.dot_dimension_numbers<[1], [0], [0], [1], [0, 0, 1, 1], [], []>} : vector<896x256xbf16>, vector<256x256xbf16>, vector<896x256xf32> -> vector<896x256xf32>
    %c0_19 = arith.constant 0 : index
    %c0_20 = arith.constant 0 : index
    %16 = vector.load %arg3[%c0_19, %c0_20] : memref<896x256xf32, #tpu.memory_space<vmem>>, vector<896x256xf32>
    %17 = arith.addf %16, %15 : vector<896x256xf32>
    %c0_21 = arith.constant 0 : index
    %c0_22 = arith.constant 0 : index
    %18 = vector.load %arg3[%c0_21, %c0_22] : memref<896x256xf32, #tpu.memory_space<vmem>>, vector<896x256xf32>
    tpu.vector_store %arg3[%c0_21, %c0_22], %17 {strides = array<i32>} : memref<896x256xf32, #tpu.memory_space<vmem>>, vector<896x256xf32>,
    %c64 = arith.constant 64 : index
    %c0_23 = arith.constant 0 : index
    %19 = vector.load %arg1[%c64, %c0_23] : memref<1056x256xbf16, #tpu.memory_space<vmem>>, vector<896x256xbf16>
    %c3 = arith.constant 3 : index
    %c0_24 = arith.constant 0 : index
    %c0_25 = arith.constant 0 : index
    %20 = vector.load %arg2[%c3, %c0_24, %c0_25] : memref<9x256x256xbf16, #tpu.memory_space<vmem>>, vector<1x256x256xbf16>
    %21 = vector.shape_cast %20 : vector<1x256x256xbf16> to vector<256x256xbf16>
    %cst_26 = arith.constant dense<0.000000e+00> : vector<896x256xf32>
    %22 = tpu.matmul %19, %21, %cst_26 {dimension_numbers = #tpu.dot_dimension_numbers<[1], [0], [0], [1], [0, 0, 1, 1], [], []>} : vector<896x256xbf16>, vector<256x256xbf16>, vector<896x256xf32> -> vector<896x256xf32>
    %c0_27 = arith.constant 0 : index
    %c0_28 = arith.constant 0 : index
    %23 = vector.load %arg3[%c0_27, %c0_28] : memref<896x256xf32, #tpu.memory_space<vmem>>, vector<896x256xf32>
    %24 = arith.addf %23, %22 : vector<896x256xf32>
    %c0_29 = arith.constant 0 : index
    %c0_30 = arith.constant 0 : index
    %25 = vector.load %arg3[%c0_29, %c0_30] : memref<896x256xf32, #tpu.memory_space<vmem>>, vector<896x256xf32>
    tpu.vector_store %arg3[%c0_29, %c0_30], %24 {strides = array<i32>} : memref<896x256xf32, #tpu.memory_space<vmem>>, vector<896x256xf32>,
    %c66 = arith.constant 66 : index
    %c0_31 = arith.constant 0 : index
    %26 = vector.load %arg1[%c66, %c0_31] : memref<1056x256xbf16, #tpu.memory_space<vmem>>, vector<896x256xbf16>
    %c4_32 = arith.constant 4 : index
    %c0_33 = arith.constant 0 : index
    %c0_34 = arith.constant 0 : index
    %27 = vector.load %arg2[%c4_32, %c0_33, %c0_34] : memref<9x256x256xbf16, #tpu.memory_space<vmem>>, vector<1x256x256xbf16>
    %28 = vector.shape_cast %27 : vector<1x256x256xbf16> to vector<256x256xbf16>
    %cst_35 = arith.constant dense<0.000000e+00> : vector<896x256xf32>
    %29 = tpu.matmul %26, %28, %cst_35 {dimension_numbers = #tpu.dot_dimension_numbers<[1], [0], [0], [1], [0, 0, 1, 1], [], []>} : vector<896x256xbf16>, vector<256x256xbf16>, vector<896x256xf32> -> vector<896x256xf32>
    %c0_36 = arith.constant 0 : index
    %c0_37 = arith.constant 0 : index
    %30 = vector.load %arg3[%c0_36, %c0_37] : memref<896x256xf32, #tpu.memory_space<vmem>>, vector<896x256xf32>
    %31 = arith.addf %30, %29 : vector<896x256xf32>
    %c0_38 = arith.constant 0 : index
    %c0_39 = arith.constant 0 : index
    %32 = vector.load %arg3[%c0_38, %c0_39] : memref<896x256xf32, #tpu.memory_space<vmem>>, vector<896x256xf32>
    tpu.vector_store %arg3[%c0_38, %c0_39], %31 {strides = array<i32>} : memref<896x256xf32, #tpu.memory_space<vmem>>, vector<896x256xf32>,
    %c68 = arith.constant 68 : index
    %c0_40 = arith.constant 0 : index
    %33 = vector.load %arg1[%c68, %c0_40] : memref<1056x256xbf16, #tpu.memory_space<vmem>>, vector<896x256xbf16>
    %c5 = arith.constant 5 : index
    %c0_41 = arith.constant 0 : index
    %c0_42 = arith.constant 0 : index
    %34 = vector.load %arg2[%c5, %c0_41, %c0_42] : memref<9x256x256xbf16, #tpu.memory_space<vmem>>, vector<1x256x256xbf16>
    %35 = vector.shape_cast %34 : vector<1x256x256xbf16> to vector<256x256xbf16>
    %cst_43 = arith.constant dense<0.000000e+00> : vector<896x256xf32>
    %36 = tpu.matmul %33, %35, %cst_43 {dimension_numbers = #tpu.dot_dimension_numbers<[1], [0], [0], [1], [0, 0, 1, 1], [], []>} : vector<896x256xbf16>, vector<256x256xbf16>, vector<896x256xf32> -> vector<896x256xf32>
    %c0_44 = arith.constant 0 : index
    %c0_45 = arith.constant 0 : index
    %37 = vector.load %arg3[%c0_44, %c0_45] : memref<896x256xf32, #tpu.memory_space<vmem>>, vector<896x256xf32>
    %38 = arith.addf %37, %36 : vector<896x256xf32>
    %c0_46 = arith.constant 0 : index
    %c0_47 = arith.constant 0 : index
    %39 = vector.load %arg3[%c0_46, %c0_47] : memref<896x256xf32, #tpu.memory_space<vmem>>, vector<896x256xf32>
    tpu.vector_store %arg3[%c0_46, %c0_47], %38 {strides = array<i32>} : memref<896x256xf32, #tpu.memory_space<vmem>>, vector<896x256xf32>,
    %c128 = arith.constant 128 : index
    %c0_48 = arith.constant 0 : index
    %40 = vector.load %arg1[%c128, %c0_48] : memref<1056x256xbf16, #tpu.memory_space<vmem>>, vector<896x256xbf16>
    %c6 = arith.constant 6 : index
    %c0_49 = arith.constant 0 : index
    %c0_50 = arith.constant 0 : index
    %41 = vector.load %arg2[%c6, %c0_49, %c0_50] : memref<9x256x256xbf16, #tpu.memory_space<vmem>>, vector<1x256x256xbf16>
    %42 = vector.shape_cast %41 : vector<1x256x256xbf16> to vector<256x256xbf16>
    %cst_51 = arith.constant dense<0.000000e+00> : vector<896x256xf32>
    %43 = tpu.matmul %40, %42, %cst_51 {dimension_numbers = #tpu.dot_dimension_numbers<[1], [0], [0], [1], [0, 0, 1, 1], [], []>} : vector<896x256xbf16>, vector<256x256xbf16>, vector<896x256xf32> -> vector<896x256xf32>
    %c0_52 = arith.constant 0 : index
    %c0_53 = arith.constant 0 : index
    %44 = vector.load %arg3[%c0_52, %c0_53] : memref<896x256xf32, #tpu.memory_space<vmem>>, vector<896x256xf32>
    %45 = arith.addf %44, %43 : vector<896x256xf32>
    %c0_54 = arith.constant 0 : index
    %c0_55 = arith.constant 0 : index
    %46 = vector.load %arg3[%c0_54, %c0_55] : memref<896x256xf32, #tpu.memory_space<vmem>>, vector<896x256xf32>
    tpu.vector_store %arg3[%c0_54, %c0_55], %45 {strides = array<i32>} : memref<896x256xf32, #tpu.memory_space<vmem>>, vector<896x256xf32>,
    %c130 = arith.constant 130 : index
    %c0_56 = arith.constant 0 : index
    %47 = vector.load %arg1[%c130, %c0_56] : memref<1056x256xbf16, #tpu.memory_space<vmem>>, vector<896x256xbf16>
    %c7 = arith.constant 7 : index
    %c0_57 = arith.constant 0 : index
    %c0_58 = arith.constant 0 : index
    %48 = vector.load %arg2[%c7, %c0_57, %c0_58] : memref<9x256x256xbf16, #tpu.memory_space<vmem>>, vector<1x256x256xbf16>
    %49 = vector.shape_cast %48 : vector<1x256x256xbf16> to vector<256x256xbf16>
    %cst_59 = arith.constant dense<0.000000e+00> : vector<896x256xf32>
    %50 = tpu.matmul %47, %49, %cst_59 {dimension_numbers = #tpu.dot_dimension_numbers<[1], [0], [0], [1], [0, 0, 1, 1], [], []>} : vector<896x256xbf16>, vector<256x256xbf16>, vector<896x256xf32> -> vector<896x256xf32>
    %c0_60 = arith.constant 0 : index
    %c0_61 = arith.constant 0 : index
    %51 = vector.load %arg3[%c0_60, %c0_61] : memref<896x256xf32, #tpu.memory_space<vmem>>, vector<896x256xf32>
    %52 = arith.addf %51, %50 : vector<896x256xf32>
    %c0_62 = arith.constant 0 : index
    %c0_63 = arith.constant 0 : index
    %53 = vector.load %arg3[%c0_62, %c0_63] : memref<896x256xf32, #tpu.memory_space<vmem>>, vector<896x256xf32>
    tpu.vector_store %arg3[%c0_62, %c0_63], %52 {strides = array<i32>} : memref<896x256xf32, #tpu.memory_space<vmem>>, vector<896x256xf32>,
    %c132 = arith.constant 132 : index
    %c0_64 = arith.constant 0 : index
    %54 = vector.load %arg1[%c132, %c0_64] : memref<1056x256xbf16, #tpu.memory_space<vmem>>, vector<896x256xbf16>
    %c8 = arith.constant 8 : index
    %c0_65 = arith.constant 0 : index
    %c0_66 = arith.constant 0 : index
    %55 = vector.load %arg2[%c8, %c0_65, %c0_66] : memref<9x256x256xbf16, #tpu.memory_space<vmem>>, vector<1x256x256xbf16>
    %56 = vector.shape_cast %55 : vector<1x256x256xbf16> to vector<256x256xbf16>
    %cst_67 = arith.constant dense<0.000000e+00> : vector<896x256xf32>
    %57 = tpu.matmul %54, %56, %cst_67 {dimension_numbers = #tpu.dot_dimension_numbers<[1], [0], [0], [1], [0, 0, 1, 1], [], []>} : vector<896x256xbf16>, vector<256x256xbf16>, vector<896x256xf32> -> vector<896x256xf32>
    %c0_68 = arith.constant 0 : index
    %c0_69 = arith.constant 0 : index
    %58 = vector.load %arg3[%c0_68, %c0_69] : memref<896x256xf32, #tpu.memory_space<vmem>>, vector<896x256xf32>
    %59 = arith.addf %58, %57 : vector<896x256xf32>
    %c0_70 = arith.constant 0 : index
    %c0_71 = arith.constant 0 : index
    %60 = vector.load %arg3[%c0_70, %c0_71] : memref<896x256xf32, #tpu.memory_space<vmem>>, vector<896x256xf32>
    tpu.vector_store %arg3[%c0_70, %c0_71], %59 {strides = array<i32>} : memref<896x256xf32, #tpu.memory_space<vmem>>, vector<896x256xf32>,
    return
  }
  func.func @transform_0(%arg0: i32) -> (i32, i32) {
    %c0_i32 = arith.constant 0 : i32
    %c0_i32_0 = arith.constant 0 : i32
    %c0_i32_1 = arith.constant 0 : i32
    return %c0_i32, %c0_i32_0 : i32, i32
  }
  func.func @transform_1(%arg0: i32) -> (i32, i32, i32) {
    %c0_i32 = arith.constant 0 : i32
    %c0_i32_0 = arith.constant 0 : i32
    %c0_i32_1 = arith.constant 0 : i32
    %c0_i32_2 = arith.constant 0 : i32
    return %c0_i32, %c0_i32_0, %c0_i32_1 : i32, i32, i32
  }
  func.func @transform_2(%arg0: i32) -> (i32, i32) {
    %c0_i32 = arith.constant 0 : i32
    %c0_i32_0 = arith.constant 0 : i32
    %c0_i32_1 = arith.constant 0 : i32
    return %c0_i32, %c0_i32_0 : i32, i32
  }
}

</mosaic_0001>

<bundles_post_ra>
// kernel: dilated_conv2d_pallas.1
= control target key start
LH: loop header
LB: loop body
LE: loop exit
PB: predicated region body
PF: predicated region fallthrough
CT: control target
= control target key end

     0   :  { %vm2291_vm0 = vcmask 1046528   ;;  %vm4654_vm1 = vcmask 1045504   ;;  %s32007_s1 = inlined_call_operand.vmem [shape: bf16[9,256,256], index: 1, kind: input, shape index: {}]   ;;  %s32008_s0 = inlined_call_operand.vmem [shape: bf16[1056,256], index: 0, kind: input, shape index: {}]   ;;  %s32009_s2 = inlined_call_operand.vmem [shape: f32[896,256], index: 2, kind: output, shape index: {}]  }
   0x1   :  { %v23966_v0 = vld [vmem:[%s32007_s1 + $0x4] ss:$8 sps:$4 sm:$0xff]   ;;  %v23970_v2 = vld [vmem:[%s32007_s1] ss:$8 sps:$4 sm:$0xff]   ;;  %v23972_v4 = vld [vmem:[%s32007_s1 + $0x14] ss:$8 sps:$4 sm:$0xff]  }
   0x2   :  { %v23968_v1 = vld [vmem:[%s32007_s1 + $0x404] ss:$8 sps:$4 sm:$0xff]   ;;  %875 = vmatprep.subr.bf16.mxu1 %v23966_v0  ;;  %v23971_v3 = vld [vmem:[%s32007_s1 + $0x400] ss:$8 sps:$4 sm:$0xff]   ;;  %v23974_v5 = vld [vmem:[%s32007_s1 + $0x414] ss:$8 sps:$4 sm:$0xff]  }
   0x3   :  { %9645 = vmatprep.subr.bf16.mxu0 %v23968_v1  ;;  %876 = vmatpush1.bf16.msra.mxu1 %v23970_v2  ;;  %v23976_v6 = vld [vmem:[%s32007_s1 + $0x10] ss:$8 sps:$4 sm:$0xff]   ;;  %v23978_v8 = vld [vmem:[%s32007_s1 + $0x24] ss:$8 sps:$4 sm:$0xff]   ;;  %v23982_v10 = vld [vmem:[%s32007_s1 + $0x20] ss:$8 sps:$4 sm:$0xff]  }
   0x4   :  { %9646 = vmatpush1.bf16.msra.mxu0 %v23971_v3  ;;  %877 = vmatprep.subr.bf16.mxu1 %v23972_v4  ;;  %v23977_v7 = vld [vmem:[%s32007_s1 + $0x410] ss:$8 sps:$4 sm:$0xff]   ;;  %v23980_v9 = vld [vmem:[%s32007_s1 + $0x424] ss:$8 sps:$4 sm:$0xff]   ;;  %v23983_v11 = vld [vmem:[%s32007_s1 + $0x420] ss:$8 sps:$4 sm:$0xff]  }
   0x5   :  { %9647 = vmatprep.subr.bf16.mxu0 %v23974_v5  ;;  %v23984_v12 = vld [vmem:[%s32007_s1 + $0x34] ss:$8 sps:$4 sm:$0xff]   ;;  %v23988_v14 = vld [vmem:[%s32007_s1 + $0x30] ss:$8 sps:$4 sm:$0xff]   ;;  %v23990_v16 = vld [vmem:[%s32007_s1 + $0x44] ss:$8 sps:$4 sm:$0xff]  }
   0x6   :  { %v23986_v13 = vld [vmem:[%s32007_s1 + $0x434] ss:$8 sps:$4 sm:$0xff]   ;;  %v23989_v15 = vld [vmem:[%s32007_s1 + $0x430] ss:$8 sps:$4 sm:$0xff]   ;;  %v23992_v17 = vld [vmem:[%s32007_s1 + $0x444] ss:$8 sps:$4 sm:$0xff]  }
   0x7   :  { %878 = vmatpush1.bf16.msra.mxu1 %v23976_v6  ;;  %v23994_v18 = vld [vmem:[%s32007_s1 + $0x40] ss:$8 sps:$4 sm:$0xff]   ;;  %v23996_v20 = vld [vmem:[%s32007_s1 + $0x54] ss:$8 sps:$4 sm:$0xff]   ;;  %v24000_v22 = vld [vmem:[%s32007_s1 + $0x50] ss:$8 sps:$4 sm:$0xff]  }
   0x8   :  { %9648 = vmatpush1.bf16.msra.mxu0 %v23977_v7  ;;  %879 = vmatprep.subr.bf16.mxu1 %v23978_v8  ;;  %v23995_v19 = vld [vmem:[%s32007_s1 + $0x440] ss:$8 sps:$4 sm:$0xff]   ;;  %v23998_v21 = vld [vmem:[%s32007_s1 + $0x454] ss:$8 sps:$4 sm:$0xff]   ;;  %v24001_v23 = vld [vmem:[%s32007_s1 + $0x450] ss:$8 sps:$4 sm:$0xff]  }
   0x9   :  { %9649 = vmatprep.subr.bf16.mxu0 %v23980_v9  ;;  %v24002_v24 = vld [vmem:[%s32007_s1 + $0x64] ss:$8 sps:$4 sm:$0xff]   ;;  %v24006_v26 = vld [vmem:[%s32007_s1 + $0x60] ss:$8 sps:$4 sm:$0xff]   ;;  %v24008_v28 = vld [vmem:[%s32007_s1 + $0x74] ss:$8 sps:$4 sm:$0xff]  }
   0xa   :  { %v24004_v25 = vld [vmem:[%s32007_s1 + $0x464] ss:$8 sps:$4 sm:$0xff]   ;;  %v24007_v27 = vld [vmem:[%s32007_s1 + $0x460] ss:$8 sps:$4 sm:$0xff]   ;;  %v24010_v29 = vld [vmem:[%s32007_s1 + $0x474] ss:$8 sps:$4 sm:$0xff]  }
   0xb   :  { %880 = vmatpush1.bf16.msra.mxu1 %v23982_v10  ;;  %v24012_v30 = vld [vmem:[%s32007_s1 + $0x70] ss:$8 sps:$4 sm:$0xff]   ;;  %v24014_v32 = vld [vmem:[%s32007_s1 + $0x84] ss:$8 sps:$4 sm:$0xff]   ;;  %v24018_v34 = vld [vmem:[%s32007_s1 + $0x80] ss:$8 sps:$4 sm:$0xff]  }
   0xc   :  { %9650 = vmatpush1.bf16.msra.mxu0 %v23983_v11  ;;  %881 = vmatprep.subr.bf16.mxu1 %v23984_v12  ;;  %v24013_v31 = vld [vmem:[%s32007_s1 + $0x470] ss:$8 sps:$4 sm:$0xff]   ;;  %v24016_v33 = vld [vmem:[%s32007_s1 + $0x484] ss:$8 sps:$4 sm:$0xff]   ;;  %v24019_v35 = vld [vmem:[%s32007_s1 + $0x480] ss:$8 sps:$4 sm:$0xff]  }
   0xd   :  { %9651 = vmatprep.subr.bf16.mxu0 %v23986_v13  ;;  %v24020_v36 = vld [vmem:[%s32007_s1 + $0x94] ss:$8 sps:$4 sm:$0xff]   ;;  %v24024_v38 = vld [vmem:[%s32007_s1 + $0x90] ss:$8 sps:$4 sm:$0xff]   ;;  %v24026_v40 = vld [vmem:[%s32007_s1 + $0xa4] ss:$8 sps:$4 sm:$0xff]  }
   0xe   :  { %v24022_v37 = vld [vmem:[%s32007_s1 + $0x494] ss:$8 sps:$4 sm:$0xff]   ;;  %v24025_v39 = vld [vmem:[%s32007_s1 + $0x490] ss:$8 sps:$4 sm:$0xff]   ;;  %v24028_v41 = vld [vmem:[%s32007_s1 + $0x4a4] ss:$8 sps:$4 sm:$0xff]  }
   0xf   :  { %882 = vmatpush1.bf16.msra.mxu1 %v23988_v14  ;;  %v24030_v42 = vld [vmem:[%s32007_s1 + $0xa0] ss:$8 sps:$4 sm:$0xff]   ;;  %v24032_v44 = vld [vmem:[%s32007_s1 + $0xb4] ss:$8 sps:$4 sm:$0xff]   ;;  %v24036_v46 = vld [vmem:[%s32007_s1 + $0xb0] ss:$8 sps:$4 sm:$0xff]  }
  0x10   :  { %9652 = vmatpush1.bf16.msra.mxu0 %v23989_v15  ;;  %883 = vmatprep.subr.bf16.mxu1 %v23990_v16  ;;  %v24031_v43 = vld [vmem:[%s32007_s1 + $0x4a0] ss:$8 sps:$4 sm:$0xff]   ;;  %v24034_v45 = vld [vmem:[%s32007_s1 + $0x4b4] ss:$8 sps:$4 sm:$0xff]   ;;  %v24037_v47 = vld [vmem:[%s32007_s1 + $0x4b0] ss:$8 sps:$4 sm:$0xff]  }
  0x11   :  { %9653 = vmatprep.subr.bf16.mxu0 %v23992_v17  ;;  %v24038_v48 = vld [vmem:[%s32007_s1 + $0xc4] ss:$8 sps:$4 sm:$0xff]   ;;  %v25600_v54 = vld [vmem:[%s32008_s0 + $0x54] ss:$8 sps:$4 sm:$0xff]   ;;  %v24042_v55 = vld [vmem:[%s32007_s1 + $0xc0] ss:$8 sps:$4 sm:$0xff]  }
  0x12   :  { %v24040_v49 = vld [vmem:[%s32007_s1 + $0x4c4] ss:$8 sps:$4 sm:$0xff]   ;;  %v9151_v57 = vrot.slane %v25600_v54, 1  ;;  %v24043_v58 = vld [vmem:[%s32007_s1 + $0x4c0] ss:$8 sps:$4 sm:$0xff]  }
  0x13   :  { %884 = vmatpush1.bf16.msra.mxu1 %v23994_v18  ;;  %v24064_v50 = vld [vmem:[%s32008_s0 + $0x4] ss:$8 sps:$4 sm:$0xff]   ;;  %v24044_v59 = vld [vmem:[%s32007_s1 + $0xd4] ss:$8 sps:$4 sm:$0xff]   ;;  %v24048_v62 = vld [vmem:[%s32007_s1 + $0xd0] ss:$8 sps:$4 sm:$0xff]  }
  0x14   :  { %9654 = vmatpush1.bf16.msra.mxu0 %v23995_v19  ;;  %885 = vmatprep.subr.bf16.mxu1 %v23996_v20  ;;  %v8548_v51 = vld [vmem:[%s32008_s0 + $0x40] sm:$0xee]  ;;  %v25594_v52 = vld [vmem:[%s32008_s0 + $0x48] sm:$0xff]  ;;  %v24046_v60 = vld [vmem:[%s32007_s1 + $0x4d4] ss:$8 sps:$4 sm:$0xff]  }
  0x15   :  { %9655 = vmatprep.subr.bf16.mxu0 %v23998_v21  ;;  %v20839_v53 = vcombine.high %v8548_v51, %v25594_v52  ;;  %907 = vmatprep.mubr.bf16.mxu1 %v24064_v50  ;;  %v24049_v63 = vld [vmem:[%s32007_s1 + $0x4d0] ss:$8 sps:$4 sm:$0xff]   ;;  %v24050_v0 = vld [vmem:[%s32007_s1 + $0xe4] ss:$8 sps:$4 sm:$0xff]   ;;  %v24054_v2 = vld [vmem:[%s32007_s1 + $0xe0] ss:$8 sps:$4 sm:$0xff]   ;;  %v20838_v4 = vcombine.low %v8548_v51, %v25594_v52 }
  0x16   :  { %v24052_v1 = vld [vmem:[%s32007_s1 + $0x4e4] ss:$8 sps:$4 sm:$0xff]   ;;  %v24055_v3 = vld [vmem:[%s32007_s1 + $0x4e0] ss:$8 sps:$4 sm:$0xff]   ;;  %v25638_v5 = vld [vmem:[%s32008_s0 + $0x50] ss:$8 sps:$4 sm:$0xff]  }
  0x17   :  { %886 = vmatpush1.bf16.msra.mxu1 %v24000_v22  ;;  %v9150_v56 = vrot.slane %v20839_v53, 1  ;;  %v24056_v6 = vld [vmem:[%s32007_s1 + $0xf4] ss:$8 sps:$4 sm:$0xff]   ;;  %v25649_v8 = vld [vmem:[%s32008_s0 + $0x64] ss:$8 sps:$4 sm:$0xff]   ;;  %v9147_v12 = vrot.slane %v20838_v4, 1 }
  0x18   :  { %9656 = vmatpush1.bf16.msra.mxu0 %v24001_v23  ;;  %887 = vmatprep.subr.bf16.mxu1 %v24002_v24  ;;  %v24058_v7 = vld [vmem:[%s32007_s1 + $0x4f4] ss:$8 sps:$4 sm:$0xff]   ;;  %v24060_v9 = vld [vmem:[%s32007_s1 + $0xf0] ss:$8 sps:$4 sm:$0xff]   ;;  %v24070_v11 = vld [vmem:[%s32007_s1 + $0x104] ss:$8 sps:$4 sm:$0xff]  }
  0x19   :  { %9657 = vmatprep.subr.bf16.mxu0 %v24004_v25  ;;  %v9152_v61 = vsel %vm2291_vm0, %v9150_v56, %v9151_v57  ;;  %v24061_v10 = vld [vmem:[%s32007_s1 + $0x4f0] ss:$8 sps:$4 sm:$0xff]   ;;  %v9148_v13 = vrot.slane %v25638_v5, 1  ;;  %v24081_v14 = vld [vmem:[%s32007_s1 + $0x504] ss:$8 sps:$4 sm:$0xff]   ;;  %v9155_v17 = vrot.slane %v25649_v8, 1 }
  0x1a   :  { %9677 = vmatprep.mubr.bf16.mxu0 %v9152_v61  ;;  %v24062_v15 = vld [vmem:[%s32008_s0] ss:$8 sps:$4 sm:$0xff]   ;;  %v24073_v18 = vld [vmem:[%s32008_s0 + $0x14] ss:$8 sps:$4 sm:$0xff]   ;;  %v25804_v4 = vld [vmem:[%s32008_s0 + $0xa4] ss:$8 sps:$4 sm:$0xff]  }
  0x1b   :  { %888 = vmatpush1.bf16.msra.mxu1 %v24006_v26  ;;  %v24068_v16 = vld [vmem:[%s32007_s1 + $0x100] ss:$8 sps:$4 sm:$0xff]   ;;  %v9149_v20 = vsel %vm2291_vm0, %v9147_v12, %v9148_v13  ;;  %v25686_v22 = vld [vmem:[%s32008_s0 + $0x74] ss:$8 sps:$4 sm:$0xff]   ;;  %v9156_v23 = vsel %vm2291_vm0, %v9151_v57, %v9155_v17  ;;  %v9171_v12 = vrot.slane %v25804_v4, 1 }
  0x1c   :  { %9658 = vmatpush1.bf16.msra.mxu0 %v24007_v27  ;;  %889 = vmatprep.subr.bf16.mxu1 %v24008_v28  ;;  %v25677_v19 = vld [vmem:[%s32008_s0 + $0x60] ss:$8 sps:$4 sm:$0xff]   ;;  %v24090_v24 = vld [vmem:[%s32007_s1 + $0x514] ss:$8 sps:$4 sm:$0xff]   ;;  %v24088_v27 = vld [vmem:[%s32007_s1 + $0x510] ss:$8 sps:$4 sm:$0xff]  }
  0x1d   :  { %9659 = vmatprep.subr.bf16.mxu0 %v24010_v29  ;;  %v24079_v21 = vld [vmem:[%s32007_s1 + $0x500] ss:$8 sps:$4 sm:$0xff]   ;;  %v24099_v25 = vld [vmem:[%s32007_s1 + $0x114] ss:$8 sps:$4 sm:$0xff]   ;;  %v9153_v26 = vrot.slane %v25677_v19, 1 }
  0x1e   :  { %v24097_v28 = vld [vmem:[%s32007_s1 + $0x110] ss:$8 sps:$4 sm:$0xff]   ;;  %v25765_v51 = vld [vmem:[%s32008_s0 + $0x94] ss:$8 sps:$4 sm:$0xff]   ;;  %v19_v57 = vld [vmem:[%s32008_s0 + $0x40] sm:$0xff] }
  0x1f   :  { %890 = vmatpush1.bf16.msra.mxu1 %v24012_v30  ;;  %v24077_v29 = vld [vmem:[%s32008_s0 + $0x10] ss:$8 sps:$4 sm:$0xff]   ;;  %v9159_v30 = vrot.slane %v25686_v22, 1  ;;  %v24134_v56 = vld [vmem:[%s32007_s1 + $0x554] ss:$8 sps:$4 sm:$0xff]  }
  0x20   :  { %9660 = vmatpush1.bf16.msra.mxu0 %v24013_v31  ;;  %891 = vmatprep.subr.bf16.mxu1 %v24014_v32  ;;  %v24121_v31 = vld [vmem:[%s32007_s1 + $0x124] ss:$8 sps:$4 sm:$0xff]   ;;  %v24158_v61 = vld [vmem:[%s32007_s1 + $0x140] ss:$8 sps:$4 sm:$0xff]  }
  0x21   :  { %9661 = vmatprep.subr.bf16.mxu0 %v24016_v33  ;;  %v24082_v32 = vld [vmem:[%s32008_s0 + $0x24] ss:$8 sps:$4 sm:$0xff]  }
  0x22   :  { %v24107_v33 = vld [vmem:[%s32007_s1 + $0x524] ss:$8 sps:$4 sm:$0xff]  }
  0x23   :  { %892 = vmatpush1.bf16.msra.mxu1 %v24018_v34  ;;  %v25718_v34 = vld [vmem:[%s32008_s0 + $0x70] ss:$8 sps:$4 sm:$0xff]  }
  0x24   :  { %9662 = vmatpush1.bf16.msra.mxu0 %v24019_v35  ;;  %893 = vmatprep.subr.bf16.mxu1 %v24020_v36  ;;  %v25723_v35 = vld [vmem:[%s32008_s0 + $0x84] ss:$8 sps:$4 sm:$0xff]   ;;  %v9154_v36 = vsel %vm2291_vm0, %v9148_v13, %v9153_v26 }
  0x25   :  { %9663 = vmatprep.subr.bf16.mxu0 %v24022_v37  ;;  %v24105_v37 = vld [vmem:[%s32007_s1 + $0x520] ss:$8 sps:$4 sm:$0xff]   ;;  %v24167_v13 = vld [vmem:[%s32007_s1 + $0x584] ss:$8 sps:$4 sm:$0xff]  }
  0x27   :  { %894 = vmatpush1.bf16.msra.mxu1 %v24024_v38  ;;  %v9160_v38 = vsel %vm2291_vm0, %v9155_v17, %v9159_v30  ;;  %v25831_v17 = vld [vmem:[%s32008_s0 + $0xa0] ss:$8 sps:$4 sm:$0xff]  }
  0x28   :  { %9664 = vmatpush1.bf16.msra.mxu0 %v24025_v39  ;;  %895 = vmatprep.subr.bf16.mxu1 %v24026_v40  ;;  %v24119_v39 = vld [vmem:[%s32007_s1 + $0x120] ss:$8 sps:$4 sm:$0xff]   ;;  %v24116_v40 = vld [vmem:[%s32007_s1 + $0x534] ss:$8 sps:$4 sm:$0xff]  }
  0x29   :  { %9665 = vmatprep.subr.bf16.mxu0 %v24028_v41  ;;  %v24114_v41 = vld [vmem:[%s32007_s1 + $0x530] ss:$8 sps:$4 sm:$0xff]  }
  0x2b   :  { %896 = vmatpush1.bf16.msra.mxu1 %v24030_v42  ;;  %v9157_v42 = vrot.slane %v25718_v34, 1 }
  0x2c   :  { %9666 = vmatpush1.bf16.msra.mxu0 %v24031_v43  ;;  %897 = vmatprep.subr.bf16.mxu1 %v24032_v44  ;;  %v24138_v43 = vld [vmem:[%s32007_s1 + $0x130] ss:$8 sps:$4 sm:$0xff]   ;;  %v9163_v44 = vrot.slane %v25723_v35, 1 }
  0x2d   :  { %9667 = vmatprep.subr.bf16.mxu0 %v24034_v45  ;;  %v24140_v45 = vld [vmem:[%s32007_s1 + $0x134] ss:$8 sps:$4 sm:$0xff]   ;;  %v9158_v50 = vsel %vm2291_vm0, %v9153_v26, %v9157_v42  ;;  %v24171_v26 = vld [vmem:[%s32007_s1 + $0x590] ss:$8 sps:$4 sm:$0xff]  }
  0x2e   :  { %v9164_v53 = vsel %vm2291_vm0, %v9159_v30, %v9163_v44 }
  0x2f   :  { %898 = vmatpush1.bf16.msra.mxu1 %v24036_v46  ;;  %v24086_v46 = vld [vmem:[%s32008_s0 + $0x20] ss:$8 sps:$4 sm:$0xff]  }
  0x30   :  { %9668 = vmatpush1.bf16.msra.mxu0 %v24037_v47  ;;  %899 = vmatprep.subr.bf16.mxu1 %v24038_v48  ;;  %v24128_v47 = vld [vmem:[%s32007_s1 + $0x544] ss:$8 sps:$4 sm:$0xff]   ;;  %v24091_v48 = vld [vmem:[%s32008_s0 + $0x34] ss:$8 sps:$4 sm:$0xff]  }
  0x31   :  { %9669 = vmatprep.subr.bf16.mxu0 %v24040_v49  ;;  %v25759_v49 = vld [vmem:[%s32008_s0 + $0x80] ss:$8 sps:$4 sm:$0xff]  }
  0x33   :  { %900 = vmatpush1.bf16.msra.mxu1 %v24042_v55  ;;  %v24126_v55 = vld [vmem:[%s32007_s1 + $0x540] ss:$8 sps:$4 sm:$0xff]  }
  0x34   :  { %9670 = vmatpush1.bf16.msra.mxu0 %v24043_v58  ;;  %901 = vmatprep.subr.bf16.mxu1 %v24044_v59  ;;  %v9161_v58 = vrot.slane %v25759_v49, 1  ;;  %v24132_v59 = vld [vmem:[%s32007_s1 + $0x550] ss:$8 sps:$4 sm:$0xff]  }
  0x35   :  { %9671 = vmatprep.subr.bf16.mxu0 %v24046_v60  ;;  %v9167_v60 = vrot.slane %v25765_v51, 1 }
  0x37   :  { %902 = vmatpush1.bf16.msra.mxu1 %v24048_v62  ;;  %v24146_v62 = vld [vmem:[%s32007_s1 + $0x564] ss:$8 sps:$4 sm:$0xff]  }
  0x38   :  { %9672 = vmatpush1.bf16.msra.mxu0 %v24049_v63  ;;  %903 = vmatprep.subr.bf16.mxu1 %v24050_v0  ;;  %v24160_v63 = vld [vmem:[%s32007_s1 + $0x144] ss:$8 sps:$4 sm:$0xff]   ;;  %v24095_v0 = vld [vmem:[%s32008_s0 + $0x30] ss:$8 sps:$4 sm:$0xff]  }
  0x39   :  { %9673 = vmatprep.subr.bf16.mxu0 %v24052_v1  ;;  %v25797_v1 = vld [vmem:[%s32008_s0 + $0x90] ss:$8 sps:$4 sm:$0xff]  }
  0x3b   :  { %904 = vmatpush1.bf16.msra.mxu1 %v24054_v2  ;;  %v9162_v2 = vsel %vm2291_vm0, %v9157_v42, %v9161_v58  ;;  %v24204_v42 = vld [vmem:[%s32007_s1 + $0x5c0] ss:$8 sps:$4 sm:$0xff]  }
  0x3c   :  { %9674 = vmatpush1.bf16.msra.mxu0 %v24055_v3  ;;  %905 = vmatprep.subr.bf16.mxu1 %v24056_v6  ;;  %v20139_v3 = vcombine.high %v19_v57, %v25594_v52  ;;  %v9168_v6 = vsel %vm2291_vm0, %v9163_v44, %v9167_v60 }
  0x3d   :  { %9675 = vmatprep.subr.bf16.mxu0 %v24058_v7  ;;  %v24144_v7 = vld [vmem:[%s32007_s1 + $0x560] ss:$8 sps:$4 sm:$0xff]  }
  0x3f   :  { %906 = vmatpush1.bf16.msra.mxu1 %v24060_v9  ;;  %v24155_v9 = vld [vmem:[%s32007_s1 + $0x574] ss:$8 sps:$4 sm:$0xff]  }
  0x40   :  { %9676 = vmatpush1.bf16.msra.mxu0 %v24061_v10  ;;  %2790 = vmatprep.subr.bf16.mxu1 %v24070_v11  ;;  %v9165_v10 = vrot.slane %v25797_v1, 1  ;;  %v24153_v11 = vld [vmem:[%s32007_s1 + $0x570] ss:$8 sps:$4 sm:$0xff]  }
  0x41   :  { %12007 = vmatprep.subr.bf16.mxu0 %v24081_v14  ;;  %v24177_v14 = vld [vmem:[%s32007_s1 + $0x150] ss:$8 sps:$4 sm:$0xff]  }
  0x42   :  { %908 = vmatmul.mubr.bf16.vlgmr.msra.gmra.mrb[0].mxu1 %v24062_v15  ;;  %v24179_v15 = vld [vmem:[%s32007_s1 + $0x154] ss:$8 sps:$4 sm:$0xff]  }
  0x43   :  { %9678 = vmatmul.mubr.bf16.vlgmr.msra.gmra.mrb[0].mxu0 %v9149_v20  ;;  %2791 = vmatpush1.bf16.msra.mxu1 %v24068_v16  ;;  %v20138_v16 = vcombine.low %v19_v57, %v25594_v52  ;;  %v25837_v20 = vld [vmem:[%s32008_s0 + $0xb4] ss:$8 sps:$4 sm:$0xff]   ;;  %v24165_v52 = vld [vmem:[%s32007_s1 + $0x580] ss:$8 sps:$4 sm:$0xff]  }
  0x44   :  { %917 = vmatprep.mubr.bf16.mxu1 %v24073_v18  ;;  %9687 = vmatprep.mubr.bf16.mxu0 %v9156_v23  ;;  %v9166_v18 = vsel %vm2291_vm0, %v9161_v58, %v9165_v10  ;;  %v24173_v23 = vld [vmem:[%s32007_s1 + $0x594] ss:$8 sps:$4 sm:$0xff]   ;;  %v24216_v58 = vld [vmem:[%s32007_s1 + $0x170] ss:$8 sps:$4 sm:$0xff]  }
  0x45   :  { %12008 = vmatpush1.bf16.msra.mxu0 %v24079_v21  ;;  %2792 = vmatprep.subr.bf16.mxu1 %v24099_v25  ;;  %v9172_v21 = vsel %vm2291_vm0, %v9167_v60, %v9171_v12  ;;  %v9175_v25 = vrot.slane %v25837_v20, 1 }
  0x46   :  { %12009 = vmatprep.subr.bf16.mxu0 %v24090_v24  ;;  %v9169_v24 = vrot.slane %v25831_v17, 1 }
  0x47   :  { %2793 = vmatpush1.bf16.msra.mxu1 %v24097_v28  ;;  %v25863_v28 = vld [vmem:[%s32008_s0 + $0xc4] ss:$8 sps:$4 sm:$0xff]  }
  0x48   :  { %2794 = vmatprep.subr.bf16.mxu1 %v24121_v31  ;;  %v9170_v30 = vsel %vm2291_vm0, %v9165_v10, %v9169_v24  ;;  %v24194_v31 = vld [vmem:[%s32007_s1 + $0x5b4] ss:$8 sps:$4 sm:$0xff]  }
  0x49   :  { %12010 = vmatpush1.bf16.msra.mxu0 %v24088_v27  ;;  %v25855_v27 = vld [vmem:[%s32008_s0 + $0xb0] ss:$8 sps:$4 sm:$0xff]  }
  0x4a   :  { %12011 = vmatprep.subr.bf16.mxu0 %v24107_v33  ;;  %918 = vmatmul.mubr.bf16.gmra.mrb[4].mxu1 %v24077_v29  ;;  %v24183_v29 = vld [vmem:[%s32007_s1 + $0x5a0] ss:$8 sps:$4 sm:$0xff]  }
  0x4b   :  { %9688 = vmatmul.mubr.bf16.gmra.mrb[4].mxu0 %v9154_v36  ;;  %927 = vmatprep.mubr.bf16.mxu1 %v24082_v32  ;;  %v9176_v32 = vsel %vm2291_vm0, %v9171_v12, %v9175_v25  ;;  %v24197_v33 = vld [vmem:[%s32007_s1 + $0x160] ss:$8 sps:$4 sm:$0xff]   ;;  %v24199_v36 = vld [vmem:[%s32007_s1 + $0x164] ss:$8 sps:$4 sm:$0xff]   ;;  %v25993_v12 = vld [vmem:[%s32008_s0 + $0x110] ss:$8 sps:$4 sm:$0xff]  }
  0x4c   :  { %9697 = vmatprep.mubr.bf16.mxu0 %v9160_v38  ;;  %2795 = vmatpush1.bf16.msra.mxu1 %v24119_v39  ;;  %v24192_v38 = vld [vmem:[%s32007_s1 + $0x5b0] ss:$8 sps:$4 sm:$0xff]   ;;  %v25889_v39 = vld [vmem:[%s32008_s0 + $0xc0] ss:$8 sps:$4 sm:$0xff]  }
  0x4d   :  { %12012 = vmatpush1.bf16.msra.mxu0 %v24105_v37  ;;  %2796 = vmatprep.subr.bf16.mxu1 %v24140_v45  ;;  %v9173_v37 = vrot.slane %v25855_v27, 1  ;;  %v9177_v44 = vrot.slane %v25889_v39, 1 }
  0x4e   :  { %12013 = vmatprep.subr.bf16.mxu0 %v24116_v40 }
  0x4f   :  { %v9174_v40 = vsel %vm2291_vm0, %v9169_v24, %v9173_v37 }
  0x50   :  { %2797 = vmatpush1.bf16.msra.mxu1 %v24138_v43  ;;  %v24206_v43 = vld [vmem:[%s32007_s1 + $0x5c4] ss:$8 sps:$4 sm:$0xff]  }
  0x51   :  { %12014 = vmatpush1.bf16.msra.mxu0 %v24114_v41  ;;  %2798 = vmatprep.subr.bf16.mxu1 %v24160_v63 }
  0x52   :  { %12015 = vmatprep.subr.bf16.mxu0 %v24128_v47  ;;  %928 = vmatmul.mubr.bf16.gmra.mrb[8].mxu1 %v24086_v46  ;;  %v25916_v46 = vld [vmem:[%s32008_s0 + $0xe4] ss:$8 sps:$4 sm:$0xff]   ;;  %v9178_v47 = vsel %vm2291_vm0, %v9173_v37, %v9177_v44  ;;  %v26056_v37 = vld [vmem:[%s32008_s0 + $0x140] ss:$8 sps:$4 sm:$0xff]  }
  0x53   :  { %9698 = vmatmul.mubr.bf16.gmra.mrb[8].mxu0 %v9158_v50  ;;  %937 = vmatprep.mubr.bf16.mxu1 %v24091_v48  ;;  %v24210_v48 = vld [vmem:[%s32007_s1 + $0x5d0] ss:$8 sps:$4 sm:$0xff]   ;;  %v24212_v50 = vld [vmem:[%s32007_s1 + $0x5d4] ss:$8 sps:$4 sm:$0xff]  }
  0x54   :  { %9707 = vmatprep.mubr.bf16.mxu0 %v9164_v53  ;;  %2799 = vmatpush1.bf16.msra.mxu1 %v24158_v61 }
  0x55   :  { %12016 = vmatpush1.bf16.msra.mxu0 %v24126_v55  ;;  %2800 = vmatprep.subr.bf16.mxu1 %v24179_v15  ;;  %v9187_v55 = vrot.slane %v25916_v46, 1 }
  0x56   :  { %12017 = vmatprep.subr.bf16.mxu0 %v24134_v56  ;;  %v25938_v56 = vld [vmem:[%s32008_s0 + $0xf4] ss:$8 sps:$4 sm:$0xff]  }
  0x57   :  { %v9191_v61 = vrot.slane %v25938_v56, 1 }
  0x58   :  { %2801 = vmatpush1.bf16.msra.mxu1 %v24177_v14 }
  0x59   :  { %12018 = vmatpush1.bf16.msra.mxu0 %v24132_v59  ;;  %2802 = vmatprep.subr.bf16.mxu1 %v24199_v36  ;;  %v24218_v59 = vld [vmem:[%s32007_s1 + $0x174] ss:$8 sps:$4 sm:$0xff]  }
  0x5a   :  { %12019 = vmatprep.subr.bf16.mxu0 %v24146_v62  ;;  %938 = vmatmul.mubr.bf16.gmra.mrb[12].mxu1 %v24095_v0  ;;  %v25960_v62 = vld [vmem:[%s32008_s0 + $0x104] ss:$8 sps:$4 sm:$0xff]   ;;  %v24222_v0 = vld [vmem:[%s32007_s1 + $0x5e0] ss:$8 sps:$4 sm:$0xff]  }
  0x5b   :  { %9708 = vmatmul.mubr.bf16.gmra.mrb[12].mxu0 %v9162_v2  ;;  %947 = vmatprep.mubr.bf16.mxu1 %v20139_v3  ;;  %v24224_v2 = vld [vmem:[%s32007_s1 + $0x5e4] ss:$8 sps:$4 sm:$0xff]  }
  0x5c   :  { %9717 = vmatprep.mubr.bf16.mxu0 %v9168_v6  ;;  %2803 = vmatpush1.bf16.msra.mxu1 %v24197_v33  ;;  %v9195_v6 = vrot.slane %v25960_v62, 1 }
  0x5d   :  { %12020 = vmatpush1.bf16.msra.mxu0 %v24144_v7  ;;  %2804 = vmatprep.subr.bf16.mxu1 %v24218_v59  ;;  %v25982_v7 = vld [vmem:[%s32008_s0 + $0x114] ss:$8 sps:$4 sm:$0xff]  }
  0x5e   :  { %12021 = vmatprep.subr.bf16.mxu0 %v24155_v9 }
  0x60   :  { %2805 = vmatpush1.bf16.msra.mxu1 %v24216_v58 }
  0x61   :  { %12022 = vmatpush1.bf16.msra.mxu0 %v24153_v11  ;;  %v9199_v11 = vrot.slane %v25982_v7, 1 }
  0x62   :  { %12023 = vmatprep.subr.bf16.mxu0 %v24167_v13  ;;  %948 = vmatmul.mubr.bf16.gmra.mrb[16].mxu1 %v20138_v16  ;;  %v25998_v13 = vld [vmem:[%s32008_s0 + $0x124] ss:$8 sps:$4 sm:$0xff]   ;;  %v24231_v16 = vld [vmem:[%s32007_s1 + $0x5f0] ss:$8 sps:$4 sm:$0xff]  }
  0x63   :  { %9718 = vmatmul.mubr.bf16.gmra.mrb[16].mxu0 %v9166_v18  ;;  %957 = vmatprep.mubr.bf16.mxu1 %v25600_v54  ;;  %v24185_v54 = vld [vmem:[%s32007_s1 + $0x5a4] ss:$8 sps:$4 sm:$0xff]   ;;  %v9200_v15 = vsel %vm2291_vm0, %v9195_v6, %v9199_v11  ;;  %v9197_v18 = vrot.slane %v25993_v12, 1 }
  0x64   :  { %9727 = vmatprep.mubr.bf16.mxu0 %v9172_v21  ;;  %v26015_v21 = vld [vmem:[%s32008_s0 + $0x120] ss:$8 sps:$4 sm:$0xff]  }
  0x65   :  { %12024 = vmatpush1.bf16.msra.mxu0 %v24165_v52  ;;  %v26020_v52 = vld [vmem:[%s32008_s0 + $0x134] ss:$8 sps:$4 sm:$0xff]  }
  0x66   :  { %12025 = vmatprep.subr.bf16.mxu0 %v24173_v23 }
  0x69   :  { %12026 = vmatpush1.bf16.msra.mxu0 %v24171_v26  ;;  %v24242_v26 = vld [vmem:[%s32007_s1 + $0x184] ss:$8 sps:$4 sm:$0xff]  }
  0x6a   :  { %12027 = vmatprep.subr.bf16.mxu0 %v24185_v54  ;;  %958 = vmatmul.mubr.bf16.gmra.mrb[20].mxu1 %v25638_v5  ;;  %v9179_v5 = vrot.slane %v25863_v28, 1  ;;  %v9207_v54 = vrot.slane %v26020_v52, 1 }
  0x6b   :  { %9728 = vmatmul.mubr.bf16.gmra.mrb[20].mxu0 %v9170_v30  ;;  %967 = vmatprep.mubr.bf16.mxu1 %v25649_v8  ;;  %v25894_v8 = vld [vmem:[%s32008_s0 + $0xd4] ss:$8 sps:$4 sm:$0xff]  }
  0x6c   :  { %9737 = vmatprep.mubr.bf16.mxu0 %v9176_v32  ;;  %v9180_v41 = vsel %vm2291_vm0, %v9175_v25, %v9179_v5  ;;  %v9183_v45 = vrot.slane %v25894_v8, 1  ;;  %v24240_v25 = vld [vmem:[%s32007_s1 + $0x180] ss:$8 sps:$4 sm:$0xff]   ;;  %2806 = vmatprep.subr.bf16.mxu1 %v24242_v26  ;;  %v24248_v32 = vld [vmem:[%s32007_s1 + $0x604] ss:$8 sps:$4 sm:$0xff]  }
  0x6d   :  { %12028 = vmatpush1.bf16.msra.mxu0 %v24183_v29  ;;  %2807 = vmatpush1.bf16.msra.mxu1 %v24240_v25  ;;  %v26042_v29 = vld [vmem:[%s32008_s0 + $0x144] ss:$8 sps:$4 sm:$0xff]   ;;  %v26201_v25 = vld [vmem:[%s32008_s0 + $0x1d4] ss:$8 sps:$4 sm:$0xff]  }
  0x6e   :  { %12029 = vmatprep.subr.bf16.mxu0 %v24194_v31  ;;  %v9211_v36 = vrot.slane %v26042_v29, 1 }
  0x71   :  { %12030 = vmatpush1.bf16.msra.mxu0 %v24192_v38  ;;  %v26061_v38 = vld [vmem:[%s32008_s0 + $0x154] ss:$8 sps:$4 sm:$0xff]  }
  0x72   :  { %968 = vmatmul.mubr.bf16.gmra.mrb[24].mxu1 %v25677_v19  ;;  %12031 = vmatprep.subr.bf16.mxu0 %v24206_v43  ;;  %v25911_v19 = vld [vmem:[%s32008_s0 + $0xd0] ss:$8 sps:$4 sm:$0xff]  }
  0x73   :  { %9738 = vmatmul.mubr.bf16.gmra.mrb[24].mxu0 %v9174_v40  ;;  %977 = vmatprep.mubr.bf16.mxu1 %v25686_v22  ;;  %v9184_v22 = vsel %vm2291_vm0, %v9179_v5, %v9183_v45  ;;  %v9181_v53 = vrot.slane %v25911_v19, 1  ;;  %v9215_v40 = vrot.slane %v26061_v38, 1 }
  0x74   :  { %9747 = vmatprep.mubr.bf16.mxu0 %v9180_v41  ;;  %v26072_v41 = vld [vmem:[%s32008_s0 + $0x150] ss:$8 sps:$4 sm:$0xff]  }
  0x75   :  { %12032 = vmatpush1.bf16.msra.mxu0 %v24204_v42  ;;  %v9182_v57 = vsel %vm2291_vm0, %v9177_v44, %v9181_v53  ;;  %v26077_v42 = vld [vmem:[%s32008_s0 + $0x164] ss:$8 sps:$4 sm:$0xff]   ;;  %v9216_v44 = vsel %vm2291_vm0, %v9211_v36, %v9215_v40 }
  0x76   :  { %12033 = vmatprep.subr.bf16.mxu0 %v24212_v50 }
  0x79   :  { %12034 = vmatpush1.bf16.msra.mxu0 %v24210_v48  ;;  %v26099_v48 = vld [vmem:[%s32008_s0 + $0x174] ss:$8 sps:$4 sm:$0xff]  }
  0x7a   :  { %978 = vmatmul.mubr.bf16.gmra.mrb[28].mxu1 %v25718_v34  ;;  %v25933_v34 = vld [vmem:[%s32008_s0 + $0xe0] ss:$8 sps:$4 sm:$0xff]   ;;  %12035 = vmatprep.subr.bf16.mxu0 %v24224_v2  ;;  %v26142_v2 = vld [vmem:[%s32008_s0 + $0x190] ss:$8 sps:$4 sm:$0xff]  }
  0x7b   :  { %9748 = vmatmul.mubr.bf16.gmra.mrb[28].mxu0 %v9178_v47  ;;  %987 = vmatprep.mubr.bf16.mxu1 %v25723_v35  ;;  %v9188_v35 = vsel %vm2291_vm0, %v9183_v45, %v9187_v55  ;;  %v9185_v60 = vrot.slane %v25933_v34, 1  ;;  %v24255_v45 = vld [vmem:[%s32007_s1 + $0x190] ss:$8 sps:$4 sm:$0xff]   ;;  %v9219_v47 = vrot.slane %v26077_v42, 1 }
  0x7c   :  { %9757 = vmatprep.mubr.bf16.mxu0 %v9184_v22  ;;  %v26094_v22 = vld [vmem:[%s32008_s0 + $0x160] ss:$8 sps:$4 sm:$0xff]  }
  0x7d   :  { %v9186_v63 = vsel %vm2291_vm0, %v9181_v53, %v9185_v60  ;;  %12036 = vmatpush1.bf16.msra.mxu0 %v24222_v0  ;;  %v9220_v53 = vsel %vm2291_vm0, %v9215_v40, %v9219_v47 }
  0x82   :  { %988 = vmatmul.mubr.bf16.gmra.mrb[32].mxu1 %v25759_v49  ;;  %v25955_v49 = vld [vmem:[%s32008_s0 + $0xf0] ss:$8 sps:$4 sm:$0xff]  }
  0x83   :  { %9758 = vmatmul.mubr.bf16.gmra.mrb[32].mxu0 %v9182_v57  ;;  %997 = vmatprep.mubr.bf16.mxu1 %v25765_v51  ;;  %v9192_v51 = vsel %vm2291_vm0, %v9187_v55, %v9191_v61  ;;  %v9189_v3 = vrot.slane %v25955_v49, 1  ;;  %v9217_v55 = vrot.slane %v26094_v22, 1  ;;  %v26115_v57 = vld [vmem:[%s32008_s0 + $0x184] ss:$8 sps:$4 sm:$0xff]  }
  0x84   :  { %9767 = vmatprep.mubr.bf16.mxu0 %v9188_v35 }
  0x85   :  { %v9190_v9 = vsel %vm2291_vm0, %v9185_v60, %v9189_v3  ;;  %v9227_v60 = vrot.slane %v26115_v57, 1 }
  0x8a   :  { %998 = vmatmul.mubr.bf16.gmra.mrb[36].mxu1 %v25797_v1  ;;  %v25977_v1 = vld [vmem:[%s32008_s0 + $0x100] ss:$8 sps:$4 sm:$0xff]  }
  0x8b   :  { %9768 = vmatmul.mubr.bf16.gmra.mrb[36].mxu0 %v9186_v63  ;;  %1007 = vmatprep.mubr.bf16.mxu1 %v25804_v4  ;;  %v9196_v4 = vsel %vm2291_vm0, %v9191_v61, %v9195_v6  ;;  %v9193_v10 = vrot.slane %v25977_v1, 1  ;;  %v26126_v61 = vld [vmem:[%s32008_s0 + $0x180] ss:$8 sps:$4 sm:$0xff]  }
  0x8c   :  { %9777 = vmatprep.mubr.bf16.mxu0 %v9192_v51  ;;  %v9225_v51 = vrot.slane %v26126_v61, 1 }
  0x8d   :  { %v9194_v14 = vsel %vm2291_vm0, %v9189_v3, %v9193_v10  ;;  %v9198_v23 = vsel %vm2291_vm0, %v9193_v10, %v9197_v18  ;;  %v26147_v3 = vld [vmem:[%s32008_s0 + $0x1a4] ss:$8 sps:$4 sm:$0xff]  }
  0x8e   :  { %v9235_v10 = vrot.slane %v26147_v3, 1 }
  0x92   :  { %1008 = vmatmul.mubr.bf16.gmra.mrb[40].mxu1 %v25831_v17  ;;  %v24233_v17 = vld [vmem:[%s32007_s1 + $0x5f4] ss:$8 sps:$4 sm:$0xff]  }
  0x93   :  { %9778 = vmatmul.mubr.bf16.gmra.mrb[40].mxu0 %v9190_v9  ;;  %1017 = vmatprep.mubr.bf16.mxu1 %v25837_v20  ;;  %v9203_v20 = vrot.slane %v25998_v13, 1  ;;  %v24283_v9 = vld [vmem:[%s32007_s1 + $0x1a4] ss:$8 sps:$4 sm:$0xff]  }
  0x94   :  { %9787 = vmatprep.mubr.bf16.mxu0 %v9196_v4  ;;  %12037 = vmatprep.subr.bf16.mxu0 %v24233_v17  ;;  %v9229_v4 = vrot.slane %v26142_v2, 1  ;;  %v26180_v17 = vld [vmem:[%s32008_s0 + $0x1b0] ss:$8 sps:$4 sm:$0xff]  }
  0x95   :  { %12038 = vmatpush1.bf16.msra.mxu0 %v24231_v16  ;;  %v9204_v24 = vsel %vm2291_vm0, %v9199_v11, %v9203_v20  ;;  %v9208_v31 = vsel %vm2291_vm0, %v9203_v20, %v9207_v54  ;;  %v26164_v11 = vld [vmem:[%s32008_s0 + $0x1a0] ss:$8 sps:$4 sm:$0xff]  }
  0x96   :  { %14137 = vmatprep.subr.bf16.mxu0 %v24248_v32  ;;  %v26223_v32 = vld [vmem:[%s32008_s0 + $0x1e4] ss:$8 sps:$4 sm:$0xff]  }
  0x9a   :  { %1018 = vmatmul.mubr.bf16.gmra.mrb[44].mxu1 %v25855_v27  ;;  %v9201_v27 = vrot.slane %v26015_v21, 1 }
  0x9b   :  { %9788 = vmatmul.mubr.bf16.gmra.mrb[44].mxu0 %v9194_v14  ;;  %1027 = vmatprep.mubr.bf16.mxu1 %v25863_v28  ;;  %v26037_v28 = vld [vmem:[%s32008_s0 + $0x130] ss:$8 sps:$4 sm:$0xff]  }
  0x9c   :  { %9797 = vmatprep.mubr.bf16.mxu0 %v9200_v15  ;;  %v9202_v30 = vsel %vm2291_vm0, %v9197_v18, %v9201_v27  ;;  %v9205_v33 = vrot.slane %v26037_v28, 1  ;;  %v9233_v15 = vrot.slane %v26164_v11, 1  ;;  %v26185_v18 = vld [vmem:[%s32008_s0 + $0x1c4] ss:$8 sps:$4 sm:$0xff]  }
  0x9e   :  { %v9206_v5 = vsel %vm2291_vm0, %v9201_v27, %v9205_v33  ;;  %v9234_v20 = vsel %vm2291_vm0, %v9229_v4, %v9233_v15 }
  0xa2   :  { %1028 = vmatmul.mubr.bf16.gmra.mrb[48].mxu1 %v25889_v39  ;;  %v9212_v39 = vsel %vm2291_vm0, %v9207_v54, %v9211_v36  ;;  %v24306_v54 = vld [vmem:[%s32007_s1 + $0x1b0] ss:$8 sps:$4 sm:$0xff]  }
  0xa3   :  { %9798 = vmatmul.mubr.bf16.gmra.mrb[48].mxu0 %v9198_v23  ;;  %1037 = vmatprep.mubr.bf16.mxu1 %v25894_v8  ;;  %v9209_v8 = vrot.slane %v26056_v37, 1  ;;  %v9243_v23 = vrot.slane %v26185_v18, 1 }
  0xa4   :  { %9807 = vmatprep.mubr.bf16.mxu0 %v9204_v24  ;;  %v26196_v24 = vld [vmem:[%s32008_s0 + $0x1c0] ss:$8 sps:$4 sm:$0xff]  }
  0xa5   :  { %v9210_v43 = vsel %vm2291_vm0, %v9205_v33, %v9209_v8 }
  0xaa   :  { %1038 = vmatmul.mubr.bf16.gmra.mrb[52].mxu1 %v25911_v19  ;;  %v24257_v19 = vld [vmem:[%s32007_s1 + $0x194] ss:$8 sps:$4 sm:$0xff]  }
  0xab   :  { %9808 = vmatmul.mubr.bf16.gmra.mrb[52].mxu0 %v9202_v30  ;;  %1047 = vmatprep.mubr.bf16.mxu1 %v25916_v46  ;;  %v9213_v46 = vrot.slane %v26072_v41, 1  ;;  %v9247_v30 = vrot.slane %v26201_v25, 1 }
  0xac   :  { %9817 = vmatprep.mubr.bf16.mxu0 %v9208_v31  ;;  %2808 = vmatprep.subr.bf16.mxu1 %v24257_v19  ;;  %v26218_v31 = vld [vmem:[%s32008_s0 + $0x1d0] ss:$8 sps:$4 sm:$0xff]  }
  0xad   :  { %2809 = vmatpush1.bf16.msra.mxu1 %v24255_v45  ;;  %v9214_v50 = vsel %vm2291_vm0, %v9209_v8, %v9213_v46  ;;  %v9218_v35 = vsel %vm2291_vm0, %v9213_v46, %v9217_v55  ;;  %v9248_v36 = vsel %vm2291_vm0, %v9243_v23, %v9247_v30 }
  0xae   :  { %2810 = vmatprep.subr.bf16.mxu1 %v24283_v9 }
  0xb2   :  { %1048 = vmatmul.mubr.bf16.gmra.mrb[56].mxu1 %v25933_v34  ;;  %v9223_v34 = vrot.slane %v26099_v48, 1 }
  0xb3   :  { %9818 = vmatmul.mubr.bf16.gmra.mrb[56].mxu0 %v9206_v5  ;;  %1057 = vmatprep.mubr.bf16.mxu1 %v25938_v56  ;;  %v26110_v56 = vld [vmem:[%s32008_s0 + $0x170] ss:$8 sps:$4 sm:$0xff]   ;;  %v26234_v5 = vld [vmem:[%s32008_s0 + $0x1e0] ss:$8 sps:$4 sm:$0xff]  }
  0xb4   :  { %9827 = vmatprep.mubr.bf16.mxu0 %v9212_v39  ;;  %v9224_v58 = vsel %vm2291_vm0, %v9219_v47, %v9223_v34  ;;  %v9221_v59 = vrot.slane %v26110_v56, 1  ;;  %v9228_v63 = vsel %vm2291_vm0, %v9223_v34, %v9227_v60  ;;  %v26239_v39 = vld [vmem:[%s32008_s0 + $0x1f4] ss:$8 sps:$4 sm:$0xff]   ;;  %v24335_v34 = vld [vmem:[%s32007_s1 + $0x1c0] ss:$8 sps:$4 sm:$0xff]  }
  0xb6   :  { %v9226_v6 = vsel %vm2291_vm0, %v9221_v59, %v9225_v51 }
  0xba   :  { %1058 = vmatmul.mubr.bf16.gmra.mrb[60].mxu1 %v25955_v49  ;;  %v26131_v49 = vld [vmem:[%s32008_s0 + $0x194] ss:$8 sps:$4 sm:$0xff]  }
  0xbb   :  { %9828 = vmatmul.mubr.bf16.gmra.mrb[60].mxu0 %v9210_v43  ;;  %1067 = vmatprep.mubr.bf16.mxu1 %v25960_v62  ;;  %v9222_v62 = vsel %vm2291_vm0, %v9217_v55, %v9221_v59  ;;  %v9231_v0 = vrot.slane %v26131_v49, 1  ;;  %v26250_v43 = vld [vmem:[%s32008_s0 + $0x1f0] ss:$8 sps:$4 sm:$0xff]   ;;  %v24234_v59 = vld [vmem:[%s32008_s0 + $0x40] ss:$8 sps:$4 sm:$0xfc]  }
  0xbc   :  { %9837 = vmatprep.mubr.bf16.mxu0 %v9216_v44  ;;  %v26255_v44 = vld [vmem:[%s32008_s0 + $0x204] ss:$8 sps:$4 sm:$0xff]   ;;  %v9253_v46 = vrot.slane %v26250_v43, 1 }
  0xbd   :  { %v9236_v14 = vsel %vm2291_vm0, %v9231_v0, %v9235_v10  ;;  %v9259_v47 = vrot.slane %v26255_v44, 1 }
  0xc2   :  { %1068 = vmatmul.mubr.bf16.gmra.mrb[64].mxu1 %v25977_v1  ;;  %v9232_v1 = vsel %vm2291_vm0, %v9227_v60, %v9231_v0  ;;  %v24237_v60 = vld [vmem:[%s32008_s0 + $0x50] ss:$8 sps:$4 sm:$0xff]  }
  0xc3   :  { %9838 = vmatmul.mubr.bf16.gmra.mrb[64].mxu0 %v9214_v50  ;;  %1077 = vmatprep.mubr.bf16.mxu1 %v25982_v7  ;;  %v24281_v7 = vld [vmem:[%s32007_s1 + $0x1a0] ss:$8 sps:$4 sm:$0xff]   ;;  %v24239_v50 = vld [vmem:[%s32008_s0 + $0x54] ss:$8 sps:$4 sm:$0xff]  }
  0xc4   :  { %9847 = vmatprep.mubr.bf16.mxu0 %v9220_v53  ;;  %2811 = vmatpush1.bf16.msra.mxu1 %v24281_v7  ;;  %v24263_v7 = vld [vmem:[%s32007_s1 + $0x614] ss:$8 sps:$4 sm:$0xff]  }
  0xca   :  { %1078 = vmatmul.mubr.bf16.gmra.mrb[68].mxu1 %v25993_v12  ;;  %v26169_v12 = vld [vmem:[%s32008_s0 + $0x1b4] ss:$8 sps:$4 sm:$0xff]  }
  0xcb   :  { %9848 = vmatmul.mubr.bf16.gmra.mrb[68].mxu0 %v9218_v35  ;;  %1087 = vmatprep.mubr.bf16.mxu1 %v25998_v13  ;;  %v9230_v13 = vsel %vm2291_vm0, %v9225_v51, %v9229_v4  ;;  %v9239_v16 = vrot.slane %v26169_v12, 1  ;;  %v11510_v51 = vrot.slane %v24237_v60, 2  ;;  %v26425_v60 = vld [vmem:[%s32008_s0 + $0x220] ss:$8 sps:$4 sm:$0xff]  }
  0xcc   :  { %9857 = vmatprep.mubr.bf16.mxu0 %v9224_v58  ;;  %v11513_v58 = vrot.slane %v24239_v50, 2  ;;  %v26404_v50 = vld [vmem:[%s32008_s0 + $0x224] ss:$8 sps:$4 sm:$0xff]  }
  0xcd   :  { %v9244_v27 = vsel %vm2291_vm0, %v9239_v16, %v9243_v23  ;;  %v24315_v23 = vld [vmem:[%s32007_s1 + $0x630] ss:$8 sps:$4 sm:$0xff]  }
  0xd2   :  { %1088 = vmatmul.mubr.bf16.gmra.mrb[72].mxu1 %v26015_v21  ;;  %v9240_v21 = vsel %vm2291_vm0, %v9235_v10, %v9239_v16  ;;  %v24261_v10 = vld [vmem:[%s32007_s1 + $0x610] ss:$8 sps:$4 sm:$0xff]  }
  0xd3   :  { %9858 = vmatmul.mubr.bf16.gmra.mrb[72].mxu0 %v9222_v62  ;;  %1097 = vmatprep.mubr.bf16.mxu1 %v26020_v52  ;;  %v9237_v52 = vrot.slane %v26180_v17, 1 }
  0xd4   :  { %9867 = vmatprep.mubr.bf16.mxu0 %v9228_v63  ;;  %v11509_v63 = vrot.slane %v24234_v59, 2 }
  0xd5   :  { %v9238_v26 = vsel %vm2291_vm0, %v9233_v15, %v9237_v52  ;;  %v24291_v15 = vld [vmem:[%s32007_s1 + $0x620] ss:$8 sps:$4 sm:$0xff]  }
  0xda   :  { %1098 = vmatmul.mubr.bf16.gmra.mrb[76].mxu1 %v26037_v28  ;;  %v24308_v28 = vld [vmem:[%s32007_s1 + $0x1b4] ss:$8 sps:$4 sm:$0xff]  }
  0xdb   :  { %9868 = vmatmul.mubr.bf16.gmra.mrb[76].mxu0 %v9226_v6  ;;  %1107 = vmatprep.mubr.bf16.mxu1 %v26042_v29  ;;  %v9241_v29 = vrot.slane %v26196_v24, 1  ;;  %v24249_v6 = vld [vmem:[%s32008_s0 + $0x74] ss:$8 sps:$4 sm:$0xff]  }
  0xdc   :  { %9877 = vmatprep.mubr.bf16.mxu0 %v9232_v1  ;;  %2812 = vmatprep.subr.bf16.mxu1 %v24308_v28  ;;  %v11511_v1 = vsel %vm4654_vm1, %v11509_v63, %v11510_v51  ;;  %v24287_v63 = vld [vmem:[%s32008_s0 + $0xd4] ss:$8 sps:$4 sm:$0xff]  }
  0xdd   :  { %2813 = vmatpush1.bf16.msra.mxu1 %v24306_v54  ;;  %v9242_v33 = vsel %vm2291_vm0, %v9237_v52, %v9241_v29  ;;  %v24345_v54 = vld [vmem:[%s32007_s1 + $0x640] ss:$8 sps:$4 sm:$0xff]  }
  0xe2   :  { %1108 = vmatmul.mubr.bf16.gmra.mrb[80].mxu1 %v26056_v37  ;;  %v9245_v37 = vrot.slane %v26218_v31, 1 }
  0xe3   :  { %9878 = vmatmul.mubr.bf16.gmra.mrb[80].mxu0 %v9230_v13  ;;  %1117 = vmatprep.mubr.bf16.mxu1 %v26061_v38  ;;  %v9251_v38 = vrot.slane %v26223_v32, 1  ;;  %v24293_v13 = vld [vmem:[%s32007_s1 + $0x624] ss:$8 sps:$4 sm:$0xff]  }
  0xe4   :  { %9887 = vmatprep.mubr.bf16.mxu0 %v9236_v14  ;;  %v9246_v8 = vsel %vm2291_vm0, %v9241_v29, %v9245_v37  ;;  %v24252_v14 = vld [vmem:[%s32008_s0 + $0x84] ss:$8 sps:$4 sm:$0xff]  }
  0xe5   :  { %v9252_v40 = vsel %vm2291_vm0, %v9247_v30, %v9251_v38  ;;  %v24371_v30 = vld [vmem:[%s32007_s1 + $0x654] ss:$8 sps:$4 sm:$0xff]  }
  0xea   :  { %1118 = vmatmul.mubr.bf16.gmra.mrb[84].mxu1 %v26072_v41  ;;  %v9249_v41 = vrot.slane %v26234_v5, 1 }
  0xeb   :  { %9888 = vmatmul.mubr.bf16.gmra.mrb[84].mxu0 %v9234_v20  ;;  %1127 = vmatprep.mubr.bf16.mxu1 %v26077_v42  ;;  %v9255_v42 = vrot.slane %v26239_v39, 1  ;;  %v24360_v20 = vld [vmem:[%s32007_s1 + $0x1d0] ss:$8 sps:$4 sm:$0xff]  }
  0xec   :  { %9897 = vmatprep.mubr.bf16.mxu0 %v9240_v21  ;;  %v9250_v45 = vsel %vm2291_vm0, %v9245_v37, %v9249_v41  ;;  %v9254_v53 = vsel %vm2291_vm0, %v9249_v41, %v9253_v46  ;;  %v24362_v21 = vld [vmem:[%s32007_s1 + $0x1d4] ss:$8 sps:$4 sm:$0xff]   ;;  %v24266_v37 = vld [vmem:[%s32008_s0 + $0xa4] ss:$8 sps:$4 sm:$0xff]   ;;  %v24269_v41 = vld [vmem:[%s32008_s0 + $0xa0] ss:$8 sps:$4 sm:$0xff]  }
  0xed   :  { %v9256_v19 = vsel %vm2291_vm0, %v9251_v38, %v9255_v42  ;;  %v9260_v55 = vsel %vm2291_vm0, %v9255_v42, %v9259_v47  ;;  %v24272_v42 = vld [vmem:[%s32008_s0 + $0xb4] ss:$8 sps:$4 sm:$0xff]  }
  0xf2   :  { %1128 = vmatmul.mubr.bf16.gmra.mrb[88].mxu1 %v26094_v22  ;;  %v26266_v22 = vld [vmem:[%s32008_s0 + $0x200] ss:$8 sps:$4 sm:$0xff]  }
  0xf3   :  { %9898 = vmatmul.mubr.bf16.gmra.mrb[88].mxu0 %v9238_v26  ;;  %1137 = vmatprep.mubr.bf16.mxu1 %v26099_v48  ;;  %v24236_v48 = vld [vmem:[%s32008_s0 + $0x44] ss:$8 sps:$4 sm:$0xfc]  }
  0xf4   :  { %9907 = vmatprep.mubr.bf16.mxu0 %v9244_v27  ;;  %v11512_v35 = vrot.slane %v24236_v48, 2  ;;  %v24347_v26 = vld [vmem:[%s32007_s1 + $0x644] ss:$8 sps:$4 sm:$0xff]   ;;  %v24258_v27 = vld [vmem:[%s32008_s0 + $0x94] ss:$8 sps:$4 sm:$0xff]   ;;  %v11537_v48 = vrot.slane %v24272_v42, 2 }
  0xf6   :  { %v11514_v62 = vsel %vm4654_vm1, %v11512_v35, %v11513_v58  ;;  %v24388_v35 = vld [vmem:[%s32007_s1 + $0x1e0] ss:$8 sps:$4 sm:$0xff]  }
  0xfa   :  { %1138 = vmatmul.mubr.bf16.gmra.mrb[92].mxu1 %v26110_v56  ;;  %v24337_v56 = vld [vmem:[%s32007_s1 + $0x1c4] ss:$8 sps:$4 sm:$0xff]  }
  0xfb   :  { %9908 = vmatmul.mubr.bf16.gmra.mrb[92].mxu0 %v9242_v33  ;;  %1147 = vmatprep.mubr.bf16.mxu1 %v26115_v57  ;;  %v9257_v57 = vrot.slane %v26266_v22, 1  ;;  %v11529_v33 = vrot.slane %v24258_v27, 2  ;;  %v26502_v27 = vld [vmem:[%s32008_s0 + $0x264] ss:$8 sps:$4 sm:$0xff]  }
  0xfc   :  { %9917 = vmatprep.mubr.bf16.mxu0 %v9248_v36  ;;  %2814 = vmatprep.subr.bf16.mxu1 %v24337_v56  ;;  %v24260_v36 = vld [vmem:[%s32008_s0 + $0x90] ss:$8 sps:$4 sm:$0xff]  }
  0xfd   :  { %2815 = vmatpush1.bf16.msra.mxu1 %v24335_v34 }
  0xfe   :  { %2816 = vmatprep.subr.bf16.mxu1 %v24362_v21 }
 0x101   :  { %2817 = vmatpush1.bf16.msra.mxu1 %v24360_v20 }
 0x102   :  { %1148 = vmatmul.mubr.bf16.gmra.mrb[96].mxu1 %v26126_v61  ;;  %v24243_v61 = vld [vmem:[%s32008_s0 + $0x64] ss:$8 sps:$4 sm:$0xff]  }
 0x103   :  { %9918 = vmatmul.mubr.bf16.gmra.mrb[96].mxu0 %v9246_v8  ;;  %1157 = vmatprep.mubr.bf16.mxu1 %v26131_v49  ;;  %v9258_v49 = vsel %vm2291_vm0, %v9253_v46, %v9257_v57  ;;  %v11517_v0 = vrot.slane %v24243_v61, 2  ;;  %v11533_v8 = vrot.slane %v24266_v37, 2  ;;  %v26399_v46 = vld [vmem:[%s32008_s0 + $0x210] ss:$8 sps:$4 sm:$0xff]  }
 0x104   :  { %9927 = vmatprep.mubr.bf16.mxu0 %v9252_v40  ;;  %v26384_v40 = vld [vmem:[%s32008_s0 + $0x214] ss:$8 sps:$4 sm:$0xff]  }
 0x105   :  { %v11518_v9 = vsel %vm4654_vm1, %v11513_v58, %v11517_v0  ;;  %v11538_v56 = vsel %vm4654_vm1, %v11533_v8, %v11537_v48  ;;  %v24390_v58 = vld [vmem:[%s32007_s1 + $0x1e4] ss:$8 sps:$4 sm:$0xff]  }
 0x106   :  { %2818 = vmatprep.subr.bf16.mxu1 %v24390_v58 }
 0x107   :  { %2819 = vmatpush1.bf16.msra.mxu1 %v24388_v35  ;;  %v26563_v35 = vld [vmem:[%s32008_s0 + $0x280] ss:$8 sps:$4 sm:$0xff]  }
 0x10a   :  { %1158 = vmatmul.mubr.bf16.gmra.mrb[100].mxu1 %v26142_v2  ;;  %v24245_v2 = vld [vmem:[%s32008_s0 + $0x60] ss:$8 sps:$4 sm:$0xff]  }
 0x10b   :  { %9928 = vmatmul.mubr.bf16.gmra.mrb[100].mxu0 %v9250_v45  ;;  %1167 = vmatprep.mubr.bf16.mxu1 %v26147_v3  ;;  %v24246_v3 = vld [vmem:[%s32007_s1 + $0x600] ss:$8 sps:$4 sm:$0xff]   ;;  %v11515_v4 = vrot.slane %v24245_v2, 2  ;;  %v11534_v45 = vsel %vm4654_vm1, %v11529_v33, %v11533_v8 }
 0x10c   :  { %9937 = vmatprep.mubr.bf16.mxu0 %v9256_v19  ;;  %v11531_v19 = vrot.slane %v24269_v41, 2  ;;  %v24398_v2 = vld [vmem:[%s32007_s1 + $0x660] ss:$8 sps:$4 sm:$0xff]  }
 0x10d   :  { %v11516_v16 = vsel %vm4654_vm1, %v11510_v51, %v11515_v4 }
 0x112   :  { %1168 = vmatmul.mubr.bf16.gmra.mrb[104].mxu1 %v26164_v11  ;;  %v11521_v11 = vrot.slane %v24249_v6, 2 }
 0x113   :  { %9938 = vmatmul.mubr.bf16.gmra.mrb[104].mxu0 %v9254_v53  ;;  %1177 = vmatprep.mubr.bf16.mxu1 %v26169_v12  ;;  %v24251_v12 = vld [vmem:[%s32008_s0 + $0x70] ss:$8 sps:$4 sm:$0xff]  }
 0x114   :  { %9947 = vmatprep.mubr.bf16.mxu0 %v9260_v55  ;;  %v11519_v52 = vrot.slane %v24251_v12, 2  ;;  %v24275_v53 = vld [vmem:[%s32008_s0 + $0xb0] ss:$8 sps:$4 sm:$0xff]   ;;  %v24278_v55 = vld [vmem:[%s32008_s0 + $0xc4] ss:$8 sps:$4 sm:$0xff]  }
 0x115   :  { %v11535_v59 = vrot.slane %v24275_v53, 2  ;;  %v11541_v61 = vrot.slane %v24278_v55, 2  ;;  %v24326_v53 = vld [vmem:[%s32008_s0 + $0x124] ss:$8 sps:$4 sm:$0xff]  }
 0x116   :  { %v11520_v28 = vsel %vm4654_vm1, %v11515_v4, %v11519_v52  ;;  %v24290_v4 = vld [vmem:[%s32008_s0 + $0xd0] ss:$8 sps:$4 sm:$0xff]   ;;  %v11565_v58 = vrot.slane %v24326_v53, 2 }
 0x117   :  { %v11536_v51 = vsel %vm4654_vm1, %v11531_v19, %v11535_v59 }
 0x11a   :  { %1178 = vmatmul.mubr.bf16.gmra.mrb[108].mxu1 %v26180_v17  ;;  %v24317_v17 = vld [vmem:[%s32007_s1 + $0x634] ss:$8 sps:$4 sm:$0xff]  }
 0x11b   :  { %9948 = vmatmul.mubr.bf16.gmra.mrb[108].mxu0 %v9258_v49  ;;  %1187 = vmatprep.mubr.bf16.mxu1 %v26185_v18  ;;  %v11522_v18 = vsel %vm4654_vm1, %v11517_v0, %v11521_v11  ;;  %v26430_v49 = vld [vmem:[%s32008_s0 + $0x234] ss:$8 sps:$4 sm:$0xff]   ;;  %v11542_v0 = vsel %vm4654_vm1, %v11537_v48, %v11541_v61  ;;  %v24323_v48 = vld [vmem:[%s32008_s0 + $0x110] ss:$8 sps:$4 sm:$0xff]  }
 0x11c   :  { %12039 = vmatprep.mubr.bf16.mxu0 %v11514_v62  ;;  %v24284_v62 = vld [vmem:[%s32008_s0 + $0xc0] ss:$8 sps:$4 sm:$0xff]  }
 0x11d   :  { %v11539_v6 = vrot.slane %v24284_v62, 2  ;;  %v24332_v62 = vld [vmem:[%s32008_s0 + $0x134] ss:$8 sps:$4 sm:$0xff]  }
 0x122   :  { %1188 = vmatmul.mubr.bf16.gmra.mrb[112].mxu1 %v26196_v24  ;;  %v11525_v24 = vrot.slane %v24252_v14, 2  ;;  %v26471_v14 = vld [vmem:[%s32008_s0 + $0x240] ss:$8 sps:$4 sm:$0xff]  }
 0x123   :  { %12040 = vmatmul.mubr.bf16.vlgmr.msra.gmra.mrb[0].mxu0 %v11511_v1  ;;  %1197 = vmatprep.mubr.bf16.mxu1 %v26201_v25  ;;  %v24254_v25 = vld [vmem:[%s32008_s0 + $0x80] ss:$8 sps:$4 sm:$0xff]   ;;  %v26451_v1 = vld [vmem:[%s32008_s0 + $0x230] ss:$8 sps:$4 sm:$0xff]  }
 0x124   :  { %12049 = vmatprep.mubr.bf16.mxu0 %v11518_v9  ;;  %14138 = vmatpush1.bf16.msra.mxu0 %v24246_v3  ;;  %v11526_v29 = vsel %vm4654_vm1, %v11521_v11, %v11525_v24  ;;  %v24400_v3 = vld [vmem:[%s32007_s1 + $0x664] ss:$8 sps:$4 sm:$0xff]   ;;  %v11540_v11 = vsel %vm4654_vm1, %v11535_v59, %v11539_v6  ;;  %v26568_v59 = vld [vmem:[%s32008_s0 + $0x294] ss:$8 sps:$4 sm:$0xff]  }
 0x125   :  { %14139 = vmatprep.subr.bf16.mxu0 %v24263_v7  ;;  %v11545_v7 = vrot.slane %v24287_v63, 2  ;;  %v26456_v9 = vld [vmem:[%s32008_s0 + $0x244] ss:$8 sps:$4 sm:$0xff]  }
 0x127   :  { %v11546_v12 = vsel %vm4654_vm1, %v11541_v61, %v11545_v7  ;;  %v24329_v61 = vld [vmem:[%s32008_s0 + $0x120] ss:$8 sps:$4 sm:$0xff]  }
 0x128   :  { %14140 = vmatpush1.bf16.msra.mxu0 %v24261_v10  ;;  %v24296_v10 = vld [vmem:[%s32008_s0 + $0xe4] ss:$8 sps:$4 sm:$0xff]  }
 0x129   :  { %14141 = vmatprep.subr.bf16.mxu0 %v24293_v13  ;;  %v11543_v13 = vrot.slane %v24290_v4, 2  ;;  %v11569_v4 = vrot.slane %v24332_v62, 2  ;;  %v24359_v62 = vld [vmem:[%s32008_s0 + $0x160] ss:$8 sps:$4 sm:$0xff]  }
 0x12a   :  { %1198 = vmatmul.mubr.bf16.gmra.mrb[116].mxu1 %v26218_v31  ;;  %v11523_v31 = vrot.slane %v24254_v25, 2  ;;  %v26497_v25 = vld [vmem:[%s32008_s0 + $0x250] ss:$8 sps:$4 sm:$0xff]  }
 0x12b   :  { %12050 = vmatmul.mubr.bf16.gmra.mrb[4].mxu0 %v11516_v16  ;;  %1207 = vmatprep.mubr.bf16.mxu1 %v26223_v32  ;;  %v24369_v32 = vld [vmem:[%s32007_s1 + $0x650] ss:$8 sps:$4 sm:$0xff]   ;;  %v26476_v16 = vld [vmem:[%s32008_s0 + $0x254] ss:$8 sps:$4 sm:$0xff]   ;;  %v11544_v20 = vsel %vm4654_vm1, %v11539_v6, %v11543_v13  ;;  %v11629_v6 = vrot.slane %v26404_v50, 2 }
 0x12c   :  { %12059 = vmatprep.mubr.bf16.mxu0 %v11522_v18  ;;  %14142 = vmatpush1.bf16.msra.mxu0 %v24291_v15  ;;  %v11524_v38 = vsel %vm4654_vm1, %v11519_v52, %v11523_v31  ;;  %v11549_v15 = vrot.slane %v24296_v10, 2  ;;  %v24302_v18 = vld [vmem:[%s32008_s0 + $0xf4] ss:$8 sps:$4 sm:$0xff]   ;;  %v24413_v52 = vld [vmem:[%s32007_s1 + $0x1f0] ss:$8 sps:$4 sm:$0xff]  }
 0x12d   :  { %14143 = vmatprep.subr.bf16.mxu0 %v24317_v17  ;;  %v24299_v17 = vld [vmem:[%s32008_s0 + $0xe0] ss:$8 sps:$4 sm:$0xff]   ;;  %v26593_v10 = vld [vmem:[%s32008_s0 + $0x2a4] ss:$8 sps:$4 sm:$0xff]  }
 0x12e   :  { %v11550_v21 = vsel %vm4654_vm1, %v11545_v7, %v11549_v15  ;;  %v26588_v7 = vld [vmem:[%s32008_s0 + $0x290] ss:$8 sps:$4 sm:$0xff]  }
 0x130   :  { %14144 = vmatpush1.bf16.msra.mxu0 %v24315_v23  ;;  %v24415_v23 = vld [vmem:[%s32007_s1 + $0x1f4] ss:$8 sps:$4 sm:$0xff]  }
 0x131   :  { %14145 = vmatprep.subr.bf16.mxu0 %v24347_v26  ;;  %v11553_v26 = vrot.slane %v24302_v18, 2  ;;  %2820 = vmatprep.subr.bf16.mxu1 %v24415_v23  ;;  %v11570_v18 = vsel %vm4654_vm1, %v11565_v58, %v11569_v4  ;;  %v11633_v23 = vrot.slane %v26430_v49, 2 }
 0x132   :  { %1208 = vmatmul.mubr.bf16.gmra.mrb[120].mxu1 %v26234_v5  ;;  %v11530_v5 = vsel %vm4654_vm1, %v11525_v24, %v11529_v33  ;;  %v11547_v24 = vrot.slane %v24299_v17, 2  ;;  %v11627_v17 = vrot.slane %v26425_v60, 2 }
 0x133   :  { %12060 = vmatmul.mubr.bf16.gmra.mrb[8].mxu0 %v11520_v28  ;;  %1217 = vmatprep.mubr.bf16.mxu1 %v26239_v39  ;;  %v11527_v39 = vrot.slane %v24260_v36, 2  ;;  %v24311_v28 = vld [vmem:[%s32008_s0 + $0x104] ss:$8 sps:$4 sm:$0xff]   ;;  %v26523_v36 = vld [vmem:[%s32008_s0 + $0x260] ss:$8 sps:$4 sm:$0xff]  }
 0x134   :  { %12069 = vmatprep.mubr.bf16.mxu0 %v11526_v29  ;;  %14146 = vmatpush1.bf16.msra.mxu0 %v24345_v54  ;;  %v24305_v54 = vld [vmem:[%s32008_s0 + $0xf0] ss:$8 sps:$4 sm:$0xff]   ;;  %v11548_v29 = vsel %vm4654_vm1, %v11543_v13, %v11547_v24  ;;  %v11557_v37 = vrot.slane %v24311_v28, 2  ;;  %v24344_v28 = vld [vmem:[%s32008_s0 + $0x140] ss:$8 sps:$4 sm:$0xff]  }
 0x135   :  { %14147 = vmatprep.subr.bf16.mxu0 %v24371_v30  ;;  %v11532_v34 = vsel %vm4654_vm1, %v11527_v39, %v11531_v19  ;;  %2821 = vmatpush1.bf16.msra.mxu1 %v24413_v52  ;;  %v11554_v30 = vsel %vm4654_vm1, %v11549_v15, %v11553_v26  ;;  %v11551_v33 = vrot.slane %v24305_v54, 2  ;;  %v26548_v19 = vld [vmem:[%s32008_s0 + $0x284] ss:$8 sps:$4 sm:$0xff]   ;;  %v11623_v15 = vrot.slane %v26399_v46, 2  ;;  %v26632_v54 = vld [vmem:[%s32008_s0 + $0x2b4] ss:$8 sps:$4 sm:$0xff]  }
 0x136   :  { %v11558_v41 = vsel %vm4654_vm1, %v11553_v26, %v11557_v37  ;;  %v24451_v52 = vld [vmem:[%s32007_s1 + $0x684] ss:$8 sps:$4 sm:$0xff]  }
 0x137   :  { %v11552_v8 = vsel %vm4654_vm1, %v11547_v24, %v11551_v33  ;;  %v26627_v24 = vld [vmem:[%s32008_s0 + $0x2a0] ss:$8 sps:$4 sm:$0xff]  }
 0x138   :  { %14148 = vmatpush1.bf16.msra.mxu0 %v24369_v32  ;;  %v24424_v32 = vld [vmem:[%s32007_s1 + $0x674] ss:$8 sps:$4 sm:$0xff]  }
 0x139   :  { %14149 = vmatprep.subr.bf16.mxu0 %v24400_v3  ;;  %v11625_v3 = vrot.slane %v26384_v40, 2 }
 0x13a   :  { %1218 = vmatmul.mubr.bf16.gmra.mrb[124].mxu1 %v26250_v43  ;;  %v11528_v43 = vsel %vm4654_vm1, %v11523_v31, %v11527_v39  ;;  %v24422_v31 = vld [vmem:[%s32007_s1 + $0x670] ss:$8 sps:$4 sm:$0xff]   ;;  %v24320_v39 = vld [vmem:[%s32008_s0 + $0x114] ss:$8 sps:$4 sm:$0xff]  }
 0x13b   :  { %12070 = vmatmul.mubr.bf16.gmra.mrb[12].mxu0 %v11524_v38  ;;  %1227 = vmatprep.mubr.bf16.mxu1 %v26255_v44  ;;  %v26528_v38 = vld [vmem:[%s32008_s0 + $0x274] ss:$8 sps:$4 sm:$0xff]  }
 0x13c   :  { %12079 = vmatprep.mubr.bf16.mxu0 %v11530_v5  ;;  %14150 = vmatpush1.bf16.msra.mxu0 %v24398_v2  ;;  %v24314_v5 = vld [vmem:[%s32008_s0 + $0x100] ss:$8 sps:$4 sm:$0xff]   ;;  %v11563_v2 = vrot.slane %v24329_v61, 2  ;;  %v26688_v61 = vld [vmem:[%s32008_s0 + $0x2d4] ss:$8 sps:$4 sm:$0xff]  }
 0x13d   :  { %14151 = vmatprep.subr.bf16.mxu0 %v24424_v32  ;;  %v11555_v42 = vrot.slane %v24314_v5, 2  ;;  %v11637_v5 = vrot.slane %v26456_v9, 2 }
 0x13f   :  { %v11556_v55 = vsel %vm4654_vm1, %v11551_v33, %v11555_v42 }
 0x140   :  { %14152 = vmatpush1.bf16.msra.mxu0 %v24422_v31  ;;  %v11631_v31 = vrot.slane %v26451_v1, 2 }
 0x141   :  { %14153 = vmatprep.subr.bf16.mxu0 %v24451_v52  ;;  %v26726_v52 = vld [vmem:[%s32008_s0 + $0x2e4] ss:$8 sps:$4 sm:$0xff]  }
 0x142   :  { %1228 = vmatmul.mubr.bf16.gmra.mrb[128].mxu1 %v26266_v22  ;;  %v26647_v33 = vsel %vm4654_vm1, %v11627_v17, %v11631_v31 }
 0x143   :  { %12080 = vmatmul.mubr.bf16.gmra.mrb[16].mxu0 %v11528_v43  ;;  %1237 = vmatprep.mubr.bf16.mxu1 %v26384_v40  ;;  %v26543_v43 = vld [vmem:[%s32008_s0 + $0x270] ss:$8 sps:$4 sm:$0xff]  }
 0x144   :  { %12089 = vmatprep.mubr.bf16.mxu0 %v11534_v45  ;;  %v11561_v45 = vrot.slane %v24320_v39, 2  ;;  %v26655_v39 = vld [vmem:[%s32008_s0 + $0x2b0] ss:$8 sps:$4 sm:$0xff]  }
 0x14a   :  { %1238 = vmatmul.mubr.bf16.gmra.mrb[132].mxu1 %v26399_v46 }
 0x14b   :  { %12090 = vmatmul.mubr.bf16.gmra.mrb[20].mxu0 %v11532_v34  ;;  %1247 = vmatprep.mubr.bf16.mxu1 %v26404_v50  ;;  %v11562_v34 = vsel %vm4654_vm1, %v11557_v37, %v11561_v45  ;;  %v26601_v50 = vsel %vm4654_vm1, %v11625_v3, %v11629_v6  ;;  %v11571_v37 = vrot.slane %v24344_v28, 2 }
 0x14c   :  { %12099 = vmatprep.mubr.bf16.mxu0 %v11538_v56  ;;  %v11559_v56 = vrot.slane %v24323_v48, 2  ;;  %v11635_v48 = vrot.slane %v26471_v14, 2 }
 0x14e   :  { %v11560_v63 = vsel %vm4654_vm1, %v11555_v42, %v11559_v56  ;;  %v11564_v13 = vsel %vm4654_vm1, %v11559_v56, %v11563_v2  ;;  %v26666_v42 = vsel %vm4654_vm1, %v11633_v23, %v11637_v5  ;;  %v11641_v56 = vrot.slane %v26476_v16, 2 }
 0x152   :  { %1248 = vmatmul.mubr.bf16.gmra.mrb[136].mxu1 %v26425_v60 }
 0x153   :  { %12100 = vmatmul.mubr.bf16.gmra.mrb[24].mxu0 %v11536_v51  ;;  %1257 = vmatprep.mubr.bf16.mxu1 %v26430_v49  ;;  %v11566_v51 = vsel %vm4654_vm1, %v11561_v45, %v11565_v58  ;;  %v24350_v49 = vld [vmem:[%s32008_s0 + $0x154] ss:$8 sps:$4 sm:$0xff]   ;;  %v26683_v58 = vld [vmem:[%s32008_s0 + $0x2c0] ss:$8 sps:$4 sm:$0xff]  }
 0x154   :  { %12109 = vmatprep.mubr.bf16.mxu0 %v11542_v0  ;;  %v24445_v0 = vld [vmem:[%s32007_s1 + $0x204] ss:$8 sps:$4 sm:$0xff]  }
 0x155   :  { %5153 = vmatprep.subr.bf16.mxu1 %v24445_v0  ;;  %v11639_v0 = vrot.slane %v26497_v25, 2 }
 0x15a   :  { %1258 = vmatmul.mubr.bf16.gmra.mrb[140].mxu1 %v26451_v1  ;;  %v11577_v1 = vrot.slane %v24350_v49, 2 }
 0x15b   :  { %12110 = vmatmul.mubr.bf16.gmra.mrb[28].mxu0 %v11540_v11  ;;  %1267 = vmatprep.mubr.bf16.mxu1 %v26456_v9  ;;  %v24338_v11 = vld [vmem:[%s32008_s0 + $0x130] ss:$8 sps:$4 sm:$0xff]   ;;  %v24356_v9 = vld [vmem:[%s32008_s0 + $0x164] ss:$8 sps:$4 sm:$0xff]  }
 0x15c   :  { %12119 = vmatprep.mubr.bf16.mxu0 %v11546_v12  ;;  %v24341_v12 = vld [vmem:[%s32008_s0 + $0x144] ss:$8 sps:$4 sm:$0xff]   ;;  %v11567_v60 = vrot.slane %v24338_v11, 2  ;;  %v24466_v11 = vld [vmem:[%s32007_s1 + $0x694] ss:$8 sps:$4 sm:$0xff]  }
 0x15d   :  { %v11573_v26 = vrot.slane %v24341_v12, 2  ;;  %v11645_v12 = vrot.slane %v26502_v27, 2 }
 0x15e   :  { %v11572_v45 = vsel %vm4654_vm1, %v11567_v60, %v11571_v37 }
 0x15f   :  { %v11574_v32 = vsel %vm4654_vm1, %v11569_v4, %v11573_v26  ;;  %v11578_v53 = vsel %vm4654_vm1, %v11573_v26, %v11577_v1  ;;  %v24464_v4 = vld [vmem:[%s32007_s1 + $0x690] ss:$8 sps:$4 sm:$0xff]   ;;  %v24373_v26 = vld [vmem:[%s32008_s0 + $0x184] ss:$8 sps:$4 sm:$0xff]  }
 0x162   :  { %1268 = vmatmul.mubr.bf16.gmra.mrb[144].mxu1 %v26471_v14  ;;  %v11581_v14 = vrot.slane %v24356_v9, 2  ;;  %v11647_v9 = vrot.slane %v26543_v43, 2 }
 0x163   :  { %12120 = vmatmul.mubr.bf16.gmra.mrb[32].mxu0 %v11544_v20  ;;  %1277 = vmatprep.mubr.bf16.mxu1 %v26476_v16  ;;  %v26613_v20 = vsel %vm4654_vm1, %v11623_v15, %v11627_v17  ;;  %v24365_v16 = vld [vmem:[%s32008_s0 + $0x174] ss:$8 sps:$4 sm:$0xff]   ;;  %v26715_v17 = vsel %vm4654_vm1, %v11641_v56, %v11645_v12 }
 0x164   :  { %12129 = vmatprep.mubr.bf16.mxu0 %v11550_v21  ;;  %v24449_v21 = vld [vmem:[%s32007_s1 + $0x680] ss:$8 sps:$4 sm:$0xff]  }
 0x165   :  { %14154 = vmatpush1.bf16.msra.mxu0 %v24449_v21 }
 0x166   :  { %14155 = vmatprep.subr.bf16.mxu0 %v24466_v11 }
 0x169   :  { %14156 = vmatpush1.bf16.msra.mxu0 %v24464_v4  ;;  %v24385_v4 = vld [vmem:[%s32008_s0 + $0x1a4] ss:$8 sps:$4 sm:$0xff]  }
 0x16a   :  { %1278 = vmatmul.mubr.bf16.gmra.mrb[148].mxu1 %v26497_v25  ;;  %v11579_v25 = vrot.slane %v24359_v62, 2 }
 0x16b   :  { %12130 = vmatmul.mubr.bf16.gmra.mrb[36].mxu0 %v11548_v29  ;;  %1287 = vmatprep.mubr.bf16.mxu1 %v26502_v27  ;;  %v26638_v29 = vsel %vm4654_vm1, %v11629_v6, %v11633_v23  ;;  %v26703_v6 = vsel %vm4654_vm1, %v11635_v48, %v11639_v0  ;;  %v24368_v27 = vld [vmem:[%s32008_s0 + $0x170] ss:$8 sps:$4 sm:$0xff]  }
 0x16c   :  { %12139 = vmatprep.mubr.bf16.mxu0 %v11554_v30  ;;  %v11568_v30 = vsel %vm4654_vm1, %v11563_v2, %v11567_v60  ;;  %v11582_v2 = vsel %vm4654_vm1, %v11577_v1, %v11581_v14  ;;  %v11643_v60 = vrot.slane %v26523_v36, 2  ;;  %v11583_v49 = vrot.slane %v24368_v27, 2 }
 0x16e   :  { %v26737_v28 = vsel %vm4654_vm1, %v11639_v0, %v11643_v60  ;;  %v11584_v1 = vsel %vm4654_vm1, %v11579_v25, %v11583_v49  ;;  %v24382_v0 = vld [vmem:[%s32008_s0 + $0x190] ss:$8 sps:$4 sm:$0xff]  }
 0x172   :  { %1288 = vmatmul.mubr.bf16.gmra.mrb[152].mxu1 %v26523_v36  ;;  %v105_v36 = vld [vmem:[%s32008_s0 + $0x2f0] sm:$0xff] }
 0x173   :  { %12140 = vmatmul.mubr.bf16.gmra.mrb[40].mxu0 %v11552_v8  ;;  %1297 = vmatprep.mubr.bf16.mxu1 %v26528_v38  ;;  %v26660_v8 = vld [vmem:[%s32008_s0 + $0x2c4] ss:$8 sps:$4 sm:$0xff]  }
 0x174   :  { %12149 = vmatprep.mubr.bf16.mxu0 %v11558_v41  ;;  %v24353_v41 = vld [vmem:[%s32008_s0 + $0x150] ss:$8 sps:$4 sm:$0xff]  }
 0x17a   :  { %1298 = vmatmul.mubr.bf16.gmra.mrb[156].mxu1 %v26543_v43 }
 0x17b   :  { %12150 = vmatmul.mubr.bf16.gmra.mrb[44].mxu0 %v11556_v55  ;;  %1307 = vmatprep.mubr.bf16.mxu1 %v26548_v19  ;;  %v26675_v55 = vsel %vm4654_vm1, %v11631_v31, %v11635_v48  ;;  %v106_v31 = vld [vmem:[%s32008_s0 + $0x2f8] sm:$0xff] }
 0x17c   :  { %12159 = vmatprep.mubr.bf16.mxu0 %v11562_v34  ;;  %v11575_v34 = vrot.slane %v24353_v41, 2  ;;  %v24376_v41 = vld [vmem:[%s32008_s0 + $0x180] ss:$8 sps:$4 sm:$0xff]   ;;  %v24379_v48 = vld [vmem:[%s32008_s0 + $0x194] ss:$8 sps:$4 sm:$0xff]   ;;  %v26776_v62 = vcombine.low %v105_v36, %v106_v31 }
 0x17e   :  { %v11580_v21 = vsel %vm4654_vm1, %v11575_v34, %v11579_v25  ;;  %v11591_v25 = vrot.slane %v24382_v0, 2  ;;  %v11665_v0 = vrot.slane %v26632_v54, 2 }
 0x182   :  { %1308 = vmatmul.mubr.bf16.gmra.mrb[160].mxu1 %v26563_v35 }
 0x183   :  { %12160 = vmatmul.mubr.bf16.gmra.mrb[48].mxu0 %v11560_v63  ;;  %1317 = vmatprep.mubr.bf16.mxu1 %v26568_v59  ;;  %v26694_v63 = vsel %vm4654_vm1, %v11637_v5, %v11641_v56  ;;  %v26754_v5 = vld [vmem:[%s32008_s0 + $0x2e0] ss:$8 sps:$4 sm:$0xff]   ;;  %v11653_v56 = vrot.slane %v26548_v19, 2 }
 0x184   :  { %12169 = vmatprep.mubr.bf16.mxu0 %v11566_v51  ;;  %v11576_v51 = vsel %vm4654_vm1, %v11571_v37, %v11575_v34  ;;  %v11587_v34 = vrot.slane %v24376_v41, 2 }
 0x186   :  { %v11592_v27 = vsel %vm4654_vm1, %v11587_v34, %v11591_v25 }
 0x18a   :  { %1318 = vmatmul.mubr.bf16.gmra.mrb[164].mxu1 %v26588_v7 }
 0x18b   :  { %12170 = vmatmul.mubr.bf16.gmra.mrb[52].mxu0 %v11564_v13  ;;  %1327 = vmatprep.mubr.bf16.mxu1 %v26593_v10  ;;  %v11585_v13 = vrot.slane %v24365_v16, 2  ;;  %v11588_v16 = vsel %vm4654_vm1, %v11583_v49, %v11587_v34  ;;  %v24394_v49 = vld [vmem:[%s32008_s0 + $0x1b4] ss:$8 sps:$4 sm:$0xff]   ;;  %v11659_v34 = vrot.slane %v26627_v24, 2 }
 0x18c   :  { %12179 = vmatprep.mubr.bf16.mxu0 %v11570_v18  ;;  %v26720_v18 = vld [vmem:[%s32008_s0 + $0x2d0] ss:$8 sps:$4 sm:$0xff]  }
 0x18d   :  { %v11586_v23 = vsel %vm4654_vm1, %v11581_v14, %v11585_v13  ;;  %v11593_v14 = vrot.slane %v24379_v48, 2  ;;  %v24392_v48 = vld [vmem:[%s32008_s0 + $0x324] ss:$8 sps:$4 sm:$0xff]  }
 0x192   :  { %1328 = vmatmul.mubr.bf16.gmra.mrb[168].mxu1 %v26627_v24  ;;  %v24396_v24 = vld [vmem:[%s32008_s0 + $0x320] ss:$8 sps:$4 sm:$0xff]  }
 0x193   :  { %12180 = vmatmul.mubr.bf16.gmra.mrb[56].mxu0 %v11568_v30  ;;  %1337 = vmatprep.mubr.bf16.mxu1 %v26632_v54  ;;  %v11649_v30 = vrot.slane %v26528_v38, 2  ;;  %v26757_v38 = vcombine.high %v105_v36, %v106_v31  ;;  %v24482_v36 = vld [vmem:[%s32007_s1 + $0x6a0] ss:$8 sps:$4 sm:$0xff]   ;;  %v24484_v31 = vld [vmem:[%s32007_s1 + $0x6a4] ss:$8 sps:$4 sm:$0xff]   ;;  %v11663_v54 = vrot.slane %v26655_v39, 2 }
 0x194   :  { %12189 = vmatprep.mubr.bf16.mxu0 %v11574_v32  ;;  %v11589_v32 = vrot.slane %v24373_v26, 2  ;;  %14157 = vmatprep.subr.bf16.mxu0 %v24484_v31  ;;  %v24412_v31 = vld [vmem:[%s32008_s0 + $0x1d0] ss:$8 sps:$4 sm:$0xff]  }
 0x195   :  { %v26749_v37 = vsel %vm4654_vm1, %v11645_v12, %v11649_v30  ;;  %v26774_v43 = vsel %vm4654_vm1, %v11649_v30, %v11653_v56  ;;  %v11657_v12 = vrot.slane %v26568_v59, 2  ;;  %v11655_v59 = vrot.slane %v26588_v7, 2  ;;  %14158 = vmatpush1.bf16.msra.mxu0 %v24482_v36  ;;  %v24407_v36 = vld [vmem:[%s32008_s0 + $0x344] ss:$8 sps:$4 sm:$0xff]  }
 0x196   :  { %v11594_v19 = vsel %vm4654_vm1, %v11589_v32, %v11593_v14 }
 0x19a   :  { %1338 = vmatmul.mubr.bf16.gmra.mrb[172].mxu1 %v26655_v39  ;;  %v24405_v39 = vld [vmem:[%s32008_s0 + $0x330] ss:$8 sps:$4 sm:$0xff]  }
 0x19b   :  { %12190 = vmatmul.mubr.bf16.gmra.mrb[60].mxu0 %v11572_v45  ;;  %1347 = vmatprep.mubr.bf16.mxu1 %v26660_v8  ;;  %v11590_v45 = vsel %vm4654_vm1, %v11585_v13, %v11589_v32  ;;  %v11597_v13 = vrot.slane %v24385_v4, 2  ;;  %v11661_v32 = vrot.slane %v26593_v10, 2  ;;  %v24397_v10 = vld [vmem:[%s32008_s0 + $0x1b0] ss:$8 sps:$4 sm:$0xff]  }
 0x19c   :  { %12199 = vmatprep.mubr.bf16.mxu0 %v11578_v53  ;;  %v26768_v53 = vsel %vm4654_vm1, %v11643_v60, %v11647_v9  ;;  %v24383_v60 = vld [vmem:[%s32008_s0 + $0x314] ss:$8 sps:$4 sm:$0xff]  }
 0x19d   :  { %v11598_v26 = vsel %vm4654_vm1, %v11593_v14, %v11597_v13  ;;  %v26824_v41 = vsel %vm4654_vm1, %v11657_v12, %v11661_v32  ;;  %v24403_v14 = vld [vmem:[%s32008_s0 + $0x1c4] ss:$8 sps:$4 sm:$0xff]  }
 0x1a2   :  { %1348 = vmatmul.mubr.bf16.gmra.mrb[176].mxu1 %v26683_v58 }
 0x1a3   :  { %12200 = vmatmul.mubr.bf16.gmra.mrb[64].mxu0 %v11576_v51  ;;  %1357 = vmatprep.mubr.bf16.mxu1 %v26688_v61  ;;  %v24377_v51 = vld [vmem:[%s32008_s0 + $0x304] ss:$8 sps:$4 sm:$0xff]  }
 0x1a4   :  { %12209 = vmatprep.mubr.bf16.mxu0 %v11582_v2  ;;  %v11651_v2 = vrot.slane %v26563_v35, 2  ;;  %v26796_v35 = vsel %vm4654_vm1, %v11653_v56, %v11657_v12  ;;  %v24406_v12 = vld [vmem:[%s32008_s0 + $0x1c0] ss:$8 sps:$4 sm:$0xff]  }
 0x1a6   :  { %v26791_v11 = vsel %vm4654_vm1, %v11647_v9, %v11651_v2  ;;  %v26814_v30 = vsel %vm4654_vm1, %v11651_v2, %v11655_v59  ;;  %v24387_v9 = vld [vmem:[%s32008_s0 + $0x310] ss:$8 sps:$4 sm:$0xff]   ;;  %v11605_v2 = vrot.slane %v24403_v14, 2 }
 0x1aa   :  { %1358 = vmatmul.mubr.bf16.gmra.mrb[180].mxu1 %v26720_v18 }
 0x1ab   :  { %12210 = vmatmul.mubr.bf16.gmra.mrb[68].mxu0 %v11580_v21  ;;  %1367 = vmatprep.mubr.bf16.mxu1 %v26726_v52  ;;  %v24381_v21 = vld [vmem:[%s32008_s0 + $0x300] ss:$8 sps:$4 sm:$0xff]  }
 0x1ac   :  { %12219 = vmatprep.mubr.bf16.mxu0 %v11586_v23  ;;  %v24391_v23 = vld [vmem:[%s32008_s0 + $0x1a0] ss:$8 sps:$4 sm:$0xff]  }
 0x1ad   :  { %v11595_v7 = vrot.slane %v24391_v23, 2  ;;  %v11669_v23 = vrot.slane %v26660_v8, 2  ;;  %v11667_v8 = vrot.slane %v26683_v58, 2  ;;  %v11607_v58 = vrot.slane %v24412_v31, 2 }
 0x1ae   :  { %v11681_v31 = vrot.slane %v26757_v38, 2 }
 0x1b2   :  { %1368 = vmatmul.mubr.bf16.gmra.mrb[184].mxu1 %v26754_v5 }
 0x1b3   :  { %12220 = vmatmul.mubr.bf16.gmra.mrb[72].mxu0 %v11584_v1  ;;  %1377 = vmatprep.mubr.bf16.mxu1 %v26757_v38  ;;  %v11601_v1 = vrot.slane %v24394_v49, 2 }
 0x1b4   :  { %12229 = vmatprep.mubr.bf16.mxu0 %v11590_v45  ;;  %v11596_v45 = vsel %vm4654_vm1, %v11591_v25, %v11595_v7  ;;  %v24401_v25 = vld [vmem:[%s32008_s0 + $0x334] ss:$8 sps:$4 sm:$0xff]  }
 0x1b5   :  { %v11602_v56 = vsel %vm4654_vm1, %v11597_v13, %v11601_v1  ;;  %v11606_v13 = vsel %vm4654_vm1, %v11601_v1, %v11605_v2  ;;  %v26886_v1 = vsel %vm4654_vm1, %v11663_v54, %v11667_v8 }
 0x1ba   :  { %1378 = vmatmul.mubr.bf16.gmra.mrb[188].mxu1 %v26776_v62 }
 0x1bb   :  { %12230 = vmatmul.mubr.bf16.gmra.mrb[76].mxu0 %v11588_v16  ;;  %1387 = vmatprep.mubr.bf16.mxu1 %v24377_v51  ;;  %v26842_v16 = vsel %vm4654_vm1, %v11655_v59, %v11659_v34  ;;  %v11599_v51 = vrot.slane %v24397_v10, 2 }
 0x1bc   :  { %12239 = vmatprep.mubr.bf16.mxu0 %v11594_v19  ;;  %v26846_v19 = vsel %vm4654_vm1, %v11661_v32, %v11665_v0  ;;  %v24418_v32 = vld [vmem:[%s32008_s0 + $0x1e4] ss:$8 sps:$4 sm:$0xff]  }
 0x1bd   :  { %v11600_v4 = vsel %vm4654_vm1, %v11595_v7, %v11599_v51  ;;  %v11613_v10 = vrot.slane %v24418_v32, 2  ;;  %v24429_v32 = vld [vmem:[%s32008_s0 + $0x360] ss:$8 sps:$4 sm:$0xff]  }
 0x1c2   :  { %1388 = vmatmul.mubr.bf16.gmra.mrb[192].mxu1 %v24381_v21  ;;  %v24409_v21 = vld [vmem:[%s32008_s0 + $0x1d4] ss:$8 sps:$4 sm:$0xff]  }
 0x1c3   :  { %12240 = vmatmul.mubr.bf16.gmra.mrb[80].mxu0 %v11592_v27  ;;  %1397 = vmatprep.mubr.bf16.mxu1 %v24383_v60  ;;  %v26864_v27 = vsel %vm4654_vm1, %v11659_v34, %v11663_v54  ;;  %v11603_v60 = vrot.slane %v24406_v12, 2  ;;  %v11609_v59 = vrot.slane %v24409_v21, 2  ;;  %v11677_v12 = vrot.slane %v26726_v52, 2 }
 0x1c4   :  { %12249 = vmatprep.mubr.bf16.mxu0 %v11598_v26  ;;  %v26868_v26 = vsel %vm4654_vm1, %v11665_v0, %v11669_v23  ;;  %v11671_v0 = vrot.slane %v26720_v18, 2  ;;  %v24420_v18 = vld [vmem:[%s32008_s0 + $0x350] ss:$8 sps:$4 sm:$0xff]   ;;  %v11675_v52 = vrot.slane %v26754_v5, 2  ;;  %v27274_v5 = vld [vmem:[%s32008_s0 + $0x114] ss:$8 sps:$4 sm:$0xff]  }
 0x1c5   :  { %v11604_v49 = vsel %vm4654_vm1, %v11599_v51, %v11603_v60  ;;  %v11610_v7 = vsel %vm4654_vm1, %v11605_v2, %v11609_v59  ;;  %v11608_v14 = vsel %vm4654_vm1, %v11603_v60, %v11607_v58  ;;  %v24416_v51 = vld [vmem:[%s32008_s0 + $0x354] ss:$8 sps:$4 sm:$0xff]   ;;  %v11614_v2 = vsel %vm4654_vm1, %v11609_v59, %v11613_v10  ;;  %v24425_v60 = vld [vmem:[%s32008_s0 + $0x364] ss:$8 sps:$4 sm:$0xff]  }
 0x1c6   :  { %v2360_v38 = vrot.slane %v27274_v5, 1 }
 0x1ca   :  { %1398 = vmatmul.mubr.bf16.gmra.mrb[196].mxu1 %v24387_v9  ;;  %v24497_v9 = vld [vmem:[%s32007_s1 + $0x6b0] ss:$8 sps:$4 sm:$0xff]  }
 0x1cb   :  { %12250 = vmatmul.mubr.bf16.gmra.mrb[84].mxu0 %v11596_v45  ;;  %1407 = vmatprep.mubr.bf16.mxu1 %v24392_v48  ;;  %v24499_v45 = vld [vmem:[%s32007_s1 + $0x6b4] ss:$8 sps:$4 sm:$0xff]   ;;  %v11673_v48 = vrot.slane %v26688_v61, 2  ;;  %v24421_v61 = vld [vmem:[%s32008_s0 + $0x1e0] ss:$8 sps:$4 sm:$0xff]  }
 0x1cc   :  { %12259 = vmatprep.mubr.bf16.mxu0 %v11602_v56  ;;  %14159 = vmatprep.subr.bf16.mxu0 %v24499_v45  ;;  %v24411_v56 = vld [vmem:[%s32008_s0 + $0x340] ss:$8 sps:$4 sm:$0xff]   ;;  %v24431_v45 = vld [vmem:[%s32008_s0 + $0x374] ss:$8 sps:$4 sm:$0xff]  }
 0x1cd   :  { %14160 = vmatpush1.bf16.msra.mxu0 %v24497_v9  ;;  %v26896_v34 = vsel %vm4654_vm1, %v11669_v23, %v11673_v48  ;;  %v24430_v23 = vld [vmem:[%s32008_s0 + $0x1f0] ss:$8 sps:$4 sm:$0xff]  }
 0x1d2   :  { %1408 = vmatmul.mubr.bf16.gmra.mrb[200].mxu1 %v24396_v24  ;;  %v24427_v24 = vld [vmem:[%s32008_s0 + $0x1f4] ss:$8 sps:$4 sm:$0xff]  }
 0x1d3   :  { %12260 = vmatmul.mubr.bf16.gmra.mrb[88].mxu0 %v11600_v4  ;;  %1417 = vmatprep.mubr.bf16.mxu1 %v24401_v25  ;;  %v26914_v4 = vsel %vm4654_vm1, %v11667_v8, %v11671_v0  ;;  %v11611_v25 = vrot.slane %v24421_v61, 2  ;;  %v11617_v54 = vrot.slane %v24427_v24, 2  ;;  %v24437_v24 = vld [vmem:[%s32008_s0] ss:$8 sps:$4 sm:$0xfe]  }
 0x1d4   :  { %12269 = vmatprep.mubr.bf16.mxu0 %v11606_v13  ;;  %v26918_v13 = vsel %vm4654_vm1, %v11673_v48, %v11677_v12 }
 0x1d5   :  { %v11612_v21 = vsel %vm4654_vm1, %v11607_v58, %v11611_v25  ;;  %v11618_v59 = vsel %vm4654_vm1, %v11613_v10, %v11617_v54  ;;  %v24436_v58 = vld [vmem:[%s32008_s0 + $0x200] ss:$8 sps:$4 sm:$0xff]   ;;  %v24439_v10 = vld [vmem:[%s32008_s0 + $0x4] ss:$8 sps:$4 sm:$0xfe]  }
 0x1da   :  { %1418 = vmatmul.mubr.bf16.gmra.mrb[204].mxu1 %v24405_v39  ;;  %v24433_v39 = vld [vmem:[%s32008_s0 + $0x204] ss:$8 sps:$4 sm:$0xff]  }
 0x1db   :  { %12270 = vmatmul.mubr.bf16.gmra.mrb[92].mxu0 %v11604_v49  ;;  %1427 = vmatprep.mubr.bf16.mxu1 %v24407_v36  ;;  %v26938_v49 = vsel %vm4654_vm1, %v11671_v0, %v11675_v52  ;;  %v11615_v36 = vrot.slane %v24430_v23, 2  ;;  %v11621_v8 = vrot.slane %v24433_v39, 2  ;;  %v24435_v0 = vld [vmem:[%s32008_s0 + $0x370] ss:$8 sps:$4 sm:$0xff]   ;;  %v2292_v23 = vrot.slane %v24437_v24, 1 }
 0x1dc   :  { %12279 = vmatprep.mubr.bf16.mxu0 %v11610_v7  ;;  %v26944_v7 = vsel %vm4654_vm1, %v11677_v12, %v11681_v31  ;;  %v24443_v39 = vld [vmem:[%s32007_s1 + $0x200] ss:$8 sps:$4 sm:$0xff]   ;;  %v24491_v24 = vld [vmem:[%s32007_s1 + $0x230] ss:$8 sps:$4 sm:$0xff]  }
 0x1dd   :  { %v11616_v9 = vsel %vm4654_vm1, %v11611_v25, %v11615_v36  ;;  %v11622_v48 = vsel %vm4654_vm1, %v11617_v54, %v11621_v8  ;;  %v24440_v25 = vld [vmem:[%s32008_s0 + $0x10] ss:$8 sps:$4 sm:$0xff]   ;;  %v11626_v54 = vsel %vm4654_vm1, %v11621_v8, %v11625_v3  ;;  %v24448_v8 = vld [vmem:[%s32008_s0 + $0x20] ss:$8 sps:$4 sm:$0xff]  }
 0x1de   :  { %v2298_v46 = vrot.slane %v24448_v8, 1 }
 0x1e2   :  { %1428 = vmatmul.mubr.bf16.gmra.mrb[208].mxu1 %v24411_v56  ;;  %v24442_v56 = vld [vmem:[%s32008_s0 + $0x14] ss:$8 sps:$4 sm:$0xff]  }
 0x1e3   :  { %12280 = vmatmul.mubr.bf16.gmra.mrb[96].mxu0 %v11608_v14  ;;  %1437 = vmatprep.mubr.bf16.mxu1 %v24416_v51  ;;  %v11619_v14 = vrot.slane %v24436_v58, 2  ;;  %v2295_v51 = vrot.slane %v24439_v10, 1  ;;  %v2296_v61 = vrot.slane %v24442_v56, 1  ;;  %v24454_v56 = vld [vmem:[%s32008_s0 + $0x30] ss:$8 sps:$4 sm:$0xff]  }
 0x1e4   :  { %12289 = vmatprep.mubr.bf16.mxu0 %v11614_v2 }
 0x1e5   :  { %v11620_v2 = vsel %vm4654_vm1, %v11615_v36, %v11619_v14  ;;  %v2297_v12 = vsel %vm2291_vm0, %v2295_v51, %v2296_v61  ;;  %v11624_v36 = vsel %vm4654_vm1, %v11619_v14, %v11623_v15  ;;  %v24458_v15 = vld [vmem:[%s32007_s1 + $0x210] ss:$8 sps:$4 sm:$0xff]   ;;  %v24455_v51 = vld [vmem:[%s32008_s0 + $0x44] ss:$8 sps:$4 sm:$0xff]  }
 0x1ea   :  { %1438 = vmatmul.mubr.bf16.gmra.mrb[212].mxu1 %v24420_v18  ;;  %v24446_v18 = vld [vmem:[%s32008_s0 + $0x24] ss:$8 sps:$4 sm:$0xff]  }
 0x1eb   :  { %12290 = vmatmul.mubr.bf16.gmra.mrb[100].mxu0 %v11612_v21  ;;  %1447 = vmatprep.mubr.bf16.mxu1 %v24425_v60  ;;  %v24519_v21 = vld [vmem:[%s32007_s1 + $0x6c0] ss:$8 sps:$4 sm:$0xff]   ;;  %v24521_v60 = vld [vmem:[%s32007_s1 + $0x6c4] ss:$8 sps:$4 sm:$0xff]   ;;  %v2300_v40 = vrot.slane %v24446_v18, 1 }
 0x1ec   :  { %12299 = vmatprep.mubr.bf16.mxu0 %v11618_v59  ;;  %v2293_v59 = vrot.slane %v24440_v25, 1  ;;  %14161 = vmatprep.subr.bf16.mxu0 %v24521_v60  ;;  %v24511_v25 = vld [vmem:[%s32007_s1 + $0x244] ss:$8 sps:$4 sm:$0xff]   ;;  %v24509_v18 = vld [vmem:[%s32007_s1 + $0x240] ss:$8 sps:$4 sm:$0xff]  }
 0x1ed   :  { %14162 = vmatpush1.bf16.msra.mxu0 %v24519_v21  ;;  %v24536_v21 = vld [vmem:[%s32007_s1 + $0x254] ss:$8 sps:$4 sm:$0xff]   ;;  %v24543_v60 = vld [vmem:[%s32007_s1 + $0x6d0] ss:$8 sps:$4 sm:$0xff]  }
 0x1ee   :  { %v2294_v3 = vsel %vm2291_vm0, %v2292_v23, %v2293_v59  ;;  %v2299_v10 = vsel %vm2291_vm0, %v2293_v59, %v2298_v46  ;;  %v24545_v23 = vld [vmem:[%s32007_s1 + $0x6d4] ss:$8 sps:$4 sm:$0xff]  }
 0x1ef   :  { %14163 = vmatprep.subr.bf16.mxu0 %v24545_v23  ;;  %v24590_v23 = vld [vmem:[%s32007_s1 + $0x274] ss:$8 sps:$4 sm:$0xff]  }
 0x1f1   :  { %14164 = vmatpush1.bf16.msra.mxu0 %v24543_v60 }
 0x1f2   :  { %1448 = vmatmul.mubr.bf16.gmra.mrb[216].mxu1 %v24429_v32  ;;  %v2301_v32 = vsel %vm2291_vm0, %v2296_v61, %v2300_v40  ;;  %v24493_v61 = vld [vmem:[%s32007_s1 + $0x234] ss:$8 sps:$4 sm:$0xff]  }
 0x1f3   :  { %12300 = vmatmul.mubr.bf16.gmra.mrb[104].mxu0 %v11616_v9  ;;  %1457 = vmatprep.mubr.bf16.mxu1 %v24431_v45  ;;  %v24452_v9 = vld [vmem:[%s32008_s0 + $0x34] ss:$8 sps:$4 sm:$0xff]  }
 0x1f4   :  { %12309 = vmatprep.mubr.bf16.mxu0 %v11622_v48  ;;  %v24460_v45 = vld [vmem:[%s32007_s1 + $0x214] ss:$8 sps:$4 sm:$0xff]   ;;  %v2304_v58 = vrot.slane %v24452_v9, 1  ;;  %v24478_v48 = vld [vmem:[%s32007_s1 + $0x224] ss:$8 sps:$4 sm:$0xff]  }
 0x1f6   :  { %v2305_v14 = vsel %vm2291_vm0, %v2300_v40, %v2304_v58 }
 0x1fa   :  { %1458 = vmatmul.mubr.bf16.gmra.mrb[220].mxu1 %v24435_v0  ;;  %v2302_v0 = vrot.slane %v24454_v56, 1  ;;  %v27085_v56 = vld [vmem:[%s32008_s0 + $0x84] ss:$8 sps:$4 sm:$0xff]  }
 0x1fb   :  { %12310 = vmatmul.mubr.bf16.gmra.mrb[108].mxu0 %v11620_v2  ;;  %2822 = vmatprep.mubr.bf16.mxu1 %v2297_v12  ;;  %v2308_v2 = vrot.slane %v24455_v51, 1  ;;  %v2324_v51 = vrot.slane %v27085_v56, 1 }
 0x1fc   :  { %12319 = vmatprep.mubr.bf16.mxu0 %v11626_v54  ;;  %v2303_v12 = vsel %vm2291_vm0, %v2298_v46, %v2302_v0  ;;  %v24461_v54 = vld [vmem:[%s32008_s0 + $0x54] ss:$8 sps:$4 sm:$0xff]  }
 0x1fd   :  { %v2312_v40 = vrot.slane %v24461_v54, 1 }
 0x202   :  { %2823 = vmatmul.mubr.bf16.vlgmr.msra.gmra.mrb[0].mxu1 %v2294_v3  ;;  %v24534_v3 = vld [vmem:[%s32007_s1 + $0x250] ss:$8 sps:$4 sm:$0xff]  }
 0x203   :  { %12320 = vmatmul.mubr.bf16.gmra.mrb[112].mxu0 %v11624_v36  ;;  %5154 = vmatpush1.bf16.msra.mxu1 %v24443_v39  ;;  %v24463_v39 = vld [vmem:[%s32008_s0 + $0x50] ss:$8 sps:$4 sm:$0xff]   ;;  %v2313_v36 = vsel %vm2291_vm0, %v2308_v2, %v2312_v40 }
 0x204   :  { %2832 = vmatprep.mubr.bf16.mxu1 %v2301_v32  ;;  %12329 = vmatprep.mubr.bf16.mxu0 %v26601_v50  ;;  %v24476_v50 = vld [vmem:[%s32007_s1 + $0x220] ss:$8 sps:$4 sm:$0xff]   ;;  %v2310_v8 = vrot.slane %v24463_v39, 1  ;;  %v27166_v39 = vld [vmem:[%s32008_s0 + $0xc4] ss:$8 sps:$4 sm:$0xff]  }
 0x205   :  { %5155 = vmatprep.subr.bf16.mxu1 %v24460_v45  ;;  %v24469_v45 = vld [vmem:[%s32008_s0 + $0x60] ss:$8 sps:$4 sm:$0xff]  }
 0x207   :  { %5156 = vmatpush1.bf16.msra.mxu1 %v24458_v15  ;;  %v24470_v15 = vld [vmem:[%s32008_s0 + $0x74] ss:$8 sps:$4 sm:$0xff]  }
 0x208   :  { %5157 = vmatprep.subr.bf16.mxu1 %v24478_v48  ;;  %v24472_v48 = vld [vmem:[%s32008_s0 + $0x70] ss:$8 sps:$4 sm:$0xff]  }
 0x20a   :  { %2833 = vmatmul.mubr.bf16.gmra.mrb[4].mxu1 %v2299_v10 }
 0x20b   :  { %12330 = vmatmul.mubr.bf16.gmra.mrb[116].mxu0 %v26613_v20  ;;  %2842 = vmatprep.mubr.bf16.mxu1 %v2305_v14  ;;  %v24457_v20 = vld [vmem:[%s32008_s0 + $0x40] ss:$8 sps:$4 sm:$0xff]   ;;  %v2318_v14 = vrot.slane %v24472_v48, 1 }
 0x20c   :  { %12339 = vmatprep.mubr.bf16.mxu0 %v26638_v29  ;;  %5158 = vmatpush1.bf16.msra.mxu1 %v24476_v50  ;;  %v2309_v29 = vsel %vm2291_vm0, %v2304_v58, %v2308_v2  ;;  %v2306_v59 = vrot.slane %v24457_v20, 1  ;;  %v24575_v2 = vld [vmem:[%s32007_s1 + $0x6e4] ss:$8 sps:$4 sm:$0xff]  }
 0x20d   :  { %5159 = vmatprep.subr.bf16.mxu1 %v24493_v61  ;;  %14165 = vmatprep.subr.bf16.mxu0 %v24575_v2  ;;  %v24622_v2 = vld [vmem:[%s32007_s1 + $0x704] ss:$8 sps:$4 sm:$0xff]  }
 0x20e   :  { %v2311_v9 = vsel %vm2291_vm0, %v2306_v59, %v2310_v8 }
 0x210   :  { %5160 = vmatpush1.bf16.msra.mxu1 %v24491_v24 }
 0x211   :  { %5161 = vmatprep.subr.bf16.mxu1 %v24511_v25 }
 0x212   :  { %2843 = vmatmul.mubr.bf16.gmra.mrb[8].mxu1 %v2303_v12 }
 0x213   :  { %12340 = vmatmul.mubr.bf16.gmra.mrb[120].mxu0 %v26647_v33  ;;  %2852 = vmatprep.mubr.bf16.mxu1 %v2309_v29  ;;  %v2307_v33 = vsel %vm2291_vm0, %v2302_v0, %v2306_v59  ;;  %v27106_v0 = vld [vmem:[%s32008_s0 + $0x94] ss:$8 sps:$4 sm:$0xff]   ;;  %v27128_v29 = vld [vmem:[%s32008_s0 + $0xa4] ss:$8 sps:$4 sm:$0xff]  }
 0x214   :  { %12349 = vmatprep.mubr.bf16.mxu0 %v26666_v42  ;;  %5162 = vmatpush1.bf16.msra.mxu1 %v24509_v18  ;;  %v24467_v42 = vld [vmem:[%s32008_s0 + $0x64] ss:$8 sps:$4 sm:$0xff]   ;;  %v2328_v25 = vrot.slane %v27106_v0, 1  ;;  %v2332_v54 = vrot.slane %v27128_v29, 1 }
 0x215   :  { %5163 = vmatprep.subr.bf16.mxu1 %v24536_v21  ;;  %v2316_v32 = vrot.slane %v24467_v42, 1  ;;  %v27138_v21 = vld [vmem:[%s32008_s0 + $0xa0] ss:$8 sps:$4 sm:$0xff]  }
 0x216   :  { %v2329_v20 = vsel %vm2291_vm0, %v2324_v51, %v2328_v25  ;;  %v2333_v60 = vsel %vm2291_vm0, %v2328_v25, %v2332_v54  ;;  %v2330_v59 = vrot.slane %v27138_v21, 1  ;;  %v11679_v25 = vrot.slane %v26776_v62, 2 }
 0x217   :  { %v2317_v46 = vsel %vm2291_vm0, %v2312_v40, %v2316_v32 }
 0x218   :  { %5164 = vmatpush1.bf16.msra.mxu1 %v24534_v3 }
 0x21a   :  { %2853 = vmatmul.mubr.bf16.gmra.mrb[12].mxu1 %v2307_v33 }
 0x21b   :  { %12350 = vmatmul.mubr.bf16.gmra.mrb[124].mxu0 %v26675_v55  ;;  %2862 = vmatprep.mubr.bf16.mxu1 %v2313_v36  ;;  %v2314_v55 = vrot.slane %v24469_v45, 1  ;;  %v24599_v36 = vld [vmem:[%s32007_s1 + $0x6f4] ss:$8 sps:$4 sm:$0xff]  }
 0x21c   :  { %12359 = vmatprep.mubr.bf16.mxu0 %v26694_v63  ;;  %v2320_v63 = vrot.slane %v24470_v15, 1  ;;  %v27188_v45 = vld [vmem:[%s32008_s0 + $0xd4] ss:$8 sps:$4 sm:$0xff]  }
 0x21d   :  { %v2315_v58 = vsel %vm2291_vm0, %v2310_v8, %v2314_v55  ;;  %v2319_v50 = vsel %vm2291_vm0, %v2314_v55, %v2318_v14  ;;  %v2340_v8 = vrot.slane %v27166_v39, 1  ;;  %v27198_v55 = vld [vmem:[%s32008_s0 + $0xd0] ss:$8 sps:$4 sm:$0xff]  }
 0x21e   :  { %v2321_v10 = vsel %vm2291_vm0, %v2316_v32, %v2320_v63  ;;  %v2325_v61 = vsel %vm2291_vm0, %v2320_v63, %v2324_v51 }
 0x222   :  { %2863 = vmatmul.mubr.bf16.gmra.mrb[16].mxu1 %v2311_v9 }
 0x223   :  { %12360 = vmatmul.mubr.bf16.gmra.mrb[128].mxu0 %v26703_v6  ;;  %2872 = vmatprep.mubr.bf16.mxu1 %v2317_v46  ;;  %v24563_v6 = vld [vmem:[%s32007_s1 + $0x260] ss:$8 sps:$4 sm:$0xff]   ;;  %v2344_v46 = vrot.slane %v27188_v45, 1 }
 0x224   :  { %12369 = vmatprep.mubr.bf16.mxu0 %v26715_v17  ;;  %v24565_v17 = vld [vmem:[%s32007_s1 + $0x264] ss:$8 sps:$4 sm:$0xff]  }
 0x225   :  { %5165 = vmatprep.subr.bf16.mxu1 %v24565_v17  ;;  %v2345_v63 = vsel %vm2291_vm0, %v2340_v8, %v2344_v46  ;;  %v24616_v17 = vld [vmem:[%s32007_s1 + $0x284] ss:$8 sps:$4 sm:$0xff]  }
 0x226   :  { %5166 = vmatpush1.bf16.msra.mxu1 %v24563_v6 }
 0x227   :  { %5167 = vmatprep.subr.bf16.mxu1 %v24590_v23 }
 0x22a   :  { %2873 = vmatmul.mubr.bf16.gmra.mrb[20].mxu1 %v2315_v58 }
 0x22b   :  { %12370 = vmatmul.mubr.bf16.gmra.mrb[132].mxu0 %v26737_v28  ;;  %2882 = vmatprep.mubr.bf16.mxu1 %v2321_v10  ;;  %v27100_v28 = vld [vmem:[%s32008_s0 + $0x80] ss:$8 sps:$4 sm:$0xff]  }
 0x22c   :  { %12379 = vmatprep.mubr.bf16.mxu0 %v26749_v37  ;;  %v24573_v37 = vld [vmem:[%s32007_s1 + $0x6e0] ss:$8 sps:$4 sm:$0xff]   ;;  %v2322_v24 = vrot.slane %v27100_v28, 1 }
 0x22d   :  { %14166 = vmatpush1.bf16.msra.mxu0 %v24573_v37  ;;  %v27214_v10 = vld [vmem:[%s32008_s0 + $0xe0] ss:$8 sps:$4 sm:$0xff]   ;;  %v27242_v37 = vld [vmem:[%s32008_s0 + $0x104] ss:$8 sps:$4 sm:$0xff]  }
 0x22e   :  { %v2323_v12 = vsel %vm2291_vm0, %v2318_v14, %v2322_v24  ;;  %14167 = vmatprep.subr.bf16.mxu0 %v24599_v36  ;;  %v2346_v14 = vrot.slane %v27214_v10, 1  ;;  %v27296_v36 = vld [vmem:[%s32008_s0 + $0x124] ss:$8 sps:$4 sm:$0xff]  }
 0x232   :  { %2883 = vmatmul.mubr.bf16.gmra.mrb[24].mxu1 %v2319_v50 }
 0x233   :  { %12380 = vmatmul.mubr.bf16.gmra.mrb[136].mxu0 %v26768_v53  ;;  %2892 = vmatprep.mubr.bf16.mxu1 %v2325_v61  ;;  %v27122_v53 = vld [vmem:[%s32008_s0 + $0x90] ss:$8 sps:$4 sm:$0xff]  }
 0x234   :  { %12389 = vmatprep.mubr.bf16.mxu0 %v26774_v43  ;;  %v2326_v43 = vrot.slane %v27122_v53, 1 }
 0x236   :  { %v2327_v18 = vsel %vm2291_vm0, %v2322_v24, %v2326_v43  ;;  %v2331_v3 = vsel %vm2291_vm0, %v2326_v43, %v2330_v59 }
 0x23a   :  { %2893 = vmatmul.mubr.bf16.gmra.mrb[28].mxu1 %v2323_v12  ;;  %v2356_v12 = vrot.slane %v27242_v37, 1 }
 0x23b   :  { %12390 = vmatmul.mubr.bf16.gmra.mrb[140].mxu0 %v26791_v11  ;;  %2902 = vmatprep.mubr.bf16.mxu1 %v2329_v20  ;;  %v27144_v11 = vld [vmem:[%s32008_s0 + $0xb4] ss:$8 sps:$4 sm:$0xff]  }
 0x23c   :  { %12399 = vmatprep.mubr.bf16.mxu0 %v26796_v35  ;;  %v24588_v35 = vld [vmem:[%s32007_s1 + $0x270] ss:$8 sps:$4 sm:$0xff]   ;;  %v2336_v40 = vrot.slane %v27144_v11, 1 }
 0x23d   :  { %5168 = vmatpush1.bf16.msra.mxu1 %v24588_v35 }
 0x23e   :  { %v2337_v33 = vsel %vm2291_vm0, %v2332_v54, %v2336_v40  ;;  %v2341_v9 = vsel %vm2291_vm0, %v2336_v40, %v2340_v8  ;;  %5169 = vmatprep.subr.bf16.mxu1 %v24616_v17  ;;  %v27262_v54 = vld [vmem:[%s32008_s0 + $0x100] ss:$8 sps:$4 sm:$0xff]   ;;  %v27286_v40 = vld [vmem:[%s32008_s0 + $0x110] ss:$8 sps:$4 sm:$0xff]   ;;  %v27324_v17 = vld [vmem:[%s32008_s0 + $0x134] ss:$8 sps:$4 sm:$0xff]  }
 0x23f   :  { %v24629_v8 = vld [vmem:[%s32007_s1 + $0x290] ss:$8 sps:$4 sm:$0xff]  }
 0x242   :  { %2903 = vmatmul.mubr.bf16.gmra.mrb[32].mxu1 %v2327_v18 }
 0x243   :  { %12400 = vmatmul.mubr.bf16.gmra.mrb[144].mxu0 %v26814_v30  ;;  %2912 = vmatprep.mubr.bf16.mxu1 %v2333_v60  ;;  %v27160_v30 = vld [vmem:[%s32008_s0 + $0xb0] ss:$8 sps:$4 sm:$0xff]   ;;  %v2354_v60 = vrot.slane %v27262_v54, 1 }
 0x244   :  { %12409 = vmatprep.mubr.bf16.mxu0 %v26824_v41  ;;  %v24597_v41 = vld [vmem:[%s32007_s1 + $0x6f0] ss:$8 sps:$4 sm:$0xff]   ;;  %v2334_v42 = vrot.slane %v27160_v30, 1 }
 0x245   :  { %14168 = vmatpush1.bf16.msra.mxu0 %v24597_v41 }
 0x246   :  { %v2335_v32 = vsel %vm2291_vm0, %v2330_v59, %v2334_v42  ;;  %16499 = vmatprep.subr.bf16.mxu0 %v24622_v2 }
 0x24a   :  { %2913 = vmatmul.mubr.bf16.gmra.mrb[36].mxu1 %v2331_v3  ;;  %v24527_v3 = vld [vmem:[%s32008_s0 + $0x310] ss:$8 sps:$4 sm:$0xff]  }
 0x24b   :  { %12410 = vmatmul.mubr.bf16.gmra.mrb[148].mxu0 %v26842_v16  ;;  %2922 = vmatprep.mubr.bf16.mxu1 %v2337_v33  ;;  %v27182_v16 = vld [vmem:[%s32008_s0 + $0xc0] ss:$8 sps:$4 sm:$0xff]   ;;  %v2361_v33 = vsel %vm2291_vm0, %v2356_v12, %v2360_v38 }
 0x24c   :  { %12419 = vmatprep.mubr.bf16.mxu0 %v26846_v19  ;;  %v2338_v19 = vrot.slane %v27182_v16, 1 }
 0x24e   :  { %v2339_v15 = vsel %vm2291_vm0, %v2334_v42, %v2338_v19  ;;  %v24530_v42 = vld [vmem:[%s32008_s0 + $0x324] ss:$8 sps:$4 sm:$0xff]  }
 0x252   :  { %2923 = vmatmul.mubr.bf16.gmra.mrb[40].mxu1 %v2335_v32  ;;  %v24631_v32 = vld [vmem:[%s32007_s1 + $0x294] ss:$8 sps:$4 sm:$0xff]  }
 0x253   :  { %12420 = vmatmul.mubr.bf16.gmra.mrb[152].mxu0 %v26864_v27  ;;  %2932 = vmatprep.mubr.bf16.mxu1 %v2341_v9  ;;  %v27204_v27 = vld [vmem:[%s32008_s0 + $0xe4] ss:$8 sps:$4 sm:$0xff]   ;;  %v2358_v9 = vrot.slane %v27286_v40, 1 }
 0x254   :  { %12429 = vmatprep.mubr.bf16.mxu0 %v26868_v26  ;;  %v2342_v26 = vrot.slane %v27198_v55, 1  ;;  %v2348_v58 = vrot.slane %v27204_v27, 1 }
 0x256   :  { %v2343_v48 = vsel %vm2291_vm0, %v2338_v19, %v2342_v26  ;;  %v2349_v6 = vsel %vm2291_vm0, %v2344_v46, %v2348_v58  ;;  %v2347_v50 = vsel %vm2291_vm0, %v2342_v26, %v2346_v14  ;;  %v11687_v19 = vrot.slane %v24527_v3, 2 }
 0x257   :  { %v2364_v46 = vrot.slane %v27296_v36, 1 }
 0x25a   :  { %2933 = vmatmul.mubr.bf16.gmra.mrb[44].mxu1 %v2339_v15  ;;  %v11693_v15 = vrot.slane %v24530_v42, 2 }
 0x25b   :  { %12430 = vmatmul.mubr.bf16.gmra.mrb[156].mxu0 %v26886_v1  ;;  %2942 = vmatprep.mubr.bf16.mxu1 %v2345_v63  ;;  %v27220_v1 = vld [vmem:[%s32008_s0 + $0xf4] ss:$8 sps:$4 sm:$0xff]   ;;  %v2359_v63 = vsel %vm2291_vm0, %v2354_v60, %v2358_v9 }
 0x25c   :  { %12439 = vmatprep.mubr.bf16.mxu0 %v26896_v34  ;;  %v24614_v34 = vld [vmem:[%s32007_s1 + $0x280] ss:$8 sps:$4 sm:$0xff]   ;;  %v2352_v51 = vrot.slane %v27220_v1, 1 }
 0x25d   :  { %5170 = vmatpush1.bf16.msra.mxu1 %v24614_v34 }
 0x25e   :  { %v2353_v61 = vsel %vm2291_vm0, %v2348_v58, %v2352_v51  ;;  %v2357_v62 = vsel %vm2291_vm0, %v2352_v51, %v2356_v12  ;;  %5171 = vmatprep.subr.bf16.mxu1 %v24631_v32  ;;  %v27314_v58 = vld [vmem:[%s32008_s0 + $0x120] ss:$8 sps:$4 sm:$0xff]   ;;  %v24542_v12 = vld [vmem:[%s32008_s0 + $0x330] ss:$8 sps:$4 sm:$0xff]  }
 0x25f   :  { %v2362_v51 = vrot.slane %v27314_v58, 1 }
 0x261   :  { %5172 = vmatpush1.bf16.msra.mxu1 %v24629_v8  ;;  %v2363_v2 = vsel %vm2291_vm0, %v2358_v9, %v2362_v51 }
 0x262   :  { %2943 = vmatmul.mubr.bf16.gmra.mrb[48].mxu1 %v2343_v48  ;;  %v24533_v48 = vld [vmem:[%s32008_s0 + $0x320] ss:$8 sps:$4 sm:$0xff]  }
 0x263   :  { %12440 = vmatmul.mubr.bf16.gmra.mrb[160].mxu0 %v26914_v4  ;;  %2952 = vmatprep.mubr.bf16.mxu1 %v2349_v6  ;;  %v27236_v4 = vld [vmem:[%s32008_s0 + $0xf0] ss:$8 sps:$4 sm:$0xff]   ;;  %v2365_v6 = vsel %vm2291_vm0, %v2360_v38, %v2364_v46 }
 0x264   :  { %12449 = vmatprep.mubr.bf16.mxu0 %v26918_v13  ;;  %v24515_v13 = vld [vmem:[%s32008_s0 + $0x304] ss:$8 sps:$4 sm:$0xff]   ;;  %v2350_v24 = vrot.slane %v27236_v4, 1 }
 0x265   :  { %v11685_v20 = vrot.slane %v24515_v13, 2 }
 0x266   :  { %v2351_v43 = vsel %vm2291_vm0, %v2346_v14, %v2350_v24  ;;  %v24539_v14 = vld [vmem:[%s32008_s0 + $0x334] ss:$8 sps:$4 sm:$0xff]  }
 0x267   :  { %v11686_v18 = vsel %vm4654_vm1, %v11681_v31, %v11685_v20  ;;  %v2355_v31 = vsel %vm2291_vm0, %v2350_v24, %v2354_v60  ;;  %v11697_v13 = vrot.slane %v24539_v14, 2  ;;  %v24647_v14 = vld [vmem:[%s32007_s1 + $0x2a0] ss:$8 sps:$4 sm:$0xff]  }
 0x26a   :  { %2953 = vmatmul.mubr.bf16.gmra.mrb[52].mxu1 %v2347_v50  ;;  %v11691_v50 = vrot.slane %v24533_v48, 2 }
 0x26b   :  { %12450 = vmatmul.mubr.bf16.gmra.mrb[164].mxu0 %v26938_v49  ;;  %2962 = vmatprep.mubr.bf16.mxu1 %v2353_v61  ;;  %v11680_v49 = vsel %vm4654_vm1, %v11675_v52, %v11679_v25  ;;  %v24524_v52 = vld [vmem:[%s32008_s0 + $0x314] ss:$8 sps:$4 sm:$0xff]   ;;  %v2368_v61 = vrot.slane %v27324_v17, 1 }
 0x26c   :  { %12459 = vmatprep.mubr.bf16.mxu0 %v26944_v7  ;;  %v24518_v7 = vld [vmem:[%s32008_s0 + $0x300] ss:$8 sps:$4 sm:$0xff]   ;;  %v11689_v23 = vrot.slane %v24524_v52, 2  ;;  %v11692_v24 = vsel %vm4654_vm1, %v11687_v19, %v11691_v50 }
 0x26d   :  { %v11683_v35 = vrot.slane %v24518_v7, 2  ;;  %v24548_v7 = vld [vmem:[%s32008_s0 + $0x344] ss:$8 sps:$4 sm:$0xff]  }
 0x26e   :  { %v11690_v41 = vsel %vm4654_vm1, %v11685_v20, %v11689_v23  ;;  %v11694_v34 = vsel %vm4654_vm1, %v11689_v23, %v11693_v15  ;;  %v2369_v20 = vsel %vm2291_vm0, %v2364_v46, %v2368_v61  ;;  %v11701_v60 = vrot.slane %v24548_v7, 2  ;;  %v27358_v23 = vld [vmem:[%s32008_s0 + $0x140] ss:$8 sps:$4 sm:$0xff]  }
 0x26f   :  { %v11684_v59 = vsel %vm4654_vm1, %v11679_v25, %v11683_v35  ;;  %v11688_v26 = vsel %vm4654_vm1, %v11683_v35, %v11687_v19  ;;  %v27336_v25 = vld [vmem:[%s32008_s0 + $0x130] ss:$8 sps:$4 sm:$0xff]   ;;  %v2370_v42 = vrot.slane %v27358_v23, 1 }
 0x270   :  { %v11702_v3 = vsel %vm4654_vm1, %v11697_v13, %v11701_v60 }
 0x272   :  { %2963 = vmatmul.mubr.bf16.gmra.mrb[56].mxu1 %v2351_v43  ;;  %v11698_v43 = vsel %vm4654_vm1, %v11693_v15, %v11697_v13  ;;  %v27380_v15 = vld [vmem:[%s32008_s0 + $0x150] ss:$8 sps:$4 sm:$0xff]  }
 0x273   :  { %12460 = vmatmul.mubr.bf16.gmra.mrb[168].mxu0 %v11680_v49  ;;  %2972 = vmatprep.mubr.bf16.mxu1 %v2357_v62  ;;  %v27346_v49 = vld [vmem:[%s32008_s0 + $0x144] ss:$8 sps:$4 sm:$0xff]   ;;  %v2366_v62 = vrot.slane %v27336_v25, 1 }
 0x274   :  { %12469 = vmatprep.mubr.bf16.mxu0 %v11686_v18  ;;  %v11695_v18 = vrot.slane %v24542_v12, 2  ;;  %v2372_v52 = vrot.slane %v27346_v49, 1 }
 0x275   :  { %v2367_v35 = vsel %vm2291_vm0, %v2362_v51, %v2366_v62  ;;  %v2371_v19 = vsel %vm2291_vm0, %v2366_v62, %v2370_v42  ;;  %v24649_v51 = vld [vmem:[%s32007_s1 + $0x2a4] ss:$8 sps:$4 sm:$0xff]  }
 0x276   :  { %v11696_v38 = vsel %vm4654_vm1, %v11691_v50, %v11695_v18  ;;  %v2374_v50 = vrot.slane %v27380_v15, 1  ;;  %5173 = vmatprep.subr.bf16.mxu1 %v24649_v51  ;;  %v27452_v51 = vld [vmem:[%s32008_s0 + $0x180] ss:$8 sps:$4 sm:$0xff]  }
 0x277   :  { %5174 = vmatpush1.bf16.msra.mxu1 %v24647_v14 }
 0x27a   :  { %2973 = vmatmul.mubr.bf16.gmra.mrb[60].mxu1 %v2355_v31  ;;  %v24551_v31 = vld [vmem:[%s32008_s0 + $0x340] ss:$8 sps:$4 sm:$0xff]  }
 0x27b   :  { %12470 = vmatmul.mubr.bf16.gmra.mrb[172].mxu0 %v11684_v59  ;;  %2982 = vmatprep.mubr.bf16.mxu1 %v2361_v33  ;;  %v2373_v59 = vsel %vm2291_vm0, %v2368_v61, %v2372_v52  ;;  %v27368_v33 = vld [vmem:[%s32008_s0 + $0x154] ss:$8 sps:$4 sm:$0xff]   ;;  %v11699_v8 = vrot.slane %v24551_v31, 2 }
 0x27c   :  { %12479 = vmatprep.mubr.bf16.mxu0 %v11690_v41  ;;  %v24554_v41 = vld [vmem:[%s32008_s0 + $0x354] ss:$8 sps:$4 sm:$0xff]   ;;  %v2376_v32 = vrot.slane %v27368_v33, 1 }
 0x27d   :  { %v11705_v9 = vrot.slane %v24554_v41, 2  ;;  %v11700_v46 = vsel %vm4654_vm1, %v11695_v18, %v11699_v8  ;;  %v27418_v18 = vld [vmem:[%s32008_s0 + $0x174] ss:$8 sps:$4 sm:$0xff]   ;;  %v27430_v41 = vld [vmem:[%s32008_s0 + $0x170] ss:$8 sps:$4 sm:$0xff]  }
 0x27f   :  { %v11706_v48 = vsel %vm4654_vm1, %v11701_v60, %v11705_v9 }
 0x282   :  { %2983 = vmatmul.mubr.bf16.gmra.mrb[64].mxu1 %v2359_v63  ;;  %v24557_v63 = vld [vmem:[%s32008_s0 + $0x350] ss:$8 sps:$4 sm:$0xff]  }
 0x283   :  { %12480 = vmatmul.mubr.bf16.gmra.mrb[176].mxu0 %v11688_v26  ;;  %2992 = vmatprep.mubr.bf16.mxu1 %v2365_v6  ;;  %v2377_v26 = vsel %vm2291_vm0, %v2372_v52, %v2376_v32  ;;  %v27390_v6 = vld [vmem:[%s32008_s0 + $0x164] ss:$8 sps:$4 sm:$0xff]   ;;  %v11703_v61 = vrot.slane %v24557_v63, 2  ;;  %v24569_v52 = vld [vmem:[%s32008_s0 + $0x374] ss:$8 sps:$4 sm:$0xff]  }
 0x284   :  { %12489 = vmatprep.mubr.bf16.mxu0 %v11694_v34  ;;  %v24560_v34 = vld [vmem:[%s32008_s0 + $0x364] ss:$8 sps:$4 sm:$0xff]   ;;  %v2380_v13 = vrot.slane %v27390_v6, 1  ;;  %v11713_v31 = vrot.slane %v24569_v52, 2 }
 0x285   :  { %v11704_v12 = vsel %vm4654_vm1, %v11699_v8, %v11703_v61 }
 0x286   :  { %v2381_v7 = vsel %vm2291_vm0, %v2376_v32, %v2380_v13 }
 0x28a   :  { %2993 = vmatmul.mubr.bf16.gmra.mrb[68].mxu1 %v2363_v2  ;;  %v11709_v2 = vrot.slane %v24560_v34, 2 }
 0x28b   :  { %12490 = vmatmul.mubr.bf16.gmra.mrb[180].mxu0 %v11692_v24  ;;  %3002 = vmatprep.mubr.bf16.mxu1 %v2369_v20  ;;  %v2375_v24 = vsel %vm2291_vm0, %v2370_v42, %v2374_v50  ;;  %v27408_v20 = vld [vmem:[%s32008_s0 + $0x160] ss:$8 sps:$4 sm:$0xff]   ;;  %v24572_v42 = vld [vmem:[%s32008_s0 + $0x370] ss:$8 sps:$4 sm:$0xff]  }
 0x28c   :  { %12499 = vmatprep.mubr.bf16.mxu0 %v11698_v43  ;;  %v24566_v43 = vld [vmem:[%s32008_s0 + $0x360] ss:$8 sps:$4 sm:$0xff]   ;;  %v11710_v62 = vsel %vm4654_vm1, %v11705_v9, %v11709_v2  ;;  %v2378_v60 = vrot.slane %v27408_v20, 1  ;;  %v11714_v32 = vsel %vm4654_vm1, %v11709_v2, %v11713_v31  ;;  %v27440_v9 = vld [vmem:[%s32008_s0 + $0x184] ss:$8 sps:$4 sm:$0xff]   ;;  %v11711_v63 = vrot.slane %v24572_v42, 2 }
 0x28d   :  { %v27462_v2 = vld [vmem:[%s32008_s0 + $0x194] ss:$8 sps:$4 sm:$0xff]  }
 0x28e   :  { %v2392_v52 = vrot.slane %v27462_v2, 1 }
 0x292   :  { %3003 = vmatmul.mubr.bf16.gmra.mrb[72].mxu1 %v2367_v35  ;;  %v11707_v35 = vrot.slane %v24566_v43, 2  ;;  %v24664_v43 = vld [vmem:[%s32007_s1 + $0x2b4] ss:$8 sps:$4 sm:$0xff]  }
 0x293   :  { %12500 = vmatmul.mubr.bf16.gmra.mrb[184].mxu0 %v11696_v38  ;;  %3012 = vmatprep.mubr.bf16.mxu1 %v2373_v59  ;;  %v2384_v38 = vrot.slane %v27418_v18, 1  ;;  %v2379_v59 = vsel %vm2291_vm0, %v2374_v50, %v2378_v60  ;;  %v24581_v50 = vld [vmem:[%s32008_s0 + $0x380] ss:$8 sps:$4 sm:$0xff]  }
 0x294   :  { %12509 = vmatprep.mubr.bf16.mxu0 %v11702_v3  ;;  %v11708_v3 = vsel %vm4654_vm1, %v11703_v61, %v11707_v35  ;;  %v11712_v14 = vsel %vm4654_vm1, %v11707_v35, %v11711_v63  ;;  %5175 = vmatprep.subr.bf16.mxu1 %v24664_v43 }
 0x295   :  { %v2385_v8 = vsel %vm2291_vm0, %v2380_v13, %v2384_v38 }
 0x29a   :  { %3013 = vmatmul.mubr.bf16.gmra.mrb[76].mxu1 %v2371_v19  ;;  %v24578_v19 = vld [vmem:[%s32008_s0 + $0x384] ss:$8 sps:$4 sm:$0xff]  }
 0x29b   :  { %12510 = vmatmul.mubr.bf16.gmra.mrb[188].mxu0 %v11700_v46  ;;  %3022 = vmatprep.mubr.bf16.mxu1 %v2377_v26  ;;  %v2382_v46 = vrot.slane %v27430_v41, 1  ;;  %v2388_v26 = vrot.slane %v27440_v9, 1 }
 0x29c   :  { %12519 = vmatprep.mubr.bf16.mxu0 %v11706_v48  ;;  %v11717_v48 = vrot.slane %v24578_v19, 2 }
 0x29d   :  { %v2383_v34 = vsel %vm2291_vm0, %v2378_v60, %v2382_v46  ;;  %v2389_v61 = vsel %vm2291_vm0, %v2384_v38, %v2388_v26 }
 0x29e   :  { %v11718_v13 = vsel %vm4654_vm1, %v11713_v31, %v11717_v48  ;;  %v27480_v31 = vld [vmem:[%s32008_s0 + $0x190] ss:$8 sps:$4 sm:$0xff]  }
 0x29f   :  { %v2390_v19 = vrot.slane %v27480_v31, 1 }
 0x2a2   :  { %3023 = vmatmul.mubr.bf16.gmra.mrb[80].mxu1 %v2375_v24  ;;  %v24584_v24 = vld [vmem:[%s32008_s0 + $0x394] ss:$8 sps:$4 sm:$0xff]  }
 0x2a3   :  { %12520 = vmatmul.mubr.bf16.gmra.mrb[192].mxu0 %v11704_v12  ;;  %3032 = vmatprep.mubr.bf16.mxu1 %v2381_v7  ;;  %v24662_v12 = vld [vmem:[%s32007_s1 + $0x2b0] ss:$8 sps:$4 sm:$0xff]   ;;  %v2386_v7 = vrot.slane %v27452_v51, 1  ;;  %v11721_v60 = vrot.slane %v24584_v24, 2  ;;  %v27512_v24 = vld [vmem:[%s32008_s0 + $0x1b4] ss:$8 sps:$4 sm:$0xff]  }
 0x2a4   :  { %12529 = vmatprep.mubr.bf16.mxu0 %v11710_v62  ;;  %v11715_v62 = vrot.slane %v24581_v50, 2  ;;  %5176 = vmatpush1.bf16.msra.mxu1 %v24662_v12  ;;  %v24596_v50 = vld [vmem:[%s32008_s0 + $0x3a0] ss:$8 sps:$4 sm:$0xff]   ;;  %v24602_v12 = vld [vmem:[%s32008_s0 + $0x3b4] ss:$8 sps:$4 sm:$0xff]  }
 0x2a5   :  { %v2387_v35 = vsel %vm2291_vm0, %v2382_v46, %v2386_v7  ;;  %v11722_v42 = vsel %vm4654_vm1, %v11717_v48, %v11721_v60  ;;  %v2391_v48 = vsel %vm2291_vm0, %v2386_v7, %v2390_v19  ;;  %v11723_v7 = vrot.slane %v24596_v50, 2 }
 0x2a6   :  { %v11716_v38 = vsel %vm4654_vm1, %v11711_v63, %v11715_v62 }
 0x2aa   :  { %3033 = vmatmul.mubr.bf16.gmra.mrb[84].mxu1 %v2379_v59  ;;  %v24587_v59 = vld [vmem:[%s32008_s0 + $0x390] ss:$8 sps:$4 sm:$0xff]  }
 0x2ab   :  { %12530 = vmatmul.mubr.bf16.gmra.mrb[196].mxu0 %v11708_v3  ;;  %3042 = vmatprep.mubr.bf16.mxu1 %v2385_v8  ;;  %v2393_v3 = vsel %vm2291_vm0, %v2388_v26, %v2392_v52  ;;  %v27490_v8 = vld [vmem:[%s32008_s0 + $0x1a4] ss:$8 sps:$4 sm:$0xff]   ;;  %v11719_v46 = vrot.slane %v24587_v59, 2  ;;  %v27527_v59 = vld [vmem:[%s32008_s0 + $0x1b0] ss:$8 sps:$4 sm:$0xff]  }
 0x2ac   :  { %12539 = vmatprep.mubr.bf16.mxu0 %v11714_v32  ;;  %v24593_v32 = vld [vmem:[%s32008_s0 + $0x3a4] ss:$8 sps:$4 sm:$0xff]   ;;  %v2396_v63 = vrot.slane %v27490_v8, 1 }
 0x2ad   :  { %v11725_v26 = vrot.slane %v24593_v32, 2 }
 0x2b2   :  { %3043 = vmatmul.mubr.bf16.gmra.mrb[88].mxu1 %v2383_v34  ;;  %v11720_v34 = vsel %vm4654_vm1, %v11715_v62, %v11719_v46  ;;  %v2400_v62 = vrot.slane %v27512_v24, 1 }
 0x2b3   :  { %12540 = vmatmul.mubr.bf16.gmra.mrb[200].mxu0 %v11712_v14  ;;  %3052 = vmatprep.mubr.bf16.mxu1 %v2389_v61  ;;  %v27502_v14 = vld [vmem:[%s32008_s0 + $0x1a0] ss:$8 sps:$4 sm:$0xff]   ;;  %v2397_v61 = vsel %vm2291_vm0, %v2392_v52, %v2396_v63  ;;  %v11729_v52 = vrot.slane %v24602_v12, 2 }
 0x2b4   :  { %12549 = vmatprep.mubr.bf16.mxu0 %v11718_v13  ;;  %v11726_v13 = vsel %vm4654_vm1, %v11721_v60, %v11725_v26  ;;  %v2394_v43 = vrot.slane %v27502_v14, 1  ;;  %v11022_v60 = vld [vmem:[%s32008_s0 + $0x3c0] sm:$0x33] }
 0x2b5   :  { %v11730_v32 = vsel %vm4654_vm1, %v11725_v26, %v11729_v52  ;;  %v21128_v12 = vcombine.low %v11022_v60, %v11022_v60 }
 0x2ba   :  { %3053 = vmatmul.mubr.bf16.gmra.mrb[92].mxu1 %v2387_v35  ;;  %v2395_v35 = vsel %vm2291_vm0, %v2390_v19, %v2394_v43  ;;  %v21129_v19 = vcombine.high %v11022_v60, %v11022_v60 }
 0x2bb   :  { %12550 = vmatmul.mubr.bf16.gmra.mrb[204].mxu0 %v11716_v38  ;;  %3062 = vmatprep.mubr.bf16.mxu1 %v2393_v3  ;;  %v11724_v38 = vsel %vm4654_vm1, %v11719_v46, %v11723_v7  ;;  %v24605_v3 = vld [vmem:[%s32008_s0 + $0x3b0] ss:$8 sps:$4 sm:$0xff]   ;;  %v2398_v46 = vrot.slane %v27527_v59, 1 }
 0x2bc   :  { %12559 = vmatprep.mubr.bf16.mxu0 %v11722_v42  ;;  %v2401_v42 = vsel %vm2291_vm0, %v2396_v63, %v2400_v62 }
 0x2bd   :  { %v2399_v63 = vsel %vm2291_vm0, %v2394_v43, %v2398_v46  ;;  %v24680_v43 = vld [vmem:[%s32007_s1 + $0x2c0] ss:$8 sps:$4 sm:$0xff]  }
 0x2c2   :  { %3063 = vmatmul.mubr.bf16.gmra.mrb[96].mxu1 %v2391_v48  ;;  %v27537_v48 = vld [vmem:[%s32008_s0 + $0x1c4] ss:$8 sps:$4 sm:$0xff]  }
 0x2c3   :  { %12560 = vmatmul.mubr.bf16.gmra.mrb[208].mxu0 %v11720_v34  ;;  %3072 = vmatprep.mubr.bf16.mxu1 %v2397_v61  ;;  %v11727_v34 = vrot.slane %v24605_v3, 2  ;;  %v2404_v50 = vrot.slane %v27537_v48, 1  ;;  %v11733_v61 = vrot.slane %v21129_v19, 2  ;;  %v27553_v3 = vld [vmem:[%s32008_s0 + $0x1d4] ss:$8 sps:$4 sm:$0xff]  }
 0x2c4   :  { %12569 = vmatprep.mubr.bf16.mxu0 %v11726_v13  ;;  %v27546_v13 = vld [vmem:[%s32008_s0 + $0x1c0] ss:$8 sps:$4 sm:$0xff]   ;;  %v2408_v60 = vrot.slane %v27553_v3, 1  ;;  %v27568_v19 = vld [vmem:[%s32008_s0 + $0x1d0] ss:$8 sps:$4 sm:$0xff]  }
 0x2c5   :  { %v11728_v26 = vsel %vm4654_vm1, %v11723_v7, %v11727_v34  ;;  %v24682_v7 = vld [vmem:[%s32007_s1 + $0x2c4] ss:$8 sps:$4 sm:$0xff]  }
 0x2c6   :  { %5177 = vmatprep.subr.bf16.mxu1 %v24682_v7 }
 0x2c7   :  { %5178 = vmatpush1.bf16.msra.mxu1 %v24680_v43 }
 0x2ca   :  { %3073 = vmatmul.mubr.bf16.gmra.mrb[100].mxu1 %v2395_v35  ;;  %v2405_v35 = vsel %vm2291_vm0, %v2400_v62, %v2404_v50  ;;  %v2402_v62 = vrot.slane %v27546_v13, 1 }
 0x2cb   :  { %12570 = vmatmul.mubr.bf16.gmra.mrb[212].mxu0 %v11724_v38  ;;  %3082 = vmatprep.mubr.bf16.mxu1 %v2401_v42  ;;  %v11734_v38 = vsel %vm4654_vm1, %v11729_v52, %v11733_v61  ;;  %v11731_v52 = vrot.slane %v21128_v12, 2  ;;  %v2409_v61 = vsel %vm2291_vm0, %v2404_v50, %v2408_v60  ;;  %v27583_v50 = vld [vmem:[%s32008_s0 + $0x1e0] ss:$8 sps:$4 sm:$0xff]  }
 0x2cc   :  { %12579 = vmatprep.mubr.bf16.mxu0 %v11730_v32  ;;  %v2403_v42 = vsel %vm2291_vm0, %v2398_v46, %v2402_v62  ;;  %v2406_v46 = vrot.slane %v27568_v19, 1  ;;  %v2410_v43 = vrot.slane %v27583_v50, 1 }
 0x2cd   :  { %v11732_v32 = vsel %vm4654_vm1, %v11727_v34, %v11731_v52  ;;  %v24655_v52 = vld [vmem:[%s32007_s1 + $0x724] ss:$8 sps:$4 sm:$0xff]  }
 0x2d2   :  { %3083 = vmatmul.mubr.bf16.gmra.mrb[104].mxu1 %v2399_v63  ;;  %v27574_v63 = vld [vmem:[%s32008_s0 + $0x1e4] ss:$8 sps:$4 sm:$0xff]  }
 0x2d3   :  { %12580 = vmatmul.mubr.bf16.gmra.mrb[216].mxu0 %v11728_v26  ;;  %3092 = vmatprep.mubr.bf16.mxu1 %v2405_v35  ;;  %v2412_v34 = vrot.slane %v27574_v63, 1  ;;  %v2407_v26 = vsel %vm2291_vm0, %v2402_v62, %v2406_v46  ;;  %v24620_v35 = vld [vmem:[%s32007_s1 + $0x700] ss:$8 sps:$4 sm:$0xff]   ;;  %v24635_v62 = vld [vmem:[%s32007_s1 + $0x710] ss:$8 sps:$4 sm:$0xff]  }
 0x2d4   :  { %12589 = vmatprep.mubr.bf16.mxu0 %v11734_v38  ;;  %v24637_v38 = vld [vmem:[%s32007_s1 + $0x714] ss:$8 sps:$4 sm:$0xff]  }
 0x2d5   :  { %v2413_v12 = vsel %vm2291_vm0, %v2408_v60, %v2412_v34  ;;  %v2411_v60 = vsel %vm2291_vm0, %v2406_v46, %v2410_v43  ;;  %v24695_v46 = vld [vmem:[%s32007_s1 + $0x2d0] ss:$8 sps:$4 sm:$0xff]  }
 0x2da   :  { %3093 = vmatmul.mubr.bf16.gmra.mrb[108].mxu1 %v2403_v42  ;;  %v27617_v42 = vld [vmem:[%s32008_s0 + $0x204] ss:$8 sps:$4 sm:$0xff]  }
 0x2db   :  { %12590 = vmatmul.mubr.bf16.gmra.mrb[220].mxu0 %v11732_v32  ;;  %3102 = vmatprep.mubr.bf16.mxu1 %v2409_v61  ;;  %v24653_v32 = vld [vmem:[%s32007_s1 + $0x720] ss:$8 sps:$4 sm:$0xff]   ;;  %v24670_v61 = vld [vmem:[%s32007_s1 + $0x734] ss:$8 sps:$4 sm:$0xff]  }
 0x2dc   :  { %14169 = vmatprep.mubr.bf16.mxu0 %v27085_v56  ;;  %v27592_v56 = vld [vmem:[%s32008_s0 + $0x1f4] ss:$8 sps:$4 sm:$0xff]  }
 0x2dd   :  { %v2416_v7 = vrot.slane %v27592_v56, 1 }
 0x2e2   :  { %3103 = vmatmul.mubr.bf16.gmra.mrb[112].mxu1 %v2407_v26 }
 0x2e3   :  { %14170 = vmatmul.mubr.bf16.vlgmr.msra.gmra.mrb[0].mxu0 %v27100_v28  ;;  %3112 = vmatprep.mubr.bf16.mxu1 %v2413_v12  ;;  %v27611_v28 = vld [vmem:[%s32008_s0 + $0x1f0] ss:$8 sps:$4 sm:$0xff]   ;;  %v2420_v12 = vrot.slane %v27617_v42, 1 }
 0x2e4   :  { %14179 = vmatprep.mubr.bf16.mxu0 %v27106_v0  ;;  %16500 = vmatpush1.bf16.msra.mxu0 %v24620_v35  ;;  %v2417_v0 = vsel %vm2291_vm0, %v2412_v34, %v2416_v7  ;;  %v24697_v34 = vld [vmem:[%s32007_s1 + $0x2d4] ss:$8 sps:$4 sm:$0xff]   ;;  %v2414_v26 = vrot.slane %v27611_v28, 1  ;;  %v24688_v35 = vld [vmem:[%s32007_s1 + $0x744] ss:$8 sps:$4 sm:$0xff]  }
 0x2e5   :  { %16501 = vmatprep.subr.bf16.mxu0 %v24637_v38  ;;  %5179 = vmatprep.subr.bf16.mxu1 %v24697_v34 }
 0x2e6   :  { %5180 = vmatpush1.bf16.msra.mxu1 %v24695_v46  ;;  %v2415_v38 = vsel %vm2291_vm0, %v2410_v43, %v2414_v26  ;;  %v24703_v43 = vld [vmem:[%s32007_s1 + $0x754] ss:$8 sps:$4 sm:$0xff]  }
 0x2e8   :  { %16502 = vmatpush1.bf16.msra.mxu0 %v24635_v62  ;;  %v2421_v62 = vsel %vm2291_vm0, %v2416_v7, %v2420_v12 }
 0x2e9   :  { %16503 = vmatprep.subr.bf16.mxu0 %v24655_v52  ;;  %v27651_v52 = vld [vmem:[%s32008_s0 + $0x214] ss:$8 sps:$4 sm:$0xff]  }
 0x2ea   :  { %3113 = vmatmul.mubr.bf16.gmra.mrb[116].mxu1 %v2411_v60  ;;  %v24686_v60 = vld [vmem:[%s32007_s1 + $0x740] ss:$8 sps:$4 sm:$0xff]  }
 0x2eb   :  { %14180 = vmatmul.mubr.bf16.gmra.mrb[4].mxu0 %v27122_v53  ;;  %3122 = vmatprep.mubr.bf16.mxu1 %v2417_v0  ;;  %v24668_v53 = vld [vmem:[%s32007_s1 + $0x730] ss:$8 sps:$4 sm:$0xff]   ;;  %v2424_v0 = vrot.slane %v27651_v52, 1 }
 0x2ec   :  { %14189 = vmatprep.mubr.bf16.mxu0 %v27128_v29  ;;  %16504 = vmatpush1.bf16.msra.mxu0 %v24653_v32  ;;  %v27645_v29 = vld [vmem:[%s32008_s0 + $0x200] ss:$8 sps:$4 sm:$0xff]   ;;  %v24701_v32 = vld [vmem:[%s32007_s1 + $0x750] ss:$8 sps:$4 sm:$0xff]  }
 0x2ed   :  { %16505 = vmatprep.subr.bf16.mxu0 %v24670_v61  ;;  %v2418_v7 = vrot.slane %v27645_v29, 1  ;;  %v2425_v46 = vsel %vm2291_vm0, %v2420_v12, %v2424_v0  ;;  %v27686_v12 = vld [vmem:[%s32008_s0 + $0x220] ss:$8 sps:$4 sm:$0xff]  }
 0x2ef   :  { %v2419_v61 = vsel %vm2291_vm0, %v2414_v26, %v2418_v7 }
 0x2f0   :  { %16506 = vmatpush1.bf16.msra.mxu0 %v24668_v53 }
 0x2f1   :  { %16507 = vmatprep.subr.bf16.mxu0 %v24688_v35 }
 0x2f2   :  { %3123 = vmatmul.mubr.bf16.gmra.mrb[120].mxu1 %v2415_v38 }
 0x2f3   :  { %14190 = vmatmul.mubr.bf16.gmra.mrb[8].mxu0 %v27138_v21  ;;  %3132 = vmatprep.mubr.bf16.mxu1 %v2421_v62  ;;  %v27670_v21 = vld [vmem:[%s32008_s0 + $0x210] ss:$8 sps:$4 sm:$0xff]  }
 0x2f4   :  { %14199 = vmatprep.mubr.bf16.mxu0 %v27144_v11  ;;  %16508 = vmatpush1.bf16.msra.mxu0 %v24686_v60  ;;  %v27676_v11 = vld [vmem:[%s32008_s0 + $0x224] ss:$8 sps:$4 sm:$0xff]   ;;  %v2422_v34 = vrot.slane %v27670_v21, 1  ;;  %v27702_v60 = vld [vmem:[%s32008_s0 + $0x230] ss:$8 sps:$4 sm:$0xff]  }
 0x2f5   :  { %16509 = vmatprep.subr.bf16.mxu0 %v24703_v43  ;;  %v2428_v26 = vrot.slane %v27676_v11, 1 }
 0x2f6   :  { %v2423_v53 = vsel %vm2291_vm0, %v2418_v7, %v2422_v34  ;;  %v24715_v7 = vld [vmem:[%s32007_s1 + $0x2e4] ss:$8 sps:$4 sm:$0xff]  }
 0x2f7   :  { %v2429_v35 = vsel %vm2291_vm0, %v2424_v0, %v2428_v26  ;;  %v2430_v0 = vrot.slane %v27702_v60, 1  ;;  %5181 = vmatprep.subr.bf16.mxu1 %v24715_v7  ;;  %v27762_v7 = vld [vmem:[%s32008_s0 + $0x260] ss:$8 sps:$4 sm:$0xff]  }
 0x2f8   :  { %16510 = vmatpush1.bf16.msra.mxu0 %v24701_v32 }
 0x2fa   :  { %3133 = vmatmul.mubr.bf16.gmra.mrb[124].mxu1 %v2419_v61 }
 0x2fb   :  { %14200 = vmatmul.mubr.bf16.gmra.mrb[12].mxu0 %v27160_v30  ;;  %3142 = vmatprep.mubr.bf16.mxu1 %v2425_v46  ;;  %v27692_v30 = vld [vmem:[%s32008_s0 + $0x234] ss:$8 sps:$4 sm:$0xff]  }
 0x2fc   :  { %14209 = vmatprep.mubr.bf16.mxu0 %v27166_v39  ;;  %v2426_v39 = vrot.slane %v27686_v12, 1  ;;  %v2432_v38 = vrot.slane %v27692_v30, 1 }
 0x2fe   :  { %v2427_v62 = vsel %vm2291_vm0, %v2422_v34, %v2426_v39  ;;  %v2433_v43 = vsel %vm2291_vm0, %v2428_v26, %v2432_v38  ;;  %v2431_v61 = vsel %vm2291_vm0, %v2426_v39, %v2430_v0  ;;  %v27730_v34 = vld [vmem:[%s32008_s0 + $0x254] ss:$8 sps:$4 sm:$0xff]   ;;  %v24721_v26 = vld [vmem:[%s32007_s1 + $0x764] ss:$8 sps:$4 sm:$0xff]  }
 0x2ff   :  { %16511 = vmatprep.subr.bf16.mxu0 %v24721_v26 }
 0x302   :  { %3143 = vmatmul.mubr.bf16.gmra.mrb[128].mxu1 %v2423_v53 }
 0x303   :  { %14210 = vmatmul.mubr.bf16.gmra.mrb[16].mxu0 %v27182_v16  ;;  %3152 = vmatprep.mubr.bf16.mxu1 %v2429_v35  ;;  %v27708_v16 = vld [vmem:[%s32008_s0 + $0x244] ss:$8 sps:$4 sm:$0xff]   ;;  %v2440_v35 = vrot.slane %v27730_v34, 1 }
 0x304   :  { %14219 = vmatprep.mubr.bf16.mxu0 %v27188_v45  ;;  %v24713_v45 = vld [vmem:[%s32007_s1 + $0x2e0] ss:$8 sps:$4 sm:$0xff]   ;;  %v2436_v32 = vrot.slane %v27708_v16, 1 }
 0x305   :  { %5182 = vmatpush1.bf16.msra.mxu1 %v24713_v45 }
 0x306   :  { %v2437_v46 = vsel %vm2291_vm0, %v2432_v38, %v2436_v32  ;;  %v2441_v38 = vsel %vm2291_vm0, %v2436_v32, %v2440_v35  ;;  %v24730_v32 = vld [vmem:[%s32007_s1 + $0x2f4] ss:$8 sps:$4 sm:$0xff]  }
 0x307   :  { %5183 = vmatprep.subr.bf16.mxu1 %v24730_v32  ;;  %v27822_v32 = vld [vmem:[%s32008_s0 + $0x290] ss:$8 sps:$4 sm:$0xff]  }
 0x30a   :  { %3153 = vmatmul.mubr.bf16.gmra.mrb[132].mxu1 %v2427_v62  ;;  %v27752_v62 = vld [vmem:[%s32008_s0 + $0x264] ss:$8 sps:$4 sm:$0xff]  }
 0x30b   :  { %14220 = vmatmul.mubr.bf16.gmra.mrb[20].mxu0 %v27198_v55  ;;  %3162 = vmatprep.mubr.bf16.mxu1 %v2433_v43  ;;  %v27724_v55 = vld [vmem:[%s32008_s0 + $0x240] ss:$8 sps:$4 sm:$0xff]   ;;  %v2444_v43 = vrot.slane %v27752_v62, 1 }
 0x30c   :  { %14229 = vmatprep.mubr.bf16.mxu0 %v27204_v27  ;;  %v24719_v27 = vld [vmem:[%s32007_s1 + $0x760] ss:$8 sps:$4 sm:$0xff]   ;;  %v2434_v53 = vrot.slane %v27724_v55, 1 }
 0x30d   :  { %16512 = vmatpush1.bf16.msra.mxu0 %v24719_v27 }
 0x30e   :  { %v2435_v39 = vsel %vm2291_vm0, %v2430_v0, %v2434_v53  ;;  %v2445_v0 = vsel %vm2291_vm0, %v2440_v35, %v2444_v43  ;;  %v24736_v35 = vld [vmem:[%s32007_s1 + $0x774] ss:$8 sps:$4 sm:$0xff]  }
 0x30f   :  { %16513 = vmatprep.subr.bf16.mxu0 %v24736_v35 }
 0x312   :  { %3163 = vmatmul.mubr.bf16.gmra.mrb[136].mxu1 %v2431_v61  ;;  %v2442_v61 = vrot.slane %v27762_v7, 1 }
 0x313   :  { %14230 = vmatmul.mubr.bf16.gmra.mrb[24].mxu0 %v27214_v10  ;;  %3172 = vmatprep.mubr.bf16.mxu1 %v2437_v46  ;;  %v27746_v10 = vld [vmem:[%s32008_s0 + $0x250] ss:$8 sps:$4 sm:$0xff]  }
 0x314   :  { %14239 = vmatprep.mubr.bf16.mxu0 %v27220_v1  ;;  %v2438_v1 = vrot.slane %v27746_v10, 1 }
 0x316   :  { %v2439_v45 = vsel %vm2291_vm0, %v2434_v53, %v2438_v1  ;;  %v2443_v27 = vsel %vm2291_vm0, %v2438_v1, %v2442_v61  ;;  %v27790_v53 = vld [vmem:[%s32008_s0 + $0x284] ss:$8 sps:$4 sm:$0xff]  }
 0x31a   :  { %3173 = vmatmul.mubr.bf16.gmra.mrb[140].mxu1 %v2435_v39 }
 0x31b   :  { %14240 = vmatmul.mubr.bf16.gmra.mrb[28].mxu0 %v27236_v4  ;;  %3182 = vmatprep.mubr.bf16.mxu1 %v2441_v38  ;;  %v27768_v4 = vld [vmem:[%s32008_s0 + $0x274] ss:$8 sps:$4 sm:$0xff]   ;;  %v2452_v38 = vrot.slane %v27790_v53, 1 }
 0x31c   :  { %14249 = vmatprep.mubr.bf16.mxu0 %v27242_v37  ;;  %v24728_v37 = vld [vmem:[%s32007_s1 + $0x2f0] ss:$8 sps:$4 sm:$0xff]   ;;  %v2448_v46 = vrot.slane %v27768_v4, 1 }
 0x31d   :  { %5184 = vmatpush1.bf16.msra.mxu1 %v24728_v37 }
 0x31e   :  { %v2449_v26 = vsel %vm2291_vm0, %v2444_v43, %v2448_v46  ;;  %v2453_v43 = vsel %vm2291_vm0, %v2448_v46, %v2452_v38 }
 0x322   :  { %3183 = vmatmul.mubr.bf16.gmra.mrb[144].mxu1 %v2439_v45  ;;  %v27812_v45 = vld [vmem:[%s32008_s0 + $0x294] ss:$8 sps:$4 sm:$0xff]  }
 0x323   :  { %14250 = vmatmul.mubr.bf16.gmra.mrb[32].mxu0 %v27262_v54  ;;  %3192 = vmatprep.mubr.bf16.mxu1 %v2445_v0  ;;  %v27784_v54 = vld [vmem:[%s32008_s0 + $0x270] ss:$8 sps:$4 sm:$0xff]   ;;  %v2456_v0 = vrot.slane %v27812_v45, 1 }
 0x324   :  { %14259 = vmatprep.mubr.bf16.mxu0 %v27274_v5  ;;  %v24734_v5 = vld [vmem:[%s32007_s1 + $0x770] ss:$8 sps:$4 sm:$0xff]   ;;  %v2446_v39 = vrot.slane %v27784_v54, 1 }
 0x325   :  { %16514 = vmatpush1.bf16.msra.mxu0 %v24734_v5 }
 0x326   :  { %v2447_v1 = vsel %vm2291_vm0, %v2442_v61, %v2446_v39  ;;  %v2457_v61 = vsel %vm2291_vm0, %v2452_v38, %v2456_v0 }
 0x32a   :  { %3193 = vmatmul.mubr.bf16.gmra.mrb[148].mxu1 %v2443_v27 }
 0x32b   :  { %14260 = vmatmul.mubr.bf16.gmra.mrb[36].mxu0 %v27286_v40  ;;  %3202 = vmatprep.mubr.bf16.mxu1 %v2449_v26  ;;  %v27806_v40 = vld [vmem:[%s32008_s0 + $0x280] ss:$8 sps:$4 sm:$0xff]  }
 0x32c   :  { %14269 = vmatprep.mubr.bf16.mxu0 %v27296_v36  ;;  %v2450_v36 = vrot.slane %v27806_v40, 1  ;;  %v27838_v26 = vld [vmem:[%s32008_s0 + $0x2a0] ss:$8 sps:$4 sm:$0xff]  }
 0x32d   :  { %v2458_v35 = vrot.slane %v27838_v26, 1 }
 0x32e   :  { %v2451_v37 = vsel %vm2291_vm0, %v2446_v39, %v2450_v36 }
 0x332   :  { %3203 = vmatmul.mubr.bf16.gmra.mrb[152].mxu1 %v2447_v1  ;;  %v27857_v1 = vld [vmem:[%s32008_s0 + $0x2b0] ss:$8 sps:$4 sm:$0xff]  }
 0x333   :  { %14270 = vmatmul.mubr.bf16.gmra.mrb[40].mxu0 %v27314_v58  ;;  %3212 = vmatprep.mubr.bf16.mxu1 %v2453_v43  ;;  %v27828_v58 = vld [vmem:[%s32008_s0 + $0x2a4] ss:$8 sps:$4 sm:$0xff]  }
 0x334   :  { %14279 = vmatprep.mubr.bf16.mxu0 %v27324_v17  ;;  %v2454_v17 = vrot.slane %v27822_v32, 1  ;;  %v2460_v46 = vrot.slane %v27828_v58, 1  ;;  %v27863_v43 = vld [vmem:[%s32008_s0 + $0x2c4] ss:$8 sps:$4 sm:$0xff]  }
 0x336   :  { %v2455_v27 = vsel %vm2291_vm0, %v2450_v36, %v2454_v17  ;;  %v2461_v5 = vsel %vm2291_vm0, %v2456_v0, %v2460_v46  ;;  %v2459_v38 = vsel %vm2291_vm0, %v2454_v17, %v2458_v35  ;;  %v24756_v36 = vld [vmem:[%s32007_s1 + $0x784] ss:$8 sps:$4 sm:$0xff]   ;;  %v2462_v0 = vrot.slane %v27857_v1, 1 }
 0x337   :  { %16515 = vmatprep.subr.bf16.mxu0 %v24756_v36  ;;  %v24771_v36 = vld [vmem:[%s32007_s1 + $0x794] ss:$8 sps:$4 sm:$0xff]  }
 0x33a   :  { %3213 = vmatmul.mubr.bf16.gmra.mrb[156].mxu1 %v2451_v37  ;;  %v2468_v37 = vrot.slane %v27863_v43, 1 }
 0x33b   :  { %14280 = vmatmul.mubr.bf16.gmra.mrb[44].mxu0 %v27336_v25  ;;  %3222 = vmatprep.mubr.bf16.mxu1 %v2457_v61  ;;  %v27844_v25 = vld [vmem:[%s32008_s0 + $0x2b4] ss:$8 sps:$4 sm:$0xff]   ;;  %v2463_v61 = vsel %vm2291_vm0, %v2458_v35, %v2462_v0 }
 0x33c   :  { %14289 = vmatprep.mubr.bf16.mxu0 %v27346_v49  ;;  %v24750_v49 = vld [vmem:[%s32007_s1 + $0x304] ss:$8 sps:$4 sm:$0xff]   ;;  %v2464_v39 = vrot.slane %v27844_v25, 1 }
 0x33d   :  { %7283 = vmatprep.subr.bf16.mxu1 %v24750_v49  ;;  %v27895_v49 = vld [vmem:[%s32008_s0 + $0x2d0] ss:$8 sps:$4 sm:$0xff]  }
 0x33e   :  { %v2469_v17 = vsel %vm2291_vm0, %v2464_v39, %v2468_v37 }
 0x342   :  { %3223 = vmatmul.mubr.bf16.gmra.mrb[160].mxu1 %v2455_v27 }
 0x343   :  { %14290 = vmatmul.mubr.bf16.gmra.mrb[48].mxu0 %v27358_v23  ;;  %3232 = vmatprep.mubr.bf16.mxu1 %v2461_v5  ;;  %v2465_v23 = vsel %vm2291_vm0, %v2460_v46, %v2464_v39  ;;  %v27885_v46 = vld [vmem:[%s32008_s0 + $0x2d4] ss:$8 sps:$4 sm:$0xff]  }
 0x344   :  { %14299 = vmatprep.mubr.bf16.mxu0 %v27368_v33  ;;  %v24754_v33 = vld [vmem:[%s32007_s1 + $0x780] ss:$8 sps:$4 sm:$0xff]   ;;  %v2472_v27 = vrot.slane %v27885_v46, 1 }
 0x345   :  { %16516 = vmatpush1.bf16.msra.mxu0 %v24754_v33 }
 0x346   :  { %v2473_v35 = vsel %vm2291_vm0, %v2468_v37, %v2472_v27  ;;  %16517 = vmatprep.subr.bf16.mxu0 %v24771_v36 }
 0x34a   :  { %3233 = vmatmul.mubr.bf16.gmra.mrb[164].mxu1 %v2459_v38 }
 0x34b   :  { %14300 = vmatmul.mubr.bf16.gmra.mrb[52].mxu0 %v27380_v15  ;;  %3242 = vmatprep.mubr.bf16.mxu1 %v2465_v23  ;;  %v27879_v15 = vld [vmem:[%s32008_s0 + $0x2c0] ss:$8 sps:$4 sm:$0xff]  }
 0x34c   :  { %14309 = vmatprep.mubr.bf16.mxu0 %v27390_v6  ;;  %v2466_v6 = vrot.slane %v27879_v15, 1  ;;  %v27911_v23 = vld [vmem:[%s32008_s0 + $0x2e0] ss:$8 sps:$4 sm:$0xff]  }
 0x34e   :  { %v2467_v5 = vsel %vm2291_vm0, %v2462_v0, %v2466_v6  ;;  %v2474_v0 = vrot.slane %v27911_v23, 1 }
 0x352   :  { %3243 = vmatmul.mubr.bf16.gmra.mrb[168].mxu1 %v2463_v61 }
 0x353   :  { %14310 = vmatmul.mubr.bf16.gmra.mrb[56].mxu0 %v27408_v20  ;;  %3252 = vmatprep.mubr.bf16.mxu1 %v2469_v17  ;;  %v27901_v20 = vld [vmem:[%s32008_s0 + $0x2e4] ss:$8 sps:$4 sm:$0xff]  }
 0x354   :  { %14319 = vmatprep.mubr.bf16.mxu0 %v27418_v18  ;;  %v2470_v18 = vrot.slane %v27895_v49, 1  ;;  %v2476_v39 = vrot.slane %v27901_v20, 1 }
 0x356   :  { %v2471_v38 = vsel %vm2291_vm0, %v2466_v6, %v2470_v18  ;;  %v2477_v33 = vsel %vm2291_vm0, %v2472_v27, %v2476_v39  ;;  %v2475_v61 = vsel %vm2291_vm0, %v2470_v18, %v2474_v0  ;;  %v27939_v6 = vld [vmem:[%s32008_s0 + $0x304] ss:$8 sps:$4 sm:$0xff]  }
 0x357   :  { %v2484_v27 = vrot.slane %v27939_v6, 1 }
 0x35a   :  { %3253 = vmatmul.mubr.bf16.gmra.mrb[172].mxu1 %v2467_v5 }
 0x35b   :  { %14320 = vmatmul.mubr.bf16.gmra.mrb[60].mxu0 %v27430_v41  ;;  %3262 = vmatprep.mubr.bf16.mxu1 %v2473_v35  ;;  %v27917_v41 = vld [vmem:[%s32008_s0 + $0x2f4] ss:$8 sps:$4 sm:$0xff]   ;;  %v27949_v35 = vld [vmem:[%s32008_s0 + $0x300] ss:$8 sps:$4 sm:$0xff]  }
 0x35c   :  { %14329 = vmatprep.mubr.bf16.mxu0 %v27440_v9  ;;  %v24769_v9 = vld [vmem:[%s32007_s1 + $0x790] ss:$8 sps:$4 sm:$0xff]   ;;  %v2480_v37 = vrot.slane %v27917_v41, 1 }
 0x35d   :  { %16518 = vmatpush1.bf16.msra.mxu0 %v24769_v9 }
 0x35e   :  { %v2481_v17 = vsel %vm2291_vm0, %v2476_v39, %v2480_v37  ;;  %v2485_v18 = vsel %vm2291_vm0, %v2480_v37, %v2484_v27  ;;  %v27981_v37 = vld [vmem:[%s32008_s0 + $0x320] ss:$8 sps:$4 sm:$0xff]  }
 0x362   :  { %3263 = vmatmul.mubr.bf16.gmra.mrb[176].mxu1 %v2471_v38 }
 0x363   :  { %14330 = vmatmul.mubr.bf16.gmra.mrb[64].mxu0 %v27452_v51  ;;  %3272 = vmatprep.mubr.bf16.mxu1 %v2477_v33  ;;  %v27933_v51 = vld [vmem:[%s32008_s0 + $0x2f0] ss:$8 sps:$4 sm:$0xff]  }
 0x364   :  { %14339 = vmatprep.mubr.bf16.mxu0 %v27462_v2  ;;  %v2478_v2 = vrot.slane %v27933_v51, 1  ;;  %v27965_v33 = vld [vmem:[%s32008_s0 + $0x310] ss:$8 sps:$4 sm:$0xff]  }
 0x366   :  { %v2479_v5 = vsel %vm2291_vm0, %v2474_v0, %v2478_v2 }
 0x36a   :  { %3273 = vmatmul.mubr.bf16.gmra.mrb[180].mxu1 %v2475_v61 }
 0x36b   :  { %14340 = vmatmul.mubr.bf16.gmra.mrb[68].mxu0 %v27480_v31  ;;  %3282 = vmatprep.mubr.bf16.mxu1 %v2481_v17  ;;  %v27955_v31 = vld [vmem:[%s32008_s0 + $0x314] ss:$8 sps:$4 sm:$0xff]   ;;  %v24788_v17 = vld [vmem:[%s32007_s1 + $0x7a4] ss:$8 sps:$4 sm:$0xff]  }
 0x36c   :  { %14349 = vmatprep.mubr.bf16.mxu0 %v27490_v8  ;;  %v2482_v8 = vrot.slane %v27949_v35, 1  ;;  %v2488_v39 = vrot.slane %v27955_v31, 1  ;;  %16519 = vmatprep.subr.bf16.mxu0 %v24788_v17  ;;  %v24803_v17 = vld [vmem:[%s32007_s1 + $0x7b4] ss:$8 sps:$4 sm:$0xff]  }
 0x36e   :  { %v2483_v38 = vsel %vm2291_vm0, %v2478_v2, %v2482_v8  ;;  %v2489_v9 = vsel %vm2291_vm0, %v2484_v27, %v2488_v39  ;;  %v2490_v2 = vrot.slane %v27981_v37, 1 }
 0x372   :  { %3283 = vmatmul.mubr.bf16.gmra.mrb[184].mxu1 %v2479_v5 }
 0x373   :  { %14350 = vmatmul.mubr.bf16.gmra.mrb[72].mxu0 %v27502_v14  ;;  %3292 = vmatprep.mubr.bf16.mxu1 %v2485_v18  ;;  %v27971_v14 = vld [vmem:[%s32008_s0 + $0x324] ss:$8 sps:$4 sm:$0xff]  }
 0x374   :  { %14359 = vmatprep.mubr.bf16.mxu0 %v27512_v24  ;;  %v2486_v24 = vrot.slane %v27965_v33, 1  ;;  %v2492_v36 = vrot.slane %v27971_v14, 1 }
 0x376   :  { %v2487_v0 = vsel %vm2291_vm0, %v2482_v8, %v2486_v24  ;;  %v2493_v61 = vsel %vm2291_vm0, %v2488_v39, %v2492_v36  ;;  %v2491_v5 = vsel %vm2291_vm0, %v2486_v24, %v2490_v2  ;;  %v28009_v8 = vld [vmem:[%s32008_s0 + $0x344] ss:$8 sps:$4 sm:$0xff]  }
 0x377   :  { %v2500_v39 = vrot.slane %v28009_v8, 1 }
 0x37a   :  { %3293 = vmatmul.mubr.bf16.gmra.mrb[188].mxu1 %v2483_v38 }
 0x37b   :  { %14360 = vmatmul.mubr.bf16.gmra.mrb[76].mxu0 %v27527_v59  ;;  %3302 = vmatprep.mubr.bf16.mxu1 %v2489_v9  ;;  %v27987_v59 = vld [vmem:[%s32008_s0 + $0x334] ss:$8 sps:$4 sm:$0xff]   ;;  %v28019_v9 = vld [vmem:[%s32008_s0 + $0x340] ss:$8 sps:$4 sm:$0xff]  }
 0x37c   :  { %14369 = vmatprep.mubr.bf16.mxu0 %v27537_v48  ;;  %v24786_v48 = vld [vmem:[%s32007_s1 + $0x7a0] ss:$8 sps:$4 sm:$0xff]   ;;  %v2496_v27 = vrot.slane %v27987_v59, 1 }
 0x37d   :  { %16520 = vmatpush1.bf16.msra.mxu0 %v24786_v48 }
 0x37e   :  { %v2497_v18 = vsel %vm2291_vm0, %v2492_v36, %v2496_v27  ;;  %v2501_v24 = vsel %vm2291_vm0, %v2496_v27, %v2500_v39  ;;  %16521 = vmatprep.subr.bf16.mxu0 %v24803_v17 }
 0x382   :  { %3303 = vmatmul.mubr.bf16.gmra.mrb[192].mxu1 %v2487_v0 }
 0x383   :  { %14370 = vmatmul.mubr.bf16.gmra.mrb[80].mxu0 %v27546_v13  ;;  %3312 = vmatprep.mubr.bf16.mxu1 %v2493_v61  ;;  %v28003_v13 = vld [vmem:[%s32008_s0 + $0x330] ss:$8 sps:$4 sm:$0xff]  }
 0x384   :  { %14379 = vmatprep.mubr.bf16.mxu0 %v27553_v3  ;;  %v2494_v3 = vrot.slane %v28003_v13, 1  ;;  %v28035_v61 = vld [vmem:[%s32008_s0 + $0x350] ss:$8 sps:$4 sm:$0xff]  }
 0x386   :  { %v2495_v38 = vsel %vm2291_vm0, %v2490_v2, %v2494_v3  ;;  %v2502_v2 = vrot.slane %v28035_v61, 1 }
 0x38a   :  { %3313 = vmatmul.mubr.bf16.gmra.mrb[196].mxu1 %v2491_v5 }
 0x38b   :  { %14380 = vmatmul.mubr.bf16.gmra.mrb[84].mxu0 %v27568_v19  ;;  %3322 = vmatprep.mubr.bf16.mxu1 %v2497_v18  ;;  %v28025_v19 = vld [vmem:[%s32008_s0 + $0x354] ss:$8 sps:$4 sm:$0xff]  }
 0x38c   :  { %14389 = vmatprep.mubr.bf16.mxu0 %v27574_v63  ;;  %v2498_v63 = vrot.slane %v28019_v9, 1  ;;  %v2504_v36 = vrot.slane %v28025_v19, 1 }
 0x38e   :  { %v2499_v0 = vsel %vm2291_vm0, %v2494_v3, %v2498_v63  ;;  %v2505_v48 = vsel %vm2291_vm0, %v2500_v39, %v2504_v36  ;;  %v2503_v5 = vsel %vm2291_vm0, %v2498_v63, %v2502_v2  ;;  %v28063_v3 = vld [vmem:[%s32008_s0 + $0x374] ss:$8 sps:$4 sm:$0xff]   ;;  %v28076_v63 = vld [vmem:[%s32008_s0 + $0x370] ss:$8 sps:$4 sm:$0xff]  }
 0x38f   :  { %v2512_v39 = vrot.slane %v28063_v3, 1 }
 0x392   :  { %3323 = vmatmul.mubr.bf16.gmra.mrb[200].mxu1 %v2495_v38  ;;  %v1804_v38 = vld [vmem:[%s32008_s0 + $0x380] sm:$0x11] }
 0x393   :  { %14390 = vmatmul.mubr.bf16.gmra.mrb[88].mxu0 %v27583_v50  ;;  %3332 = vmatprep.mubr.bf16.mxu1 %v2501_v24  ;;  %v28041_v50 = vld [vmem:[%s32008_s0 + $0x364] ss:$8 sps:$4 sm:$0xff]  }
 0x394   :  { %14399 = vmatprep.mubr.bf16.mxu0 %v27592_v56  ;;  %v24801_v56 = vld [vmem:[%s32007_s1 + $0x7b0] ss:$8 sps:$4 sm:$0xff]   ;;  %v2508_v27 = vrot.slane %v28041_v50, 1 }
 0x395   :  { %16522 = vmatpush1.bf16.msra.mxu0 %v24801_v56  ;;  %v20418_v56 = vcombine.low %v1804_v38, %v1804_v38 }
 0x396   :  { %v2509_v18 = vsel %vm2291_vm0, %v2504_v36, %v2508_v27  ;;  %v20419_v36 = vcombine.high %v1804_v38, %v1804_v38 }
 0x39a   :  { %3333 = vmatmul.mubr.bf16.gmra.mrb[204].mxu1 %v2499_v0  ;;  %v2516_v0 = vrot.slane %v20419_v36, 1 }
 0x39b   :  { %14400 = vmatmul.mubr.bf16.gmra.mrb[92].mxu0 %v27611_v28  ;;  %3342 = vmatprep.mubr.bf16.mxu1 %v2505_v48  ;;  %v28057_v28 = vld [vmem:[%s32008_s0 + $0x360] ss:$8 sps:$4 sm:$0xff]  }
 0x39c   :  { %14409 = vmatprep.mubr.bf16.mxu0 %v27617_v42  ;;  %v2506_v42 = vrot.slane %v28057_v28, 1  ;;  %v2517_v17 = vsel %vm2291_vm0, %v2512_v39, %v2516_v0 }
 0x39e   :  { %v2507_v24 = vsel %vm2291_vm0, %v2502_v2, %v2506_v42  ;;  %v24744_v2 = vld [vmem:[%s32008_s0 + $0x4] ss:$8 sps:$4 sm:$0xfc]  }
 0x3a2   :  { %3343 = vmatmul.mubr.bf16.gmra.mrb[208].mxu1 %v2503_v5 }
 0x3a3   :  { %14410 = vmatmul.mubr.bf16.gmra.mrb[96].mxu0 %v27645_v29  ;;  %3352 = vmatprep.mubr.bf16.mxu1 %v2509_v18  ;;  %v2513_v29 = vsel %vm2291_vm0, %v2508_v27, %v2512_v39  ;;  %v24747_v27 = vld [vmem:[%s32008_s0 + $0x14] ss:$8 sps:$4 sm:$0xff]   ;;  %v24745_v39 = vld [vmem:[%s32008_s0 + $0x10] ss:$8 sps:$4 sm:$0xff]  }
 0x3a4   :  { %14419 = vmatprep.mubr.bf16.mxu0 %v27651_v52  ;;  %v2510_v52 = vrot.slane %v28076_v63, 1  ;;  %v4659_v5 = vrot.slane %v24747_v27, 2  ;;  %v4656_v36 = vrot.slane %v24745_v39, 2  ;;  %v24763_v27 = vld [vmem:[%s32007_s1 + $0x310] ss:$8 sps:$4 sm:$0xff]  }
 0x3a5   :  { %v24797_v39 = vld [vmem:[%s32007_s1 + $0x334] ss:$8 sps:$4 sm:$0xff]  }
 0x3a6   :  { %v2511_v48 = vsel %vm2291_vm0, %v2506_v42, %v2510_v52  ;;  %v24742_v42 = vld [vmem:[%s32008_s0] ss:$8 sps:$4 sm:$0xfc]  }
 0x3aa   :  { %3353 = vmatmul.mubr.bf16.gmra.mrb[212].mxu1 %v2507_v24  ;;  %v24821_v24 = vld [vmem:[%s32007_s1 + $0x7c4] ss:$8 sps:$4 sm:$0xff]  }
 0x3ab   :  { %14420 = vmatmul.mubr.bf16.gmra.mrb[100].mxu0 %v27670_v21  ;;  %3362 = vmatprep.mubr.bf16.mxu1 %v2513_v29  ;;  %v2514_v21 = vrot.slane %v20418_v56, 1  ;;  %v4655_v29 = vrot.slane %v24742_v42, 2  ;;  %v24760_v42 = vld [vmem:[%s32008_s0 + $0x44] ss:$8 sps:$4 sm:$0xff]  }
 0x3ac   :  { %14429 = vmatprep.mubr.bf16.mxu0 %v27676_v11  ;;  %v4658_v11 = vrot.slane %v24744_v2, 2  ;;  %16523 = vmatprep.subr.bf16.mxu0 %v24821_v24  ;;  %v24815_v24 = vld [vmem:[%s32007_s1 + $0x344] ss:$8 sps:$4 sm:$0xff]  }
 0x3ad   :  { %v2515_v18 = vsel %vm2291_vm0, %v2510_v52, %v2514_v21  ;;  %v4657_v0 = vsel %vm4654_vm1, %v4655_v29, %v4656_v36 }
 0x3ae   :  { %v4660_v38 = vsel %vm4654_vm1, %v4658_v11, %v4659_v5  ;;  %v24782_v11 = vld [vmem:[%s32007_s1 + $0x324] ss:$8 sps:$4 sm:$0xff]  }
 0x3b2   :  { %3363 = vmatmul.mubr.bf16.gmra.mrb[216].mxu1 %v2511_v48  ;;  %v24753_v48 = vld [vmem:[%s32008_s0 + $0x20] ss:$8 sps:$4 sm:$0xff]  }
 0x3b3   :  { %14430 = vmatmul.mubr.bf16.gmra.mrb[104].mxu0 %v27686_v12  ;;  %3372 = vmatprep.mubr.bf16.mxu1 %v2517_v17  ;;  %v24751_v12 = vld [vmem:[%s32008_s0 + $0x24] ss:$8 sps:$4 sm:$0xff]   ;;  %v24757_v17 = vld [vmem:[%s32008_s0 + $0x34] ss:$8 sps:$4 sm:$0xff]   ;;  %v4661_v2 = vrot.slane %v24753_v48, 2 }
 0x3b4   :  { %14439 = vmatprep.mubr.bf16.mxu0 %v27692_v30  ;;  %v24819_v30 = vld [vmem:[%s32007_s1 + $0x7c0] ss:$8 sps:$4 sm:$0xff]   ;;  %v4663_v52 = vrot.slane %v24751_v12, 2  ;;  %v4667_v21 = vrot.slane %v24757_v17, 2  ;;  %v4671_v12 = vrot.slane %v24760_v42, 2 }
 0x3b5   :  { %16524 = vmatpush1.bf16.msra.mxu0 %v24819_v30  ;;  %v24795_v30 = vld [vmem:[%s32007_s1 + $0x330] ss:$8 sps:$4 sm:$0xff]   ;;  %v24836_v48 = vld [vmem:[%s32007_s1 + $0x7d4] ss:$8 sps:$4 sm:$0xff]  }
 0x3b6   :  { %v4664_v56 = vsel %vm4654_vm1, %v4659_v5, %v4663_v52  ;;  %v4662_v5 = vsel %vm4654_vm1, %v4656_v36, %v4661_v2  ;;  %v24766_v36 = vld [vmem:[%s32008_s0 + $0x54] ss:$8 sps:$4 sm:$0xff]   ;;  %16525 = vmatprep.subr.bf16.mxu0 %v24836_v48 }
 0x3b7   :  { %v4675_v17 = vrot.slane %v24766_v36, 2  ;;  %v24775_v42 = vld [vmem:[%s32008_s0 + $0x74] ss:$8 sps:$4 sm:$0xff]  }
 0x3ba   :  { %3373 = vmatmul.mubr.bf16.gmra.mrb[220].mxu1 %v2515_v18  ;;  %v4668_v18 = vsel %vm4654_vm1, %v4663_v52, %v4667_v21  ;;  %v24813_v52 = vld [vmem:[%s32007_s1 + $0x340] ss:$8 sps:$4 sm:$0xff]  }
 0x3bb   :  { %14440 = vmatmul.mubr.bf16.gmra.mrb[108].mxu0 %v27702_v60  ;;  %5185 = vmatprep.mubr.bf16.mxu1 %v4660_v38  ;;  %v24748_v60 = vld [vmem:[%s32007_s1 + $0x300] ss:$8 sps:$4 sm:$0xff]  }
 0x3bc   :  { %14449 = vmatprep.mubr.bf16.mxu0 %v27708_v16  ;;  %v24765_v16 = vld [vmem:[%s32007_s1 + $0x314] ss:$8 sps:$4 sm:$0xff]  }
 0x3c2   :  { %5186 = vmatmul.mubr.bf16.vlgmr.msra.gmra.mrb[0].mxu1 %v4657_v0  ;;  %v24830_v0 = vld [vmem:[%s32007_s1 + $0x354] ss:$8 sps:$4 sm:$0xff]  }
 0x3c3   :  { %14450 = vmatmul.mubr.bf16.gmra.mrb[112].mxu0 %v27724_v55  ;;  %7284 = vmatpush1.bf16.msra.mxu1 %v24748_v60  ;;  %v24759_v55 = vld [vmem:[%s32008_s0 + $0x30] ss:$8 sps:$4 sm:$0xff]  }
 0x3c4   :  { %5195 = vmatprep.mubr.bf16.mxu1 %v4664_v56  ;;  %14459 = vmatprep.mubr.bf16.mxu0 %v27730_v34  ;;  %v24780_v34 = vld [vmem:[%s32007_s1 + $0x320] ss:$8 sps:$4 sm:$0xff]   ;;  %v4665_v38 = vrot.slane %v24759_v55, 2  ;;  %v24834_v60 = vld [vmem:[%s32007_s1 + $0x7d0] ss:$8 sps:$4 sm:$0xff]  }
 0x3c5   :  { %7285 = vmatprep.subr.bf16.mxu1 %v24765_v16  ;;  %v24828_v16 = vld [vmem:[%s32007_s1 + $0x350] ss:$8 sps:$4 sm:$0xff]   ;;  %16526 = vmatpush1.bf16.msra.mxu0 %v24834_v60  ;;  %v24774_v55 = vld [vmem:[%s32008_s0 + $0x60] ss:$8 sps:$4 sm:$0xff]  }
 0x3c6   :  { %v4666_v29 = vsel %vm4654_vm1, %v4661_v2, %v4665_v38  ;;  %v24768_v2 = vld [vmem:[%s32008_s0 + $0x50] ss:$8 sps:$4 sm:$0xff]  }
 0x3c7   :  { %7286 = vmatpush1.bf16.msra.mxu1 %v24763_v27  ;;  %v4676_v27 = vsel %vm4654_vm1, %v4671_v12, %v4675_v17 }
 0x3c8   :  { %7287 = vmatprep.subr.bf16.mxu1 %v24782_v11 }
 0x3ca   :  { %5196 = vmatmul.mubr.bf16.gmra.mrb[4].mxu1 %v4662_v5 }
 0x3cb   :  { %14460 = vmatmul.mubr.bf16.gmra.mrb[116].mxu0 %v27746_v10  ;;  %5205 = vmatprep.mubr.bf16.mxu1 %v4668_v18  ;;  %v24762_v10 = vld [vmem:[%s32008_s0 + $0x40] ss:$8 sps:$4 sm:$0xff]  }
 0x3cc   :  { %14469 = vmatprep.mubr.bf16.mxu0 %v27752_v62  ;;  %7288 = vmatpush1.bf16.msra.mxu1 %v24780_v34  ;;  %v4672_v62 = vsel %vm4654_vm1, %v4667_v21, %v4671_v12  ;;  %v4669_v56 = vrot.slane %v24762_v10, 2  ;;  %v4673_v21 = vrot.slane %v24768_v2, 2  ;;  %v4071_v34 = vld [vmem:[%s32008_s0 + $0x80] sm:$0xff] }
 0x3cd   :  { %7289 = vmatprep.subr.bf16.mxu1 %v24797_v39  ;;  %v28206_v39 = vld [vmem:[%s32008_s0 + $0x88] sm:$0xff] }
 0x3ce   :  { %v4674_v5 = vsel %vm4654_vm1, %v4669_v56, %v4673_v21  ;;  %v20500_v36 = vcombine.low %v4071_v34, %v28206_v39 }
 0x3d0   :  { %7290 = vmatpush1.bf16.msra.mxu1 %v24795_v30  ;;  %v24851_v30 = vld [vmem:[%s32007_s1 + $0x360] ss:$8 sps:$4 sm:$0xff]   ;;  %v4685_v60 = vrot.slane %v20500_v36, 2 }
 0x3d1   :  { %7291 = vmatprep.subr.bf16.mxu1 %v24815_v24  ;;  %v24853_v24 = vld [vmem:[%s32007_s1 + $0x364] ss:$8 sps:$4 sm:$0xff]   ;;  %v28335_v36 = vld [vmem:[%s32008_s0 + $0xe0] ss:$8 sps:$4 sm:$0xff]  }
 0x3d2   :  { %5206 = vmatmul.mubr.bf16.gmra.mrb[8].mxu1 %v4666_v29 }
 0x3d3   :  { %14470 = vmatmul.mubr.bf16.gmra.mrb[120].mxu0 %v27762_v7  ;;  %5215 = vmatprep.mubr.bf16.mxu1 %v4672_v62  ;;  %v4670_v7 = vsel %vm4654_vm1, %v4665_v38, %v4669_v56 }
 0x3d4   :  { %14479 = vmatprep.mubr.bf16.mxu0 %v27768_v4  ;;  %7292 = vmatpush1.bf16.msra.mxu1 %v24813_v52  ;;  %v24772_v4 = vld [vmem:[%s32008_s0 + $0x64] ss:$8 sps:$4 sm:$0xff]   ;;  %v28228_v52 = vld [vmem:[%s32008_s0 + $0x94] ss:$8 sps:$4 sm:$0xff]  }
 0x3d5   :  { %7293 = vmatprep.subr.bf16.mxu1 %v24830_v0  ;;  %v4679_v11 = vrot.slane %v24772_v4, 2  ;;  %v24863_v0 = vld [vmem:[%s32007_s1 + $0x7e4] ss:$8 sps:$4 sm:$0xff]   ;;  %v4691_v48 = vrot.slane %v28228_v52, 2 }
 0x3d6   :  { %16527 = vmatprep.subr.bf16.mxu0 %v24863_v0  ;;  %v4709_v0 = vrot.slane %v28335_v36, 2 }
 0x3d7   :  { %v4680_v18 = vsel %vm4654_vm1, %v4675_v17, %v4679_v11 }
 0x3d8   :  { %7294 = vmatpush1.bf16.msra.mxu1 %v24828_v16  ;;  %v28249_v16 = vld [vmem:[%s32008_s0 + $0xa4] ss:$8 sps:$4 sm:$0xff]  }
 0x3d9   :  { %7295 = vmatprep.subr.bf16.mxu1 %v24853_v24  ;;  %v28319_v24 = vld [vmem:[%s32008_s0 + $0xd0] ss:$8 sps:$4 sm:$0xff]  }
 0x3da   :  { %5216 = vmatmul.mubr.bf16.gmra.mrb[12].mxu1 %v4670_v7  ;;  %v4695_v7 = vrot.slane %v28249_v16, 2 }
 0x3db   :  { %14480 = vmatmul.mubr.bf16.gmra.mrb[124].mxu0 %v27784_v54  ;;  %5225 = vmatprep.mubr.bf16.mxu1 %v4676_v27  ;;  %v4677_v54 = vrot.slane %v24774_v55, 2  ;;  %v28259_v27 = vld [vmem:[%s32008_s0 + $0xa0] ss:$8 sps:$4 sm:$0xff]  }
 0x3dc   :  { %14489 = vmatprep.mubr.bf16.mxu0 %v27790_v53  ;;  %v4683_v53 = vrot.slane %v24775_v42, 2  ;;  %7296 = vmatpush1.bf16.msra.mxu1 %v24851_v30  ;;  %v4696_v4 = vsel %vm4654_vm1, %v4691_v48, %v4695_v7  ;;  %v28287_v42 = vld [vmem:[%s32008_s0 + $0xc4] ss:$8 sps:$4 sm:$0xff]  }
 0x3dd   :  { %v4678_v38 = vsel %vm4654_vm1, %v4673_v21, %v4677_v54  ;;  %v24878_v21 = vld [vmem:[%s32007_s1 + $0x374] ss:$8 sps:$4 sm:$0xff]  }
 0x3de   :  { %v4684_v12 = vsel %vm4654_vm1, %v4679_v11, %v4683_v53  ;;  %v4693_v11 = vrot.slane %v28259_v27, 2  ;;  %7297 = vmatprep.subr.bf16.mxu1 %v24878_v21 }
 0x3e2   :  { %5226 = vmatmul.mubr.bf16.gmra.mrb[16].mxu1 %v4674_v5 }
 0x3e3   :  { %14490 = vmatmul.mubr.bf16.gmra.mrb[128].mxu0 %v27806_v40  ;;  %5235 = vmatprep.mubr.bf16.mxu1 %v4680_v18  ;;  %v24777_v40 = vld [vmem:[%s32008_s0 + $0x70] ss:$8 sps:$4 sm:$0xff]  }
 0x3e4   :  { %14499 = vmatprep.mubr.bf16.mxu0 %v27812_v45  ;;  %v20501_v45 = vcombine.high %v4071_v34, %v28206_v39  ;;  %v4681_v29 = vrot.slane %v24777_v40, 2  ;;  %v4703_v34 = vrot.slane %v28287_v42, 2 }
 0x3e6   :  { %v4687_v10 = vrot.slane %v20501_v45, 2  ;;  %v4682_v62 = vsel %vm4654_vm1, %v4677_v54, %v4681_v29  ;;  %v4686_v56 = vsel %vm4654_vm1, %v4681_v29, %v4685_v60  ;;  %v24887_v54 = vld [vmem:[%s32007_s1 + $0x7f4] ss:$8 sps:$4 sm:$0xff]  }
 0x3e8   :  { %v4692_v17 = vsel %vm4654_vm1, %v4687_v10, %v4691_v48 }
 0x3ea   :  { %5236 = vmatmul.mubr.bf16.gmra.mrb[20].mxu1 %v4678_v38 }
 0x3eb   :  { %14500 = vmatmul.mubr.bf16.gmra.mrb[132].mxu0 %v27822_v32  ;;  %5245 = vmatprep.mubr.bf16.mxu1 %v4684_v12  ;;  %v4688_v32 = vsel %vm4654_vm1, %v4683_v53, %v4687_v10  ;;  %v28309_v12 = vld [vmem:[%s32008_s0 + $0xd4] ss:$8 sps:$4 sm:$0xff]  }
 0x3ec   :  { %14509 = vmatprep.mubr.bf16.mxu0 %v27828_v58  ;;  %v24861_v58 = vld [vmem:[%s32007_s1 + $0x7e0] ss:$8 sps:$4 sm:$0xff]   ;;  %v4707_v45 = vrot.slane %v28309_v12, 2 }
 0x3ed   :  { %16528 = vmatpush1.bf16.msra.mxu0 %v24861_v58  ;;  %v24907_v58 = vld [vmem:[%s32007_s1 + $0x384] ss:$8 sps:$4 sm:$0xff]  }
 0x3ee   :  { %16529 = vmatprep.subr.bf16.mxu0 %v24887_v54  ;;  %v4708_v29 = vsel %vm4654_vm1, %v4703_v34, %v4707_v45 }
 0x3f2   :  { %5246 = vmatmul.mubr.bf16.gmra.mrb[24].mxu1 %v4682_v62 }
 0x3f3   :  { %14510 = vmatmul.mubr.bf16.gmra.mrb[136].mxu0 %v27838_v26  ;;  %5255 = vmatprep.mubr.bf16.mxu1 %v4688_v32  ;;  %v28243_v26 = vld [vmem:[%s32008_s0 + $0x90] ss:$8 sps:$4 sm:$0xff]  }
 0x3f4   :  { %14519 = vmatprep.mubr.bf16.mxu0 %v27844_v25  ;;  %v4689_v25 = vrot.slane %v28243_v26, 2 }
 0x3f6   :  { %v4690_v2 = vsel %vm4654_vm1, %v4685_v60, %v4689_v25  ;;  %v4694_v55 = vsel %vm4654_vm1, %v4689_v25, %v4693_v11 }
 0x3fa   :  { %5256 = vmatmul.mubr.bf16.gmra.mrb[28].mxu1 %v4686_v56 }
 0x3fb   :  { %14520 = vmatmul.mubr.bf16.gmra.mrb[140].mxu0 %v27857_v1  ;;  %5265 = vmatprep.mubr.bf16.mxu1 %v4692_v17  ;;  %v28265_v1 = vld [vmem:[%s32008_s0 + $0xb4] ss:$8 sps:$4 sm:$0xff]   ;;  %v28363_v17 = vld [vmem:[%s32008_s0 + $0x104] ss:$8 sps:$4 sm:$0xff]  }
 0x3fc   :  { %14529 = vmatprep.mubr.bf16.mxu0 %v27863_v43  ;;  %v24876_v43 = vld [vmem:[%s32007_s1 + $0x370] ss:$8 sps:$4 sm:$0xff]   ;;  %v4699_v5 = vrot.slane %v28265_v1, 2 }
 0x3fd   :  { %7298 = vmatpush1.bf16.msra.mxu1 %v24876_v43  ;;  %v28382_v43 = vld [vmem:[%s32008_s0 + $0x114] ss:$8 sps:$4 sm:$0xff]  }
 0x3fe   :  { %v4700_v18 = vsel %vm4654_vm1, %v4695_v7, %v4699_v5  ;;  %v4704_v40 = vsel %vm4654_vm1, %v4699_v5, %v4703_v34  ;;  %7299 = vmatprep.subr.bf16.mxu1 %v24907_v58  ;;  %v4719_v7 = vrot.slane %v28363_v17, 2  ;;  %v4723_v21 = vrot.slane %v28382_v43, 2  ;;  %v28392_v5 = vld [vmem:[%s32008_s0 + $0x110] ss:$8 sps:$4 sm:$0xff]   ;;  %v24842_v58 = vld [vmem:[%s32008_s0 + $0x384] ss:$8 sps:$4 sm:$0xff]  }
 0x402   :  { %5266 = vmatmul.mubr.bf16.gmra.mrb[32].mxu1 %v4690_v2 }
 0x403   :  { %14530 = vmatmul.mubr.bf16.gmra.mrb[144].mxu0 %v27879_v15  ;;  %5275 = vmatprep.mubr.bf16.mxu1 %v4696_v4  ;;  %v28281_v15 = vld [vmem:[%s32008_s0 + $0xb0] ss:$8 sps:$4 sm:$0xff]   ;;  %v28376_v4 = vld [vmem:[%s32008_s0 + $0x100] ss:$8 sps:$4 sm:$0xff]  }
 0x404   :  { %14539 = vmatprep.mubr.bf16.mxu0 %v27885_v46  ;;  %v24885_v46 = vld [vmem:[%s32007_s1 + $0x7f0] ss:$8 sps:$4 sm:$0xff]   ;;  %v4697_v53 = vrot.slane %v28281_v15, 2 }
 0x405   :  { %16530 = vmatpush1.bf16.msra.mxu0 %v24885_v46  ;;  %v4721_v46 = vrot.slane %v28392_v5, 2 }
 0x406   :  { %v4698_v38 = vsel %vm4654_vm1, %v4693_v11, %v4697_v53 }
 0x40a   :  { %5276 = vmatmul.mubr.bf16.gmra.mrb[36].mxu1 %v4694_v55  ;;  %v4724_v55 = vsel %vm4654_vm1, %v4719_v7, %v4723_v21 }
 0x40b   :  { %14540 = vmatmul.mubr.bf16.gmra.mrb[148].mxu0 %v27895_v49  ;;  %5285 = vmatprep.mubr.bf16.mxu1 %v4700_v18  ;;  %v28303_v49 = vld [vmem:[%s32008_s0 + $0xc0] ss:$8 sps:$4 sm:$0xff]   ;;  %v24922_v18 = vld [vmem:[%s32007_s1 + $0x394] ss:$8 sps:$4 sm:$0xff]  }
 0x40c   :  { %14549 = vmatprep.mubr.bf16.mxu0 %v27901_v20  ;;  %v4701_v20 = vrot.slane %v28303_v49, 2 }
 0x40e   :  { %v4702_v30 = vsel %vm4654_vm1, %v4697_v53, %v4701_v20 }
 0x412   :  { %5286 = vmatmul.mubr.bf16.gmra.mrb[40].mxu1 %v4698_v38  ;;  %v28420_v38 = vld [vmem:[%s32008_s0 + $0x134] ss:$8 sps:$4 sm:$0xff]  }
 0x413   :  { %14550 = vmatmul.mubr.bf16.gmra.mrb[152].mxu0 %v27911_v23  ;;  %5295 = vmatprep.mubr.bf16.mxu1 %v4704_v40  ;;  %v28325_v23 = vld [vmem:[%s32008_s0 + $0xe4] ss:$8 sps:$4 sm:$0xff]   ;;  %v4731_v40 = vrot.slane %v28420_v38, 2 }
 0x414   :  { %14559 = vmatprep.mubr.bf16.mxu0 %v27917_v41  ;;  %v4705_v41 = vrot.slane %v28319_v24, 2  ;;  %v4711_v10 = vrot.slane %v28325_v23, 2 }
 0x416   :  { %v4706_v62 = vsel %vm4654_vm1, %v4701_v20, %v4705_v41  ;;  %v4712_v32 = vsel %vm4654_vm1, %v4707_v45, %v4711_v10  ;;  %v4710_v48 = vsel %vm4654_vm1, %v4705_v41, %v4709_v0  ;;  %v28430_v45 = vld [vmem:[%s32008_s0 + $0x130] ss:$8 sps:$4 sm:$0xff]  }
 0x41a   :  { %5296 = vmatmul.mubr.bf16.gmra.mrb[44].mxu1 %v4702_v30 }
 0x41b   :  { %14560 = vmatmul.mubr.bf16.gmra.mrb[156].mxu0 %v27933_v51  ;;  %5305 = vmatprep.mubr.bf16.mxu1 %v4708_v29  ;;  %v28341_v51 = vld [vmem:[%s32008_s0 + $0xf4] ss:$8 sps:$4 sm:$0xff]  }
 0x41c   :  { %14569 = vmatprep.mubr.bf16.mxu0 %v27939_v6  ;;  %v24905_v6 = vld [vmem:[%s32007_s1 + $0x380] ss:$8 sps:$4 sm:$0xff]   ;;  %v4715_v60 = vrot.slane %v28341_v51, 2 }
 0x41d   :  { %7300 = vmatpush1.bf16.msra.mxu1 %v24905_v6 }
 0x41e   :  { %v4716_v56 = vsel %vm4654_vm1, %v4711_v10, %v4715_v60  ;;  %7301 = vmatprep.subr.bf16.mxu1 %v24922_v18  ;;  %v28446_v10 = vld [vmem:[%s32008_s0 + $0x140] ss:$8 sps:$4 sm:$0xff]   ;;  %v24857_v18 = vld [vmem:[%s32008_s0 + $0x3a4] ss:$8 sps:$4 sm:$0xff]  }
 0x422   :  { %5306 = vmatmul.mubr.bf16.gmra.mrb[48].mxu1 %v4706_v62 }
 0x423   :  { %14570 = vmatmul.mubr.bf16.gmra.mrb[160].mxu0 %v27949_v35  ;;  %5315 = vmatprep.mubr.bf16.mxu1 %v4712_v32  ;;  %v28357_v35 = vld [vmem:[%s32008_s0 + $0xf0] ss:$8 sps:$4 sm:$0xff]  }
 0x424   :  { %14579 = vmatprep.mubr.bf16.mxu0 %v27955_v31  ;;  %v24913_v31 = vld [vmem:[%s32007_s1 + $0x804] ss:$8 sps:$4 sm:$0xff]   ;;  %v4713_v25 = vrot.slane %v28357_v35, 2 }
 0x425   :  { %18861 = vmatprep.subr.bf16.mxu0 %v24913_v31 }
 0x426   :  { %v4714_v2 = vsel %vm4654_vm1, %v4709_v0, %v4713_v25  ;;  %v28465_v0 = vld [vmem:[%s32008_s0 + $0x150] ss:$8 sps:$4 sm:$0xff]  }
 0x42a   :  { %5316 = vmatmul.mubr.bf16.gmra.mrb[52].mxu1 %v4710_v48  ;;  %v24940_v48 = vld [vmem:[%s32007_s1 + $0x3a4] ss:$8 sps:$4 sm:$0xff]  }
 0x42b   :  { %14580 = vmatmul.mubr.bf16.gmra.mrb[164].mxu0 %v27965_v33  ;;  %5325 = vmatprep.mubr.bf16.mxu1 %v4716_v56  ;;  %v4720_v33 = vsel %vm4654_vm1, %v4715_v60, %v4719_v7  ;;  %v24938_v60 = vld [vmem:[%s32007_s1 + $0x3a0] ss:$8 sps:$4 sm:$0xff]   ;;  %v4737_v56 = vrot.slane %v28465_v0, 2  ;;  %v24848_v7 = vld [vmem:[%s32008_s0 + $0x394] ss:$8 sps:$4 sm:$0xff]  }
 0x42c   :  { %14589 = vmatprep.mubr.bf16.mxu0 %v27971_v14  ;;  %v4717_v14 = vrot.slane %v28376_v4, 2 }
 0x42e   :  { %v4718_v11 = vsel %vm4654_vm1, %v4713_v25, %v4717_v14  ;;  %v4722_v53 = vsel %vm4654_vm1, %v4717_v14, %v4721_v46  ;;  %v28498_v14 = vld [vmem:[%s32008_s0 + $0x174] ss:$8 sps:$4 sm:$0xff]  }
 0x432   :  { %5326 = vmatmul.mubr.bf16.gmra.mrb[56].mxu1 %v4714_v2  ;;  %v28492_v2 = vld [vmem:[%s32008_s0 + $0x160] ss:$8 sps:$4 sm:$0xff]  }
 0x433   :  { %14590 = vmatmul.mubr.bf16.gmra.mrb[168].mxu0 %v27981_v37  ;;  %5335 = vmatprep.mubr.bf16.mxu1 %v4720_v33  ;;  %v28398_v37 = vld [vmem:[%s32008_s0 + $0x124] ss:$8 sps:$4 sm:$0xff]  }
 0x434   :  { %14599 = vmatprep.mubr.bf16.mxu0 %v27987_v59  ;;  %v24920_v59 = vld [vmem:[%s32007_s1 + $0x390] ss:$8 sps:$4 sm:$0xff]   ;;  %v4727_v54 = vrot.slane %v28398_v37, 2 }
 0x435   :  { %7302 = vmatpush1.bf16.msra.mxu1 %v24920_v59 }
 0x436   :  { %v4728_v34 = vsel %vm4654_vm1, %v4723_v21, %v4727_v54  ;;  %v4732_v30 = vsel %vm4654_vm1, %v4727_v54, %v4731_v40  ;;  %7303 = vmatprep.subr.bf16.mxu1 %v24940_v48  ;;  %v4741_v21 = vrot.slane %v28492_v2, 2  ;;  %v28558_v48 = vld [vmem:[%s32008_s0 + $0x190] ss:$8 sps:$4 sm:$0xff]  }
 0x438   :  { %v4742_v59 = vsel %vm4654_vm1, %v4737_v56, %v4741_v21 }
 0x439   :  { %7304 = vmatpush1.bf16.msra.mxu1 %v24938_v60  ;;  %v24872_v60 = vld [vmem:[%s32008_s0 + $0x3c4] ss:$8 sps:$4 sm:$0xff]  }
 0x43a   :  { %5336 = vmatmul.mubr.bf16.gmra.mrb[60].mxu1 %v4718_v11  ;;  %v4747_v11 = vrot.slane %v28498_v14, 2 }
 0x43b   :  { %14600 = vmatmul.mubr.bf16.gmra.mrb[172].mxu0 %v28003_v13  ;;  %5345 = vmatprep.mubr.bf16.mxu1 %v4724_v55  ;;  %v28414_v13 = vld [vmem:[%s32008_s0 + $0x120] ss:$8 sps:$4 sm:$0xff]   ;;  %v24854_v55 = vld [vmem:[%s32008_s0 + $0x390] ss:$8 sps:$4 sm:$0xff]  }
 0x43c   :  { %14609 = vmatprep.mubr.bf16.mxu0 %v28009_v8  ;;  %v4725_v8 = vrot.slane %v28414_v13, 2 }
 0x43e   :  { %v4726_v20 = vsel %vm4654_vm1, %v4721_v46, %v4725_v8  ;;  %v28512_v46 = vld [vmem:[%s32008_s0 + $0x170] ss:$8 sps:$4 sm:$0xff]  }
 0x442   :  { %5346 = vmatmul.mubr.bf16.gmra.mrb[64].mxu1 %v4722_v53  ;;  %v28518_v53 = vld [vmem:[%s32008_s0 + $0x184] ss:$8 sps:$4 sm:$0xff]  }
 0x443   :  { %14610 = vmatmul.mubr.bf16.gmra.mrb[176].mxu0 %v28019_v9  ;;  %5355 = vmatprep.mubr.bf16.mxu1 %v4728_v34  ;;  %v28436_v9 = vld [vmem:[%s32008_s0 + $0x144] ss:$8 sps:$4 sm:$0xff]   ;;  %v4745_v34 = vrot.slane %v28512_v46, 2 }
 0x444   :  { %14619 = vmatprep.mubr.bf16.mxu0 %v28025_v19  ;;  %v4729_v19 = vrot.slane %v28430_v45, 2  ;;  %v4735_v29 = vrot.slane %v28436_v9, 2 }
 0x446   :  { %v4730_v41 = vsel %vm4654_vm1, %v4725_v8, %v4729_v19  ;;  %v4736_v62 = vsel %vm4654_vm1, %v4731_v40, %v4735_v29  ;;  %v4751_v8 = vrot.slane %v28518_v53, 2  ;;  %v24860_v40 = vld [vmem:[%s32008_s0 + $0x3a0] ss:$8 sps:$4 sm:$0xff]  }
 0x44a   :  { %5356 = vmatmul.mubr.bf16.gmra.mrb[68].mxu1 %v4726_v20  ;;  %v4746_v20 = vsel %vm4654_vm1, %v4741_v21, %v4745_v34  ;;  %v24881_v21 = vld [vmem:[%s32008_s0 + $0x3d4] ss:$8 sps:$4 sm:$0xff]  }
 0x44b   :  { %14620 = vmatmul.mubr.bf16.gmra.mrb[180].mxu0 %v28035_v61  ;;  %5365 = vmatprep.mubr.bf16.mxu1 %v4732_v30  ;;  %v28452_v61 = vld [vmem:[%s32008_s0 + $0x154] ss:$8 sps:$4 sm:$0xff]  }
 0x44c   :  { %14629 = vmatprep.mubr.bf16.mxu0 %v28041_v50  ;;  %v4733_v50 = vrot.slane %v28446_v10, 2  ;;  %v4739_v32 = vrot.slane %v28452_v61, 2  ;;  %v24866_v30 = vld [vmem:[%s32008_s0 + $0x3b4] ss:$8 sps:$4 sm:$0xff]  }
 0x44e   :  { %v4734_v6 = vsel %vm4654_vm1, %v4729_v19, %v4733_v50  ;;  %v4738_v25 = vsel %vm4654_vm1, %v4733_v50, %v4737_v56  ;;  %v28532_v19 = vld [vmem:[%s32008_s0 + $0x180] ss:$8 sps:$4 sm:$0xff]   ;;  %v24955_v50 = vld [vmem:[%s32007_s1 + $0x3b4] ss:$8 sps:$4 sm:$0xff]  }
 0x44f   :  { %7305 = vmatprep.subr.bf16.mxu1 %v24955_v50 }
 0x452   :  { %5366 = vmatmul.mubr.bf16.gmra.mrb[72].mxu1 %v4730_v41  ;;  %v28538_v41 = vld [vmem:[%s32008_s0 + $0x194] ss:$8 sps:$4 sm:$0xff]  }
 0x453   :  { %14630 = vmatmul.mubr.bf16.gmra.mrb[184].mxu0 %v28057_v28  ;;  %5375 = vmatprep.mubr.bf16.mxu1 %v4736_v62  ;;  %v4740_v28 = vsel %vm4654_vm1, %v4735_v29, %v4739_v32  ;;  %v4752_v29 = vsel %vm4654_vm1, %v4747_v11, %v4751_v8  ;;  %v24953_v62 = vld [vmem:[%s32007_s1 + $0x3b0] ss:$8 sps:$4 sm:$0xff]  }
 0x454   :  { %14639 = vmatprep.mubr.bf16.mxu0 %v28063_v3  ;;  %v28471_v3 = vld [vmem:[%s32008_s0 + $0x164] ss:$8 sps:$4 sm:$0xff]   ;;  %7306 = vmatpush1.bf16.msra.mxu1 %v24953_v62 }
 0x455   :  { %v4743_v31 = vrot.slane %v28471_v3, 2 }
 0x457   :  { %v4744_v33 = vsel %vm4654_vm1, %v4739_v32, %v4743_v31  ;;  %v4748_v54 = vsel %vm4654_vm1, %v4743_v31, %v4747_v11  ;;  %v4749_v32 = vrot.slane %v28532_v19, 2  ;;  %v28564_v31 = vld [vmem:[%s32008_s0 + $0x1a4] ss:$8 sps:$4 sm:$0xff]   ;;  %v28578_v11 = vld [vmem:[%s32008_s0 + $0x1a0] ss:$8 sps:$4 sm:$0xff]  }
 0x45a   :  { %5376 = vmatmul.mubr.bf16.gmra.mrb[76].mxu1 %v4734_v6  ;;  %v4755_v6 = vrot.slane %v28538_v41, 2 }
 0x45b   :  { %14640 = vmatmul.mubr.bf16.gmra.mrb[188].mxu0 %v28076_v63  ;;  %5385 = vmatprep.mubr.bf16.mxu1 %v4740_v28  ;;  %v24845_v63 = vld [vmem:[%s32008_s0 + $0x380] ss:$8 sps:$4 sm:$0xff]   ;;  %v4750_v28 = vsel %vm4654_vm1, %v4745_v34, %v4749_v32  ;;  %v24884_v34 = vld [vmem:[%s32008_s0 + $0x3d0] ss:$8 sps:$4 sm:$0xff]  }
 0x45c   :  { %14649 = vmatprep.mubr.bf16.mxu0 %v24842_v58  ;;  %v24869_v58 = vld [vmem:[%s32008_s0 + $0x3b0] ss:$8 sps:$4 sm:$0xff]   ;;  %v4756_v56 = vsel %vm4654_vm1, %v4751_v8, %v4755_v6 }
 0x462   :  { %5386 = vmatmul.mubr.bf16.gmra.mrb[80].mxu1 %v4738_v25  ;;  %v4759_v25 = vrot.slane %v28564_v31, 2 }
 0x463   :  { %14650 = vmatmul.mubr.bf16.gmra.mrb[192].mxu0 %v24845_v63  ;;  %5395 = vmatprep.mubr.bf16.mxu1 %v4744_v33  ;;  %v4753_v63 = vrot.slane %v28558_v48, 2 }
 0x464   :  { %14659 = vmatprep.mubr.bf16.mxu0 %v24848_v7  ;;  %v24875_v7 = vld [vmem:[%s32008_s0 + $0x3c0] ss:$8 sps:$4 sm:$0xff]  }
 0x465   :  { %v4754_v33 = vsel %vm4654_vm1, %v4749_v32, %v4753_v63  ;;  %v15402_v32 = vld [vmem:[%s32008_s0 + $0x80] sm:$0xee] }
 0x46a   :  { %5396 = vmatmul.mubr.bf16.gmra.mrb[84].mxu1 %v4742_v59  ;;  %v28584_v59 = vld [vmem:[%s32008_s0 + $0x1b4] ss:$8 sps:$4 sm:$0xff]  }
 0x46b   :  { %14660 = vmatmul.mubr.bf16.gmra.mrb[196].mxu0 %v24854_v55  ;;  %5405 = vmatprep.mubr.bf16.mxu1 %v4748_v54  ;;  %v4760_v55 = vsel %vm4654_vm1, %v4755_v6, %v4759_v25  ;;  %v4763_v54 = vrot.slane %v28584_v59, 2  ;;  %v24893_v6 = vld [vmem:[%s32008_s0 + $0x3e0] ss:$8 sps:$4 sm:$0xff]  }
 0x46c   :  { %14669 = vmatprep.mubr.bf16.mxu0 %v24857_v18  ;;  %v4757_v18 = vrot.slane %v28578_v11, 2 }
 0x46e   :  { %v4758_v8 = vsel %vm4654_vm1, %v4753_v63, %v4757_v18  ;;  %v28627_v63 = vld [vmem:[%s32008_s0 + $0x1d4] ss:$8 sps:$4 sm:$0xff]  }
 0x472   :  { %5406 = vmatmul.mubr.bf16.gmra.mrb[88].mxu1 %v4746_v20  ;;  %v28598_v20 = vld [vmem:[%s32008_s0 + $0x1b0] ss:$8 sps:$4 sm:$0xff]  }
 0x473   :  { %14670 = vmatmul.mubr.bf16.gmra.mrb[200].mxu0 %v24860_v40  ;;  %5415 = vmatprep.mubr.bf16.mxu1 %v4752_v29  ;;  %v24890_v40 = vld [vmem:[%s32008_s0 + $0x3e4] ss:$8 sps:$4 sm:$0xff]   ;;  %v4761_v62 = vrot.slane %v28598_v20, 2 }
 0x474   :  { %14679 = vmatprep.mubr.bf16.mxu0 %v24866_v30  ;;  %v4764_v30 = vsel %vm4654_vm1, %v4759_v25, %v4763_v54  ;;  %v28604_v29 = vld [vmem:[%s32008_s0 + $0x1c4] ss:$8 sps:$4 sm:$0xff]   ;;  %v21371_v25 = vcombine.high %v15402_v32, %v28206_v39 }
 0x475   :  { %v4767_v50 = vrot.slane %v28604_v29, 2 }
 0x47a   :  { %5416 = vmatmul.mubr.bf16.gmra.mrb[92].mxu1 %v4750_v28  ;;  %v24896_v28 = vld [vmem:[%s32008_s0 + $0x3f4] ss:$8 sps:$4 sm:$0xff]  }
 0x47b   :  { %14680 = vmatmul.mubr.bf16.gmra.mrb[204].mxu0 %v24869_v58  ;;  %5425 = vmatprep.mubr.bf16.mxu1 %v4756_v56  ;;  %v4762_v58 = vsel %vm4654_vm1, %v4757_v18, %v4761_v62  ;;  %v4768_v56 = vsel %vm4654_vm1, %v4763_v54, %v4767_v50  ;;  %v16004_v18 = vrot.slane %v21371_v25, 1  ;;  %v16005_v54 = vrot.slane %v28228_v52, 1  ;;  %v28654_v52 = vld [vmem:[%s32008_s0 + $0x1e4] ss:$8 sps:$4 sm:$0xff]  }
 0x47c   :  { %14689 = vmatprep.mubr.bf16.mxu0 %v24872_v60  ;;  %v28621_v60 = vld [vmem:[%s32008_s0 + $0x1c0] ss:$8 sps:$4 sm:$0xff]  }
 0x482   :  { %5426 = vmatmul.mubr.bf16.gmra.mrb[96].mxu1 %v4754_v33  ;;  %v24973_v33 = vld [vmem:[%s32007_s1 + $0x3c4] ss:$8 sps:$4 sm:$0xff]  }
 0x483   :  { %14690 = vmatmul.mubr.bf16.gmra.mrb[208].mxu0 %v24875_v7  ;;  %5435 = vmatprep.mubr.bf16.mxu1 %v4760_v55  ;;  %v24971_v7 = vld [vmem:[%s32007_s1 + $0x3c0] ss:$8 sps:$4 sm:$0xff]   ;;  %v4771_v55 = vrot.slane %v28627_v63, 2 }
 0x484   :  { %14699 = vmatprep.mubr.bf16.mxu0 %v24881_v21  ;;  %v4765_v21 = vrot.slane %v28621_v60, 2  ;;  %7307 = vmatprep.subr.bf16.mxu1 %v24973_v33 }
 0x485   :  { %7308 = vmatpush1.bf16.msra.mxu1 %v24971_v7  ;;  %v28665_v7 = vld [vmem:[%s32008_s0 + $0x1e0] ss:$8 sps:$4 sm:$0xff]  }
 0x48a   :  { %5436 = vmatmul.mubr.bf16.gmra.mrb[100].mxu1 %v4758_v8  ;;  %v4766_v8 = vsel %vm4654_vm1, %v4761_v62, %v4765_v21 }
 0x48b   :  { %14700 = vmatmul.mubr.bf16.gmra.mrb[212].mxu0 %v24884_v34  ;;  %5445 = vmatprep.mubr.bf16.mxu1 %v4764_v30  ;;  %v24899_v34 = vld [vmem:[%s32008_s0 + $0x3f0] ss:$8 sps:$4 sm:$0xff]  }
 0x48c   :  { %14709 = vmatprep.mubr.bf16.mxu0 %v24890_v40  ;;  %v21370_v40 = vcombine.low %v15402_v32, %v28206_v39  ;;  %v28647_v30 = vld [vmem:[%s32008_s0 + $0x1d0] ss:$8 sps:$4 sm:$0xff]   ;;  %v16002_v39 = vrot.slane %v28243_v26, 1 }
 0x48d   :  { %v4769_v32 = vrot.slane %v28647_v30, 2 }
 0x48e   :  { %v16001_v62 = vrot.slane %v21370_v40, 1  ;;  %v24926_v40 = vld [vmem:[%s32007_s1 + $0x810] ss:$8 sps:$4 sm:$0xff]  }
 0x490   :  { %v16003_v25 = vsel %vm2291_vm0, %v16001_v62, %v16002_v39 }
 0x492   :  { %5446 = vmatmul.mubr.bf16.gmra.mrb[104].mxu1 %v4762_v58  ;;  %v16006_v58 = vsel %vm2291_vm0, %v16004_v18, %v16005_v54  ;;  %v24911_v18 = vld [vmem:[%s32007_s1 + $0x800] ss:$8 sps:$4 sm:$0xff]  }
 0x493   :  { %14710 = vmatmul.mubr.bf16.gmra.mrb[216].mxu0 %v24893_v6  ;;  %5455 = vmatprep.mubr.bf16.mxu1 %v4768_v56  ;;  %v4772_v6 = vsel %vm4654_vm1, %v4767_v50, %v4771_v55  ;;  %v16009_v50 = vrot.slane %v28249_v16, 1  ;;  %v4770_v56 = vsel %vm4654_vm1, %v4765_v21, %v4769_v32  ;;  %v28675_v16 = vld [vmem:[%s32008_s0 + $0x1f4] ss:$8 sps:$4 sm:$0xff]  }
 0x494   :  { %14719 = vmatprep.mubr.bf16.mxu0 %v24896_v28  ;;  %v4775_v28 = vrot.slane %v28654_v52, 2  ;;  %v24928_v21 = vld [vmem:[%s32007_s1 + $0x814] ss:$8 sps:$4 sm:$0xff]  }
 0x495   :  { %v16010_v26 = vsel %vm2291_vm0, %v16005_v54, %v16009_v50  ;;  %v16007_v54 = vrot.slane %v28259_v27, 1  ;;  %v28695_v27 = vld [vmem:[%s32008_s0 + $0x1f0] ss:$8 sps:$4 sm:$0xff]  }
 0x496   :  { %v4776_v33 = vsel %vm4654_vm1, %v4771_v55, %v4775_v28  ;;  %v4773_v55 = vrot.slane %v28665_v7, 2 }
 0x497   :  { %v16008_v62 = vsel %vm2291_vm0, %v16002_v39, %v16007_v54  ;;  %v24961_v39 = vld [vmem:[%s32007_s1 + $0x834] ss:$8 sps:$4 sm:$0xff]  }
 0x49a   :  { %5456 = vmatmul.mubr.bf16.gmra.mrb[108].mxu1 %v4766_v8  ;;  %v16013_v8 = vrot.slane %v28265_v1, 1 }
 0x49b   :  { %14720 = vmatmul.mubr.bf16.gmra.mrb[220].mxu0 %v24899_v34  ;;  %5465 = vmatprep.mubr.bf16.mxu1 %v4772_v6  ;;  %v4779_v34 = vrot.slane %v28675_v16, 2  ;;  %v24946_v6 = vld [vmem:[%s32007_s1 + $0x824] ss:$8 sps:$4 sm:$0xff]  }
 0x49c   :  { %16531 = vmatprep.mubr.bf16.mxu0 %v16006_v58  ;;  %v4774_v58 = vsel %vm4654_vm1, %v4769_v32, %v4773_v55  ;;  %v24944_v32 = vld [vmem:[%s32007_s1 + $0x820] ss:$8 sps:$4 sm:$0xff]  }
 0x49d   :  { %v4780_v1 = vsel %vm4654_vm1, %v4775_v28, %v4779_v34  ;;  %v24986_v28 = vld [vmem:[%s32007_s1 + $0x3d0] ss:$8 sps:$4 sm:$0xff]  }
 0x4a2   :  { %5466 = vmatmul.mubr.bf16.gmra.mrb[112].mxu1 %v4770_v56  ;;  %v16014_v56 = vsel %vm2291_vm0, %v16009_v50, %v16013_v8  ;;  %v24988_v50 = vld [vmem:[%s32007_s1 + $0x3d4] ss:$8 sps:$4 sm:$0xff]  }
 0x4a3   :  { %16532 = vmatmul.mubr.bf16.vlgmr.msra.gmra.mrb[0].mxu0 %v16003_v25  ;;  %5475 = vmatprep.mubr.bf16.mxu1 %v4776_v33  ;;  %v28702_v25 = vld [vmem:[%s32008_s0 + $0x204] ss:$8 sps:$4 sm:$0xff]   ;;  %v4777_v33 = vrot.slane %v28695_v27, 2 }
 0x4a4   :  { %16541 = vmatprep.mubr.bf16.mxu0 %v16010_v26  ;;  %18862 = vmatpush1.bf16.msra.mxu0 %v24911_v18  ;;  %v16011_v26 = vrot.slane %v28281_v15, 1  ;;  %v4783_v18 = vrot.slane %v28702_v25, 2 }
 0x4a5   :  { %18863 = vmatprep.subr.bf16.mxu0 %v24928_v21  ;;  %v16017_v21 = vrot.slane %v28287_v42, 1  ;;  %7309 = vmatprep.subr.bf16.mxu1 %v24988_v50  ;;  %v28731_v42 = vld [vmem:[%s32008_s0 + $0x200] ss:$8 sps:$4 sm:$0xff]  }
 0x4a6   :  { %7310 = vmatpush1.bf16.msra.mxu1 %v24986_v28  ;;  %v16012_v15 = vsel %vm2291_vm0, %v16007_v54, %v16011_v26  ;;  %v24994_v54 = vld [vmem:[%s32007_s1 + $0x854] ss:$8 sps:$4 sm:$0xff]   ;;  %v24992_v28 = vld [vmem:[%s32007_s1 + $0x850] ss:$8 sps:$4 sm:$0xff]  }
 0x4a8   :  { %18864 = vmatpush1.bf16.msra.mxu0 %v24926_v40  ;;  %v24959_v40 = vld [vmem:[%s32007_s1 + $0x830] ss:$8 sps:$4 sm:$0xff]  }
 0x4a9   :  { %18865 = vmatprep.subr.bf16.mxu0 %v24946_v6  ;;  %v24979_v6 = vld [vmem:[%s32007_s1 + $0x844] ss:$8 sps:$4 sm:$0xff]  }
 0x4aa   :  { %5476 = vmatmul.mubr.bf16.gmra.mrb[116].mxu1 %v4774_v58  ;;  %v4778_v58 = vsel %vm4654_vm1, %v4773_v55, %v4777_v33  ;;  %v24977_v55 = vld [vmem:[%s32007_s1 + $0x840] ss:$8 sps:$4 sm:$0xff]  }
 0x4ab   :  { %16542 = vmatmul.mubr.bf16.gmra.mrb[4].mxu0 %v16008_v62  ;;  %5485 = vmatprep.mubr.bf16.mxu1 %v4780_v1  ;;  %v4784_v62 = vsel %vm4654_vm1, %v4779_v34, %v4783_v18  ;;  %v16018_v1 = vsel %vm2291_vm0, %v16013_v8, %v16017_v21  ;;  %v4781_v34 = vrot.slane %v28731_v42, 2  ;;  %v16015_v8 = vrot.slane %v28303_v49, 1 }
 0x4ac   :  { %16551 = vmatprep.mubr.bf16.mxu0 %v16014_v56  ;;  %18866 = vmatpush1.bf16.msra.mxu0 %v24944_v32  ;;  %v28738_v56 = vld [vmem:[%s32008_s0 + $0x214] ss:$8 sps:$4 sm:$0xff]  }
 0x4ad   :  { %18867 = vmatprep.subr.bf16.mxu0 %v24961_v39  ;;  %v4787_v32 = vrot.slane %v28738_v56, 2  ;;  %v16021_v39 = vrot.slane %v28309_v12, 1  ;;  %v4782_v50 = vsel %vm4654_vm1, %v4777_v33, %v4781_v34  ;;  %v28765_v12 = vld [vmem:[%s32008_s0 + $0x224] ss:$8 sps:$4 sm:$0xff]  }
 0x4af   :  { %v4788_v49 = vsel %vm4654_vm1, %v4783_v18, %v4787_v32  ;;  %v16025_v18 = vrot.slane %v28325_v23, 1 }
 0x4b0   :  { %18868 = vmatpush1.bf16.msra.mxu0 %v24959_v40  ;;  %v16016_v40 = vsel %vm2291_vm0, %v16011_v26, %v16015_v8  ;;  %v16019_v26 = vrot.slane %v28319_v24, 1  ;;  %v28783_v24 = vld [vmem:[%s32008_s0 + $0x234] ss:$8 sps:$4 sm:$0xff]  }
 0x4b1   :  { %18869 = vmatprep.subr.bf16.mxu0 %v24979_v6  ;;  %v28758_v6 = vld [vmem:[%s32008_s0 + $0x210] ss:$8 sps:$4 sm:$0xff]  }
 0x4b2   :  { %5486 = vmatmul.mubr.bf16.gmra.mrb[120].mxu1 %v4778_v58  ;;  %v16022_v58 = vsel %vm2291_vm0, %v16017_v21, %v16021_v39  ;;  %v4785_v33 = vrot.slane %v28758_v6, 2 }
 0x4b3   :  { %16552 = vmatmul.mubr.bf16.gmra.mrb[8].mxu0 %v16012_v15  ;;  %5495 = vmatprep.mubr.bf16.mxu1 %v4784_v62  ;;  %v4791_v15 = vrot.slane %v28765_v12, 2  ;;  %v16020_v62 = vsel %vm2291_vm0, %v16015_v8, %v16019_v26  ;;  %v4795_v8 = vrot.slane %v28783_v24, 2 }
 0x4b4   :  { %16561 = vmatprep.mubr.bf16.mxu0 %v16018_v1  ;;  %18870 = vmatpush1.bf16.msra.mxu0 %v24977_v55  ;;  %v4786_v21 = vsel %vm4654_vm1, %v4781_v34, %v4785_v33  ;;  %v28776_v1 = vld [vmem:[%s32008_s0 + $0x220] ss:$8 sps:$4 sm:$0xff]   ;;  %v16023_v34 = vrot.slane %v28335_v36, 1  ;;  %v28801_v36 = vld [vmem:[%s32008_s0 + $0x244] ss:$8 sps:$4 sm:$0xff]  }
 0x4b5   :  { %18871 = vmatprep.subr.bf16.mxu0 %v24994_v54  ;;  %v4792_v55 = vsel %vm4654_vm1, %v4787_v32, %v4791_v15  ;;  %v16026_v54 = vsel %vm2291_vm0, %v16021_v39, %v16025_v18  ;;  %v4789_v23 = vrot.slane %v28776_v1, 2 }
 0x4b6   :  { %v16024_v39 = vsel %vm2291_vm0, %v16019_v26, %v16023_v34  ;;  %v16027_v26 = vrot.slane %v28357_v35, 1  ;;  %v28825_v35 = vld [vmem:[%s32008_s0 + $0x254] ss:$8 sps:$4 sm:$0xff]  }
 0x4b7   :  { %v4790_v32 = vsel %vm4654_vm1, %v4785_v33, %v4789_v23 }
 0x4b8   :  { %18872 = vmatpush1.bf16.msra.mxu0 %v24992_v28  ;;  %v16029_v28 = vrot.slane %v28341_v51, 1  ;;  %v25004_v51 = vld [vmem:[%s32007_s1 + $0x3e0] ss:$8 sps:$4 sm:$0xff]  }
 0x4ba   :  { %5496 = vmatmul.mubr.bf16.gmra.mrb[124].mxu1 %v4782_v50  ;;  %v28794_v50 = vld [vmem:[%s32008_s0 + $0x230] ss:$8 sps:$4 sm:$0xff]  }
 0x4bb   :  { %16562 = vmatmul.mubr.bf16.gmra.mrb[12].mxu0 %v16016_v40  ;;  %5505 = vmatprep.mubr.bf16.mxu1 %v4788_v49  ;;  %v4796_v40 = vsel %vm4654_vm1, %v4791_v15, %v4795_v8  ;;  %v16030_v49 = vsel %vm2291_vm0, %v16025_v18, %v16029_v28  ;;  %v4793_v33 = vrot.slane %v28794_v50, 2  ;;  %v4799_v15 = vrot.slane %v28801_v36, 2 }
 0x4bc   :  { %16571 = vmatprep.mubr.bf16.mxu0 %v16022_v58  ;;  %v25006_v58 = vld [vmem:[%s32007_s1 + $0x3e4] ss:$8 sps:$4 sm:$0xff]   ;;  %v16033_v18 = vrot.slane %v28363_v17, 1  ;;  %v25010_v17 = vld [vmem:[%s32007_s1 + $0x860] ss:$8 sps:$4 sm:$0xff]  }
 0x4bd   :  { %7311 = vmatprep.subr.bf16.mxu1 %v25006_v58 }
 0x4be   :  { %7312 = vmatpush1.bf16.msra.mxu1 %v25004_v51  ;;  %v28842_v51 = vld [vmem:[%s32008_s0 + $0x250] ss:$8 sps:$4 sm:$0xff]  }
 0x4c2   :  { %5506 = vmatmul.mubr.bf16.gmra.mrb[128].mxu1 %v4786_v21  ;;  %v4794_v21 = vsel %vm4654_vm1, %v4789_v23, %v4793_v33  ;;  %v25012_v23 = vld [vmem:[%s32007_s1 + $0x864] ss:$8 sps:$4 sm:$0xff]  }
 0x4c3   :  { %16572 = vmatmul.mubr.bf16.gmra.mrb[16].mxu0 %v16020_v62  ;;  %5515 = vmatprep.mubr.bf16.mxu1 %v4792_v55  ;;  %v16028_v62 = vsel %vm2291_vm0, %v16023_v34, %v16027_v26  ;;  %v28818_v55 = vld [vmem:[%s32008_s0 + $0x240] ss:$8 sps:$4 sm:$0xff]  }
 0x4c4   :  { %16581 = vmatprep.mubr.bf16.mxu0 %v16026_v54  ;;  %v4800_v54 = vsel %vm4654_vm1, %v4795_v8, %v4799_v15  ;;  %v4797_v34 = vrot.slane %v28818_v55, 2  ;;  %v16031_v8 = vrot.slane %v28376_v4, 1  ;;  %18873 = vmatprep.subr.bf16.mxu0 %v25012_v23  ;;  %v28849_v4 = vld [vmem:[%s32008_s0 + $0x264] ss:$8 sps:$4 sm:$0xff]   ;;  %v25021_v23 = vld [vmem:[%s32007_s1 + $0x3f4] ss:$8 sps:$4 sm:$0xff]  }
 0x4c5   :  { %18874 = vmatpush1.bf16.msra.mxu0 %v25010_v17  ;;  %7313 = vmatprep.subr.bf16.mxu1 %v25021_v23  ;;  %v28911_v23 = vld [vmem:[%s32008_s0 + $0x280] ss:$8 sps:$4 sm:$0xff]  }
 0x4ca   :  { %5516 = vmatmul.mubr.bf16.gmra.mrb[132].mxu1 %v4790_v32  ;;  %v16034_v32 = vsel %vm2291_vm0, %v16029_v28, %v16033_v18  ;;  %v4803_v28 = vrot.slane %v28825_v35, 2 }
 0x4cb   :  { %16582 = vmatmul.mubr.bf16.gmra.mrb[20].mxu0 %v16024_v39  ;;  %5525 = vmatprep.mubr.bf16.mxu1 %v4796_v40  ;;  %v16037_v39 = vrot.slane %v28382_v43, 1  ;;  %v4798_v40 = vsel %vm4654_vm1, %v4793_v33, %v4797_v34  ;;  %v4801_v43 = vrot.slane %v28842_v51, 2  ;;  %v16035_v33 = vrot.slane %v28392_v5, 1  ;;  %v28867_v5 = vld [vmem:[%s32008_s0 + $0x274] ss:$8 sps:$4 sm:$0xff]  }
 0x4cc   :  { %16591 = vmatprep.mubr.bf16.mxu0 %v16030_v49  ;;  %v16032_v49 = vsel %vm2291_vm0, %v16027_v26, %v16031_v8  ;;  %v4804_v58 = vsel %vm4654_vm1, %v4799_v15, %v4803_v28  ;;  %v4807_v26 = vrot.slane %v28849_v4, 2 }
 0x4cd   :  { %v4802_v15 = vsel %vm4654_vm1, %v4797_v34, %v4801_v43 }
 0x4d2   :  { %5526 = vmatmul.mubr.bf16.gmra.mrb[136].mxu1 %v4794_v21  ;;  %v16038_v21 = vsel %vm2291_vm0, %v16033_v18, %v16037_v39  ;;  %v16036_v18 = vsel %vm2291_vm0, %v16031_v8, %v16035_v33  ;;  %v16039_v8 = vrot.slane %v28414_v13, 1 }
 0x4d3   :  { %16592 = vmatmul.mubr.bf16.gmra.mrb[24].mxu0 %v16028_v62  ;;  %5535 = vmatprep.mubr.bf16.mxu1 %v4800_v54  ;;  %v16041_v62 = vrot.slane %v28398_v37, 1  ;;  %v28860_v54 = vld [vmem:[%s32008_s0 + $0x260] ss:$8 sps:$4 sm:$0xff]   ;;  %v25019_v37 = vld [vmem:[%s32007_s1 + $0x3f0] ss:$8 sps:$4 sm:$0xff]  }
 0x4d4   :  { %16601 = vmatprep.mubr.bf16.mxu0 %v16034_v32  ;;  %v4808_v32 = vsel %vm4654_vm1, %v4803_v28, %v4807_v26  ;;  %v4805_v34 = vrot.slane %v28860_v54, 2  ;;  %v4811_v28 = vrot.slane %v28867_v5, 2  ;;  %7314 = vmatpush1.bf16.msra.mxu1 %v25019_v37 }
 0x4d5   :  { %v16042_v17 = vsel %vm2291_vm0, %v16037_v39, %v16041_v62  ;;  %v16045_v39 = vrot.slane %v28420_v38, 1 }
 0x4d6   :  { %v4812_v13 = vsel %vm4654_vm1, %v4807_v26, %v4811_v28 }
 0x4d7   :  { %v16046_v38 = vsel %vm2291_vm0, %v16041_v62, %v16045_v39  ;;  %v16043_v62 = vrot.slane %v28430_v45, 1  ;;  %v28918_v45 = vld [vmem:[%s32008_s0 + $0x294] ss:$8 sps:$4 sm:$0xff]  }
 0x4d9   :  { %v16044_v37 = vsel %vm2291_vm0, %v16039_v8, %v16043_v62 }
 0x4da   :  { %5536 = vmatmul.mubr.bf16.gmra.mrb[140].mxu1 %v4798_v40  ;;  %v25388_v40 = vld [vmem:[%s32007_s1 + $0x404] ss:$8 sps:$4 sm:$0xff]  }
 0x4db   :  { %16602 = vmatmul.mubr.bf16.gmra.mrb[28].mxu0 %v16032_v49  ;;  %5545 = vmatprep.mubr.bf16.mxu1 %v4804_v58  ;;  %v4806_v49 = vsel %vm4654_vm1, %v4801_v43, %v4805_v34  ;;  %v16040_v58 = vsel %vm2291_vm0, %v16035_v33, %v16039_v8  ;;  %v25025_v43 = vld [vmem:[%s32007_s1 + $0x870] ss:$8 sps:$4 sm:$0xff]   ;;  %v25027_v33 = vld [vmem:[%s32007_s1 + $0x874] ss:$8 sps:$4 sm:$0xff]   ;;  %v4819_v8 = vrot.slane %v28918_v45, 2 }
 0x4dc   :  { %16611 = vmatprep.mubr.bf16.mxu0 %v16038_v21  ;;  %21694 = vmatprep.subr.bf16.mxu1 %v25388_v40  ;;  %v28887_v21 = vld [vmem:[%s32008_s0 + $0x270] ss:$8 sps:$4 sm:$0xff]  }
 0x4dd   :  { %v4809_v26 = vrot.slane %v28887_v21, 2  ;;  %18875 = vmatprep.subr.bf16.mxu0 %v25027_v33  ;;  %v16051_v33 = vrot.slane %v28465_v0, 1  ;;  %v28954_v0 = vld [vmem:[%s32008_s0 + $0x2b4] ss:$8 sps:$4 sm:$0xff]  }
 0x4de   :  { %18876 = vmatpush1.bf16.msra.mxu0 %v25025_v43 }
 0x4e2   :  { %5546 = vmatmul.mubr.bf16.gmra.mrb[144].mxu1 %v4802_v15  ;;  %v28894_v15 = vld [vmem:[%s32008_s0 + $0x284] ss:$8 sps:$4 sm:$0xff]  }
 0x4e3   :  { %16612 = vmatmul.mubr.bf16.gmra.mrb[32].mxu0 %v16036_v18  ;;  %5555 = vmatprep.mubr.bf16.mxu1 %v4808_v32  ;;  %v4815_v18 = vrot.slane %v28894_v15, 2  ;;  %v16049_v32 = vrot.slane %v28436_v9, 1  ;;  %v4813_v9 = vrot.slane %v28911_v23, 2 }
 0x4e4   :  { %16621 = vmatprep.mubr.bf16.mxu0 %v16042_v17  ;;  %v4810_v17 = vsel %vm4654_vm1, %v4805_v34, %v4809_v26  ;;  %v16047_v34 = vrot.slane %v28446_v10, 1  ;;  %v28936_v10 = vld [vmem:[%s32008_s0 + $0x2a4] ss:$8 sps:$4 sm:$0xff]  }
 0x4e5   :  { %v4816_v40 = vsel %vm4654_vm1, %v4811_v28, %v4815_v18  ;;  %v4814_v28 = vsel %vm4654_vm1, %v4809_v26, %v4813_v9  ;;  %v4823_v26 = vrot.slane %v28936_v10, 2 }
 0x4ea   :  { %5556 = vmatmul.mubr.bf16.gmra.mrb[148].mxu1 %v4806_v49  ;;  %v16050_v49 = vsel %vm2291_vm0, %v16045_v39, %v16049_v32  ;;  %v16048_v39 = vsel %vm2291_vm0, %v16043_v62, %v16047_v34  ;;  %v16057_v62 = vrot.slane %v28471_v3, 1 }
 0x4eb   :  { %16622 = vmatmul.mubr.bf16.gmra.mrb[36].mxu0 %v16040_v58  ;;  %5565 = vmatprep.mubr.bf16.mxu1 %v4812_v13  ;;  %v16053_v58 = vrot.slane %v28452_v61, 1  ;;  %v28929_v13 = vld [vmem:[%s32008_s0 + $0x290] ss:$8 sps:$4 sm:$0xff]  }
 0x4ec   :  { %16631 = vmatprep.mubr.bf16.mxu0 %v16046_v38  ;;  %v4820_v38 = vsel %vm4654_vm1, %v4815_v18, %v4819_v8  ;;  %v4817_v61 = vrot.slane %v28929_v13, 2 }
 0x4ed   :  { %v16054_v43 = vsel %vm2291_vm0, %v16049_v32, %v16053_v58  ;;  %v16052_v32 = vsel %vm2291_vm0, %v16047_v34, %v16051_v33  ;;  %v16061_v34 = vrot.slane %v28498_v14, 1  ;;  %v25039_v14 = vld [vmem:[%s32007_s1 + $0x880] ss:$8 sps:$4 sm:$0xff]  }
 0x4ee   :  { %v4818_v18 = vsel %vm4654_vm1, %v4813_v9, %v4817_v61  ;;  %v4827_v9 = vrot.slane %v28954_v0, 2 }
 0x4f2   :  { %5566 = vmatmul.mubr.bf16.gmra.mrb[152].mxu1 %v4810_v17  ;;  %v28947_v17 = vld [vmem:[%s32008_s0 + $0x2a0] ss:$8 sps:$4 sm:$0xff]  }
 0x4f3   :  { %16632 = vmatmul.mubr.bf16.gmra.mrb[40].mxu0 %v16044_v37  ;;  %5575 = vmatprep.mubr.bf16.mxu1 %v4816_v40  ;;  %v4824_v37 = vsel %vm4654_vm1, %v4819_v8, %v4823_v26  ;;  %v16058_v40 = vsel %vm2291_vm0, %v16053_v58, %v16057_v62  ;;  %v4821_v3 = vrot.slane %v28947_v17, 2 }
 0x4f4   :  { %16641 = vmatprep.mubr.bf16.mxu0 %v16050_v49  ;;  %v16055_v49 = vrot.slane %v28492_v2, 1  ;;  %v28972_v2 = vld [vmem:[%s32008_s0 + $0x2c4] ss:$8 sps:$4 sm:$0xff]  }
 0x4f5   :  { %v4822_v8 = vsel %vm4654_vm1, %v4817_v61, %v4821_v3 }
 0x4f6   :  { %v16056_v58 = vsel %vm2291_vm0, %v16051_v33, %v16055_v49  ;;  %v16059_v33 = vrot.slane %v28512_v46, 1  ;;  %v28996_v46 = vld [vmem:[%s32008_s0 + $0x2d4] ss:$8 sps:$4 sm:$0xff]  }
 0x4fa   :  { %5576 = vmatmul.mubr.bf16.gmra.mrb[156].mxu1 %v4814_v28  ;;  %v28965_v28 = vld [vmem:[%s32008_s0 + $0x2b0] ss:$8 sps:$4 sm:$0xff]  }
 0x4fb   :  { %16642 = vmatmul.mubr.bf16.gmra.mrb[44].mxu0 %v16048_v39  ;;  %5585 = vmatprep.mubr.bf16.mxu1 %v4820_v38  ;;  %v4828_v39 = vsel %vm4654_vm1, %v4823_v26, %v4827_v9  ;;  %v16062_v38 = vsel %vm2291_vm0, %v16057_v62, %v16061_v34  ;;  %v4825_v61 = vrot.slane %v28965_v28, 2  ;;  %v4831_v26 = vrot.slane %v28972_v2, 2 }
 0x4fc   :  { %16651 = vmatprep.mubr.bf16.mxu0 %v16054_v43  ;;  %v25041_v43 = vld [vmem:[%s32007_s1 + $0x884] ss:$8 sps:$4 sm:$0xff]   ;;  %v16065_v62 = vrot.slane %v28518_v53, 1 }
 0x4fd   :  { %18877 = vmatprep.subr.bf16.mxu0 %v25041_v43  ;;  %v16067_v43 = vrot.slane %v28558_v48, 1  ;;  %v29032_v48 = vld [vmem:[%s32008_s0 + $0x2f4] ss:$8 sps:$4 sm:$0xff]  }
 0x4fe   :  { %18878 = vmatpush1.bf16.msra.mxu0 %v25039_v14 }
 0x502   :  { %5586 = vmatmul.mubr.bf16.gmra.mrb[160].mxu1 %v4818_v18  ;;  %v4826_v18 = vsel %vm4654_vm1, %v4821_v3, %v4825_v61  ;;  %v16063_v3 = vrot.slane %v28532_v19, 1  ;;  %v29014_v19 = vld [vmem:[%s32008_s0 + $0x2e4] ss:$8 sps:$4 sm:$0xff]  }
 0x503   :  { %16652 = vmatmul.mubr.bf16.gmra.mrb[48].mxu0 %v16052_v32  ;;  %5595 = vmatprep.mubr.bf16.mxu1 %v4824_v37  ;;  %v16060_v32 = vsel %vm2291_vm0, %v16055_v49, %v16059_v33  ;;  %v28989_v37 = vld [vmem:[%s32008_s0 + $0x2c0] ss:$8 sps:$4 sm:$0xff]   ;;  %v4835_v49 = vrot.slane %v28996_v46, 2 }
 0x504   :  { %16661 = vmatprep.mubr.bf16.mxu0 %v16058_v40  ;;  %v4832_v40 = vsel %vm4654_vm1, %v4827_v9, %v4831_v26  ;;  %v4829_v53 = vrot.slane %v28989_v37, 2 }
 0x506   :  { %v4830_v9 = vsel %vm4654_vm1, %v4825_v61, %v4829_v53  ;;  %v4839_v61 = vrot.slane %v29014_v19, 2 }
 0x50a   :  { %5596 = vmatmul.mubr.bf16.gmra.mrb[164].mxu1 %v4822_v8  ;;  %v16066_v8 = vsel %vm2291_vm0, %v16061_v34, %v16065_v62  ;;  %v16064_v34 = vsel %vm2291_vm0, %v16059_v33, %v16063_v3  ;;  %v16073_v33 = vrot.slane %v28564_v31, 1  ;;  %v25050_v31 = vld [vmem:[%s32007_s1 + $0x890] ss:$8 sps:$4 sm:$0xff]  }
 0x50b   :  { %16662 = vmatmul.mubr.bf16.gmra.mrb[52].mxu0 %v16056_v58  ;;  %5605 = vmatprep.mubr.bf16.mxu1 %v4828_v39  ;;  %v16069_v58 = vrot.slane %v28538_v41, 1  ;;  %v29007_v39 = vld [vmem:[%s32008_s0 + $0x2d0] ss:$8 sps:$4 sm:$0xff]  }
 0x50c   :  { %16671 = vmatprep.mubr.bf16.mxu0 %v16062_v38  ;;  %v4836_v38 = vsel %vm4654_vm1, %v4831_v26, %v4835_v49  ;;  %v4833_v41 = vrot.slane %v29007_v39, 2 }
 0x50d   :  { %v16070_v14 = vsel %vm2291_vm0, %v16065_v62, %v16069_v58  ;;  %v16068_v62 = vsel %vm2291_vm0, %v16063_v3, %v16067_v43  ;;  %v16071_v3 = vrot.slane %v28578_v11, 1  ;;  %v29056_v11 = vld [vmem:[%s32008_s0 + $0x304] ss:$8 sps:$4 sm:$0xff]  }
 0x50e   :  { %v4834_v26 = vsel %vm4654_vm1, %v4829_v53, %v4833_v41 }
 0x512   :  { %5606 = vmatmul.mubr.bf16.gmra.mrb[168].mxu1 %v4826_v18  ;;  %v29025_v18 = vld [vmem:[%s32008_s0 + $0x2e0] ss:$8 sps:$4 sm:$0xff]  }
 0x513   :  { %16672 = vmatmul.mubr.bf16.gmra.mrb[56].mxu0 %v16060_v32  ;;  %5615 = vmatprep.mubr.bf16.mxu1 %v4832_v40  ;;  %v4840_v32 = vsel %vm4654_vm1, %v4835_v49, %v4839_v61  ;;  %v16074_v40 = vsel %vm2291_vm0, %v16069_v58, %v16073_v33  ;;  %v4837_v53 = vrot.slane %v29025_v18, 2  ;;  %v4843_v49 = vrot.slane %v29032_v48, 2 }
 0x514   :  { %16681 = vmatprep.mubr.bf16.mxu0 %v16066_v8  ;;  %v25052_v8 = vld [vmem:[%s32007_s1 + $0x894] ss:$8 sps:$4 sm:$0xff]   ;;  %v16077_v58 = vrot.slane %v28584_v59, 1 }
 0x515   :  { %18879 = vmatprep.subr.bf16.mxu0 %v25052_v8  ;;  %v16079_v8 = vrot.slane %v28621_v60, 1  ;;  %v29092_v60 = vld [vmem:[%s32008_s0 + $0x324] ss:$8 sps:$4 sm:$0xff]  }
 0x516   :  { %18880 = vmatpush1.bf16.msra.mxu0 %v25050_v31 }
 0x51a   :  { %5616 = vmatmul.mubr.bf16.gmra.mrb[172].mxu1 %v4830_v9  ;;  %v4838_v9 = vsel %vm4654_vm1, %v4833_v41, %v4837_v53  ;;  %v16075_v41 = vrot.slane %v28598_v20, 1  ;;  %v29074_v20 = vld [vmem:[%s32008_s0 + $0x314] ss:$8 sps:$4 sm:$0xff]  }
 0x51b   :  { %16682 = vmatmul.mubr.bf16.gmra.mrb[60].mxu0 %v16064_v34  ;;  %5625 = vmatprep.mubr.bf16.mxu1 %v4836_v38  ;;  %v16072_v34 = vsel %vm2291_vm0, %v16067_v43, %v16071_v3  ;;  %v29049_v38 = vld [vmem:[%s32008_s0 + $0x2f0] ss:$8 sps:$4 sm:$0xff]   ;;  %v4847_v43 = vrot.slane %v29056_v11, 2 }
 0x51c   :  { %16691 = vmatprep.mubr.bf16.mxu0 %v16070_v14  ;;  %v4844_v14 = vsel %vm4654_vm1, %v4839_v61, %v4843_v49  ;;  %v4841_v59 = vrot.slane %v29049_v38, 2 }
 0x51e   :  { %v4842_v61 = vsel %vm4654_vm1, %v4837_v53, %v4841_v59  ;;  %v4851_v53 = vrot.slane %v29074_v20, 2 }
 0x522   :  { %5626 = vmatmul.mubr.bf16.gmra.mrb[176].mxu1 %v4834_v26  ;;  %v16078_v26 = vsel %vm2291_vm0, %v16073_v33, %v16077_v58  ;;  %v16076_v33 = vsel %vm2291_vm0, %v16071_v3, %v16075_v41  ;;  %v16085_v3 = vrot.slane %v28627_v63, 1 }
 0x523   :  { %16692 = vmatmul.mubr.bf16.gmra.mrb[64].mxu0 %v16068_v62  ;;  %5635 = vmatprep.mubr.bf16.mxu1 %v4840_v32  ;;  %v16081_v62 = vrot.slane %v28604_v29, 1  ;;  %v29067_v32 = vld [vmem:[%s32008_s0 + $0x300] ss:$8 sps:$4 sm:$0xff]  }
 0x524   :  { %16701 = vmatprep.mubr.bf16.mxu0 %v16074_v40  ;;  %v4848_v40 = vsel %vm4654_vm1, %v4843_v49, %v4847_v43  ;;  %v4845_v29 = vrot.slane %v29067_v32, 2 }
 0x525   :  { %v16082_v31 = vsel %vm2291_vm0, %v16077_v58, %v16081_v62  ;;  %v16080_v58 = vsel %vm2291_vm0, %v16075_v41, %v16079_v8  ;;  %v16089_v41 = vrot.slane %v28654_v52, 1  ;;  %v25065_v52 = vld [vmem:[%s32007_s1 + $0x8a0] ss:$8 sps:$4 sm:$0xff]  }
 0x526   :  { %v4846_v49 = vsel %vm4654_vm1, %v4841_v59, %v4845_v29  ;;  %v4855_v59 = vrot.slane %v29092_v60, 2 }
 0x52a   :  { %5636 = vmatmul.mubr.bf16.gmra.mrb[180].mxu1 %v4838_v9  ;;  %v29085_v9 = vld [vmem:[%s32008_s0 + $0x310] ss:$8 sps:$4 sm:$0xff]  }
 0x52b   :  { %16702 = vmatmul.mubr.bf16.gmra.mrb[68].mxu0 %v16072_v34  ;;  %5645 = vmatprep.mubr.bf16.mxu1 %v4844_v14  ;;  %v4852_v34 = vsel %vm4654_vm1, %v4847_v43, %v4851_v53  ;;  %v16086_v14 = vsel %vm2291_vm0, %v16081_v62, %v16085_v3  ;;  %v4849_v63 = vrot.slane %v29085_v9, 2 }
 0x52c   :  { %16711 = vmatprep.mubr.bf16.mxu0 %v16078_v26  ;;  %v16083_v26 = vrot.slane %v28647_v30, 1  ;;  %v29110_v30 = vld [vmem:[%s32008_s0 + $0x334] ss:$8 sps:$4 sm:$0xff]  }
 0x52d   :  { %v4850_v43 = vsel %vm4654_vm1, %v4845_v29, %v4849_v63 }
 0x52e   :  { %v16084_v62 = vsel %vm2291_vm0, %v16079_v8, %v16083_v26  ;;  %v16087_v8 = vrot.slane %v28665_v7, 1  ;;  %v29134_v7 = vld [vmem:[%s32008_s0 + $0x344] ss:$8 sps:$4 sm:$0xff]  }
 0x532   :  { %5646 = vmatmul.mubr.bf16.gmra.mrb[184].mxu1 %v4842_v61  ;;  %v29103_v61 = vld [vmem:[%s32008_s0 + $0x320] ss:$8 sps:$4 sm:$0xff]  }
 0x533   :  { %16712 = vmatmul.mubr.bf16.gmra.mrb[72].mxu0 %v16076_v33  ;;  %5655 = vmatprep.mubr.bf16.mxu1 %v4848_v40  ;;  %v4856_v33 = vsel %vm4654_vm1, %v4851_v53, %v4855_v59  ;;  %v16090_v40 = vsel %vm2291_vm0, %v16085_v3, %v16089_v41  ;;  %v4853_v29 = vrot.slane %v29103_v61, 2  ;;  %v4859_v53 = vrot.slane %v29110_v30, 2 }
 0x534   :  { %16721 = vmatprep.mubr.bf16.mxu0 %v16082_v31  ;;  %v25067_v31 = vld [vmem:[%s32007_s1 + $0x8a4] ss:$8 sps:$4 sm:$0xff]   ;;  %v16093_v3 = vrot.slane %v28675_v16, 1 }
 0x535   :  { %18881 = vmatprep.subr.bf16.mxu0 %v25067_v31  ;;  %v16095_v31 = vrot.slane %v28731_v42, 1  ;;  %v29170_v42 = vld [vmem:[%s32008_s0 + $0x364] ss:$8 sps:$4 sm:$0xff]  }
 0x536   :  { %18882 = vmatpush1.bf16.msra.mxu0 %v25065_v52 }
 0x53a   :  { %5656 = vmatmul.mubr.bf16.gmra.mrb[188].mxu1 %v4846_v49  ;;  %v4854_v49 = vsel %vm4654_vm1, %v4849_v63, %v4853_v29  ;;  %v16091_v63 = vrot.slane %v28695_v27, 1  ;;  %v29152_v27 = vld [vmem:[%s32008_s0 + $0x354] ss:$8 sps:$4 sm:$0xff]  }
 0x53b   :  { %16722 = vmatmul.mubr.bf16.gmra.mrb[76].mxu0 %v16080_v58  ;;  %5665 = vmatprep.mubr.bf16.mxu1 %v4852_v34  ;;  %v16088_v58 = vsel %vm2291_vm0, %v16083_v26, %v16087_v8  ;;  %v29127_v34 = vld [vmem:[%s32008_s0 + $0x330] ss:$8 sps:$4 sm:$0xff]   ;;  %v4863_v26 = vrot.slane %v29134_v7, 2 }
 0x53c   :  { %16731 = vmatprep.mubr.bf16.mxu0 %v16086_v14  ;;  %v4860_v14 = vsel %vm4654_vm1, %v4855_v59, %v4859_v53  ;;  %v4857_v16 = vrot.slane %v29127_v34, 2 }
 0x53e   :  { %v4858_v59 = vsel %vm4654_vm1, %v4853_v29, %v4857_v16  ;;  %v4867_v29 = vrot.slane %v29152_v27, 2 }
 0x542   :  { %5666 = vmatmul.mubr.bf16.gmra.mrb[192].mxu1 %v4850_v43  ;;  %v16094_v43 = vsel %vm2291_vm0, %v16089_v41, %v16093_v3  ;;  %v16092_v41 = vsel %vm2291_vm0, %v16087_v8, %v16091_v63  ;;  %v16101_v8 = vrot.slane %v28738_v56, 1  ;;  %v25077_v56 = vld [vmem:[%s32007_s1 + $0x8b0] ss:$8 sps:$4 sm:$0xff]  }
 0x543   :  { %16732 = vmatmul.mubr.bf16.gmra.mrb[80].mxu0 %v16084_v62  ;;  %5675 = vmatprep.mubr.bf16.mxu1 %v4856_v33  ;;  %v16097_v62 = vrot.slane %v28702_v25, 1  ;;  %v29145_v33 = vld [vmem:[%s32008_s0 + $0x340] ss:$8 sps:$4 sm:$0xff]  }
 0x544   :  { %16741 = vmatprep.mubr.bf16.mxu0 %v16090_v40  ;;  %v4864_v40 = vsel %vm4654_vm1, %v4859_v53, %v4863_v26  ;;  %v4861_v25 = vrot.slane %v29145_v33, 2 }
 0x545   :  { %v16098_v52 = vsel %vm2291_vm0, %v16093_v3, %v16097_v62  ;;  %v16096_v3 = vsel %vm2291_vm0, %v16091_v63, %v16095_v31  ;;  %v16099_v63 = vrot.slane %v28758_v6, 1  ;;  %v29194_v6 = vld [vmem:[%s32008_s0 + $0x374] ss:$8 sps:$4 sm:$0xff]  }
 0x546   :  { %v4862_v53 = vsel %vm4654_vm1, %v4857_v16, %v4861_v25 }
 0x54a   :  { %5676 = vmatmul.mubr.bf16.gmra.mrb[196].mxu1 %v4854_v49  ;;  %v29163_v49 = vld [vmem:[%s32008_s0 + $0x350] ss:$8 sps:$4 sm:$0xff]  }
 0x54b   :  { %16742 = vmatmul.mubr.bf16.gmra.mrb[84].mxu0 %v16088_v58  ;;  %5685 = vmatprep.mubr.bf16.mxu1 %v4860_v14  ;;  %v4868_v58 = vsel %vm4654_vm1, %v4863_v26, %v4867_v29  ;;  %v16102_v14 = vsel %vm2291_vm0, %v16097_v62, %v16101_v8  ;;  %v4865_v16 = vrot.slane %v29163_v49, 2  ;;  %v4871_v26 = vrot.slane %v29170_v42, 2 }
 0x54c   :  { %16751 = vmatprep.mubr.bf16.mxu0 %v16094_v43  ;;  %v25079_v43 = vld [vmem:[%s32007_s1 + $0x8b4] ss:$8 sps:$4 sm:$0xff]   ;;  %v16105_v62 = vrot.slane %v28765_v12, 1 }
 0x54d   :  { %18883 = vmatprep.subr.bf16.mxu0 %v25079_v43 }
 0x54e   :  { %18884 = vmatpush1.bf16.msra.mxu0 %v25077_v56 }
 0x552   :  { %5686 = vmatmul.mubr.bf16.gmra.mrb[200].mxu1 %v4858_v59  ;;  %v4866_v59 = vsel %vm4654_vm1, %v4861_v25, %v4865_v16  ;;  %v16103_v25 = vrot.slane %v28776_v1, 1 }
 0x553   :  { %16752 = vmatmul.mubr.bf16.gmra.mrb[88].mxu0 %v16092_v41  ;;  %5695 = vmatprep.mubr.bf16.mxu1 %v4864_v40  ;;  %v16100_v41 = vsel %vm2291_vm0, %v16095_v31, %v16099_v63  ;;  %v29187_v40 = vld [vmem:[%s32008_s0 + $0x360] ss:$8 sps:$4 sm:$0xff]   ;;  %v4875_v31 = vrot.slane %v29194_v6, 2 }
 0x554   :  { %16761 = vmatprep.mubr.bf16.mxu0 %v16098_v52  ;;  %v4872_v52 = vsel %vm4654_vm1, %v4867_v29, %v4871_v26  ;;  %v4869_v12 = vrot.slane %v29187_v40, 2  ;;  %v4167_v29 = vld [vmem:[%s32008_s0 + $0x380] sm:$0x33] }
 0x555   :  { %v4876_v56 = vsel %vm4654_vm1, %v4871_v26, %v4875_v31  ;;  %v20597_v43 = vcombine.high %v4167_v29, %v4167_v29 }
 0x55a   :  { %5696 = vmatmul.mubr.bf16.gmra.mrb[204].mxu1 %v4862_v53  ;;  %v16106_v53 = vsel %vm2291_vm0, %v16101_v8, %v16105_v62  ;;  %v4870_v8 = vsel %vm4654_vm1, %v4865_v16, %v4869_v12  ;;  %v16107_v16 = vrot.slane %v28794_v50, 1  ;;  %v16117_v50 = vrot.slane %v28825_v35, 1 }
 0x55b   :  { %16762 = vmatmul.mubr.bf16.gmra.mrb[92].mxu0 %v16096_v3  ;;  %5705 = vmatprep.mubr.bf16.mxu1 %v4868_v58  ;;  %v16109_v3 = vrot.slane %v28783_v24, 1  ;;  %v16104_v58 = vsel %vm2291_vm0, %v16099_v63, %v16103_v25  ;;  %v16113_v63 = vrot.slane %v28801_v36, 1  ;;  %v16115_v35 = vrot.slane %v28842_v51, 1  ;;  %v25389_v51 = vld [vmem:[%s32007_s1 + $0x400] ss:$8 sps:$4 sm:$0xff]  }
 0x55c   :  { %16771 = vmatprep.mubr.bf16.mxu0 %v16102_v14  ;;  %v29208_v14 = vld [vmem:[%s32008_s0 + $0x370] ss:$8 sps:$4 sm:$0xff]  }
 0x55d   :  { %v16110_v1 = vsel %vm2291_vm0, %v16105_v62, %v16109_v3  ;;  %v4873_v24 = vrot.slane %v29208_v14, 2  ;;  %v16114_v62 = vsel %vm2291_vm0, %v16109_v3, %v16113_v63  ;;  %v25092_v3 = vld [vmem:[%s32007_s1 + $0x8c0] ss:$8 sps:$4 sm:$0xff]  }
 0x562   :  { %5706 = vmatmul.mubr.bf16.gmra.mrb[208].mxu1 %v4866_v59  ;;  %v4879_v59 = vrot.slane %v20597_v43, 2  ;;  %v25036_v43 = vld [vmem:[%s32008_s0 + $0x54] ss:$8 sps:$4 sm:$0xff]  }
 0x563   :  { %16772 = vmatmul.mubr.bf16.gmra.mrb[96].mxu0 %v16100_v41  ;;  %5715 = vmatprep.mubr.bf16.mxu1 %v4872_v52  ;;  %v4874_v41 = vsel %vm4654_vm1, %v4869_v12, %v4873_v24  ;;  %v16108_v52 = vsel %vm2291_vm0, %v16103_v25, %v16107_v16  ;;  %v25035_v25 = vld [vmem:[%s32008_s0 + $0x44] ss:$8 sps:$4 sm:$0xff]  }
 0x564   :  { %16781 = vmatprep.mubr.bf16.mxu0 %v16106_v53  ;;  %v20596_v53 = vcombine.low %v4167_v29, %v4167_v29  ;;  %v4880_v26 = vsel %vm4654_vm1, %v4875_v31, %v4879_v59  ;;  %v16118_v31 = vsel %vm2291_vm0, %v16113_v63, %v16117_v50  ;;  %v16121_v29 = vrot.slane %v28849_v4, 1  ;;  %v25390_v59 = vld [vmem:[%s32007_s1 + $0x414] ss:$8 sps:$4 sm:$0xff]   ;;  %v25038_v63 = vld [vmem:[%s32008_s0 + $0x50] ss:$8 sps:$4 sm:$0xff]  }
 0x565   :  { %v16119_v4 = vrot.slane %v28860_v54, 1  ;;  %v25391_v54 = vld [vmem:[%s32007_s1 + $0x410] ss:$8 sps:$4 sm:$0xff]  }
 0x56a   :  { %5716 = vmatmul.mubr.bf16.gmra.mrb[212].mxu1 %v4870_v8  ;;  %v4877_v8 = vrot.slane %v20596_v53, 2  ;;  %v25392_v53 = vld [vmem:[%s32007_s1 + $0x424] ss:$8 sps:$4 sm:$0xff]  }
 0x56b   :  { %16782 = vmatmul.mubr.bf16.gmra.mrb[100].mxu0 %v16104_v58  ;;  %5725 = vmatprep.mubr.bf16.mxu1 %v4876_v56  ;;  %v16111_v58 = vrot.slane %v28818_v55, 1  ;;  %v25094_v55 = vld [vmem:[%s32007_s1 + $0x8c4] ss:$8 sps:$4 sm:$0xff]   ;;  %v25033_v56 = vld [vmem:[%s32008_s0 + $0x40] ss:$8 sps:$4 sm:$0xff]  }
 0x56c   :  { %16791 = vmatprep.mubr.bf16.mxu0 %v16110_v1  ;;  %v4878_v36 = vsel %vm4654_vm1, %v4873_v24, %v4877_v8  ;;  %18885 = vmatprep.subr.bf16.mxu0 %v25094_v55  ;;  %v16122_v24 = vsel %vm2291_vm0, %v16117_v50, %v16121_v29  ;;  %v25393_v8 = vld [vmem:[%s32007_s1 + $0x420] ss:$8 sps:$4 sm:$0xff]   ;;  %v16127_v55 = vrot.slane %v28911_v23, 1  ;;  %v25398_v23 = vld [vmem:[%s32007_s1 + $0x454] ss:$8 sps:$4 sm:$0xff]  }
 0x56d   :  { %v16112_v12 = vsel %vm2291_vm0, %v16107_v16, %v16111_v58  ;;  %18886 = vmatpush1.bf16.msra.mxu0 %v25092_v3  ;;  %v16116_v1 = vsel %vm2291_vm0, %v16111_v58, %v16115_v35  ;;  %v16125_v16 = vrot.slane %v28867_v5, 1  ;;  %v25394_v58 = vld [vmem:[%s32007_s1 + $0x434] ss:$8 sps:$4 sm:$0xff]   ;;  %v25044_v50 = vld [vmem:[%s32008_s0 + $0x60] ss:$8 sps:$4 sm:$0xff]  }
 0x56e   :  { %v25106_v3 = vld [vmem:[%s32007_s1 + $0x8d4] ss:$8 sps:$4 sm:$0xff]  }
 0x56f   :  { %v16126_v5 = vsel %vm2291_vm0, %v16121_v29, %v16125_v16  ;;  %v29300_v29 = vld [vmem:[%s32008_s0 + $0x88] sm:$0xff]  ;;  %18887 = vmatprep.subr.bf16.mxu0 %v25106_v3 }
 0x570   :  { %v25409_v3 = vld [vmem:[%s32007_s1 + $0x4a0] ss:$8 sps:$4 sm:$0xff]  }
 0x572   :  { %5726 = vmatmul.mubr.bf16.gmra.mrb[216].mxu1 %v4874_v41  ;;  %v16120_v41 = vsel %vm2291_vm0, %v16115_v35, %v16119_v4  ;;  %v6426_v35 = vld [vmem:[%s32008_s0 + $0x80] sm:$0xff] }
 0x573   :  { %16792 = vmatmul.mubr.bf16.gmra.mrb[104].mxu0 %v16108_v52  ;;  %5735 = vmatprep.mubr.bf16.mxu1 %v4880_v26  ;;  %v25042_v52 = vld [vmem:[%s32008_s0 + $0x64] ss:$8 sps:$4 sm:$0xff]   ;;  %v16123_v26 = vrot.slane %v28887_v21, 1  ;;  %v25045_v21 = vld [vmem:[%s32008_s0 + $0x74] ss:$8 sps:$4 sm:$0xff]  }
 0x574   :  { %16801 = vmatprep.mubr.bf16.mxu0 %v16114_v62  ;;  %v16129_v62 = vrot.slane %v28894_v15, 1 }
 0x576   :  { %v16130_v15 = vsel %vm2291_vm0, %v16125_v16, %v16129_v62  ;;  %v25400_v16 = vld [vmem:[%s32007_s1 + $0x464] ss:$8 sps:$4 sm:$0xff]  }
 0x57a   :  { %5736 = vmatmul.mubr.bf16.gmra.mrb[220].mxu1 %v4878_v36  ;;  %v16124_v36 = vsel %vm2291_vm0, %v16119_v4, %v16123_v26  ;;  %v25399_v4 = vld [vmem:[%s32007_s1 + $0x450] ss:$8 sps:$4 sm:$0xff]  }
 0x57b   :  { %16802 = vmatmul.mubr.bf16.gmra.mrb[108].mxu0 %v16112_v12  ;;  %7315 = vmatprep.mubr.bf16.mxu1 %v25035_v25  ;;  %v25395_v12 = vld [vmem:[%s32007_s1 + $0x430] ss:$8 sps:$4 sm:$0xff]   ;;  %v25396_v25 = vld [vmem:[%s32007_s1 + $0x444] ss:$8 sps:$4 sm:$0xff]  }
 0x57c   :  { %16811 = vmatprep.mubr.bf16.mxu0 %v16118_v31  ;;  %v25104_v31 = vld [vmem:[%s32007_s1 + $0x8d0] ss:$8 sps:$4 sm:$0xff]  }
 0x57d   :  { %18888 = vmatpush1.bf16.msra.mxu0 %v25104_v31  ;;  %v16145_v31 = vrot.slane %v28972_v2, 1 }
 0x582   :  { %7316 = vmatmul.mubr.bf16.vlgmr.msra.gmra.mrb[0].mxu1 %v25033_v56  ;;  %v16133_v56 = vrot.slane %v28918_v45, 1  ;;  %v20671_v45 = vcombine.high %v6426_v35, %v29300_v29 }
 0x583   :  { %16812 = vmatmul.mubr.bf16.gmra.mrb[112].mxu0 %v16116_v1  ;;  %21710 = vmatpush1.bf16.msra.mxu1 %v25389_v51  ;;  %v25397_v1 = vld [vmem:[%s32007_s1 + $0x440] ss:$8 sps:$4 sm:$0xff]  }
 0x584   :  { %7325 = vmatprep.mubr.bf16.mxu1 %v25036_v43  ;;  %16821 = vmatprep.mubr.bf16.mxu0 %v16122_v24  ;;  %v25047_v43 = vld [vmem:[%s32008_s0 + $0x70] ss:$8 sps:$4 sm:$0xff]   ;;  %v16128_v24 = vsel %vm2291_vm0, %v16123_v26, %v16127_v55  ;;  %v16134_v51 = vsel %vm2291_vm0, %v16129_v62, %v16133_v56  ;;  %v25404_v26 = vld [vmem:[%s32007_s1 + $0x484] ss:$8 sps:$4 sm:$0xff]   ;;  %v16135_v62 = vrot.slane %v28947_v17, 1 }
 0x585   :  { %21695 = vmatprep.subr.bf16.mxu1 %v25390_v59  ;;  %v16131_v59 = vrot.slane %v28929_v13, 1  ;;  %v29334_v13 = vld [vmem:[%s32008_s0 + $0x94] ss:$8 sps:$4 sm:$0xff]   ;;  %v29361_v17 = vld [vmem:[%s32008_s0 + $0xa4] ss:$8 sps:$4 sm:$0xff]  }
 0x587   :  { %21711 = vmatpush1.bf16.msra.mxu1 %v25391_v54  ;;  %v20670_v54 = vcombine.low %v6426_v35, %v29300_v29  ;;  %v29383_v35 = vld [vmem:[%s32008_s0 + $0xa0] ss:$8 sps:$4 sm:$0xff]  }
 0x588   :  { %21696 = vmatprep.subr.bf16.mxu1 %v25392_v53  ;;  %v25403_v53 = vld [vmem:[%s32007_s1 + $0x470] ss:$8 sps:$4 sm:$0xff]  }
 0x58a   :  { %7326 = vmatmul.mubr.bf16.gmra.mrb[4].mxu1 %v25038_v63  ;;  %v16137_v63 = vrot.slane %v28936_v10, 1 }
 0x58b   :  { %16822 = vmatmul.mubr.bf16.gmra.mrb[116].mxu0 %v16120_v41  ;;  %7335 = vmatprep.mubr.bf16.mxu1 %v25042_v52  ;;  %v25401_v41 = vld [vmem:[%s32007_s1 + $0x460] ss:$8 sps:$4 sm:$0xff]   ;;  %v25402_v52 = vld [vmem:[%s32007_s1 + $0x474] ss:$8 sps:$4 sm:$0xff]  }
 0x58c   :  { %16831 = vmatprep.mubr.bf16.mxu0 %v16126_v5  ;;  %21712 = vmatpush1.bf16.msra.mxu1 %v25393_v8  ;;  %v16132_v5 = vsel %vm2291_vm0, %v16127_v55, %v16131_v59  ;;  %v16138_v10 = vsel %vm2291_vm0, %v16133_v56, %v16137_v63  ;;  %v16141_v8 = vrot.slane %v28954_v0, 1  ;;  %v25410_v55 = vld [vmem:[%s32007_s1 + $0x4b4] ss:$8 sps:$4 sm:$0xff]  }
 0x58d   :  { %21697 = vmatprep.subr.bf16.mxu1 %v25394_v58  ;;  %v25405_v58 = vld [vmem:[%s32007_s1 + $0x480] ss:$8 sps:$4 sm:$0xff]  }
 0x58e   :  { %v16142_v0 = vsel %vm2291_vm0, %v16137_v63, %v16141_v8  ;;  %v16146_v2 = vsel %vm2291_vm0, %v16141_v8, %v16145_v31  ;;  %v25419_v8 = vld [vmem:[%s32007_s1 + $0x4f0] ss:$8 sps:$4 sm:$0xff]  }
 0x590   :  { %21713 = vmatpush1.bf16.msra.mxu1 %v25395_v12  ;;  %v25408_v12 = vld [vmem:[%s32007_s1 + $0x4a4] ss:$8 sps:$4 sm:$0xff]  }
 0x591   :  { %21698 = vmatprep.subr.bf16.mxu1 %v25396_v25  ;;  %v16139_v25 = vrot.slane %v28965_v28, 1  ;;  %v29389_v28 = vld [vmem:[%s32008_s0 + $0xb4] ss:$8 sps:$4 sm:$0xff]  }
 0x592   :  { %7336 = vmatmul.mubr.bf16.gmra.mrb[8].mxu1 %v25044_v50  ;;  %v25406_v50 = vld [vmem:[%s32007_s1 + $0x494] ss:$8 sps:$4 sm:$0xff]  }
 0x593   :  { %16832 = vmatmul.mubr.bf16.gmra.mrb[120].mxu0 %v16124_v36  ;;  %7345 = vmatprep.mubr.bf16.mxu1 %v25045_v21  ;;  %v29355_v36 = vld [vmem:[%s32008_s0 + $0x90] ss:$8 sps:$4 sm:$0xff]   ;;  %v16136_v21 = vsel %vm2291_vm0, %v16131_v59, %v16135_v62  ;;  %v16140_v56 = vsel %vm2291_vm0, %v16135_v62, %v16139_v25 }
 0x594   :  { %16841 = vmatprep.mubr.bf16.mxu0 %v16130_v15  ;;  %21714 = vmatpush1.bf16.msra.mxu1 %v25397_v1  ;;  %v25407_v15 = vld [vmem:[%s32007_s1 + $0x490] ss:$8 sps:$4 sm:$0xff]  }
 0x595   :  { %21699 = vmatprep.subr.bf16.mxu1 %v25398_v23  ;;  %v25411_v1 = vld [vmem:[%s32007_s1 + $0x4b0] ss:$8 sps:$4 sm:$0xff]   ;;  %v25412_v23 = vld [vmem:[%s32007_s1 + $0x4c4] ss:$8 sps:$4 sm:$0xff]  }
 0x596   :  { %v29417_v59 = vld [vmem:[%s32008_s0 + $0xb0] ss:$8 sps:$4 sm:$0xff]  }
 0x598   :  { %21715 = vmatpush1.bf16.msra.mxu1 %v25399_v4  ;;  %v25413_v4 = vld [vmem:[%s32007_s1 + $0x4c0] ss:$8 sps:$4 sm:$0xff]  }
 0x599   :  { %21700 = vmatprep.subr.bf16.mxu1 %v25400_v16  ;;  %v25414_v16 = vld [vmem:[%s32007_s1 + $0x4d4] ss:$8 sps:$4 sm:$0xff]  }
 0x59a   :  { %7346 = vmatmul.mubr.bf16.gmra.mrb[12].mxu1 %v25047_v43  ;;  %v25131_v43 = vld [vmem:[%s32007_s1 + $0x8e0] ss:$8 sps:$4 sm:$0xff]  }
 0x59b   :  { %16842 = vmatmul.mubr.bf16.gmra.mrb[124].mxu0 %v16128_v24  ;;  %7355 = vmatprep.mubr.bf16.mxu1 %v20671_v45  ;;  %v25133_v24 = vld [vmem:[%s32007_s1 + $0x8e4] ss:$8 sps:$4 sm:$0xff]   ;;  %v16143_v45 = vrot.slane %v28989_v37, 1 }
 0x59c   :  { %16851 = vmatprep.mubr.bf16.mxu0 %v16134_v51  ;;  %21716 = vmatpush1.bf16.msra.mxu1 %v25401_v41  ;;  %v16149_v51 = vrot.slane %v28996_v46, 1  ;;  %v29423_v46 = vld [vmem:[%s32008_s0 + $0xc4] ss:$8 sps:$4 sm:$0xff]   ;;  %v25415_v41 = vld [vmem:[%s32007_s1 + $0x4d0] ss:$8 sps:$4 sm:$0xff]  }
 0x59d   :  { %21701 = vmatprep.subr.bf16.mxu1 %v25402_v52  ;;  %18889 = vmatprep.subr.bf16.mxu0 %v25133_v24  ;;  %v16144_v37 = vsel %vm2291_vm0, %v16139_v25, %v16143_v45  ;;  %v25416_v52 = vld [vmem:[%s32007_s1 + $0x4e4] ss:$8 sps:$4 sm:$0xff]   ;;  %v16155_v25 = vrot.slane %v29049_v38, 1  ;;  %v16159_v38 = vrot.slane %v29067_v32, 1  ;;  %v16163_v32 = vrot.slane %v29085_v9, 1 }
 0x59e   :  { %18890 = vmatpush1.bf16.msra.mxu0 %v25131_v43  ;;  %v16150_v63 = vsel %vm2291_vm0, %v16145_v31, %v16149_v51  ;;  %v16161_v31 = vrot.slane %v29056_v11, 1  ;;  %v16165_v11 = vrot.slane %v29074_v20, 1  ;;  %v29508_v43 = vld [vmem:[%s32008_s0 + $0x104] ss:$8 sps:$4 sm:$0xff]   ;;  %v16169_v20 = vrot.slane %v29092_v60, 1 }
 0x59f   :  { %v16167_v9 = vrot.slane %v29103_v61, 1  ;;  %v16173_v60 = vrot.slane %v29110_v30, 1  ;;  %v18364_v61 = vrot.slane %v29355_v36, 2  ;;  %v18369_v30 = vrot.slane %v29383_v35, 2 }
 0x5a0   :  { %21717 = vmatpush1.bf16.msra.mxu1 %v25403_v53  ;;  %v25418_v53 = vld [vmem:[%s32007_s1 + $0x4f4] ss:$8 sps:$4 sm:$0xff]   ;;  %v16166_v24 = vsel %vm2291_vm0, %v16161_v31, %v16165_v11 }
 0x5a1   :  { %21702 = vmatprep.subr.bf16.mxu1 %v25404_v26  ;;  %v29445_v26 = vld [vmem:[%s32008_s0 + $0xc0] ss:$8 sps:$4 sm:$0xff]  }
 0x5a2   :  { %7356 = vmatmul.mubr.bf16.gmra.mrb[16].mxu1 %v20670_v54  ;;  %v16147_v54 = vrot.slane %v29007_v39, 1  ;;  %v29451_v39 = vld [vmem:[%s32008_s0 + $0xd4] ss:$8 sps:$4 sm:$0xff]  }
 0x5a3   :  { %16852 = vmatmul.mubr.bf16.gmra.mrb[128].mxu0 %v16132_v5  ;;  %7365 = vmatprep.mubr.bf16.mxu1 %v29334_v13  ;;  %v16153_v5 = vrot.slane %v29014_v19, 1 }
 0x5a4   :  { %16861 = vmatprep.mubr.bf16.mxu0 %v16138_v10  ;;  %21718 = vmatpush1.bf16.msra.mxu1 %v25405_v58  ;;  %v25417_v10 = vld [vmem:[%s32007_s1 + $0x4e0] ss:$8 sps:$4 sm:$0xff]   ;;  %v16148_v62 = vsel %vm2291_vm0, %v16143_v45, %v16147_v54  ;;  %v16151_v58 = vrot.slane %v29025_v18, 1  ;;  %v25152_v18 = vld [vmem:[%s32007_s1 + $0x8f0] ss:$8 sps:$4 sm:$0xff]  }
 0x5a5   :  { %21703 = vmatprep.subr.bf16.mxu1 %v25406_v50  ;;  %v16154_v19 = vsel %vm2291_vm0, %v16149_v51, %v16153_v5  ;;  %v16157_v50 = vrot.slane %v29032_v48, 1  ;;  %v25154_v48 = vld [vmem:[%s32007_s1 + $0x8f4] ss:$8 sps:$4 sm:$0xff]   ;;  %v29518_v45 = vld [vmem:[%s32008_s0 + $0x100] ss:$8 sps:$4 sm:$0xff]   ;;  %v16164_v51 = vsel %vm2291_vm0, %v16159_v38, %v16163_v32 }
 0x5a6   :  { %18891 = vmatprep.subr.bf16.mxu0 %v25154_v48 }
 0x5a7   :  { %18892 = vmatpush1.bf16.msra.mxu0 %v25152_v18  ;;  %v18379_v18 = vrot.slane %v29423_v46, 2 }
 0x5a8   :  { %21719 = vmatpush1.bf16.msra.mxu1 %v25407_v15  ;;  %v29470_v15 = vld [vmem:[%s32008_s0 + $0xe4] ss:$8 sps:$4 sm:$0xff]  }
 0x5a9   :  { %21704 = vmatprep.subr.bf16.mxu1 %v25408_v12  ;;  %v16158_v12 = vsel %vm2291_vm0, %v16153_v5, %v16157_v50  ;;  %v16174_v5 = vsel %vm2291_vm0, %v16169_v20, %v16173_v60 }
 0x5aa   :  { %7366 = vmatmul.mubr.bf16.gmra.mrb[20].mxu1 %v29355_v36 }
 0x5ab   :  { %16862 = vmatmul.mubr.bf16.gmra.mrb[132].mxu0 %v16136_v21  ;;  %7375 = vmatprep.mubr.bf16.mxu1 %v29361_v17  ;;  %v29464_v21 = vld [vmem:[%s32008_s0 + $0xd0] ss:$8 sps:$4 sm:$0xff]  }
 0x5ac   :  { %16871 = vmatprep.mubr.bf16.mxu0 %v16142_v0  ;;  %21720 = vmatpush1.bf16.msra.mxu1 %v25409_v3  ;;  %v16152_v0 = vsel %vm2291_vm0, %v16147_v54, %v16151_v58  ;;  %v29486_v3 = vld [vmem:[%s32008_s0 + $0xe0] ss:$8 sps:$4 sm:$0xff]   ;;  %v29542_v54 = vld [vmem:[%s32008_s0 + $0x124] ss:$8 sps:$4 sm:$0xff]  }
 0x5ad   :  { %21705 = vmatprep.subr.bf16.mxu1 %v25410_v55  ;;  %v16156_v55 = vsel %vm2291_vm0, %v16151_v58, %v16155_v25  ;;  %v29571_v58 = vld [vmem:[%s32008_s0 + $0x134] ss:$8 sps:$4 sm:$0xff]  }
 0x5b0   :  { %21721 = vmatpush1.bf16.msra.mxu1 %v25411_v1  ;;  %v29502_v1 = vld [vmem:[%s32008_s0 + $0xf0] ss:$8 sps:$4 sm:$0xff]  }
 0x5b1   :  { %21706 = vmatprep.subr.bf16.mxu1 %v25412_v23  ;;  %v16160_v23 = vsel %vm2291_vm0, %v16155_v25, %v16159_v38  ;;  %v25095_v25 = vld [vmem:[%s32008_s0 + $0x144] ss:$8 sps:$4 sm:$0xff]   ;;  %v18383_v38 = vrot.slane %v29451_v39, 2 }
 0x5b2   :  { %7376 = vmatmul.mubr.bf16.gmra.mrb[24].mxu1 %v29383_v35  ;;  %v16171_v35 = vrot.slane %v29127_v34, 1 }
 0x5b3   :  { %16872 = vmatmul.mubr.bf16.gmra.mrb[136].mxu0 %v16140_v56  ;;  %7385 = vmatprep.mubr.bf16.mxu1 %v29389_v28  ;;  %v29492_v56 = vld [vmem:[%s32008_s0 + $0xf4] ss:$8 sps:$4 sm:$0xff]  }
 0x5b4   :  { %16881 = vmatprep.mubr.bf16.mxu0 %v16146_v2  ;;  %21722 = vmatpush1.bf16.msra.mxu1 %v25413_v4  ;;  %v16162_v2 = vsel %vm2291_vm0, %v16157_v50, %v16161_v31  ;;  %v29524_v4 = vld [vmem:[%s32008_s0 + $0x114] ss:$8 sps:$4 sm:$0xff]   ;;  %v18373_v50 = vrot.slane %v29417_v59, 2  ;;  %v18377_v31 = vrot.slane %v29445_v26, 2 }
 0x5b5   :  { %21707 = vmatprep.subr.bf16.mxu1 %v25414_v16  ;;  %v16170_v16 = vsel %vm2291_vm0, %v16165_v11, %v16169_v20  ;;  %v16189_v20 = vrot.slane %v29194_v6, 1 }
 0x5b8   :  { %21723 = vmatpush1.bf16.msra.mxu1 %v25415_v41  ;;  %v18371_v41 = vrot.slane %v29361_v17, 2  ;;  %v29555_v17 = vsel %vm4654_vm1, %v18364_v61, %v18369_v30 }
 0x5b9   :  { %21708 = vmatprep.subr.bf16.mxu1 %v25416_v52  ;;  %v16168_v52 = vsel %vm2291_vm0, %v16163_v32, %v16167_v9 }
 0x5ba   :  { %7386 = vmatmul.mubr.bf16.gmra.mrb[28].mxu1 %v29417_v59  ;;  %v29588_v59 = vld [vmem:[%s32008_s0 + $0x130] ss:$8 sps:$4 sm:$0xff]  }
 0x5bb   :  { %16882 = vmatmul.mubr.bf16.gmra.mrb[140].mxu0 %v16144_v37  ;;  %7395 = vmatprep.mubr.bf16.mxu1 %v29423_v46  ;;  %v29534_v37 = vld [vmem:[%s32008_s0 + $0x110] ss:$8 sps:$4 sm:$0xff]   ;;  %v16179_v46 = vrot.slane %v29163_v49, 1  ;;  %v29617_v49 = vsel %vm4654_vm1, %v18379_v18, %v18383_v38 }
 0x5bc   :  { %16891 = vmatprep.mubr.bf16.mxu0 %v16150_v63  ;;  %21724 = vmatpush1.bf16.msra.mxu1 %v25417_v10  ;;  %v18367_v63 = vrot.slane %v29334_v13, 2  ;;  %v25170_v13 = vld [vmem:[%s32008_s0 + $0x200] ss:$8 sps:$4 sm:$0xff]  }
 0x5bd   :  { %21709 = vmatprep.subr.bf16.mxu1 %v25418_v53  ;;  %v16177_v53 = vrot.slane %v29134_v7, 1 }
 0x5be   :  { %v29550_v10 = vsel %vm4654_vm1, %v18367_v63, %v18371_v41 }
 0x5bf   :  { %v16178_v34 = vsel %vm2291_vm0, %v16173_v60, %v16177_v53  ;;  %v18385_v60 = vrot.slane %v29486_v3, 2 }
 0x5c0   :  { %21725 = vmatpush1.bf16.msra.mxu1 %v25419_v8  ;;  %v16172_v8 = vsel %vm2291_vm0, %v16167_v9, %v16171_v35  ;;  %v25101_v9 = vld [vmem:[%s32008_s0 + $0x164] ss:$8 sps:$4 sm:$0xff]  }
 0x5c2   :  { %7396 = vmatmul.mubr.bf16.gmra.mrb[32].mxu1 %v29445_v26  ;;  %v25097_v26 = vld [vmem:[%s32008_s0 + $0x140] ss:$8 sps:$4 sm:$0xff]  }
 0x5c3   :  { %16892 = vmatmul.mubr.bf16.gmra.mrb[144].mxu0 %v16148_v62  ;;  %7405 = vmatprep.mubr.bf16.mxu1 %v29451_v39  ;;  %v29564_v62 = vld [vmem:[%s32008_s0 + $0x120] ss:$8 sps:$4 sm:$0xff]   ;;  %v16183_v39 = vrot.slane %v29187_v40, 1  ;;  %v25109_v40 = vld [vmem:[%s32008_s0 + $0x384] ss:$8 sps:$4 sm:$0xff]  }
 0x5c4   :  { %16901 = vmatprep.mubr.bf16.mxu0 %v16154_v19  ;;  %v18375_v19 = vrot.slane %v29389_v28, 2  ;;  %v16175_v28 = vrot.slane %v29145_v33, 1 }
 0x5c6   :  { %v29576_v7 = vsel %vm4654_vm1, %v18371_v41, %v18375_v19  ;;  %v16176_v48 = vsel %vm2291_vm0, %v16171_v35, %v16175_v28  ;;  %v29598_v33 = vsel %vm4654_vm1, %v18375_v19, %v18379_v18  ;;  %v16180_v11 = vsel %vm2291_vm0, %v16175_v28, %v16179_v46  ;;  %v25112_v19 = vld [vmem:[%s32008_s0 + $0x380] ss:$8 sps:$4 sm:$0xff]  }
 0x5c7   :  { %v16191_v28 = vrot.slane %v25112_v19, 1  ;;  %v18395_v18 = vrot.slane %v29508_v43, 2 }
 0x5ca   :  { %7406 = vmatmul.mubr.bf16.gmra.mrb[36].mxu1 %v29464_v21 }
 0x5cb   :  { %16902 = vmatmul.mubr.bf16.gmra.mrb[148].mxu0 %v16152_v0  ;;  %7415 = vmatprep.mubr.bf16.mxu1 %v29470_v15  ;;  %v29579_v0 = vsel %vm4654_vm1, %v18369_v30, %v18373_v50  ;;  %v16193_v30 = vrot.slane %v25109_v40, 1 }
 0x5cc   :  { %16911 = vmatprep.mubr.bf16.mxu0 %v16158_v12  ;;  %v16181_v12 = vrot.slane %v29152_v27, 1  ;;  %v29601_v27 = vsel %vm4654_vm1, %v18373_v50, %v18377_v31  ;;  %v25115_v50 = vld [vmem:[%s32008_s0 + $0x394] ss:$8 sps:$4 sm:$0xff]  }
 0x5d2   :  { %7416 = vmatmul.mubr.bf16.gmra.mrb[40].mxu1 %v29486_v3  ;;  %v25103_v3 = vld [vmem:[%s32008_s0 + $0x160] ss:$8 sps:$4 sm:$0xff]  }
 0x5d3   :  { %16912 = vmatmul.mubr.bf16.gmra.mrb[152].mxu0 %v16156_v55  ;;  %7425 = vmatprep.mubr.bf16.mxu1 %v29492_v56  ;;  %v16182_v55 = vsel %vm2291_vm0, %v16177_v53, %v16181_v12  ;;  %v25107_v53 = vld [vmem:[%s32008_s0 + $0x174] ss:$8 sps:$4 sm:$0xff]  }
 0x5d4   :  { %16921 = vmatprep.mubr.bf16.mxu0 %v16162_v2  ;;  %v16185_v2 = vrot.slane %v29170_v42, 1 }
 0x5d6   :  { %v16186_v32 = vsel %vm2291_vm0, %v16181_v12, %v16185_v2  ;;  %v16190_v41 = vsel %vm2291_vm0, %v16185_v2, %v16189_v20  ;;  %v16197_v12 = vrot.slane %v25115_v50, 1  ;;  %v25121_v2 = vld [vmem:[%s32008_s0 + $0x3a4] ss:$8 sps:$4 sm:$0xff]  }
 0x5da   :  { %7426 = vmatmul.mubr.bf16.gmra.mrb[44].mxu1 %v29502_v1 }
 0x5db   :  { %16922 = vmatmul.mubr.bf16.gmra.mrb[156].mxu0 %v16160_v23  ;;  %7435 = vmatprep.mubr.bf16.mxu1 %v29508_v43  ;;  %v25098_v23 = vld [vmem:[%s32008_s0 + $0x154] ss:$8 sps:$4 sm:$0xff]  }
 0x5dc   :  { %16931 = vmatprep.mubr.bf16.mxu0 %v16166_v24  ;;  %v18381_v24 = vrot.slane %v29464_v21, 2  ;;  %v25100_v21 = vld [vmem:[%s32008_s0 + $0x150] ss:$8 sps:$4 sm:$0xff]  }
 0x5de   :  { %v29620_v42 = vsel %vm4654_vm1, %v18377_v31, %v18381_v24  ;;  %v25118_v31 = vld [vmem:[%s32008_s0 + $0x390] ss:$8 sps:$4 sm:$0xff]  }
 0x5e2   :  { %7436 = vmatmul.mubr.bf16.gmra.mrb[48].mxu1 %v29518_v45 }
 0x5e3   :  { %16932 = vmatmul.mubr.bf16.gmra.mrb[160].mxu0 %v16164_v51  ;;  %7445 = vmatprep.mubr.bf16.mxu1 %v29524_v4  ;;  %v18387_v51 = vrot.slane %v29470_v15, 2  ;;  %v16187_v15 = vrot.slane %v29208_v14, 1  ;;  %v16194_v14 = vsel %vm2291_vm0, %v16189_v20, %v16193_v30  ;;  %v18397_v20 = vrot.slane %v29534_v37, 2 }
 0x5e4   :  { %16941 = vmatprep.mubr.bf16.mxu0 %v16170_v16  ;;  %v16184_v16 = vsel %vm2291_vm0, %v16179_v46, %v16183_v39  ;;  %v16198_v46 = vsel %vm2291_vm0, %v16193_v30, %v16197_v12  ;;  %v25130_v30 = vld [vmem:[%s32008_s0 + $0x3b0] ss:$8 sps:$4 sm:$0xff]  }
 0x5e5   :  { %v29638_v6 = vsel %vm4654_vm1, %v18383_v38, %v18387_v51  ;;  %v16188_v35 = vsel %vm2291_vm0, %v16183_v39, %v16187_v15  ;;  %v16195_v38 = vrot.slane %v25118_v31, 1  ;;  %v25124_v39 = vld [vmem:[%s32008_s0 + $0x3a0] ss:$8 sps:$4 sm:$0xff]   ;;  %v16203_v19 = vrot.slane %v25130_v30, 1  ;;  %v25150_v30 = vld [vmem:[%s32008_s0 + $0x1d0] ss:$8 sps:$4 sm:$0xff]  }
 0x5ea   :  { %7446 = vmatmul.mubr.bf16.gmra.mrb[52].mxu1 %v29534_v37  ;;  %v25123_v37 = vld [vmem:[%s32008_s0 + $0x190] ss:$8 sps:$4 sm:$0xff]  }
 0x5eb   :  { %16942 = vmatmul.mubr.bf16.gmra.mrb[164].mxu0 %v16168_v52  ;;  %7455 = vmatprep.mubr.bf16.mxu1 %v29542_v54  ;;  %v29641_v52 = vsel %vm4654_vm1, %v18381_v24, %v18385_v60  ;;  %v16196_v24 = vsel %vm2291_vm0, %v16191_v28, %v16195_v38 }
 0x5ec   :  { %16951 = vmatprep.mubr.bf16.mxu0 %v16174_v5  ;;  %v18391_v5 = vrot.slane %v29492_v56, 2 }
 0x5ee   :  { %v29661_v56 = vsel %vm4654_vm1, %v18387_v51, %v18391_v5  ;;  %v29683_v43 = vsel %vm4654_vm1, %v18391_v5, %v18395_v18  ;;  %v25127_v51 = vld [vmem:[%s32008_s0 + $0x3b4] ss:$8 sps:$4 sm:$0xff]  }
 0x5f2   :  { %7456 = vmatmul.mubr.bf16.gmra.mrb[56].mxu1 %v29564_v62 }
 0x5f3   :  { %16952 = vmatmul.mubr.bf16.gmra.mrb[168].mxu0 %v16172_v8  ;;  %7465 = vmatprep.mubr.bf16.mxu1 %v29571_v58  ;;  %v18389_v8 = vrot.slane %v29502_v1, 2  ;;  %v25111_v1 = vld [vmem:[%s32008_s0 + $0x170] ss:$8 sps:$4 sm:$0xff]  }
 0x5f4   :  { %16961 = vmatprep.mubr.bf16.mxu0 %v16178_v34 }
 0x5f5   :  { %v29664_v34 = vsel %vm4654_vm1, %v18385_v60, %v18389_v8  ;;  %v16205_v60 = vrot.slane %v25127_v51, 1  ;;  %v25146_v51 = vld [vmem:[%s32008_s0 + $0x1d4] ss:$8 sps:$4 sm:$0xff]  }
 0x5fa   :  { %7466 = vmatmul.mubr.bf16.gmra.mrb[60].mxu1 %v29588_v59 }
 0x5fb   :  { %16962 = vmatmul.mubr.bf16.gmra.mrb[172].mxu0 %v16176_v48  ;;  %7475 = vmatprep.mubr.bf16.mxu1 %v25095_v25  ;;  %v16192_v48 = vsel %vm2291_vm0, %v16187_v15, %v16191_v28  ;;  %v25113_v25 = vld [vmem:[%s32008_s0 + $0x184] ss:$8 sps:$4 sm:$0xff]   ;;  %v25134_v28 = vld [vmem:[%s32008_s0 + $0x1b4] ss:$8 sps:$4 sm:$0xff]  }
 0x5fc   :  { %16971 = vmatprep.mubr.bf16.mxu0 %v16182_v55  ;;  %v18393_v55 = vrot.slane %v29518_v45, 2  ;;  %v25117_v45 = vld [vmem:[%s32008_s0 + $0x180] ss:$8 sps:$4 sm:$0xff]   ;;  %v25125_v15 = vld [vmem:[%s32008_s0 + $0x1a4] ss:$8 sps:$4 sm:$0xff]  }
 0x602   :  { %7476 = vmatmul.mubr.bf16.gmra.mrb[64].mxu1 %v25097_v26  ;;  %v29686_v26 = vsel %vm4654_vm1, %v18389_v8, %v18393_v55 }
 0x603   :  { %16972 = vmatmul.mubr.bf16.gmra.mrb[176].mxu0 %v16180_v11  ;;  %7485 = vmatprep.mubr.bf16.mxu1 %v25098_v23  ;;  %v16201_v11 = vrot.slane %v25121_v2, 1  ;;  %v18399_v23 = vrot.slane %v29524_v4, 2  ;;  %v25138_v2 = vld [vmem:[%s32008_s0 + $0x1b0] ss:$8 sps:$4 sm:$0xff]  }
 0x604   :  { %16981 = vmatprep.mubr.bf16.mxu0 %v16186_v32  ;;  %v25119_v32 = vld [vmem:[%s32008_s0 + $0x194] ss:$8 sps:$4 sm:$0xff]  }
 0x605   :  { %v29705_v4 = vsel %vm4654_vm1, %v18395_v18, %v18399_v23  ;;  %v16206_v5 = vsel %vm2291_vm0, %v16201_v11, %v16205_v60 }
 0x60a   :  { %7486 = vmatmul.mubr.bf16.gmra.mrb[68].mxu1 %v25100_v21  ;;  %v16202_v21 = vsel %vm2291_vm0, %v16197_v12, %v16201_v11  ;;  %v25139_v12 = vld [vmem:[%s32008_s0 + $0x3c0] ss:$8 sps:$4 sm:$0xff]   ;;  %v25140_v11 = vld [vmem:[%s32008_s0 + $0x1c4] ss:$8 sps:$4 sm:$0xff]  }
 0x60b   :  { %16982 = vmatmul.mubr.bf16.gmra.mrb[180].mxu0 %v16184_v16  ;;  %7495 = vmatprep.mubr.bf16.mxu1 %v25101_v9  ;;  %v29708_v16 = vsel %vm4654_vm1, %v18393_v55, %v18397_v20  ;;  %v16199_v9 = vrot.slane %v25124_v39, 1  ;;  %v16207_v55 = vrot.slane %v25139_v12, 1  ;;  %v25159_v12 = vld [vmem:[%s32008_s0 + $0x1e0] ss:$8 sps:$4 sm:$0xff]  }
 0x60c   :  { %16991 = vmatprep.mubr.bf16.mxu0 %v16190_v41  ;;  %v18403_v41 = vrot.slane %v29542_v54, 2 }
 0x60d   :  { %v16200_v40 = vsel %vm2291_vm0, %v16195_v38, %v16199_v9  ;;  %v16204_v50 = vsel %vm2291_vm0, %v16199_v9, %v16203_v19  ;;  %v16208_v38 = vsel %vm2291_vm0, %v16203_v19, %v16207_v55  ;;  %v25151_v9 = vld [vmem:[%s32008_s0 + $0x3e0] ss:$8 sps:$4 sm:$0xff]  }
 0x60e   :  { %v29727_v54 = vsel %vm4654_vm1, %v18399_v23, %v18403_v41 }
 0x612   :  { %7496 = vmatmul.mubr.bf16.gmra.mrb[72].mxu1 %v25103_v3  ;;  %v18401_v3 = vrot.slane %v29564_v62, 2  ;;  %v25129_v62 = vld [vmem:[%s32008_s0 + $0x1a0] ss:$8 sps:$4 sm:$0xff]  }
 0x613   :  { %16992 = vmatmul.mubr.bf16.gmra.mrb[184].mxu0 %v16188_v35  ;;  %7505 = vmatprep.mubr.bf16.mxu1 %v25107_v53  ;;  %v25136_v35 = vld [vmem:[%s32008_s0 + $0x3c4] ss:$8 sps:$4 sm:$0xff]  }
 0x614   :  { %17001 = vmatprep.mubr.bf16.mxu0 %v16194_v14  ;;  %v29730_v53 = vsel %vm4654_vm1, %v18397_v20, %v18401_v3  ;;  %v16209_v8 = vrot.slane %v25136_v35, 1  ;;  %v18407_v14 = vrot.slane %v29571_v58, 2  ;;  %v25144_v20 = vld [vmem:[%s32008_s0 + $0x1c0] ss:$8 sps:$4 sm:$0xff]   ;;  %v25160_v35 = vld [vmem:[%s32008_s0 + $0x3f0] ss:$8 sps:$4 sm:$0xff]  }
 0x616   :  { %v16210_v18 = vsel %vm2291_vm0, %v16205_v60, %v16209_v8 }
 0x61a   :  { %7506 = vmatmul.mubr.bf16.gmra.mrb[76].mxu1 %v25111_v1  ;;  %v18405_v1 = vrot.slane %v29588_v59, 2  ;;  %v25215_v59 = vld [vmem:[%s32008_s0 + $0x164] ss:$8 sps:$4 sm:$0xff]  }
 0x61b   :  { %17002 = vmatmul.mubr.bf16.gmra.mrb[188].mxu0 %v16192_v48  ;;  %7515 = vmatprep.mubr.bf16.mxu1 %v25113_v25  ;;  %v25142_v48 = vld [vmem:[%s32008_s0 + $0x3d4] ss:$8 sps:$4 sm:$0xff]   ;;  %v29751_v25 = vsel %vm4654_vm1, %v18403_v41, %v18407_v14  ;;  %v16215_v41 = vrot.slane %v25151_v9, 1 }
 0x61c   :  { %17011 = vmatprep.mubr.bf16.mxu0 %v16198_v46  ;;  %v29756_v31 = vsel %vm4654_vm1, %v18401_v3, %v18405_v1  ;;  %v16213_v46 = vrot.slane %v25142_v48, 1  ;;  %v25161_v48 = vld [vmem:[%s32008_s0 + $0x1f4] ss:$8 sps:$4 sm:$0xff]  }
 0x61e   :  { %v16214_v23 = vsel %vm2291_vm0, %v16209_v8, %v16213_v46 }
 0x622   :  { %7516 = vmatmul.mubr.bf16.gmra.mrb[80].mxu1 %v25117_v45  ;;  %v25145_v45 = vld [vmem:[%s32008_s0 + $0x3d0] ss:$8 sps:$4 sm:$0xff]  }
 0x623   :  { %17012 = vmatmul.mubr.bf16.gmra.mrb[192].mxu0 %v16196_v24  ;;  %7525 = vmatprep.mubr.bf16.mxu1 %v25119_v32  ;;  %v25148_v24 = vld [vmem:[%s32008_s0 + $0x3e4] ss:$8 sps:$4 sm:$0xff]   ;;  %v16211_v32 = vrot.slane %v25145_v45, 1 }
 0x624   :  { %17021 = vmatprep.mubr.bf16.mxu0 %v16202_v21  ;;  %v16217_v39 = vrot.slane %v25148_v24, 1  ;;  %v25164_v24 = vld [vmem:[%s32008_s0 + $0x1f0] ss:$8 sps:$4 sm:$0xff]  }
 0x625   :  { %v16212_v21 = vsel %vm2291_vm0, %v16207_v55, %v16211_v32  ;;  %v16216_v3 = vsel %vm2291_vm0, %v16211_v32, %v16215_v41 }
 0x626   :  { %v16218_v60 = vsel %vm2291_vm0, %v16213_v46, %v16217_v39 }
 0x62a   :  { %7526 = vmatmul.mubr.bf16.gmra.mrb[84].mxu1 %v25123_v37  ;;  %v25157_v37 = vld [vmem:[%s32008_s0 + $0x3f4] ss:$8 sps:$4 sm:$0xff]  }
 0x62b   :  { %17022 = vmatmul.mubr.bf16.gmra.mrb[196].mxu0 %v16200_v40  ;;  %7535 = vmatprep.mubr.bf16.mxu1 %v25125_v15  ;;  %v16221_v40 = vrot.slane %v25157_v37, 1  ;;  %v15514_v15 = vld [vmem:[%s32008_s0 + $0x400] sm:$0x11] }
 0x62c   :  { %17031 = vmatprep.mubr.bf16.mxu0 %v16206_v5  ;;  %v25155_v5 = vld [vmem:[%s32008_s0 + $0x1e4] ss:$8 sps:$4 sm:$0xff]   ;;  %v21483_v8 = vcombine.high %v15514_v15, %v15514_v15  ;;  %v21482_v55 = vcombine.low %v15514_v15, %v15514_v15 }
 0x62d   :  { %v16222_v19 = vsel %vm2291_vm0, %v16217_v39, %v16221_v40 }
 0x632   :  { %7536 = vmatmul.mubr.bf16.gmra.mrb[88].mxu1 %v25129_v62  ;;  %v16219_v62 = vrot.slane %v25160_v35, 1 }
 0x633   :  { %17032 = vmatmul.mubr.bf16.gmra.mrb[200].mxu0 %v16204_v50  ;;  %7545 = vmatprep.mubr.bf16.mxu1 %v25134_v28  ;;  %v16225_v50 = vrot.slane %v21483_v8, 1  ;;  %v17764_v28 = vld [vmem:[%s32008_s0 + $0x80] sm:$0xcc] }
 0x634   :  { %17041 = vmatprep.mubr.bf16.mxu0 %v16210_v18  ;;  %v16220_v18 = vsel %vm2291_vm0, %v16215_v41, %v16219_v62  ;;  %v25176_v8 = vld [vmem:[%s32008_s0 + $0x220] ss:$8 sps:$4 sm:$0xff]  }
 0x635   :  { %v16226_v46 = vsel %vm2291_vm0, %v16221_v40, %v16225_v50  ;;  %v25171_v40 = vld [vmem:[%s32008_s0 + $0x214] ss:$8 sps:$4 sm:$0xff]  }
 0x63a   :  { %7546 = vmatmul.mubr.bf16.gmra.mrb[92].mxu1 %v25138_v2  ;;  %v21549_v2 = vcombine.high %v17764_v28, %v29300_v29 }
 0x63b   :  { %17042 = vmatmul.mubr.bf16.gmra.mrb[204].mxu0 %v16208_v38  ;;  %7555 = vmatprep.mubr.bf16.mxu1 %v25140_v11  ;;  %v16223_v38 = vrot.slane %v21482_v55, 1 }
 0x63c   :  { %17051 = vmatprep.mubr.bf16.mxu0 %v16214_v23  ;;  %v18366_v11 = vrot.slane %v21549_v2, 2 }
 0x63d   :  { %v16224_v39 = vsel %vm2291_vm0, %v16219_v62, %v16223_v38 }
 0x63e   :  { %v18368_v9 = vsel %vm4654_vm1, %v18366_v11, %v18367_v63 }
 0x642   :  { %7556 = vmatmul.mubr.bf16.gmra.mrb[96].mxu1 %v25144_v20  ;;  %v25166_v20 = vld [vmem:[%s32008_s0 + $0x204] ss:$8 sps:$4 sm:$0xff]  }
 0x643   :  { %17052 = vmatmul.mubr.bf16.gmra.mrb[208].mxu0 %v16212_v21  ;;  %7565 = vmatprep.mubr.bf16.mxu1 %v25146_v51  ;;  %v21548_v21 = vcombine.low %v17764_v28, %v29300_v29 }
 0x644   :  { %17061 = vmatprep.mubr.bf16.mxu0 %v16218_v60 }
 0x645   :  { %v18363_v60 = vrot.slane %v21548_v21, 2 }
 0x647   :  { %v18365_v41 = vsel %vm4654_vm1, %v18363_v60, %v18364_v61 }
 0x64a   :  { %7566 = vmatmul.mubr.bf16.gmra.mrb[100].mxu1 %v25150_v30  ;;  %v25173_v30 = vld [vmem:[%s32008_s0 + $0x210] ss:$8 sps:$4 sm:$0xff]  }
 0x64b   :  { %17062 = vmatmul.mubr.bf16.gmra.mrb[212].mxu0 %v16216_v3  ;;  %7575 = vmatprep.mubr.bf16.mxu1 %v25155_v5  ;;  %v25174_v5 = vld [vmem:[%s32008_s0 + $0x224] ss:$8 sps:$4 sm:$0xff]  }
 0x64c   :  { %17071 = vmatprep.mubr.bf16.mxu0 %v16222_v19 }
 0x652   :  { %7576 = vmatmul.mubr.bf16.gmra.mrb[104].mxu1 %v25159_v12  ;;  %v25179_v12 = vld [vmem:[%s32008_s0 + $0x230] ss:$8 sps:$4 sm:$0xff]  }
 0x653   :  { %17072 = vmatmul.mubr.bf16.gmra.mrb[216].mxu0 %v16220_v18  ;;  %7585 = vmatprep.mubr.bf16.mxu1 %v25161_v48 }
 0x654   :  { %17081 = vmatprep.mubr.bf16.mxu0 %v16226_v46  ;;  %v25182_v46 = vld [vmem:[%s32008_s0 + $0x240] ss:$8 sps:$4 sm:$0xff]  }
 0x655   :  { %v7317_v45 = vpop.f32.mrb[0].mxu1 }
 0x656   :  { %21726 = vst [vmem:[%s32009_s2] sm:$0xff] %v7317_v45  ;;  %v7319_v23 = vpop.f32.mrb[1].mxu1  ;;  %v25185_v45 = vld [vmem:[%s32008_s0 + $0x250] ss:$8 sps:$4 sm:$0xff]  }
 0x657   :  { %21729 = vst [vmem:[%s32009_s2 + $0x8] sm:$0xff] %v7319_v23  ;;  %v7321_v32 = vpop.f32.mrb[2].mxu1 }
 0x658   :  { %21732 = vst [vmem:[%s32009_s2 + $0x10] sm:$0xff] %v7321_v32  ;;  %v7323_v51 = vpop.f32.mrb[3].mxu1 }
 0x659   :  { %21735 = vst [vmem:[%s32009_s2 + $0x18] sm:$0xff] %v7323_v51 }
 0x65a   :  { %7586 = vmatmul.mubr.bf16.gmra.mrb[108].mxu1 %v25164_v24 }
 0x65b   :  { %17082 = vmatmul.mubr.bf16.gmra.mrb[220].mxu0 %v16224_v39  ;;  %7595 = vmatprep.mubr.bf16.mxu1 %v25166_v20  ;;  %v25188_v39 = vld [vmem:[%s32008_s0 + $0x260] ss:$8 sps:$4 sm:$0xff]  }
 0x65c   :  { %18893 = vmatprep.mubr.bf16.mxu0 %v18368_v9  ;;  %v25191_v9 = vld [vmem:[%s32008_s0 + $0x270] ss:$8 sps:$4 sm:$0xff]  }
 0x65d   :  { %v7327_v37 = vpop.f32.mrb[4].mxu1 }
 0x65e   :  { %21738 = vst [vmem:[%s32009_s2 + $0x20] sm:$0xff] %v7327_v37  ;;  %v7329_v29 = vpop.f32.mrb[5].mxu1 }
 0x65f   :  { %21741 = vst [vmem:[%s32009_s2 + $0x28] sm:$0xff] %v7329_v29  ;;  %v7331_v63 = vpop.f32.mrb[6].mxu1 }
 0x660   :  { %21744 = vst [vmem:[%s32009_s2 + $0x30] sm:$0xff] %v7331_v63  ;;  %v7333_v15 = vpop.f32.mrb[7].mxu1 }
 0x661   :  { %21747 = vst [vmem:[%s32009_s2 + $0x38] sm:$0xff] %v7333_v15  ;;  %v25197_v15 = vld [vmem:[%s32008_s0 + $0x290] ss:$8 sps:$4 sm:$0xff]  }
 0x662   :  { %7596 = vmatmul.mubr.bf16.gmra.mrb[112].mxu1 %v25170_v13  ;;  %v25194_v13 = vld [vmem:[%s32008_s0 + $0x280] ss:$8 sps:$4 sm:$0xff]  }
 0x663   :  { %18894 = vmatmul.mubr.bf16.vlgmr.msra.gmra.mrb[0].mxu0 %v18365_v41  ;;  %7605 = vmatprep.mubr.bf16.mxu1 %v25171_v40 }
 0x664   :  { %18903 = vmatprep.mubr.bf16.mxu0 %v29550_v10 }
 0x665   :  { %v7337_v36 = vpop.f32.mrb[8].mxu1 }
 0x666   :  { %21750 = vst [vmem:[%s32009_s2 + $0x40] sm:$0xff] %v7337_v36  ;;  %v7339_v61 = vpop.f32.mrb[9].mxu1 }
 0x667   :  { %21753 = vst [vmem:[%s32009_s2 + $0x48] sm:$0xff] %v7339_v61  ;;  %v7341_v3 = vpop.f32.mrb[10].mxu1  ;;  %v25203_v61 = vld [vmem:[%s32008_s0 + $0x144] ss:$8 sps:$4 sm:$0xff]  }
 0x668   :  { %21756 = vst [vmem:[%s32009_s2 + $0x50] sm:$0xff] %v7341_v3  ;;  %v7343_v10 = vpop.f32.mrb[11].mxu1 }
 0x669   :  { %21759 = vst [vmem:[%s32009_s2 + $0x58] sm:$0xff] %v7343_v10  ;;  %v25200_v10 = vld [vmem:[%s32008_s0 + $0x2a0] ss:$8 sps:$4 sm:$0xff]  }
 0x66a   :  { %7606 = vmatmul.mubr.bf16.gmra.mrb[116].mxu1 %v25173_v30  ;;  %v18411_v30 = vrot.slane %v25203_v61, 2 }
 0x66b   :  { %18904 = vmatmul.mubr.bf16.gmra.mrb[4].mxu0 %v29555_v17  ;;  %7615 = vmatprep.mubr.bf16.mxu1 %v25174_v5  ;;  %v25177_v17 = vld [vmem:[%s32008_s0 + $0x234] ss:$8 sps:$4 sm:$0xff]  }
 0x66c   :  { %18913 = vmatprep.mubr.bf16.mxu0 %v29576_v7 }
 0x66d   :  { %v7347_v35 = vpop.f32.mrb[12].mxu1 }
 0x66e   :  { %21762 = vst [vmem:[%s32009_s2 + $0x60] sm:$0xff] %v7347_v35  ;;  %v7349_v19 = vpop.f32.mrb[13].mxu1 }
 0x66f   :  { %21765 = vst [vmem:[%s32009_s2 + $0x68] sm:$0xff] %v7349_v19  ;;  %v7351_v62 = vpop.f32.mrb[14].mxu1 }
 0x670   :  { %21768 = vst [vmem:[%s32009_s2 + $0x70] sm:$0xff] %v7351_v62  ;;  %v7353_v7 = vpop.f32.mrb[15].mxu1  ;;  %v25209_v62 = vld [vmem:[%s32008_s0 + $0x154] ss:$8 sps:$4 sm:$0xff]  }
 0x671   :  { %21771 = vst [vmem:[%s32009_s2 + $0x78] sm:$0xff] %v7353_v7  ;;  %v18415_v7 = vrot.slane %v25209_v62, 2  ;;  %v25239_v62 = vld [vmem:[%s32008_s0 + $0x1a4] ss:$8 sps:$4 sm:$0xff]  }
 0x672   :  { %7616 = vmatmul.mubr.bf16.gmra.mrb[120].mxu1 %v25176_v8  ;;  %v18412_v8 = vsel %vm4654_vm1, %v18407_v14, %v18411_v30  ;;  %v25205_v14 = vld [vmem:[%s32008_s0 + $0x2b0] ss:$8 sps:$4 sm:$0xff]  }
 0x673   :  { %18914 = vmatmul.mubr.bf16.gmra.mrb[8].mxu0 %v29579_v0  ;;  %7625 = vmatprep.mubr.bf16.mxu1 %v25177_v17  ;;  %v25180_v0 = vld [vmem:[%s32008_s0 + $0x244] ss:$8 sps:$4 sm:$0xff]  }
 0x674   :  { %18923 = vmatprep.mubr.bf16.mxu0 %v29598_v33 }
 0x675   :  { %v7357_v50 = vpop.f32.mrb[16].mxu1 }
 0x676   :  { %21774 = vst [vmem:[%s32009_s2 + $0x80] sm:$0xff] %v7357_v50  ;;  %v7359_v28 = vpop.f32.mrb[17].mxu1 }
 0x677   :  { %21777 = vst [vmem:[%s32009_s2 + $0x88] sm:$0xff] %v7359_v28  ;;  %v7361_v18 = vpop.f32.mrb[18].mxu1 }
 0x678   :  { %21780 = vst [vmem:[%s32009_s2 + $0x90] sm:$0xff] %v7361_v18  ;;  %v7363_v33 = vpop.f32.mrb[19].mxu1  ;;  %v25212_v18 = vld [vmem:[%s32008_s0 + $0x150] ss:$8 sps:$4 sm:$0xff]  }
 0x679   :  { %21783 = vst [vmem:[%s32009_s2 + $0x98] sm:$0xff] %v7363_v33  ;;  %v18416_v33 = vsel %vm4654_vm1, %v18411_v30, %v18415_v7 }
 0x67a   :  { %7626 = vmatmul.mubr.bf16.gmra.mrb[124].mxu1 %v25179_v12  ;;  %v25207_v12 = vld [vmem:[%s32008_s0 + $0x2c4] ss:$8 sps:$4 sm:$0xff]  }
 0x67b   :  { %18924 = vmatmul.mubr.bf16.gmra.mrb[12].mxu0 %v29601_v27  ;;  %7635 = vmatprep.mubr.bf16.mxu1 %v25180_v0  ;;  %v25183_v27 = vld [vmem:[%s32008_s0 + $0x254] ss:$8 sps:$4 sm:$0xff]  }
 0x67c   :  { %18933 = vmatprep.mubr.bf16.mxu0 %v29617_v49 }
 0x67d   :  { %v7367_v48 = vpop.f32.mrb[20].mxu1 }
 0x67e   :  { %21786 = vst [vmem:[%s32009_s2 + $0xa0] sm:$0xff] %v7367_v48  ;;  %v7369_v55 = vpop.f32.mrb[21].mxu1  ;;  %v18419_v48 = vrot.slane %v25215_v59, 2  ;;  %v25245_v59 = vld [vmem:[%s32008_s0 + $0x1b4] ss:$8 sps:$4 sm:$0xff]  }
 0x67f   :  { %21789 = vst [vmem:[%s32009_s2 + $0xa8] sm:$0xff] %v7369_v55  ;;  %v7371_v2 = vpop.f32.mrb[22].mxu1 }
 0x680   :  { %21792 = vst [vmem:[%s32009_s2 + $0xb0] sm:$0xff] %v7371_v2  ;;  %v7373_v49 = vpop.f32.mrb[23].mxu1  ;;  %v25211_v2 = vld [vmem:[%s32008_s0 + $0x2c0] ss:$8 sps:$4 sm:$0xff]  }
 0x681   :  { %21795 = vst [vmem:[%s32009_s2 + $0xb8] sm:$0xff] %v7373_v49 }
 0x682   :  { %7636 = vmatmul.mubr.bf16.gmra.mrb[128].mxu1 %v25182_v46 }
 0x683   :  { %18934 = vmatmul.mubr.bf16.gmra.mrb[16].mxu0 %v29620_v42  ;;  %7645 = vmatprep.mubr.bf16.mxu1 %v25183_v27  ;;  %v25186_v42 = vld [vmem:[%s32008_s0 + $0x264] ss:$8 sps:$4 sm:$0xff]  }
 0x684   :  { %18943 = vmatprep.mubr.bf16.mxu0 %v29638_v6 }
 0x685   :  { %v7377_v38 = vpop.f32.mrb[24].mxu1 }
 0x686   :  { %21798 = vst [vmem:[%s32009_s2 + $0xc0] sm:$0xff] %v7377_v38  ;;  %v7379_v11 = vpop.f32.mrb[25].mxu1  ;;  %v25213_v38 = vld [vmem:[%s32008_s0 + $0x2d4] ss:$8 sps:$4 sm:$0xff]  }
 0x687   :  { %21801 = vst [vmem:[%s32009_s2 + $0xc8] sm:$0xff] %v7379_v11  ;;  %v7381_v23 = vpop.f32.mrb[26].mxu1  ;;  %v25218_v11 = vld [vmem:[%s32008_s0 + $0x160] ss:$8 sps:$4 sm:$0xff]  }
 0x688   :  { %21804 = vst [vmem:[%s32009_s2 + $0xd0] sm:$0xff] %v7381_v23  ;;  %v7383_v6 = vpop.f32.mrb[27].mxu1  ;;  %v18420_v23 = vsel %vm4654_vm1, %v18415_v7, %v18419_v48  ;;  %v18435_v7 = vrot.slane %v25239_v62, 2  ;;  %v25269_v62 = vld [vmem:[%s32008_s0 + $0x1f4] ss:$8 sps:$4 sm:$0xff]  }
 0x689   :  { %21807 = vst [vmem:[%s32009_s2 + $0xd8] sm:$0xff] %v7383_v6  ;;  %v18417_v6 = vrot.slane %v25218_v11, 2  ;;  %v25248_v11 = vld [vmem:[%s32008_s0 + $0x1b0] ss:$8 sps:$4 sm:$0xff]  }
 0x68a   :  { %7646 = vmatmul.mubr.bf16.gmra.mrb[132].mxu1 %v25185_v45 }
 0x68b   :  { %18944 = vmatmul.mubr.bf16.gmra.mrb[20].mxu0 %v29641_v52  ;;  %7655 = vmatprep.mubr.bf16.mxu1 %v25186_v42  ;;  %v25189_v52 = vld [vmem:[%s32008_s0 + $0x274] ss:$8 sps:$4 sm:$0xff]  }
 0x68c   :  { %18953 = vmatprep.mubr.bf16.mxu0 %v29661_v56  ;;  %v25221_v42 = vld [vmem:[%s32008_s0 + $0x174] ss:$8 sps:$4 sm:$0xff]  }
 0x68d   :  { %v7387_v24 = vpop.f32.mrb[28].mxu1 }
 0x68e   :  { %21810 = vst [vmem:[%s32009_s2 + $0xe0] sm:$0xff] %v7387_v24  ;;  %v7389_v32 = vpop.f32.mrb[29].mxu1  ;;  %v18423_v24 = vrot.slane %v25221_v42, 2  ;;  %v25251_v42 = vld [vmem:[%s32008_s0 + $0x1c4] ss:$8 sps:$4 sm:$0xff]  }
 0x68f   :  { %21813 = vst [vmem:[%s32009_s2 + $0xe8] sm:$0xff] %v7389_v32  ;;  %v7391_v20 = vpop.f32.mrb[30].mxu1 }
 0x690   :  { %21816 = vst [vmem:[%s32009_s2 + $0xf0] sm:$0xff] %v7391_v20  ;;  %v7393_v56 = vpop.f32.mrb[31].mxu1  ;;  %v25217_v20 = vld [vmem:[%s32008_s0 + $0x2d0] ss:$8 sps:$4 sm:$0xff]  }
 0x691   :  { %21819 = vst [vmem:[%s32009_s2 + $0xf8] sm:$0xff] %v7393_v56 }
 0x692   :  { %7656 = vmatmul.mubr.bf16.gmra.mrb[136].mxu1 %v25188_v39 }
 0x693   :  { %18954 = vmatmul.mubr.bf16.gmra.mrb[24].mxu0 %v29664_v34  ;;  %7665 = vmatprep.mubr.bf16.mxu1 %v25189_v52  ;;  %v25192_v34 = vld [vmem:[%s32008_s0 + $0x284] ss:$8 sps:$4 sm:$0xff]  }
 0x694   :  { %18963 = vmatprep.mubr.bf16.mxu0 %v29683_v43 }
 0x695   :  { %v7397_v21 = vpop.f32.mrb[32].mxu1 }
 0x696   :  { %21822 = vst [vmem:[%s32009_s2 + $0x100] sm:$0xff] %v7397_v21  ;;  %v7399_v51 = vpop.f32.mrb[33].mxu1  ;;  %v25219_v21 = vld [vmem:[%s32008_s0 + $0x2e4] ss:$8 sps:$4 sm:$0xff]  }
 0x697   :  { %21825 = vst [vmem:[%s32009_s2 + $0x108] sm:$0xff] %v7399_v51  ;;  %v7401_v60 = vpop.f32.mrb[34].mxu1  ;;  %v25224_v51 = vld [vmem:[%s32008_s0 + $0x170] ss:$8 sps:$4 sm:$0xff]  }
 0x698   :  { %21828 = vst [vmem:[%s32009_s2 + $0x110] sm:$0xff] %v7401_v60  ;;  %v7403_v43 = vpop.f32.mrb[35].mxu1  ;;  %v18424_v60 = vsel %vm4654_vm1, %v18419_v48, %v18423_v24  ;;  %v18439_v48 = vrot.slane %v25245_v59, 2  ;;  %v25275_v59 = vld [vmem:[%s32008_s0 + $0x204] ss:$8 sps:$4 sm:$0xff]  }
 0x699   :  { %21831 = vst [vmem:[%s32009_s2 + $0x118] sm:$0xff] %v7403_v43  ;;  %v18421_v43 = vrot.slane %v25224_v51, 2  ;;  %v25254_v51 = vld [vmem:[%s32008_s0 + $0x1c0] ss:$8 sps:$4 sm:$0xff]  }
 0x69a   :  { %7666 = vmatmul.mubr.bf16.gmra.mrb[140].mxu1 %v25191_v9 }
 0x69b   :  { %18964 = vmatmul.mubr.bf16.gmra.mrb[28].mxu0 %v29686_v26  ;;  %7675 = vmatprep.mubr.bf16.mxu1 %v25192_v34  ;;  %v25195_v26 = vld [vmem:[%s32008_s0 + $0x294] ss:$8 sps:$4 sm:$0xff]   ;;  %v25227_v34 = vld [vmem:[%s32008_s0 + $0x184] ss:$8 sps:$4 sm:$0xff]  }
 0x69c   :  { %18973 = vmatprep.mubr.bf16.mxu0 %v29705_v4 }
 0x69d   :  { %v7407_v37 = vpop.f32.mrb[36].mxu1 }
 0x69e   :  { %21834 = vst [vmem:[%s32009_s2 + $0x120] sm:$0xff] %v7407_v37  ;;  %v7409_v29 = vpop.f32.mrb[37].mxu1  ;;  %v18427_v37 = vrot.slane %v25227_v34, 2  ;;  %v25257_v34 = vld [vmem:[%s32008_s0 + $0x1d4] ss:$8 sps:$4 sm:$0xff]  }
 0x69f   :  { %21837 = vst [vmem:[%s32009_s2 + $0x128] sm:$0xff] %v7409_v29  ;;  %v7411_v63 = vpop.f32.mrb[38].mxu1 }
 0x6a0   :  { %21840 = vst [vmem:[%s32009_s2 + $0x130] sm:$0xff] %v7411_v63  ;;  %v7413_v4 = vpop.f32.mrb[39].mxu1  ;;  %v25223_v63 = vld [vmem:[%s32008_s0 + $0x2e0] ss:$8 sps:$4 sm:$0xff]  }
 0x6a1   :  { %21843 = vst [vmem:[%s32009_s2 + $0x138] sm:$0xff] %v7413_v4  ;;  %v18422_v4 = vsel %vm4654_vm1, %v18417_v6, %v18421_v43 }
 0x6a2   :  { %7676 = vmatmul.mubr.bf16.gmra.mrb[144].mxu1 %v25194_v13 }
 0x6a3   :  { %18974 = vmatmul.mubr.bf16.gmra.mrb[32].mxu0 %v29708_v16  ;;  %7685 = vmatprep.mubr.bf16.mxu1 %v25195_v26  ;;  %v25198_v16 = vld [vmem:[%s32008_s0 + $0x2a4] ss:$8 sps:$4 sm:$0xff]  }
 0x6a4   :  { %18983 = vmatprep.mubr.bf16.mxu0 %v29727_v54 }
 0x6a5   :  { %v7417_v41 = vpop.f32.mrb[40].mxu1 }
 0x6a6   :  { %21846 = vst [vmem:[%s32009_s2 + $0x140] sm:$0xff] %v7417_v41  ;;  %v7419_v40 = vpop.f32.mrb[41].mxu1  ;;  %v25225_v41 = vld [vmem:[%s32008_s0 + $0x2f4] ss:$8 sps:$4 sm:$0xff]  }
 0x6a7   :  { %21849 = vst [vmem:[%s32009_s2 + $0x148] sm:$0xff] %v7419_v40  ;;  %v7421_v36 = vpop.f32.mrb[42].mxu1  ;;  %v25230_v40 = vld [vmem:[%s32008_s0 + $0x180] ss:$8 sps:$4 sm:$0xff]  }
 0x6a8   :  { %21852 = vst [vmem:[%s32009_s2 + $0x150] sm:$0xff] %v7421_v36  ;;  %v7423_v54 = vpop.f32.mrb[43].mxu1  ;;  %v18428_v36 = vsel %vm4654_vm1, %v18423_v24, %v18427_v37  ;;  %v18443_v24 = vrot.slane %v25251_v42, 2  ;;  %v30379_v42 = vld [vmem:[%s32008_s0 + $0x214] ss:$8 sps:$4 sm:$0xff]  }
 0x6a9   :  { %21855 = vst [vmem:[%s32009_s2 + $0x158] sm:$0xff] %v7423_v54  ;;  %v18425_v54 = vrot.slane %v25230_v40, 2  ;;  %v25260_v40 = vld [vmem:[%s32008_s0 + $0x1d0] ss:$8 sps:$4 sm:$0xff]  }
 0x6aa   :  { %7686 = vmatmul.mubr.bf16.gmra.mrb[148].mxu1 %v25197_v15 }
 0x6ab   :  { %18984 = vmatmul.mubr.bf16.gmra.mrb[36].mxu0 %v29730_v53  ;;  %7695 = vmatprep.mubr.bf16.mxu1 %v25198_v16  ;;  %v25201_v53 = vld [vmem:[%s32008_s0 + $0x2b4] ss:$8 sps:$4 sm:$0xff]  }
 0x6ac   :  { %18993 = vmatprep.mubr.bf16.mxu0 %v29751_v25  ;;  %v25206_v25 = vld [vmem:[%s32008_s0 + $0x140] ss:$8 sps:$4 sm:$0xff]   ;;  %v25233_v16 = vld [vmem:[%s32008_s0 + $0x194] ss:$8 sps:$4 sm:$0xff]  }
 0x6ad   :  { %v7427_v3 = vpop.f32.mrb[44].mxu1  ;;  %v18409_v17 = vrot.slane %v25206_v25, 2  ;;  %v18431_v61 = vrot.slane %v25233_v16, 2  ;;  %v25236_v25 = vld [vmem:[%s32008_s0 + $0x190] ss:$8 sps:$4 sm:$0xff]  }
 0x6ae   :  { %21858 = vst [vmem:[%s32009_s2 + $0x160] sm:$0xff] %v7427_v3  ;;  %v7429_v5 = vpop.f32.mrb[45].mxu1  ;;  %v25263_v16 = vld [vmem:[%s32008_s0 + $0x1e4] ss:$8 sps:$4 sm:$0xff]  }
 0x6af   :  { %21861 = vst [vmem:[%s32009_s2 + $0x168] sm:$0xff] %v7429_v5  ;;  %v7431_v35 = vpop.f32.mrb[46].mxu1  ;;  %v25229_v5 = vld [vmem:[%s32008_s0 + $0x2f0] ss:$8 sps:$4 sm:$0xff]  }
 0x6b0   :  { %21864 = vst [vmem:[%s32009_s2 + $0x170] sm:$0xff] %v7431_v35  ;;  %v7433_v19 = vpop.f32.mrb[47].mxu1  ;;  %v18426_v35 = vsel %vm4654_vm1, %v18421_v43, %v18425_v54  ;;  %v18441_v43 = vrot.slane %v25254_v51, 2  ;;  %v30401_v51 = vld [vmem:[%s32008_s0 + $0x210] ss:$8 sps:$4 sm:$0xff]  }
 0x6b1   :  { %21867 = vst [vmem:[%s32009_s2 + $0x178] sm:$0xff] %v7433_v19  ;;  %v9261_v44 = vrot.slane %v30401_v51, 1 }
 0x6b2   :  { %7696 = vmatmul.mubr.bf16.gmra.mrb[152].mxu1 %v25200_v10 }
 0x6b3   :  { %18994 = vmatmul.mubr.bf16.gmra.mrb[40].mxu0 %v29756_v31  ;;  %7705 = vmatprep.mubr.bf16.mxu1 %v25201_v53  ;;  %v18410_v31 = vsel %vm4654_vm1, %v18405_v1, %v18409_v17  ;;  %v18413_v1 = vrot.slane %v25212_v18, 2  ;;  %v25231_v53 = vld [vmem:[%s32008_s0 + $0x304] ss:$8 sps:$4 sm:$0xff]   ;;  %v25242_v18 = vld [vmem:[%s32008_s0 + $0x1a0] ss:$8 sps:$4 sm:$0xff]  }
 0x6b4   :  { %19003 = vmatprep.mubr.bf16.mxu0 %v18412_v8  ;;  %v18432_v8 = vsel %vm4654_vm1, %v18427_v37, %v18431_v61  ;;  %v18447_v37 = vrot.slane %v25257_v34, 2  ;;  %v30410_v34 = vld [vmem:[%s32008_s0 + $0x224] ss:$8 sps:$4 sm:$0xff]  }
 0x6b5   :  { %v7437_v50 = vpop.f32.mrb[48].mxu1  ;;  %v18414_v49 = vsel %vm4654_vm1, %v18409_v17, %v18413_v1  ;;  %v18418_v56 = vsel %vm4654_vm1, %v18413_v1, %v18417_v6  ;;  %v18429_v17 = vrot.slane %v25236_v25, 2  ;;  %v18433_v1 = vrot.slane %v25242_v18, 2  ;;  %v25266_v25 = vld [vmem:[%s32008_s0 + $0x1e0] ss:$8 sps:$4 sm:$0xff]  }
 0x6b6   :  { %21870 = vst [vmem:[%s32009_s2 + $0x180] sm:$0xff] %v7437_v50  ;;  %v7439_v58 = vpop.f32.mrb[49].mxu1  ;;  %v18437_v6 = vrot.slane %v25248_v11, 2  ;;  %v25272_v18 = vld [vmem:[%s32008_s0 + $0x1f0] ss:$8 sps:$4 sm:$0xff]  }
 0x6b7   :  { %21873 = vst [vmem:[%s32009_s2 + $0x188] sm:$0xff] %v7439_v58  ;;  %v7441_v28 = vpop.f32.mrb[50].mxu1  ;;  %v25278_v11 = vld [vmem:[%s32008_s0 + $0x200] ss:$8 sps:$4 sm:$0xff]  }
 0x6b8   :  { %21876 = vst [vmem:[%s32009_s2 + $0x190] sm:$0xff] %v7441_v28  ;;  %v7443_v0 = vpop.f32.mrb[51].mxu1 }
 0x6b9   :  { %21879 = vst [vmem:[%s32009_s2 + $0x198] sm:$0xff] %v7443_v0 }
 0x6ba   :  { %7706 = vmatmul.mubr.bf16.gmra.mrb[156].mxu1 %v25205_v14  ;;  %v25235_v14 = vld [vmem:[%s32008_s0 + $0x300] ss:$8 sps:$4 sm:$0xff]  }
 0x6bb   :  { %19004 = vmatmul.mubr.bf16.gmra.mrb[44].mxu0 %v18410_v31  ;;  %7715 = vmatprep.mubr.bf16.mxu1 %v25207_v12  ;;  %v18430_v31 = vsel %vm4654_vm1, %v18425_v54, %v18429_v17  ;;  %v25237_v12 = vld [vmem:[%s32008_s0 + $0x314] ss:$8 sps:$4 sm:$0xff]   ;;  %v18445_v54 = vrot.slane %v25260_v40, 2  ;;  %v30433_v40 = vld [vmem:[%s32008_s0 + $0x220] ss:$8 sps:$4 sm:$0xff]  }
 0x6bc   :  { %19013 = vmatprep.mubr.bf16.mxu0 %v18416_v33  ;;  %v18436_v33 = vsel %vm4654_vm1, %v18431_v61, %v18435_v7  ;;  %v18451_v61 = vrot.slane %v25263_v16, 2  ;;  %v30442_v16 = vld [vmem:[%s32008_s0 + $0x234] ss:$8 sps:$4 sm:$0xff]  }
 0x6bd   :  { %v7447_v55 = vpop.f32.mrb[52].mxu1 }
 0x6be   :  { %21882 = vst [vmem:[%s32009_s2 + $0x1a0] sm:$0xff] %v7447_v55  ;;  %v7449_v46 = vpop.f32.mrb[53].mxu1 }
 0x6bf   :  { %21885 = vst [vmem:[%s32009_s2 + $0x1a8] sm:$0xff] %v7449_v46  ;;  %v7451_v27 = vpop.f32.mrb[54].mxu1 }
 0x6c0   :  { %21888 = vst [vmem:[%s32009_s2 + $0x1b0] sm:$0xff] %v7451_v27  ;;  %v7453_v45 = vpop.f32.mrb[55].mxu1 }
 0x6c1   :  { %21891 = vst [vmem:[%s32009_s2 + $0x1b8] sm:$0xff] %v7453_v45 }
 0x6c2   :  { %7716 = vmatmul.mubr.bf16.gmra.mrb[160].mxu1 %v25211_v2  ;;  %v25241_v2 = vld [vmem:[%s32008_s0 + $0x310] ss:$8 sps:$4 sm:$0xff]  }
 0x6c3   :  { %19014 = vmatmul.mubr.bf16.gmra.mrb[48].mxu0 %v18414_v49  ;;  %7725 = vmatprep.mubr.bf16.mxu1 %v25213_v38  ;;  %v18434_v49 = vsel %vm4654_vm1, %v18429_v17, %v18433_v1  ;;  %v25243_v38 = vld [vmem:[%s32008_s0 + $0x324] ss:$8 sps:$4 sm:$0xff]   ;;  %v18449_v17 = vrot.slane %v25266_v25, 2  ;;  %v30465_v25 = vld [vmem:[%s32008_s0 + $0x230] ss:$8 sps:$4 sm:$0xff]  }
 0x6c4   :  { %19023 = vmatprep.mubr.bf16.mxu0 %v18420_v23  ;;  %v18440_v23 = vsel %vm4654_vm1, %v18435_v7, %v18439_v48  ;;  %v18455_v7 = vrot.slane %v25269_v62, 2  ;;  %v30474_v62 = vld [vmem:[%s32008_s0 + $0x244] ss:$8 sps:$4 sm:$0xff]  }
 0x6c5   :  { %v7457_v32 = vpop.f32.mrb[56].mxu1 }
 0x6c6   :  { %21894 = vst [vmem:[%s32009_s2 + $0x1c0] sm:$0xff] %v7457_v32  ;;  %v7459_v39 = vpop.f32.mrb[57].mxu1 }
 0x6c7   :  { %21897 = vst [vmem:[%s32009_s2 + $0x1c8] sm:$0xff] %v7459_v39  ;;  %v7461_v52 = vpop.f32.mrb[58].mxu1 }
 0x6c8   :  { %21900 = vst [vmem:[%s32009_s2 + $0x1d0] sm:$0xff] %v7461_v52  ;;  %v7463_v9 = vpop.f32.mrb[59].mxu1 }
 0x6c9   :  { %21903 = vst [vmem:[%s32009_s2 + $0x1d8] sm:$0xff] %v7463_v9 }
 0x6ca   :  { %7726 = vmatmul.mubr.bf16.gmra.mrb[164].mxu1 %v25217_v20  ;;  %v25247_v20 = vld [vmem:[%s32008_s0 + $0x320] ss:$8 sps:$4 sm:$0xff]  }
 0x6cb   :  { %19024 = vmatmul.mubr.bf16.gmra.mrb[52].mxu0 %v18418_v56  ;;  %7735 = vmatprep.mubr.bf16.mxu1 %v25219_v21  ;;  %v18438_v56 = vsel %vm4654_vm1, %v18433_v1, %v18437_v6  ;;  %v25249_v21 = vld [vmem:[%s32008_s0 + $0x334] ss:$8 sps:$4 sm:$0xff]   ;;  %v18453_v1 = vrot.slane %v25272_v18, 2  ;;  %v30497_v18 = vld [vmem:[%s32008_s0 + $0x240] ss:$8 sps:$4 sm:$0xff]  }
 0x6cc   :  { %19033 = vmatprep.mubr.bf16.mxu0 %v18424_v60  ;;  %v18444_v60 = vsel %vm4654_vm1, %v18439_v48, %v18443_v24  ;;  %v18459_v48 = vrot.slane %v25275_v59, 2  ;;  %v30506_v59 = vld [vmem:[%s32008_s0 + $0x254] ss:$8 sps:$4 sm:$0xff]  }
 0x6cd   :  { %v7467_v29 = vpop.f32.mrb[60].mxu1 }
 0x6ce   :  { %21906 = vst [vmem:[%s32009_s2 + $0x1e0] sm:$0xff] %v7467_v29  ;;  %v7469_v13 = vpop.f32.mrb[61].mxu1 }
 0x6cf   :  { %21909 = vst [vmem:[%s32009_s2 + $0x1e8] sm:$0xff] %v7469_v13  ;;  %v7471_v26 = vpop.f32.mrb[62].mxu1 }
 0x6d0   :  { %21912 = vst [vmem:[%s32009_s2 + $0x1f0] sm:$0xff] %v7471_v26  ;;  %v7473_v15 = vpop.f32.mrb[63].mxu1 }
 0x6d1   :  { %21915 = vst [vmem:[%s32009_s2 + $0x1f8] sm:$0xff] %v7473_v15 }
 0x6d2   :  { %7736 = vmatmul.mubr.bf16.gmra.mrb[168].mxu1 %v25223_v63  ;;  %v25253_v63 = vld [vmem:[%s32008_s0 + $0x330] ss:$8 sps:$4 sm:$0xff]  }
 0x6d3   :  { %19034 = vmatmul.mubr.bf16.gmra.mrb[56].mxu0 %v18422_v4  ;;  %7745 = vmatprep.mubr.bf16.mxu1 %v25225_v41  ;;  %v18442_v4 = vsel %vm4654_vm1, %v18437_v6, %v18441_v43  ;;  %v25255_v41 = vld [vmem:[%s32008_s0 + $0x344] ss:$8 sps:$4 sm:$0xff]   ;;  %v18457_v6 = vrot.slane %v25278_v11, 2  ;;  %v25301_v11 = vld [vmem:[%s32008_s0 + $0x3b0] ss:$8 sps:$4 sm:$0xff]  }
 0x6d4   :  { %19043 = vmatprep.mubr.bf16.mxu0 %v18428_v36  ;;  %v18448_v36 = vsel %vm4654_vm1, %v18443_v24, %v18447_v37  ;;  %v18463_v24 = vrot.slane %v30379_v42, 2 }
 0x6d5   :  { %v7477_v30 = vpop.f32.mrb[64].mxu1 }
 0x6d6   :  { %21918 = vst [vmem:[%s32009_s2 + $0x200] sm:$0xff] %v7477_v30  ;;  %v7479_v3 = vpop.f32.mrb[65].mxu1 }
 0x6d7   :  { %21921 = vst [vmem:[%s32009_s2 + $0x208] sm:$0xff] %v7479_v3  ;;  %v7481_v10 = vpop.f32.mrb[66].mxu1 }
 0x6d8   :  { %21924 = vst [vmem:[%s32009_s2 + $0x210] sm:$0xff] %v7481_v10  ;;  %v7483_v19 = vpop.f32.mrb[67].mxu1 }
 0x6d9   :  { %21927 = vst [vmem:[%s32009_s2 + $0x218] sm:$0xff] %v7483_v19 }
 0x6da   :  { %7746 = vmatmul.mubr.bf16.gmra.mrb[172].mxu1 %v25229_v5  ;;  %v25259_v5 = vld [vmem:[%s32008_s0 + $0x340] ss:$8 sps:$4 sm:$0xff]  }
 0x6db   :  { %19044 = vmatmul.mubr.bf16.gmra.mrb[60].mxu0 %v18426_v35  ;;  %7755 = vmatprep.mubr.bf16.mxu1 %v25231_v53  ;;  %v18446_v35 = vsel %vm4654_vm1, %v18441_v43, %v18445_v54  ;;  %v25261_v53 = vld [vmem:[%s32008_s0 + $0x354] ss:$8 sps:$4 sm:$0xff]   ;;  %v18461_v43 = vrot.slane %v30401_v51, 2 }
 0x6dc   :  { %19053 = vmatprep.mubr.bf16.mxu0 %v18432_v8  ;;  %v18452_v8 = vsel %vm4654_vm1, %v18447_v37, %v18451_v61  ;;  %v18467_v37 = vrot.slane %v30410_v34, 2 }
 0x6dd   :  { %v7487_v50 = vpop.f32.mrb[68].mxu1 }
 0x6de   :  { %21930 = vst [vmem:[%s32009_s2 + $0x220] sm:$0xff] %v7487_v50  ;;  %v7489_v58 = vpop.f32.mrb[69].mxu1 }
 0x6df   :  { %21933 = vst [vmem:[%s32009_s2 + $0x228] sm:$0xff] %v7489_v58  ;;  %v7491_v28 = vpop.f32.mrb[70].mxu1 }
 0x6e0   :  { %21936 = vst [vmem:[%s32009_s2 + $0x230] sm:$0xff] %v7491_v28  ;;  %v7493_v0 = vpop.f32.mrb[71].mxu1 }
 0x6e1   :  { %21939 = vst [vmem:[%s32009_s2 + $0x238] sm:$0xff] %v7493_v0 }
 0x6e2   :  { %7756 = vmatmul.mubr.bf16.gmra.mrb[176].mxu1 %v25235_v14  ;;  %v25265_v14 = vld [vmem:[%s32008_s0 + $0x350] ss:$8 sps:$4 sm:$0xff]  }
 0x6e3   :  { %19054 = vmatmul.mubr.bf16.gmra.mrb[64].mxu0 %v18430_v31  ;;  %7765 = vmatprep.mubr.bf16.mxu1 %v25237_v12  ;;  %v18450_v31 = vsel %vm4654_vm1, %v18445_v54, %v18449_v17  ;;  %v25267_v12 = vld [vmem:[%s32008_s0 + $0x364] ss:$8 sps:$4 sm:$0xff]   ;;  %v18465_v54 = vrot.slane %v30433_v40, 2 }
 0x6e4   :  { %19063 = vmatprep.mubr.bf16.mxu0 %v18436_v33  ;;  %v18456_v33 = vsel %vm4654_vm1, %v18451_v61, %v18455_v7  ;;  %v18471_v61 = vrot.slane %v30442_v16, 2 }
 0x6e5   :  { %v7497_v55 = vpop.f32.mrb[72].mxu1 }
 0x6e6   :  { %21942 = vst [vmem:[%s32009_s2 + $0x240] sm:$0xff] %v7497_v55  ;;  %v7499_v46 = vpop.f32.mrb[73].mxu1 }
 0x6e7   :  { %21945 = vst [vmem:[%s32009_s2 + $0x248] sm:$0xff] %v7499_v46  ;;  %v7501_v27 = vpop.f32.mrb[74].mxu1 }
 0x6e8   :  { %21948 = vst [vmem:[%s32009_s2 + $0x250] sm:$0xff] %v7501_v27  ;;  %v7503_v45 = vpop.f32.mrb[75].mxu1 }
 0x6e9   :  { %21951 = vst [vmem:[%s32009_s2 + $0x258] sm:$0xff] %v7503_v45 }
 0x6ea   :  { %7766 = vmatmul.mubr.bf16.gmra.mrb[180].mxu1 %v25241_v2  ;;  %v25271_v2 = vld [vmem:[%s32008_s0 + $0x360] ss:$8 sps:$4 sm:$0xff]  }
 0x6eb   :  { %19064 = vmatmul.mubr.bf16.gmra.mrb[68].mxu0 %v18434_v49  ;;  %7775 = vmatprep.mubr.bf16.mxu1 %v25243_v38  ;;  %v18454_v49 = vsel %vm4654_vm1, %v18449_v17, %v18453_v1  ;;  %v25273_v38 = vld [vmem:[%s32008_s0 + $0x374] ss:$8 sps:$4 sm:$0xff]   ;;  %v18469_v17 = vrot.slane %v30465_v25, 2 }
 0x6ec   :  { %19073 = vmatprep.mubr.bf16.mxu0 %v18440_v23  ;;  %v18460_v23 = vsel %vm4654_vm1, %v18455_v7, %v18459_v48  ;;  %v18475_v7 = vrot.slane %v30474_v62, 2 }
 0x6ed   :  { %v7507_v32 = vpop.f32.mrb[76].mxu1 }
 0x6ee   :  { %21954 = vst [vmem:[%s32009_s2 + $0x260] sm:$0xff] %v7507_v32  ;;  %v7509_v39 = vpop.f32.mrb[77].mxu1 }
 0x6ef   :  { %21957 = vst [vmem:[%s32009_s2 + $0x268] sm:$0xff] %v7509_v39  ;;  %v7511_v52 = vpop.f32.mrb[78].mxu1 }
 0x6f0   :  { %21960 = vst [vmem:[%s32009_s2 + $0x270] sm:$0xff] %v7511_v52  ;;  %v7513_v9 = vpop.f32.mrb[79].mxu1 }
 0x6f1   :  { %21963 = vst [vmem:[%s32009_s2 + $0x278] sm:$0xff] %v7513_v9 }
 0x6f2   :  { %7776 = vmatmul.mubr.bf16.gmra.mrb[184].mxu1 %v25247_v20  ;;  %v25277_v20 = vld [vmem:[%s32008_s0 + $0x370] ss:$8 sps:$4 sm:$0xff]  }
 0x6f3   :  { %19074 = vmatmul.mubr.bf16.gmra.mrb[72].mxu0 %v18438_v56  ;;  %7785 = vmatprep.mubr.bf16.mxu1 %v25249_v21  ;;  %v18458_v56 = vsel %vm4654_vm1, %v18453_v1, %v18457_v6  ;;  %v25279_v21 = vld [vmem:[%s32008_s0 + $0x384] ss:$8 sps:$4 sm:$0xff]   ;;  %v18473_v1 = vrot.slane %v30497_v18, 2 }
 0x6f4   :  { %19083 = vmatprep.mubr.bf16.mxu0 %v18444_v60  ;;  %v18464_v60 = vsel %vm4654_vm1, %v18459_v48, %v18463_v24  ;;  %v9263_v48 = vrot.slane %v30379_v42, 1  ;;  %v21733_v42 = vld [vmem:[%s32009_s2 + $0x10] sm:$0xff] }
 0x6f5   :  { %v7517_v29 = vpop.f32.mrb[80].mxu1 }
 0x6f6   :  { %21966 = vst [vmem:[%s32009_s2 + $0x280] sm:$0xff] %v7517_v29  ;;  %v7519_v13 = vpop.f32.mrb[81].mxu1 }
 0x6f7   :  { %21969 = vst [vmem:[%s32009_s2 + $0x288] sm:$0xff] %v7519_v13  ;;  %v7521_v26 = vpop.f32.mrb[82].mxu1 }
 0x6f8   :  { %21972 = vst [vmem:[%s32009_s2 + $0x290] sm:$0xff] %v7521_v26  ;;  %v7523_v15 = vpop.f32.mrb[83].mxu1 }
 0x6f9   :  { %21975 = vst [vmem:[%s32009_s2 + $0x298] sm:$0xff] %v7523_v15 }
 0x6fa   :  { %7786 = vmatmul.mubr.bf16.gmra.mrb[188].mxu1 %v25253_v63  ;;  %v25283_v63 = vld [vmem:[%s32008_s0 + $0x380] ss:$8 sps:$4 sm:$0xff]  }
 0x6fb   :  { %19084 = vmatmul.mubr.bf16.gmra.mrb[76].mxu0 %v18442_v4  ;;  %7795 = vmatprep.mubr.bf16.mxu1 %v25255_v41  ;;  %v18462_v4 = vsel %vm4654_vm1, %v18457_v6, %v18461_v43  ;;  %v25285_v41 = vld [vmem:[%s32008_s0 + $0x394] ss:$8 sps:$4 sm:$0xff]   ;;  %v18474_v6 = vsel %vm4654_vm1, %v18469_v17, %v18473_v1 }
 0x6fc   :  { %19093 = vmatprep.mubr.bf16.mxu0 %v18448_v36  ;;  %v18468_v36 = vsel %vm4654_vm1, %v18463_v24, %v18467_v37  ;;  %v30530_v24 = vld [vmem:[%s32008_s0 + $0x250] ss:$8 sps:$4 sm:$0xff]  }
 0x6fd   :  { %v7527_v30 = vpop.f32.mrb[84].mxu1 }
 0x6fe   :  { %21978 = vst [vmem:[%s32009_s2 + $0x2a0] sm:$0xff] %v7527_v30  ;;  %v7529_v3 = vpop.f32.mrb[85].mxu1 }
 0x6ff   :  { %21981 = vst [vmem:[%s32009_s2 + $0x2a8] sm:$0xff] %v7529_v3  ;;  %v7531_v10 = vpop.f32.mrb[86].mxu1 }
 0x700   :  { %21984 = vst [vmem:[%s32009_s2 + $0x2b0] sm:$0xff] %v7531_v10  ;;  %v7533_v19 = vpop.f32.mrb[87].mxu1 }
 0x701   :  { %21987 = vst [vmem:[%s32009_s2 + $0x2b8] sm:$0xff] %v7533_v19 }
 0x702   :  { %7796 = vmatmul.mubr.bf16.gmra.mrb[192].mxu1 %v25259_v5  ;;  %v25289_v5 = vld [vmem:[%s32008_s0 + $0x390] ss:$8 sps:$4 sm:$0xff]  }
 0x703   :  { %19094 = vmatmul.mubr.bf16.gmra.mrb[80].mxu0 %v18446_v35  ;;  %7805 = vmatprep.mubr.bf16.mxu1 %v25261_v53  ;;  %v18466_v35 = vsel %vm4654_vm1, %v18461_v43, %v18465_v54  ;;  %v25291_v53 = vld [vmem:[%s32008_s0 + $0x3a4] ss:$8 sps:$4 sm:$0xff]  }
 0x704   :  { %19103 = vmatprep.mubr.bf16.mxu0 %v18452_v8  ;;  %v18472_v8 = vsel %vm4654_vm1, %v18467_v37, %v18471_v61 }
 0x705   :  { %v7537_v50 = vpop.f32.mrb[88].mxu1 }
 0x706   :  { %21990 = vst [vmem:[%s32009_s2 + $0x2c0] sm:$0xff] %v7537_v50  ;;  %v7539_v58 = vpop.f32.mrb[89].mxu1 }
 0x707   :  { %21993 = vst [vmem:[%s32009_s2 + $0x2c8] sm:$0xff] %v7539_v58  ;;  %v7541_v28 = vpop.f32.mrb[90].mxu1 }
 0x708   :  { %21996 = vst [vmem:[%s32009_s2 + $0x2d0] sm:$0xff] %v7541_v28  ;;  %v7543_v0 = vpop.f32.mrb[91].mxu1 }
 0x709   :  { %21999 = vst [vmem:[%s32009_s2 + $0x2d8] sm:$0xff] %v7543_v0 }
 0x70a   :  { %7806 = vmatmul.mubr.bf16.gmra.mrb[196].mxu1 %v25265_v14  ;;  %v25295_v14 = vld [vmem:[%s32008_s0 + $0x3a0] ss:$8 sps:$4 sm:$0xff]  }
 0x70b   :  { %19104 = vmatmul.mubr.bf16.gmra.mrb[84].mxu0 %v18450_v31  ;;  %7815 = vmatprep.mubr.bf16.mxu1 %v25267_v12  ;;  %v18470_v31 = vsel %vm4654_vm1, %v18465_v54, %v18469_v17  ;;  %v25297_v12 = vld [vmem:[%s32008_s0 + $0x3b4] ss:$8 sps:$4 sm:$0xff]   ;;  %v21751_v17 = vld [vmem:[%s32009_s2 + $0x40] sm:$0xff] }
 0x70c   :  { %19113 = vmatprep.mubr.bf16.mxu0 %v18456_v33  ;;  %v18476_v33 = vsel %vm4654_vm1, %v18471_v61, %v18475_v7 }
 0x70d   :  { %v7547_v55 = vpop.f32.mrb[92].mxu1 }
 0x70e   :  { %22002 = vst [vmem:[%s32009_s2 + $0x2e0] sm:$0xff] %v7547_v55  ;;  %v7549_v46 = vpop.f32.mrb[93].mxu1  ;;  %v18479_v55 = vrot.slane %v30506_v59, 2 }
 0x70f   :  { %22005 = vst [vmem:[%s32009_s2 + $0x2e8] sm:$0xff] %v7549_v46  ;;  %v7551_v27 = vpop.f32.mrb[94].mxu1 }
 0x710   :  { %22008 = vst [vmem:[%s32009_s2 + $0x2f0] sm:$0xff] %v7551_v27  ;;  %v7553_v45 = vpop.f32.mrb[95].mxu1 }
 0x711   :  { %22011 = vst [vmem:[%s32009_s2 + $0x2f8] sm:$0xff] %v7553_v45 }
 0x712   :  { %7816 = vmatmul.mubr.bf16.gmra.mrb[200].mxu1 %v25271_v2  ;;  %v21727_v2 = vld [vmem:[%s32009_s2] sm:$0xff] }
 0x713   :  { %19114 = vmatmul.mubr.bf16.gmra.mrb[88].mxu0 %v18454_v49  ;;  %7825 = vmatprep.mubr.bf16.mxu1 %v25273_v38  ;;  %v21730_v38 = vld [vmem:[%s32009_s2 + $0x8] sm:$0xff] }
 0x714   :  { %19123 = vmatprep.mubr.bf16.mxu0 %v18460_v23 }
 0x715   :  { %v7557_v32 = vpop.f32.mrb[96].mxu1 }
 0x716   :  { %22014 = vst [vmem:[%s32009_s2 + $0x300] sm:$0xff] %v7557_v32  ;;  %v7559_v39 = vpop.f32.mrb[97].mxu1 }
 0x717   :  { %22017 = vst [vmem:[%s32009_s2 + $0x308] sm:$0xff] %v7559_v39  ;;  %v7561_v52 = vpop.f32.mrb[98].mxu1 }
 0x718   :  { %22020 = vst [vmem:[%s32009_s2 + $0x310] sm:$0xff] %v7561_v52  ;;  %v7563_v9 = vpop.f32.mrb[99].mxu1  ;;  %v9264_v52 = vsel %vm2291_vm0, %v9259_v47, %v9263_v48  ;;  %v18477_v47 = vrot.slane %v30530_v24, 2 }
 0x719   :  { %22023 = vst [vmem:[%s32009_s2 + $0x318] sm:$0xff] %v7563_v9 }
 0x71a   :  { %7826 = vmatmul.mubr.bf16.gmra.mrb[204].mxu1 %v25277_v20  ;;  %v21736_v20 = vld [vmem:[%s32009_s2 + $0x18] sm:$0xff] }
 0x71b   :  { %19124 = vmatmul.mubr.bf16.gmra.mrb[92].mxu0 %v18458_v56  ;;  %7835 = vmatprep.mubr.bf16.mxu1 %v25279_v21  ;;  %v18480_v56 = vsel %vm4654_vm1, %v18475_v7, %v18479_v55  ;;  %v30545_v21 = vld [vmem:[%s32008_s0 + $0x264] ss:$8 sps:$4 sm:$0xff]  }
 0x71c   :  { %19133 = vmatprep.mubr.bf16.mxu0 %v18464_v60  ;;  %v9267_v60 = vrot.slane %v30410_v34, 1  ;;  %v18483_v43 = vrot.slane %v30545_v21, 2  ;;  %v9262_v34 = vsel %vm2291_vm0, %v9257_v57, %v9261_v44 }
 0x71d   :  { %v7567_v29 = vpop.f32.mrb[100].mxu1 }
 0x71e   :  { %22026 = vst [vmem:[%s32009_s2 + $0x320] sm:$0xff] %v7567_v29  ;;  %v7569_v13 = vpop.f32.mrb[101].mxu1  ;;  %v21739_v29 = vld [vmem:[%s32009_s2 + $0x20] sm:$0xff]  ;;  %v9268_v22 = vsel %vm2291_vm0, %v9263_v48, %v9267_v60  ;;  %v18484_v57 = vsel %vm4654_vm1, %v18479_v55, %v18483_v43 }
 0x71f   :  { %22029 = vst [vmem:[%s32009_s2 + $0x328] sm:$0xff] %v7569_v13  ;;  %v7571_v26 = vpop.f32.mrb[102].mxu1 }
 0x720   :  { %22032 = vst [vmem:[%s32009_s2 + $0x330] sm:$0xff] %v7571_v26  ;;  %v7573_v15 = vpop.f32.mrb[103].mxu1  ;;  %v21742_v26 = vld [vmem:[%s32009_s2 + $0x28] sm:$0xff] }
 0x721   :  { %22035 = vst [vmem:[%s32009_s2 + $0x338] sm:$0xff] %v7573_v15  ;;  %v18478_v15 = vsel %vm4654_vm1, %v18473_v1, %v18477_v47  ;;  %v21760_v1 = vld [vmem:[%s32009_s2 + $0x58] sm:$0xff] }
 0x722   :  { %7836 = vmatmul.mubr.bf16.gmra.mrb[208].mxu1 %v25283_v63 }
 0x723   :  { %19134 = vmatmul.mubr.bf16.gmra.mrb[96].mxu0 %v18462_v4  ;;  %7845 = vmatprep.mubr.bf16.mxu1 %v25285_v41  ;;  %v21745_v41 = vld [vmem:[%s32009_s2 + $0x30] sm:$0xff] }
 0x724   :  { %19143 = vmatprep.mubr.bf16.mxu0 %v18468_v36  ;;  %v30576_v36 = vld [vmem:[%s32008_s0 + $0x260] ss:$8 sps:$4 sm:$0xff]  }
 0x725   :  { %v7577_v30 = vpop.f32.mrb[104].mxu1 }
 0x726   :  { %22038 = vst [vmem:[%s32009_s2 + $0x340] sm:$0xff] %v7577_v30  ;;  %v7579_v3 = vpop.f32.mrb[105].mxu1  ;;  %v21748_v30 = vld [vmem:[%s32009_s2 + $0x38] sm:$0xff] }
 0x727   :  { %22041 = vst [vmem:[%s32009_s2 + $0x348] sm:$0xff] %v7579_v3  ;;  %v7581_v10 = vpop.f32.mrb[106].mxu1  ;;  %v30589_v3 = vld [vmem:[%s32008_s0 + $0x274] ss:$8 sps:$4 sm:$0xff]  }
 0x728   :  { %22044 = vst [vmem:[%s32009_s2 + $0x350] sm:$0xff] %v7581_v10  ;;  %v7583_v19 = vpop.f32.mrb[107].mxu1  ;;  %v9265_v10 = vrot.slane %v30433_v40, 1  ;;  %v21757_v40 = vld [vmem:[%s32009_s2 + $0x50] sm:$0xff] }
 0x729   :  { %22047 = vst [vmem:[%s32009_s2 + $0x358] sm:$0xff] %v7583_v19  ;;  %v18487_v19 = vrot.slane %v30589_v3, 2 }
 0x72a   :  { %7846 = vmatmul.mubr.bf16.gmra.mrb[212].mxu1 %v25289_v5 }
 0x72b   :  { %19144 = vmatmul.mubr.bf16.gmra.mrb[100].mxu0 %v18466_v35  ;;  %7855 = vmatprep.mubr.bf16.mxu1 %v25291_v53  ;;  %v18481_v35 = vrot.slane %v30576_v36, 2  ;;  %v9271_v53 = vrot.slane %v30442_v16, 1  ;;  %v9266_v16 = vsel %vm2291_vm0, %v9261_v44, %v9265_v10  ;;  %v18488_v55 = vsel %vm4654_vm1, %v18483_v43, %v18487_v19 }
 0x72c   :  { %19153 = vmatprep.mubr.bf16.mxu0 %v18472_v8 }
 0x72d   :  { %v7587_v50 = vpop.f32.mrb[108].mxu1  ;;  %v9272_v48 = vsel %vm2291_vm0, %v9267_v60, %v9271_v53 }
 0x72e   :  { %22050 = vst [vmem:[%s32009_s2 + $0x360] sm:$0xff] %v7587_v50  ;;  %v7589_v58 = vpop.f32.mrb[109].mxu1 }
 0x72f   :  { %22053 = vst [vmem:[%s32009_s2 + $0x368] sm:$0xff] %v7589_v58  ;;  %v7591_v28 = vpop.f32.mrb[110].mxu1  ;;  %v21754_v58 = vld [vmem:[%s32009_s2 + $0x48] sm:$0xff] }
 0x730   :  { %22056 = vst [vmem:[%s32009_s2 + $0x370] sm:$0xff] %v7591_v28  ;;  %v7593_v0 = vpop.f32.mrb[111].mxu1 }
 0x731   :  { %22059 = vst [vmem:[%s32009_s2 + $0x378] sm:$0xff] %v7593_v0 }
 0x732   :  { %7856 = vmatmul.mubr.bf16.gmra.mrb[216].mxu1 %v25295_v14 }
 0x733   :  { %19154 = vmatmul.mubr.bf16.gmra.mrb[104].mxu0 %v18470_v31  ;;  %7865 = vmatprep.mubr.bf16.mxu1 %v25297_v12  ;;  %v18482_v31 = vsel %vm4654_vm1, %v18477_v47, %v18481_v35  ;;  %v30618_v12 = vld [vmem:[%s32008_s0 + $0x270] ss:$8 sps:$4 sm:$0xff]  }
 0x734   :  { %19163 = vmatprep.mubr.bf16.mxu0 %v18476_v33  ;;  %v21772_v47 = vld [vmem:[%s32009_s2 + $0x78] sm:$0xff] }
 0x736   :  { %v18895_v46 = vpop.f32.mrb[0].mxu0 }
 0x737   :  { %v21728_v27 = vadd.f32 %v21727_v2, %v18895_v46  ;;  %v18897_v49 = vpop.f32.mrb[1].mxu0  ;;  %v30631_v46 = vld [vmem:[%s32008_s0 + $0x284] ss:$8 sps:$4 sm:$0xff]  }
 0x738   :  { %v21731_v45 = vadd.f32 %v21730_v38, %v18897_v49  ;;  %v18899_v23 = vpop.f32.mrb[2].mxu0  ;;  %v18485_v49 = vrot.slane %v30618_v12, 2  ;;  %v9275_v38 = vrot.slane %v30474_v62, 1 }
 0x739   :  { %19902 = vst [vmem:[%s32009_s2] sm:$0xff] %v21728_v27  ;;  %v21734_v32 = vadd.f32 %v21733_v42, %v18899_v23  ;;  %v18901_v39 = vpop.f32.mrb[3].mxu0  ;;  %v9269_v27 = vrot.slane %v30465_v25, 1  ;;  %v21763_v23 = vld [vmem:[%s32009_s2 + $0x60] sm:$0xff]  ;;  %v21769_v25 = vld [vmem:[%s32009_s2 + $0x70] sm:$0xff] }
 0x73a   :  { %19903 = vst [vmem:[%s32009_s2 + $0x8] sm:$0xff] %v21731_v45  ;;  %v21737_v9 = vadd.f32 %v21736_v20, %v18901_v39  ;;  %7866 = vmatmul.mubr.bf16.gmra.mrb[220].mxu1 %v25301_v11  ;;  %v18491_v11 = vrot.slane %v30631_v46, 2  ;;  %v9276_v60 = vsel %vm2291_vm0, %v9271_v53, %v9275_v38 }
 0x73b   :  { %19904 = vst [vmem:[%s32009_s2 + $0x10] sm:$0xff] %v21734_v32  ;;  %19164 = vmatmul.mubr.bf16.gmra.mrb[108].mxu0 %v18474_v6  ;;  %9957 = vmatprep.mubr.bf16.mxu1 %v9264_v52  ;;  %v21766_v32 = vld [vmem:[%s32009_s2 + $0x68] sm:$0xff]  ;;  %v9270_v62 = vsel %vm2291_vm0, %v9265_v10, %v9269_v27  ;;  %v18486_v52 = vsel %vm4654_vm1, %v18481_v35, %v18485_v49  ;;  %v21784_v35 = vld [vmem:[%s32009_s2 + $0x98] sm:$0xff] }
 0x73c   :  { %19905 = vst [vmem:[%s32009_s2 + $0x18] sm:$0xff] %v21737_v9  ;;  %19173 = vmatprep.mubr.bf16.mxu0 %v18480_v56  ;;  %v30660_v56 = vld [vmem:[%s32008_s0 + $0x280] ss:$8 sps:$4 sm:$0xff]   ;;  %v18492_v43 = vsel %vm4654_vm1, %v18487_v19, %v18491_v11 }
 0x73e   :  { %v18905_v37 = vpop.f32.mrb[4].mxu0 }
 0x73f   :  { %v21740_v13 = vadd.f32 %v21739_v29, %v18905_v37  ;;  %v18907_v63 = vpop.f32.mrb[5].mxu0  ;;  %v30673_v37 = vld [vmem:[%s32008_s0 + $0x294] ss:$8 sps:$4 sm:$0xff]  }
 0x740   :  { %v21743_v51 = vadd.f32 %v21742_v26, %v18907_v63  ;;  %v18909_v4 = vpop.f32.mrb[6].mxu0  ;;  %v18489_v63 = vrot.slane %v30660_v56, 2  ;;  %v9279_v26 = vrot.slane %v30506_v59, 1 }
 0x741   :  { %19906 = vst [vmem:[%s32009_s2 + $0x20] sm:$0xff] %v21740_v13  ;;  %v21746_v54 = vadd.f32 %v21745_v41, %v18909_v4  ;;  %v18911_v61 = vpop.f32.mrb[7].mxu0  ;;  %v9273_v13 = vrot.slane %v30497_v18, 1  ;;  %v21775_v41 = vld [vmem:[%s32009_s2 + $0x80] sm:$0xff]  ;;  %v21781_v18 = vld [vmem:[%s32009_s2 + $0x90] sm:$0xff] }
 0x742   :  { %19907 = vst [vmem:[%s32009_s2 + $0x28] sm:$0xff] %v21743_v51  ;;  %v21749_v5 = vadd.f32 %v21748_v30, %v18911_v61  ;;  %9958 = vmatmul.mubr.bf16.vlgmr.msra.gmra.mrb[112].mxu1 %v9262_v34  ;;  %v18495_v51 = vrot.slane %v30673_v37, 2  ;;  %v9280_v53 = vsel %vm2291_vm0, %v9275_v38, %v9279_v26 }
 0x743   :  { %19908 = vst [vmem:[%s32009_s2 + $0x30] sm:$0xff] %v21746_v54  ;;  %19174 = vmatmul.mubr.bf16.gmra.mrb[112].mxu0 %v18478_v15  ;;  %9967 = vmatprep.mubr.bf16.mxu1 %v9268_v22  ;;  %v21778_v54 = vld [vmem:[%s32009_s2 + $0x88] sm:$0xff]  ;;  %v9274_v59 = vsel %vm2291_vm0, %v9269_v27, %v9273_v13  ;;  %v18490_v22 = vsel %vm4654_vm1, %v18485_v49, %v18489_v63  ;;  %v21796_v49 = vld [vmem:[%s32009_s2 + $0xb8] sm:$0xff] }
 0x744   :  { %19909 = vst [vmem:[%s32009_s2 + $0x38] sm:$0xff] %v21749_v5  ;;  %19183 = vmatprep.mubr.bf16.mxu0 %v18484_v57  ;;  %v30702_v57 = vld [vmem:[%s32008_s0 + $0x290] ss:$8 sps:$4 sm:$0xff]   ;;  %v18496_v19 = vsel %vm4654_vm1, %v18491_v11, %v18495_v51 }
 0x746   :  { %v18915_v8 = vpop.f32.mrb[8].mxu0 }
 0x747   :  { %v21752_v7 = vadd.f32 %v21751_v17, %v18915_v8  ;;  %v18917_v50 = vpop.f32.mrb[9].mxu0  ;;  %v30715_v8 = vld [vmem:[%s32008_s0 + $0x2a4] ss:$8 sps:$4 sm:$0xff]  }
 0x748   :  { %v21755_v14 = vadd.f32 %v21754_v58, %v18917_v50  ;;  %v18919_v28 = vpop.f32.mrb[10].mxu0  ;;  %v18493_v50 = vrot.slane %v30702_v57, 2  ;;  %v9283_v58 = vrot.slane %v30545_v21, 1 }
 0x749   :  { %19910 = vst [vmem:[%s32009_s2 + $0x40] sm:$0xff] %v21752_v7  ;;  %v21758_v0 = vadd.f32 %v21757_v40, %v18919_v28  ;;  %v18921_v33 = vpop.f32.mrb[11].mxu0  ;;  %v9277_v7 = vrot.slane %v30530_v24, 1  ;;  %v21787_v40 = vld [vmem:[%s32009_s2 + $0xa0] sm:$0xff]  ;;  %v21793_v24 = vld [vmem:[%s32009_s2 + $0xb0] sm:$0xff] }
 0x74a   :  { %19911 = vst [vmem:[%s32009_s2 + $0x48] sm:$0xff] %v21755_v14  ;;  %v21761_v2 = vadd.f32 %v21760_v1, %v18921_v33  ;;  %9968 = vmatmul.mubr.bf16.gmra.mrb[116].mxu1 %v9266_v16  ;;  %v18499_v14 = vrot.slane %v30715_v8, 2  ;;  %v9284_v38 = vsel %vm2291_vm0, %v9279_v26, %v9283_v58 }
 0x74b   :  { %19912 = vst [vmem:[%s32009_s2 + $0x50] sm:$0xff] %v21758_v0  ;;  %19184 = vmatmul.mubr.bf16.gmra.mrb[116].mxu0 %v18482_v31  ;;  %9977 = vmatprep.mubr.bf16.mxu1 %v9272_v48  ;;  %v21790_v0 = vld [vmem:[%s32009_s2 + $0xa8] sm:$0xff]  ;;  %v9278_v21 = vsel %vm2291_vm0, %v9273_v13, %v9277_v7  ;;  %v18494_v48 = vsel %vm4654_vm1, %v18489_v63, %v18493_v50  ;;  %v21808_v63 = vld [vmem:[%s32009_s2 + $0xd8] sm:$0xff] }
 0x74c   :  { %19913 = vst [vmem:[%s32009_s2 + $0x58] sm:$0xff] %v21761_v2  ;;  %19193 = vmatprep.mubr.bf16.mxu0 %v18488_v55  ;;  %v30744_v55 = vld [vmem:[%s32008_s0 + $0x2a0] ss:$8 sps:$4 sm:$0xff]   ;;  %v18500_v11 = vsel %vm4654_vm1, %v18495_v51, %v18499_v14 }
 0x74e   :  { %v18925_v45 = vpop.f32.mrb[12].mxu0 }
 0x74f   :  { %v21764_v42 = vadd.f32 %v21763_v23, %v18925_v45  ;;  %v18927_v6 = vpop.f32.mrb[13].mxu0  ;;  %v30757_v45 = vld [vmem:[%s32008_s0 + $0x2b4] ss:$8 sps:$4 sm:$0xff]  }
 0x750   :  { %v21767_v39 = vadd.f32 %v21766_v32, %v18927_v6  ;;  %v18929_v20 = vpop.f32.mrb[14].mxu0  ;;  %v18497_v6 = vrot.slane %v30744_v55, 2  ;;  %v9287_v32 = vrot.slane %v30589_v3, 1 }
 0x751   :  { %19914 = vst [vmem:[%s32009_s2 + $0x60] sm:$0xff] %v21764_v42  ;;  %v21770_v9 = vadd.f32 %v21769_v25, %v18929_v20  ;;  %v18931_v44 = vpop.f32.mrb[15].mxu0  ;;  %v9281_v42 = vrot.slane %v30576_v36, 1  ;;  %v21799_v25 = vld [vmem:[%s32009_s2 + $0xc0] sm:$0xff]  ;;  %v21805_v36 = vld [vmem:[%s32009_s2 + $0xd0] sm:$0xff] }
 0x752   :  { %19915 = vst [vmem:[%s32009_s2 + $0x68] sm:$0xff] %v21767_v39  ;;  %v21773_v29 = vadd.f32 %v21772_v47, %v18931_v44  ;;  %9978 = vmatmul.mubr.bf16.gmra.mrb[120].mxu1 %v9270_v62  ;;  %v18503_v39 = vrot.slane %v30757_v45, 2  ;;  %v9288_v26 = vsel %vm2291_vm0, %v9283_v58, %v9287_v32 }
 0x753   :  { %19916 = vst [vmem:[%s32009_s2 + $0x70] sm:$0xff] %v21770_v9  ;;  %19194 = vmatmul.mubr.bf16.gmra.mrb[120].mxu0 %v18486_v52  ;;  %9987 = vmatprep.mubr.bf16.mxu1 %v9276_v60  ;;  %v21802_v9 = vld [vmem:[%s32009_s2 + $0xc8] sm:$0xff]  ;;  %v9282_v3 = vsel %vm2291_vm0, %v9277_v7, %v9281_v42  ;;  %v18498_v60 = vsel %vm4654_vm1, %v18493_v50, %v18497_v6  ;;  %v21820_v50 = vld [vmem:[%s32009_s2 + $0xf8] sm:$0xff] }
 0x754   :  { %19917 = vst [vmem:[%s32009_s2 + $0x78] sm:$0xff] %v21773_v29  ;;  %19203 = vmatprep.mubr.bf16.mxu0 %v18492_v43  ;;  %v30786_v43 = vld [vmem:[%s32008_s0 + $0x2b0] ss:$8 sps:$4 sm:$0xff]   ;;  %v18504_v51 = vsel %vm4654_vm1, %v18499_v14, %v18503_v39 }
 0x756   :  { %v18935_v4 = vpop.f32.mrb[16].mxu0 }
 0x757   :  { %v21776_v34 = vadd.f32 %v21775_v41, %v18935_v4  ;;  %v18937_v15 = vpop.f32.mrb[17].mxu0  ;;  %v30799_v4 = vld [vmem:[%s32008_s0 + $0x2c4] ss:$8 sps:$4 sm:$0xff]  }
 0x758   :  { %v21779_v61 = vadd.f32 %v21778_v54, %v18937_v15  ;;  %v18939_v30 = vpop.f32.mrb[18].mxu0  ;;  %v18501_v15 = vrot.slane %v30786_v43, 2  ;;  %v9291_v54 = vrot.slane %v30631_v46, 1 }
 0x759   :  { %19918 = vst [vmem:[%s32009_s2 + $0x80] sm:$0xff] %v21776_v34  ;;  %v21782_v5 = vadd.f32 %v21781_v18, %v18939_v30  ;;  %v18941_v10 = vpop.f32.mrb[19].mxu0  ;;  %v9285_v34 = vrot.slane %v30618_v12, 1  ;;  %v21811_v18 = vld [vmem:[%s32009_s2 + $0xe0] sm:$0xff]  ;;  %v21817_v12 = vld [vmem:[%s32009_s2 + $0xf0] sm:$0xff] }
 0x75a   :  { %19919 = vst [vmem:[%s32009_s2 + $0x88] sm:$0xff] %v21779_v61  ;;  %v21785_v17 = vadd.f32 %v21784_v35, %v18941_v10  ;;  %9988 = vmatmul.mubr.bf16.gmra.mrb[124].mxu1 %v9274_v59  ;;  %v18507_v61 = vrot.slane %v30799_v4, 2  ;;  %v9292_v58 = vsel %vm2291_vm0, %v9287_v32, %v9291_v54 }
 0x75b   :  { %19920 = vst [vmem:[%s32009_s2 + $0x90] sm:$0xff] %v21782_v5  ;;  %19204 = vmatmul.mubr.bf16.gmra.mrb[124].mxu0 %v18490_v22  ;;  %9997 = vmatprep.mubr.bf16.mxu1 %v9280_v53  ;;  %v21814_v5 = vld [vmem:[%s32009_s2 + $0xe8] sm:$0xff]  ;;  %v9286_v46 = vsel %vm2291_vm0, %v9281_v42, %v9285_v34  ;;  %v18502_v53 = vsel %vm4654_vm1, %v18497_v6, %v18501_v15  ;;  %v21832_v6 = vld [vmem:[%s32009_s2 + $0x118] sm:$0xff] }
 0x75c   :  { %19921 = vst [vmem:[%s32009_s2 + $0x98] sm:$0xff] %v21785_v17  ;;  %19213 = vmatprep.mubr.bf16.mxu0 %v18496_v19  ;;  %v30828_v19 = vld [vmem:[%s32008_s0 + $0x2c0] ss:$8 sps:$4 sm:$0xff]   ;;  %v18508_v14 = vsel %vm4654_vm1, %v18503_v39, %v18507_v61 }
 0x75e   :  { %v18945_v28 = vpop.f32.mrb[20].mxu0 }
 0x75f   :  { %v21788_v16 = vadd.f32 %v21787_v40, %v18945_v28  ;;  %v18947_v31 = vpop.f32.mrb[21].mxu0  ;;  %v30841_v28 = vld [vmem:[%s32008_s0 + $0x2d4] ss:$8 sps:$4 sm:$0xff]  }
 0x760   :  { %v21791_v33 = vadd.f32 %v21790_v0, %v18947_v31  ;;  %v18949_v1 = vpop.f32.mrb[22].mxu0  ;;  %v18505_v31 = vrot.slane %v30828_v19, 2  ;;  %v9295_v0 = vrot.slane %v30673_v37, 1 }
 0x761   :  { %19922 = vst [vmem:[%s32009_s2 + $0xa0] sm:$0xff] %v21788_v16  ;;  %v21794_v2 = vadd.f32 %v21793_v24, %v18949_v1  ;;  %v18951_v27 = vpop.f32.mrb[23].mxu0  ;;  %v9289_v16 = vrot.slane %v30660_v56, 1  ;;  %v21823_v24 = vld [vmem:[%s32009_s2 + $0x100] sm:$0xff]  ;;  %v21829_v56 = vld [vmem:[%s32009_s2 + $0x110] sm:$0xff] }
 0x762   :  { %19923 = vst [vmem:[%s32009_s2 + $0xa8] sm:$0xff] %v21791_v33  ;;  %v21797_v23 = vadd.f32 %v21796_v49, %v18951_v27  ;;  %9998 = vmatmul.mubr.bf16.gmra.mrb[128].mxu1 %v9278_v21  ;;  %v18511_v33 = vrot.slane %v30841_v28, 2  ;;  %v9296_v32 = vsel %vm2291_vm0, %v9291_v54, %v9295_v0 }
 0x763   :  { %19924 = vst [vmem:[%s32009_s2 + $0xb0] sm:$0xff] %v21794_v2  ;;  %19214 = vmatmul.mubr.bf16.gmra.mrb[128].mxu0 %v18494_v48  ;;  %10007 = vmatprep.mubr.bf16.mxu1 %v9284_v38  ;;  %v21826_v2 = vld [vmem:[%s32009_s2 + $0x108] sm:$0xff]  ;;  %v9290_v37 = vsel %vm2291_vm0, %v9285_v34, %v9289_v16  ;;  %v18506_v38 = vsel %vm4654_vm1, %v18501_v15, %v18505_v31  ;;  %v21844_v15 = vld [vmem:[%s32009_s2 + $0x138] sm:$0xff] }
 0x764   :  { %19925 = vst [vmem:[%s32009_s2 + $0xb8] sm:$0xff] %v21797_v23  ;;  %19223 = vmatprep.mubr.bf16.mxu0 %v18500_v11  ;;  %v30870_v11 = vld [vmem:[%s32008_s0 + $0x2d0] ss:$8 sps:$4 sm:$0xff]   ;;  %v18512_v39 = vsel %vm4654_vm1, %v18507_v61, %v18511_v33 }
 0x766   :  { %v18955_v20 = vpop.f32.mrb[24].mxu0 }
 0x767   :  { %v21800_v62 = vadd.f32 %v21799_v25, %v18955_v20  ;;  %v18957_v52 = vpop.f32.mrb[25].mxu0  ;;  %v30883_v20 = vld [vmem:[%s32008_s0 + $0x2e4] ss:$8 sps:$4 sm:$0xff]  }
 0x768   :  { %v21803_v44 = vadd.f32 %v21802_v9, %v18957_v52  ;;  %v18959_v47 = vpop.f32.mrb[26].mxu0  ;;  %v18509_v52 = vrot.slane %v30870_v11, 2  ;;  %v9299_v9 = vrot.slane %v30715_v8, 1 }
 0x769   :  { %19926 = vst [vmem:[%s32009_s2 + $0xc0] sm:$0xff] %v21800_v62  ;;  %v21806_v29 = vadd.f32 %v21805_v36, %v18959_v47  ;;  %v18961_v13 = vpop.f32.mrb[27].mxu0  ;;  %v9293_v62 = vrot.slane %v30702_v57, 1  ;;  %v21835_v36 = vld [vmem:[%s32009_s2 + $0x120] sm:$0xff]  ;;  %v21841_v57 = vld [vmem:[%s32009_s2 + $0x130] sm:$0xff] }
 0x76a   :  { %19927 = vst [vmem:[%s32009_s2 + $0xc8] sm:$0xff] %v21803_v44  ;;  %v21809_v41 = vadd.f32 %v21808_v63, %v18961_v13  ;;  %10008 = vmatmul.mubr.bf16.gmra.mrb[132].mxu1 %v9282_v3  ;;  %v18515_v44 = vrot.slane %v30883_v20, 2  ;;  %v9300_v54 = vsel %vm2291_vm0, %v9295_v0, %v9299_v9 }
 0x76b   :  { %19928 = vst [vmem:[%s32009_s2 + $0xd0] sm:$0xff] %v21806_v29  ;;  %19224 = vmatmul.mubr.bf16.gmra.mrb[132].mxu0 %v18498_v60  ;;  %10017 = vmatprep.mubr.bf16.mxu1 %v9288_v26  ;;  %v21838_v29 = vld [vmem:[%s32009_s2 + $0x128] sm:$0xff]  ;;  %v9294_v8 = vsel %vm2291_vm0, %v9289_v16, %v9293_v62  ;;  %v18510_v26 = vsel %vm4654_vm1, %v18505_v31, %v18509_v52  ;;  %v21856_v31 = vld [vmem:[%s32009_s2 + $0x158] sm:$0xff] }
 0x76c   :  { %19929 = vst [vmem:[%s32009_s2 + $0xd8] sm:$0xff] %v21809_v41  ;;  %19233 = vmatprep.mubr.bf16.mxu0 %v18504_v51  ;;  %v30912_v51 = vld [vmem:[%s32008_s0 + $0x2e0] ss:$8 sps:$4 sm:$0xff]   ;;  %v18516_v61 = vsel %vm4654_vm1, %v18511_v33, %v18515_v44 }
 0x76e   :  { %v18965_v30 = vpop.f32.mrb[28].mxu0 }
 0x76f   :  { %v21812_v59 = vadd.f32 %v21811_v18, %v18965_v30  ;;  %v18967_v22 = vpop.f32.mrb[29].mxu0  ;;  %v30925_v30 = vld [vmem:[%s32008_s0 + $0x2f4] ss:$8 sps:$4 sm:$0xff]  }
 0x770   :  { %v21815_v10 = vadd.f32 %v21814_v5, %v18967_v22  ;;  %v18969_v35 = vpop.f32.mrb[30].mxu0  ;;  %v18513_v22 = vrot.slane %v30912_v51, 2  ;;  %v9303_v5 = vrot.slane %v30757_v45, 1 }
 0x771   :  { %19930 = vst [vmem:[%s32009_s2 + $0xe0] sm:$0xff] %v21812_v59  ;;  %v21818_v17 = vadd.f32 %v21817_v12, %v18969_v35  ;;  %v18971_v7 = vpop.f32.mrb[31].mxu0  ;;  %v9297_v59 = vrot.slane %v30744_v55, 1  ;;  %v21847_v12 = vld [vmem:[%s32009_s2 + $0x140] sm:$0xff]  ;;  %v21853_v55 = vld [vmem:[%s32009_s2 + $0x150] sm:$0xff] }
 0x772   :  { %19931 = vst [vmem:[%s32009_s2 + $0xe8] sm:$0xff] %v21815_v10  ;;  %v21821_v40 = vadd.f32 %v21820_v50, %v18971_v7  ;;  %10018 = vmatmul.mubr.bf16.gmra.mrb[136].mxu1 %v9286_v46  ;;  %v18519_v10 = vrot.slane %v30925_v30, 2  ;;  %v9304_v0 = vsel %vm2291_vm0, %v9299_v9, %v9303_v5 }
 0x773   :  { %19932 = vst [vmem:[%s32009_s2 + $0xf0] sm:$0xff] %v21818_v17  ;;  %19234 = vmatmul.mubr.bf16.gmra.mrb[136].mxu0 %v18502_v53  ;;  %10027 = vmatprep.mubr.bf16.mxu1 %v9292_v58  ;;  %v21850_v17 = vld [vmem:[%s32009_s2 + $0x148] sm:$0xff]  ;;  %v9298_v45 = vsel %vm2291_vm0, %v9293_v62, %v9297_v59  ;;  %v18514_v58 = vsel %vm4654_vm1, %v18509_v52, %v18513_v22  ;;  %v21868_v52 = vld [vmem:[%s32009_s2 + $0x178] sm:$0xff] }
 0x774   :  { %19933 = vst [vmem:[%s32009_s2 + $0xf8] sm:$0xff] %v21821_v40  ;;  %19243 = vmatprep.mubr.bf16.mxu0 %v18508_v14  ;;  %v30954_v14 = vld [vmem:[%s32008_s0 + $0x2f0] ss:$8 sps:$4 sm:$0xff]   ;;  %v18520_v33 = vsel %vm4654_vm1, %v18515_v44, %v18519_v10 }
 0x776   :  { %v18975_v1 = vpop.f32.mrb[32].mxu0 }
 0x777   :  { %v21824_v21 = vadd.f32 %v21823_v24, %v18975_v1  ;;  %v18977_v48 = vpop.f32.mrb[33].mxu0  ;;  %v30967_v1 = vld [vmem:[%s32008_s0 + $0x304] ss:$8 sps:$4 sm:$0xff]  }
 0x778   :  { %v21827_v27 = vadd.f32 %v21826_v2, %v18977_v48  ;;  %v18979_v49 = vpop.f32.mrb[34].mxu0  ;;  %v18517_v48 = vrot.slane %v30954_v14, 2  ;;  %v9307_v2 = vrot.slane %v30799_v4, 1 }
 0x779   :  { %19934 = vst [vmem:[%s32009_s2 + $0x100] sm:$0xff] %v21824_v21  ;;  %v21830_v23 = vadd.f32 %v21829_v56, %v18979_v49  ;;  %v18981_v42 = vpop.f32.mrb[35].mxu0  ;;  %v9301_v21 = vrot.slane %v30786_v43, 1  ;;  %v21859_v56 = vld [vmem:[%s32009_s2 + $0x160] sm:$0xff]  ;;  %v21865_v43 = vld [vmem:[%s32009_s2 + $0x170] sm:$0xff] }
 0x77a   :  { %19935 = vst [vmem:[%s32009_s2 + $0x108] sm:$0xff] %v21827_v27  ;;  %v21833_v25 = vadd.f32 %v21832_v6, %v18981_v42  ;;  %10028 = vmatmul.mubr.bf16.gmra.mrb[140].mxu1 %v9290_v37  ;;  %v18523_v27 = vrot.slane %v30967_v1, 2  ;;  %v9308_v9 = vsel %vm2291_vm0, %v9303_v5, %v9307_v2 }
 0x77b   :  { %19936 = vst [vmem:[%s32009_s2 + $0x110] sm:$0xff] %v21830_v23  ;;  %19244 = vmatmul.mubr.bf16.gmra.mrb[140].mxu0 %v18506_v38  ;;  %10037 = vmatprep.mubr.bf16.mxu1 %v9296_v32  ;;  %v21862_v23 = vld [vmem:[%s32009_s2 + $0x168] sm:$0xff]  ;;  %v9302_v4 = vsel %vm2291_vm0, %v9297_v59, %v9301_v21  ;;  %v18518_v32 = vsel %vm4654_vm1, %v18513_v22, %v18517_v48  ;;  %v21880_v22 = vld [vmem:[%s32009_s2 + $0x198] sm:$0xff] }
 0x77c   :  { %19937 = vst [vmem:[%s32009_s2 + $0x118] sm:$0xff] %v21833_v25  ;;  %19253 = vmatprep.mubr.bf16.mxu0 %v18512_v39  ;;  %v30996_v39 = vld [vmem:[%s32008_s0 + $0x300] ss:$8 sps:$4 sm:$0xff]   ;;  %v18524_v44 = vsel %vm4654_vm1, %v18519_v10, %v18523_v27 }
 0x77e   :  { %v18985_v47 = vpop.f32.mrb[36].mxu0 }
 0x77f   :  { %v21836_v3 = vadd.f32 %v21835_v36, %v18985_v47  ;;  %v18987_v60 = vpop.f32.mrb[37].mxu0  ;;  %v31009_v47 = vld [vmem:[%s32008_s0 + $0x314] ss:$8 sps:$4 sm:$0xff]  }
 0x780   :  { %v21839_v13 = vadd.f32 %v21838_v29, %v18987_v60  ;;  %v18989_v63 = vpop.f32.mrb[38].mxu0  ;;  %v18521_v60 = vrot.slane %v30996_v39, 2  ;;  %v9311_v29 = vrot.slane %v30841_v28, 1 }
 0x781   :  { %19938 = vst [vmem:[%s32009_s2 + $0x120] sm:$0xff] %v21836_v3  ;;  %v21842_v41 = vadd.f32 %v21841_v57, %v18989_v63  ;;  %v18991_v34 = vpop.f32.mrb[39].mxu0  ;;  %v9305_v3 = vrot.slane %v30828_v19, 1  ;;  %v21871_v57 = vld [vmem:[%s32009_s2 + $0x180] sm:$0xff]  ;;  %v21877_v19 = vld [vmem:[%s32009_s2 + $0x190] sm:$0xff] }
 0x782   :  { %19939 = vst [vmem:[%s32009_s2 + $0x128] sm:$0xff] %v21839_v13  ;;  %v21845_v18 = vadd.f32 %v21844_v15, %v18991_v34  ;;  %10038 = vmatmul.mubr.bf16.gmra.mrb[144].mxu1 %v9294_v8  ;;  %v18527_v13 = vrot.slane %v31009_v47, 2  ;;  %v9312_v5 = vsel %vm2291_vm0, %v9307_v2, %v9311_v29 }
 0x783   :  { %19940 = vst [vmem:[%s32009_s2 + $0x130] sm:$0xff] %v21842_v41  ;;  %19254 = vmatmul.mubr.bf16.gmra.mrb[144].mxu0 %v18510_v26  ;;  %10047 = vmatprep.mubr.bf16.mxu1 %v9300_v54  ;;  %v21874_v41 = vld [vmem:[%s32009_s2 + $0x188] sm:$0xff]  ;;  %v9306_v28 = vsel %vm2291_vm0, %v9301_v21, %v9305_v3  ;;  %v18522_v54 = vsel %vm4654_vm1, %v18517_v48, %v18521_v60  ;;  %v21892_v48 = vld [vmem:[%s32009_s2 + $0x1b8] sm:$0xff] }
 0x784   :  { %19941 = vst [vmem:[%s32009_s2 + $0x138] sm:$0xff] %v21845_v18  ;;  %19263 = vmatprep.mubr.bf16.mxu0 %v18516_v61  ;;  %v31038_v61 = vld [vmem:[%s32008_s0 + $0x310] ss:$8 sps:$4 sm:$0xff]   ;;  %v18528_v10 = vsel %vm4654_vm1, %v18523_v27, %v18527_v13 }
 0x786   :  { %v18995_v35 = vpop.f32.mrb[40].mxu0 }
 0x787   :  { %v21848_v46 = vadd.f32 %v21847_v12, %v18995_v35  ;;  %v18997_v53 = vpop.f32.mrb[41].mxu0  ;;  %v31051_v35 = vld [vmem:[%s32008_s0 + $0x324] ss:$8 sps:$4 sm:$0xff]  }
 0x788   :  { %v21851_v7 = vadd.f32 %v21850_v17, %v18997_v53  ;;  %v18999_v50 = vpop.f32.mrb[42].mxu0  ;;  %v18525_v53 = vrot.slane %v31038_v61, 2  ;;  %v9315_v17 = vrot.slane %v30883_v20, 1 }
 0x789   :  { %19942 = vst [vmem:[%s32009_s2 + $0x140] sm:$0xff] %v21848_v46  ;;  %v21854_v40 = vadd.f32 %v21853_v55, %v18999_v50  ;;  %v19001_v16 = vpop.f32.mrb[43].mxu0  ;;  %v9309_v46 = vrot.slane %v30870_v11, 1  ;;  %v21883_v55 = vld [vmem:[%s32009_s2 + $0x1a0] sm:$0xff]  ;;  %v21889_v11 = vld [vmem:[%s32009_s2 + $0x1b0] sm:$0xff] }
 0x78a   :  { %19943 = vst [vmem:[%s32009_s2 + $0x148] sm:$0xff] %v21851_v7  ;;  %v21857_v24 = vadd.f32 %v21856_v31, %v19001_v16  ;;  %10048 = vmatmul.mubr.bf16.gmra.mrb[148].mxu1 %v9298_v45  ;;  %v18531_v7 = vrot.slane %v31051_v35, 2  ;;  %v9316_v2 = vsel %vm2291_vm0, %v9311_v29, %v9315_v17 }
 0x78b   :  { %19944 = vst [vmem:[%s32009_s2 + $0x150] sm:$0xff] %v21854_v40  ;;  %19264 = vmatmul.mubr.bf16.gmra.mrb[148].mxu0 %v18514_v58  ;;  %10057 = vmatprep.mubr.bf16.mxu1 %v9304_v0  ;;  %v21886_v40 = vld [vmem:[%s32009_s2 + $0x1a8] sm:$0xff]  ;;  %v9310_v20 = vsel %vm2291_vm0, %v9305_v3, %v9309_v46  ;;  %v18526_v0 = vsel %vm4654_vm1, %v18521_v60, %v18525_v53  ;;  %v21904_v60 = vld [vmem:[%s32009_s2 + $0x1d8] sm:$0xff] }
 0x78c   :  { %19945 = vst [vmem:[%s32009_s2 + $0x158] sm:$0xff] %v21857_v24  ;;  %19273 = vmatprep.mubr.bf16.mxu0 %v18520_v33  ;;  %v31080_v33 = vld [vmem:[%s32008_s0 + $0x320] ss:$8 sps:$4 sm:$0xff]   ;;  %v18532_v27 = vsel %vm4654_vm1, %v18527_v13, %v18531_v7 }
 0x78e   :  { %v19005_v49 = vpop.f32.mrb[44].mxu0 }
 0x78f   :  { %v21860_v37 = vadd.f32 %v21859_v56, %v19005_v49  ;;  %v19007_v38 = vpop.f32.mrb[45].mxu0  ;;  %v31093_v49 = vld [vmem:[%s32008_s0 + $0x334] ss:$8 sps:$4 sm:$0xff]  }
 0x790   :  { %v21863_v42 = vadd.f32 %v21862_v23, %v19007_v38  ;;  %v19009_v6 = vpop.f32.mrb[46].mxu0  ;;  %v18529_v38 = vrot.slane %v31080_v33, 2  ;;  %v9319_v23 = vrot.slane %v30925_v30, 1 }
 0x791   :  { %19946 = vst [vmem:[%s32009_s2 + $0x160] sm:$0xff] %v21860_v37  ;;  %v21866_v25 = vadd.f32 %v21865_v43, %v19009_v6  ;;  %v19011_v62 = vpop.f32.mrb[47].mxu0  ;;  %v9313_v37 = vrot.slane %v30912_v51, 1  ;;  %v21895_v43 = vld [vmem:[%s32009_s2 + $0x1c0] sm:$0xff]  ;;  %v21901_v51 = vld [vmem:[%s32009_s2 + $0x1d0] sm:$0xff] }
 0x792   :  { %19947 = vst [vmem:[%s32009_s2 + $0x168] sm:$0xff] %v21863_v42  ;;  %v21869_v36 = vadd.f32 %v21868_v52, %v19011_v62  ;;  %10058 = vmatmul.mubr.bf16.gmra.mrb[152].mxu1 %v9302_v4  ;;  %v18535_v42 = vrot.slane %v31093_v49, 2  ;;  %v9320_v29 = vsel %vm2291_vm0, %v9315_v17, %v9319_v23 }
 0x793   :  { %19948 = vst [vmem:[%s32009_s2 + $0x170] sm:$0xff] %v21866_v25  ;;  %19274 = vmatmul.mubr.bf16.gmra.mrb[152].mxu0 %v18518_v32  ;;  %10067 = vmatprep.mubr.bf16.mxu1 %v9308_v9  ;;  %v21898_v25 = vld [vmem:[%s32009_s2 + $0x1c8] sm:$0xff]  ;;  %v9314_v30 = vsel %vm2291_vm0, %v9309_v46, %v9313_v37  ;;  %v18530_v9 = vsel %vm4654_vm1, %v18525_v53, %v18529_v38  ;;  %v21916_v53 = vld [vmem:[%s32009_s2 + $0x1f8] sm:$0xff] }
 0x794   :  { %19949 = vst [vmem:[%s32009_s2 + $0x178] sm:$0xff] %v21869_v36  ;;  %19283 = vmatprep.mubr.bf16.mxu0 %v18524_v44  ;;  %v31122_v44 = vld [vmem:[%s32008_s0 + $0x330] ss:$8 sps:$4 sm:$0xff]   ;;  %v18536_v13 = vsel %vm4654_vm1, %v18531_v7, %v18535_v42 }
 0x796   :  { %v19015_v63 = vpop.f32.mrb[48].mxu0 }
 0x797   :  { %v21872_v8 = vadd.f32 %v21871_v57, %v19015_v63  ;;  %v19017_v26 = vpop.f32.mrb[49].mxu0  ;;  %v31135_v63 = vld [vmem:[%s32008_s0 + $0x344] ss:$8 sps:$4 sm:$0xff]  }
 0x798   :  { %v21875_v34 = vadd.f32 %v21874_v41, %v19017_v26  ;;  %v19019_v15 = vpop.f32.mrb[50].mxu0  ;;  %v18533_v26 = vrot.slane %v31122_v44, 2  ;;  %v9323_v41 = vrot.slane %v30967_v1, 1 }
 0x799   :  { %19950 = vst [vmem:[%s32009_s2 + $0x180] sm:$0xff] %v21872_v8  ;;  %v21878_v18 = vadd.f32 %v21877_v19, %v19019_v15  ;;  %v19021_v59 = vpop.f32.mrb[51].mxu0  ;;  %v9317_v8 = vrot.slane %v30954_v14, 1  ;;  %v21907_v19 = vld [vmem:[%s32009_s2 + $0x1e0] sm:$0xff]  ;;  %v21913_v14 = vld [vmem:[%s32009_s2 + $0x1f0] sm:$0xff] }
 0x79a   :  { %19951 = vst [vmem:[%s32009_s2 + $0x188] sm:$0xff] %v21875_v34  ;;  %v21881_v12 = vadd.f32 %v21880_v22, %v19021_v59  ;;  %10068 = vmatmul.mubr.bf16.gmra.mrb[156].mxu1 %v9306_v28  ;;  %v18539_v34 = vrot.slane %v31135_v63, 2  ;;  %v9324_v17 = vsel %vm2291_vm0, %v9319_v23, %v9323_v41 }
 0x79b   :  { %19952 = vst [vmem:[%s32009_s2 + $0x190] sm:$0xff] %v21878_v18  ;;  %19284 = vmatmul.mubr.bf16.gmra.mrb[156].mxu0 %v18522_v54  ;;  %10077 = vmatprep.mubr.bf16.mxu1 %v9312_v5  ;;  %v21910_v18 = vld [vmem:[%s32009_s2 + $0x1e8] sm:$0xff]  ;;  %v9318_v1 = vsel %vm2291_vm0, %v9313_v37, %v9317_v8  ;;  %v18534_v5 = vsel %vm4654_vm1, %v18529_v38, %v18533_v26  ;;  %v21928_v38 = vld [vmem:[%s32009_s2 + $0x218] sm:$0xff] }
 0x79c   :  { %19953 = vst [vmem:[%s32009_s2 + $0x198] sm:$0xff] %v21881_v12  ;;  %19293 = vmatprep.mubr.bf16.mxu0 %v18528_v10  ;;  %v31164_v10 = vld [vmem:[%s32008_s0 + $0x340] ss:$8 sps:$4 sm:$0xff]   ;;  %v18540_v7 = vsel %vm4654_vm1, %v18535_v42, %v18539_v34 }
 0x79e   :  { %v19025_v50 = vpop.f32.mrb[52].mxu0 }
 0x79f   :  { %v21884_v45 = vadd.f32 %v21883_v55, %v19025_v50  ;;  %v19027_v58 = vpop.f32.mrb[53].mxu0  ;;  %v31177_v50 = vld [vmem:[%s32008_s0 + $0x354] ss:$8 sps:$4 sm:$0xff]  }
 0x7a0   :  { %v21887_v16 = vadd.f32 %v21886_v40, %v19027_v58  ;;  %v19029_v31 = vpop.f32.mrb[54].mxu0  ;;  %v18537_v58 = vrot.slane %v31164_v10, 2  ;;  %v9327_v40 = vrot.slane %v31009_v47, 1 }
 0x7a1   :  { %19954 = vst [vmem:[%s32009_s2 + $0x1a0] sm:$0xff] %v21884_v45  ;;  %v21890_v24 = vadd.f32 %v21889_v11, %v19029_v31  ;;  %v19031_v21 = vpop.f32.mrb[55].mxu0  ;;  %v9321_v45 = vrot.slane %v30996_v39, 1  ;;  %v21919_v11 = vld [vmem:[%s32009_s2 + $0x200] sm:$0xff]  ;;  %v21925_v39 = vld [vmem:[%s32009_s2 + $0x210] sm:$0xff] }
 0x7a2   :  { %19955 = vst [vmem:[%s32009_s2 + $0x1a8] sm:$0xff] %v21887_v16  ;;  %v21893_v56 = vadd.f32 %v21892_v48, %v19031_v21  ;;  %10078 = vmatmul.mubr.bf16.gmra.mrb[160].mxu1 %v9310_v20  ;;  %v18543_v16 = vrot.slane %v31177_v50, 2  ;;  %v9328_v23 = vsel %vm2291_vm0, %v9323_v41, %v9327_v40 }
 0x7a3   :  { %19956 = vst [vmem:[%s32009_s2 + $0x1b0] sm:$0xff] %v21890_v24  ;;  %19294 = vmatmul.mubr.bf16.gmra.mrb[160].mxu0 %v18526_v0  ;;  %10087 = vmatprep.mubr.bf16.mxu1 %v9316_v2  ;;  %v21922_v24 = vld [vmem:[%s32009_s2 + $0x208] sm:$0xff]  ;;  %v9322_v47 = vsel %vm2291_vm0, %v9317_v8, %v9321_v45  ;;  %v18538_v2 = vsel %vm4654_vm1, %v18533_v26, %v18537_v58  ;;  %v21940_v26 = vld [vmem:[%s32009_s2 + $0x238] sm:$0xff] }
 0x7a4   :  { %19957 = vst [vmem:[%s32009_s2 + $0x1b8] sm:$0xff] %v21893_v56  ;;  %19303 = vmatprep.mubr.bf16.mxu0 %v18532_v27  ;;  %v31206_v27 = vld [vmem:[%s32008_s0 + $0x350] ss:$8 sps:$4 sm:$0xff]   ;;  %v18544_v42 = vsel %vm4654_vm1, %v18539_v34, %v18543_v16 }
 0x7a6   :  { %v19035_v6 = vpop.f32.mrb[56].mxu0 }
 0x7a7   :  { %v21896_v4 = vadd.f32 %v21895_v43, %v19035_v6  ;;  %v19037_v32 = vpop.f32.mrb[57].mxu0  ;;  %v31219_v6 = vld [vmem:[%s32008_s0 + $0x364] ss:$8 sps:$4 sm:$0xff]  }
 0x7a8   :  { %v21899_v62 = vadd.f32 %v21898_v25, %v19037_v32  ;;  %v19039_v52 = vpop.f32.mrb[58].mxu0  ;;  %v18541_v32 = vrot.slane %v31206_v27, 2  ;;  %v9331_v25 = vrot.slane %v31051_v35, 1 }
 0x7a9   :  { %19958 = vst [vmem:[%s32009_s2 + $0x1c0] sm:$0xff] %v21896_v4  ;;  %v21902_v36 = vadd.f32 %v21901_v51, %v19039_v52  ;;  %v19041_v3 = vpop.f32.mrb[59].mxu0  ;;  %v9325_v4 = vrot.slane %v31038_v61, 1  ;;  %v21931_v51 = vld [vmem:[%s32009_s2 + $0x220] sm:$0xff]  ;;  %v21937_v61 = vld [vmem:[%s32009_s2 + $0x230] sm:$0xff] }
 0x7aa   :  { %19959 = vst [vmem:[%s32009_s2 + $0x1c8] sm:$0xff] %v21899_v62  ;;  %v21905_v57 = vadd.f32 %v21904_v60, %v19041_v3  ;;  %10088 = vmatmul.mubr.bf16.gmra.mrb[164].mxu1 %v9314_v30  ;;  %v18547_v62 = vrot.slane %v31219_v6, 2  ;;  %v9332_v41 = vsel %vm2291_vm0, %v9327_v40, %v9331_v25 }
 0x7ab   :  { %19960 = vst [vmem:[%s32009_s2 + $0x1d0] sm:$0xff] %v21902_v36  ;;  %19304 = vmatmul.mubr.bf16.gmra.mrb[164].mxu0 %v18530_v9  ;;  %10097 = vmatprep.mubr.bf16.mxu1 %v9320_v29  ;;  %v21934_v36 = vld [vmem:[%s32009_s2 + $0x228] sm:$0xff]  ;;  %v9326_v35 = vsel %vm2291_vm0, %v9321_v45, %v9325_v4  ;;  %v18542_v29 = vsel %vm4654_vm1, %v18537_v58, %v18541_v32  ;;  %v21952_v58 = vld [vmem:[%s32009_s2 + $0x258] sm:$0xff] }
 0x7ac   :  { %19961 = vst [vmem:[%s32009_s2 + $0x1d8] sm:$0xff] %v21905_v57  ;;  %19313 = vmatprep.mubr.bf16.mxu0 %v18536_v13  ;;  %v31248_v13 = vld [vmem:[%s32008_s0 + $0x360] ss:$8 sps:$4 sm:$0xff]   ;;  %v18548_v34 = vsel %vm4654_vm1, %v18543_v16, %v18547_v62 }
 0x7ae   :  { %v19045_v15 = vpop.f32.mrb[60].mxu0 }
 0x7af   :  { %v21908_v28 = vadd.f32 %v21907_v19, %v19045_v15  ;;  %v19047_v54 = vpop.f32.mrb[61].mxu0  ;;  %v31261_v15 = vld [vmem:[%s32008_s0 + $0x374] ss:$8 sps:$4 sm:$0xff]  }
 0x7b0   :  { %v21911_v59 = vadd.f32 %v21910_v18, %v19047_v54  ;;  %v19049_v22 = vpop.f32.mrb[62].mxu0  ;;  %v18545_v54 = vrot.slane %v31248_v13, 2  ;;  %v9335_v18 = vrot.slane %v31093_v49, 1 }
 0x7b1   :  { %19962 = vst [vmem:[%s32009_s2 + $0x1e0] sm:$0xff] %v21908_v28  ;;  %v21914_v12 = vadd.f32 %v21913_v14, %v19049_v22  ;;  %v19051_v46 = vpop.f32.mrb[63].mxu0  ;;  %v9329_v28 = vrot.slane %v31080_v33, 1  ;;  %v21943_v14 = vld [vmem:[%s32009_s2 + $0x240] sm:$0xff]  ;;  %v21949_v33 = vld [vmem:[%s32009_s2 + $0x250] sm:$0xff] }
 0x7b2   :  { %19963 = vst [vmem:[%s32009_s2 + $0x1e8] sm:$0xff] %v21911_v59  ;;  %v21917_v55 = vadd.f32 %v21916_v53, %v19051_v46  ;;  %10098 = vmatmul.mubr.bf16.gmra.mrb[168].mxu1 %v9318_v1  ;;  %v18551_v59 = vrot.slane %v31261_v15, 2  ;;  %v9336_v40 = vsel %vm2291_vm0, %v9331_v25, %v9335_v18 }
 0x7b3   :  { %19964 = vst [vmem:[%s32009_s2 + $0x1f0] sm:$0xff] %v21914_v12  ;;  %19314 = vmatmul.mubr.bf16.gmra.mrb[168].mxu0 %v18534_v5  ;;  %10107 = vmatprep.mubr.bf16.mxu1 %v9324_v17  ;;  %v21946_v12 = vld [vmem:[%s32009_s2 + $0x248] sm:$0xff]  ;;  %v9330_v49 = vsel %vm2291_vm0, %v9325_v4, %v9329_v28  ;;  %v18546_v17 = vsel %vm4654_vm1, %v18541_v32, %v18545_v54  ;;  %v21964_v32 = vld [vmem:[%s32009_s2 + $0x278] sm:$0xff] }
 0x7b4   :  { %19965 = vst [vmem:[%s32009_s2 + $0x1f8] sm:$0xff] %v21917_v55  ;;  %19323 = vmatprep.mubr.bf16.mxu0 %v18540_v7  ;;  %v31290_v7 = vld [vmem:[%s32008_s0 + $0x370] ss:$8 sps:$4 sm:$0xff]   ;;  %v18552_v16 = vsel %vm4654_vm1, %v18547_v62, %v18551_v59 }
 0x7b6   :  { %v19055_v31 = vpop.f32.mrb[64].mxu0 }
 0x7b7   :  { %v21920_v20 = vadd.f32 %v21919_v11, %v19055_v31  ;;  %v19057_v0 = vpop.f32.mrb[65].mxu0  ;;  %v31303_v31 = vld [vmem:[%s32008_s0 + $0x384] ss:$8 sps:$4 sm:$0xff]  }
 0x7b8   :  { %v21923_v21 = vadd.f32 %v21922_v24, %v19057_v0  ;;  %v19059_v48 = vpop.f32.mrb[66].mxu0  ;;  %v18549_v0 = vrot.slane %v31290_v7, 2  ;;  %v9339_v24 = vrot.slane %v31135_v63, 1 }
 0x7b9   :  { %19966 = vst [vmem:[%s32009_s2 + $0x200] sm:$0xff] %v21920_v20  ;;  %v21926_v56 = vadd.f32 %v21925_v39, %v19059_v48  ;;  %v19061_v37 = vpop.f32.mrb[67].mxu0  ;;  %v9333_v20 = vrot.slane %v31122_v44, 1  ;;  %v21955_v39 = vld [vmem:[%s32009_s2 + $0x260] sm:$0xff]  ;;  %v21961_v44 = vld [vmem:[%s32009_s2 + $0x270] sm:$0xff] }
 0x7ba   :  { %19967 = vst [vmem:[%s32009_s2 + $0x208] sm:$0xff] %v21923_v21  ;;  %v21929_v43 = vadd.f32 %v21928_v38, %v19061_v37  ;;  %10108 = vmatmul.mubr.bf16.gmra.mrb[172].mxu1 %v9322_v47  ;;  %v18555_v21 = vrot.slane %v31303_v31, 2  ;;  %v9340_v25 = vsel %vm2291_vm0, %v9335_v18, %v9339_v24 }
 0x7bb   :  { %19968 = vst [vmem:[%s32009_s2 + $0x210] sm:$0xff] %v21926_v56  ;;  %19324 = vmatmul.mubr.bf16.gmra.mrb[172].mxu0 %v18538_v2  ;;  %10117 = vmatprep.mubr.bf16.mxu1 %v9328_v23  ;;  %v21958_v56 = vld [vmem:[%s32009_s2 + $0x268] sm:$0xff]  ;;  %v9334_v63 = vsel %vm2291_vm0, %v9329_v28, %v9333_v20  ;;  %v18550_v23 = vsel %vm4654_vm1, %v18545_v54, %v18549_v0  ;;  %v21976_v54 = vld [vmem:[%s32009_s2 + $0x298] sm:$0xff] }
 0x7bc   :  { %19969 = vst [vmem:[%s32009_s2 + $0x218] sm:$0xff] %v21929_v43  ;;  %19333 = vmatprep.mubr.bf16.mxu0 %v18544_v42  ;;  %v31332_v42 = vld [vmem:[%s32008_s0 + $0x380] ss:$8 sps:$4 sm:$0xff]   ;;  %v18556_v62 = vsel %vm4654_vm1, %v18551_v59, %v18555_v21 }
 0x7be   :  { %v19065_v52 = vpop.f32.mrb[68].mxu0 }
 0x7bf   :  { %v21932_v30 = vadd.f32 %v21931_v51, %v19065_v52  ;;  %v19067_v9 = vpop.f32.mrb[69].mxu0  ;;  %v31345_v52 = vld [vmem:[%s32008_s0 + $0x394] ss:$8 sps:$4 sm:$0xff]  }
 0x7c0   :  { %v21935_v3 = vadd.f32 %v21934_v36, %v19067_v9  ;;  %v19069_v60 = vpop.f32.mrb[70].mxu0  ;;  %v18553_v9 = vrot.slane %v31332_v42, 2  ;;  %v9343_v36 = vrot.slane %v31177_v50, 1 }
 0x7c1   :  { %19970 = vst [vmem:[%s32009_s2 + $0x220] sm:$0xff] %v21932_v30  ;;  %v21938_v57 = vadd.f32 %v21937_v61, %v19069_v60  ;;  %v19071_v8 = vpop.f32.mrb[71].mxu0  ;;  %v9337_v30 = vrot.slane %v31164_v10, 1  ;;  %v21967_v61 = vld [vmem:[%s32009_s2 + $0x280] sm:$0xff]  ;;  %v21973_v10 = vld [vmem:[%s32009_s2 + $0x290] sm:$0xff] }
 0x7c2   :  { %19971 = vst [vmem:[%s32009_s2 + $0x228] sm:$0xff] %v21935_v3  ;;  %v21941_v19 = vadd.f32 %v21940_v26, %v19071_v8  ;;  %10118 = vmatmul.mubr.bf16.gmra.mrb[176].mxu1 %v9326_v35  ;;  %v18559_v3 = vrot.slane %v31345_v52, 2  ;;  %v9344_v18 = vsel %vm2291_vm0, %v9339_v24, %v9343_v36 }
 0x7c3   :  { %19972 = vst [vmem:[%s32009_s2 + $0x230] sm:$0xff] %v21938_v57  ;;  %19334 = vmatmul.mubr.bf16.gmra.mrb[176].mxu0 %v18542_v29  ;;  %10127 = vmatprep.mubr.bf16.mxu1 %v9332_v41  ;;  %v21970_v57 = vld [vmem:[%s32009_s2 + $0x288] sm:$0xff]  ;;  %v9338_v50 = vsel %vm2291_vm0, %v9333_v20, %v9337_v30  ;;  %v18554_v41 = vsel %vm4654_vm1, %v18549_v0, %v18553_v9  ;;  %v21988_v0 = vld [vmem:[%s32009_s2 + $0x2b8] sm:$0xff] }
 0x7c4   :  { %19973 = vst [vmem:[%s32009_s2 + $0x238] sm:$0xff] %v21941_v19  ;;  %19343 = vmatprep.mubr.bf16.mxu0 %v18548_v34  ;;  %v31374_v34 = vld [vmem:[%s32008_s0 + $0x390] ss:$8 sps:$4 sm:$0xff]   ;;  %v18560_v59 = vsel %vm4654_vm1, %v18555_v21, %v18559_v3 }
 0x7c6   :  { %v19075_v22 = vpop.f32.mrb[72].mxu0 }
 0x7c7   :  { %v21944_v1 = vadd.f32 %v21943_v14, %v19075_v22  ;;  %v19077_v5 = vpop.f32.mrb[73].mxu0  ;;  %v31387_v22 = vld [vmem:[%s32008_s0 + $0x3a4] ss:$8 sps:$4 sm:$0xff]  }
 0x7c8   :  { %v21947_v46 = vadd.f32 %v21946_v12, %v19077_v5  ;;  %v19079_v53 = vpop.f32.mrb[74].mxu0  ;;  %v18557_v5 = vrot.slane %v31374_v34, 2  ;;  %v9347_v12 = vrot.slane %v31219_v6, 1 }
 0x7c9   :  { %19974 = vst [vmem:[%s32009_s2 + $0x240] sm:$0xff] %v21944_v1  ;;  %v21950_v55 = vadd.f32 %v21949_v33, %v19079_v53  ;;  %v19081_v45 = vpop.f32.mrb[75].mxu0  ;;  %v9341_v1 = vrot.slane %v31206_v27, 1  ;;  %v21979_v33 = vld [vmem:[%s32009_s2 + $0x2a0] sm:$0xff]  ;;  %v21985_v27 = vld [vmem:[%s32009_s2 + $0x2b0] sm:$0xff] }
 0x7ca   :  { %19975 = vst [vmem:[%s32009_s2 + $0x248] sm:$0xff] %v21947_v46  ;;  %v21953_v11 = vadd.f32 %v21952_v58, %v19081_v45  ;;  %10128 = vmatmul.mubr.bf16.gmra.mrb[180].mxu1 %v9330_v49  ;;  %v18563_v46 = vrot.slane %v31387_v22, 2  ;;  %v9348_v24 = vsel %vm2291_vm0, %v9343_v36, %v9347_v12 }
 0x7cb   :  { %19976 = vst [vmem:[%s32009_s2 + $0x250] sm:$0xff] %v21950_v55  ;;  %19344 = vmatmul.mubr.bf16.gmra.mrb[180].mxu0 %v18546_v17  ;;  %10137 = vmatprep.mubr.bf16.mxu1 %v9336_v40  ;;  %v21982_v55 = vld [vmem:[%s32009_s2 + $0x2a8] sm:$0xff]  ;;  %v9342_v6 = vsel %vm2291_vm0, %v9337_v30, %v9341_v1  ;;  %v18558_v40 = vsel %vm4654_vm1, %v18553_v9, %v18557_v5  ;;  %v22000_v9 = vld [vmem:[%s32009_s2 + $0x2d8] sm:$0xff] }
 0x7cc   :  { %19977 = vst [vmem:[%s32009_s2 + $0x258] sm:$0xff] %v21953_v11  ;;  %19353 = vmatprep.mubr.bf16.mxu0 %v18552_v16  ;;  %v31416_v16 = vld [vmem:[%s32008_s0 + $0x3a0] ss:$8 sps:$4 sm:$0xff]   ;;  %v18564_v21 = vsel %vm4654_vm1, %v18559_v3, %v18563_v46 }
 0x7ce   :  { %v19085_v48 = vpop.f32.mrb[76].mxu0 }
 0x7cf   :  { %v21956_v47 = vadd.f32 %v21955_v39, %v19085_v48  ;;  %v19087_v2 = vpop.f32.mrb[77].mxu0  ;;  %v31429_v48 = vld [vmem:[%s32008_s0 + $0x3b4] ss:$8 sps:$4 sm:$0xff]  }
 0x7d0   :  { %v21959_v37 = vadd.f32 %v21958_v56, %v19087_v2  ;;  %v19089_v38 = vpop.f32.mrb[78].mxu0  ;;  %v18561_v2 = vrot.slane %v31416_v16, 2  ;;  %v9351_v56 = vrot.slane %v31261_v15, 1 }
 0x7d1   :  { %19978 = vst [vmem:[%s32009_s2 + $0x260] sm:$0xff] %v21956_v47  ;;  %v21962_v43 = vadd.f32 %v21961_v44, %v19089_v38  ;;  %v19091_v4 = vpop.f32.mrb[79].mxu0  ;;  %v9345_v47 = vrot.slane %v31248_v13, 1  ;;  %v21991_v44 = vld [vmem:[%s32009_s2 + $0x2c0] sm:$0xff]  ;;  %v21997_v13 = vld [vmem:[%s32009_s2 + $0x2d0] sm:$0xff] }
 0x7d2   :  { %19979 = vst [vmem:[%s32009_s2 + $0x268] sm:$0xff] %v21959_v37  ;;  %v21965_v51 = vadd.f32 %v21964_v32, %v19091_v4  ;;  %10138 = vmatmul.mubr.bf16.gmra.mrb[184].mxu1 %v9334_v63  ;;  %v18567_v37 = vrot.slane %v31429_v48, 2  ;;  %v9352_v36 = vsel %vm2291_vm0, %v9347_v12, %v9351_v56 }
 0x7d3   :  { %19980 = vst [vmem:[%s32009_s2 + $0x270] sm:$0xff] %v21962_v43  ;;  %19354 = vmatmul.mubr.bf16.gmra.mrb[184].mxu0 %v18550_v23  ;;  %10147 = vmatprep.mubr.bf16.mxu1 %v9340_v25  ;;  %v21994_v43 = vld [vmem:[%s32009_s2 + $0x2c8] sm:$0xff]  ;;  %v9346_v15 = vsel %vm2291_vm0, %v9341_v1, %v9345_v47  ;;  %v18562_v25 = vsel %vm4654_vm1, %v18557_v5, %v18561_v2  ;;  %v22012_v5 = vld [vmem:[%s32009_s2 + $0x2f8] sm:$0xff] }
 0x7d4   :  { %19981 = vst [vmem:[%s32009_s2 + $0x278] sm:$0xff] %v21965_v51  ;;  %19363 = vmatprep.mubr.bf16.mxu0 %v18556_v62  ;;  %v31458_v62 = vld [vmem:[%s32008_s0 + $0x3b0] ss:$8 sps:$4 sm:$0xff]   ;;  %v18568_v3 = vsel %vm4654_vm1, %v18563_v46, %v18567_v37 }
 0x7d6   :  { %v19095_v60 = vpop.f32.mrb[80].mxu0 }
 0x7d7   :  { %v21968_v35 = vadd.f32 %v21967_v61, %v19095_v60  ;;  %v19097_v29 = vpop.f32.mrb[81].mxu0  ;;  %v25372_v60 = vld [vmem:[%s32008_s0 + $0x3c4] ss:$8 sps:$4 sm:$0xff]  }
 0x7d8   :  { %v21971_v8 = vadd.f32 %v21970_v57, %v19097_v29  ;;  %v19099_v26 = vpop.f32.mrb[82].mxu0  ;;  %v18565_v29 = vrot.slane %v31458_v62, 2  ;;  %v9355_v57 = vrot.slane %v31303_v31, 1 }
 0x7d9   :  { %19982 = vst [vmem:[%s32009_s2 + $0x280] sm:$0xff] %v21968_v35  ;;  %v21974_v19 = vadd.f32 %v21973_v10, %v19099_v26  ;;  %v19101_v28 = vpop.f32.mrb[83].mxu0  ;;  %v9349_v35 = vrot.slane %v31290_v7, 1  ;;  %v22003_v10 = vld [vmem:[%s32009_s2 + $0x2e0] sm:$0xff]  ;;  %v22009_v7 = vld [vmem:[%s32009_s2 + $0x2f0] sm:$0xff] }
 0x7da   :  { %19983 = vst [vmem:[%s32009_s2 + $0x288] sm:$0xff] %v21971_v8  ;;  %v21977_v14 = vadd.f32 %v21976_v54, %v19101_v28  ;;  %10148 = vmatmul.mubr.bf16.gmra.mrb[188].mxu1 %v9338_v50  ;;  %v18571_v8 = vrot.slane %v25372_v60, 2  ;;  %v9356_v12 = vsel %vm2291_vm0, %v9351_v56, %v9355_v57 }
 0x7db   :  { %19984 = vst [vmem:[%s32009_s2 + $0x290] sm:$0xff] %v21974_v19  ;;  %19364 = vmatmul.mubr.bf16.gmra.mrb[188].mxu0 %v18554_v41  ;;  %10157 = vmatprep.mubr.bf16.mxu1 %v9344_v18  ;;  %v22006_v19 = vld [vmem:[%s32009_s2 + $0x2e8] sm:$0xff]  ;;  %v9350_v31 = vsel %vm2291_vm0, %v9345_v47, %v9349_v35  ;;  %v18566_v18 = vsel %vm4654_vm1, %v18561_v2, %v18565_v29  ;;  %v22024_v2 = vld [vmem:[%s32009_s2 + $0x318] sm:$0xff] }
 0x7dc   :  { %19985 = vst [vmem:[%s32009_s2 + $0x298] sm:$0xff] %v21977_v14  ;;  %19373 = vmatprep.mubr.bf16.mxu0 %v18560_v59  ;;  %v25374_v59 = vld [vmem:[%s32008_s0 + $0x3c0] ss:$8 sps:$4 sm:$0xff]   ;;  %v18572_v46 = vsel %vm4654_vm1, %v18567_v37, %v18571_v8 }
 0x7de   :  { %v19105_v53 = vpop.f32.mrb[84].mxu0 }
 0x7df   :  { %v21980_v49 = vadd.f32 %v21979_v33, %v19105_v53  ;;  %v19107_v17 = vpop.f32.mrb[85].mxu0  ;;  %v25375_v53 = vld [vmem:[%s32008_s0 + $0x3d4] ss:$8 sps:$4 sm:$0xff]  }
 0x7e0   :  { %v21983_v45 = vadd.f32 %v21982_v55, %v19107_v17  ;;  %v19109_v58 = vpop.f32.mrb[86].mxu0  ;;  %v18569_v17 = vrot.slane %v25374_v59, 2  ;;  %v9359_v55 = vrot.slane %v31345_v52, 1 }
 0x7e1   :  { %19986 = vst [vmem:[%s32009_s2 + $0x2a0] sm:$0xff] %v21980_v49  ;;  %v21986_v11 = vadd.f32 %v21985_v27, %v19109_v58  ;;  %v19111_v20 = vpop.f32.mrb[87].mxu0  ;;  %v9353_v49 = vrot.slane %v31332_v42, 1  ;;  %v22015_v27 = vld [vmem:[%s32009_s2 + $0x300] sm:$0xff]  ;;  %v22021_v42 = vld [vmem:[%s32009_s2 + $0x310] sm:$0xff] }
 0x7e2   :  { %19987 = vst [vmem:[%s32009_s2 + $0x2a8] sm:$0xff] %v21983_v45  ;;  %v21989_v39 = vadd.f32 %v21988_v0, %v19111_v20  ;;  %10158 = vmatmul.mubr.bf16.gmra.mrb[192].mxu1 %v9342_v6  ;;  %v18575_v45 = vrot.slane %v25375_v53, 2  ;;  %v9360_v56 = vsel %vm2291_vm0, %v9355_v57, %v9359_v55  ;;  %v25383_v53 = vld [vmem:[%s32008_s0 + $0x3f0] ss:$8 sps:$4 sm:$0xff]  }
 0x7e3   :  { %19988 = vst [vmem:[%s32009_s2 + $0x2b0] sm:$0xff] %v21986_v11  ;;  %19374 = vmatmul.mubr.bf16.gmra.mrb[192].mxu0 %v18558_v40  ;;  %10167 = vmatprep.mubr.bf16.mxu1 %v9348_v24  ;;  %v22018_v11 = vld [vmem:[%s32009_s2 + $0x308] sm:$0xff]  ;;  %v9354_v52 = vsel %vm2291_vm0, %v9349_v35, %v9353_v49  ;;  %v18570_v24 = vsel %vm4654_vm1, %v18565_v29, %v18569_v17  ;;  %v22036_v35 = vld [vmem:[%s32009_s2 + $0x338] sm:$0xff] }
 0x7e4   :  { %19989 = vst [vmem:[%s32009_s2 + $0x2b8] sm:$0xff] %v21989_v39  ;;  %19383 = vmatprep.mubr.bf16.mxu0 %v18564_v21  ;;  %v31533_v21 = vld [vmem:[%s32008_s0 + $0x3d0] ss:$8 sps:$4 sm:$0xff]   ;;  %v18576_v37 = vsel %vm4654_vm1, %v18571_v8, %v18575_v45  ;;  %v31588_v8 = vld [vmem:[%s32008_s0 + $0x3f4] ss:$8 sps:$4 sm:$0xff]  }
 0x7e6   :  { %v19115_v38 = vpop.f32.mrb[88].mxu0 }
 0x7e7   :  { %v21992_v63 = vadd.f32 %v21991_v44, %v19115_v38  ;;  %v19117_v23 = vpop.f32.mrb[89].mxu0  ;;  %v31546_v38 = vld [vmem:[%s32008_s0 + $0x3e4] ss:$8 sps:$4 sm:$0xff]  }
 0x7e8   :  { %v21995_v4 = vadd.f32 %v21994_v43, %v19117_v23  ;;  %v19119_v32 = vpop.f32.mrb[90].mxu0  ;;  %v18573_v23 = vrot.slane %v31533_v21, 2  ;;  %v9363_v43 = vrot.slane %v31387_v22, 1 }
 0x7e9   :  { %19990 = vst [vmem:[%s32009_s2 + $0x2c0] sm:$0xff] %v21992_v63  ;;  %v21998_v51 = vadd.f32 %v21997_v13, %v19119_v32  ;;  %v19121_v30 = vpop.f32.mrb[91].mxu0  ;;  %v9357_v63 = vrot.slane %v31374_v34, 1  ;;  %v22027_v13 = vld [vmem:[%s32009_s2 + $0x320] sm:$0xff]  ;;  %v22033_v34 = vld [vmem:[%s32009_s2 + $0x330] sm:$0xff] }
 0x7ea   :  { %19991 = vst [vmem:[%s32009_s2 + $0x2c8] sm:$0xff] %v21995_v4  ;;  %v22001_v61 = vadd.f32 %v22000_v9, %v19121_v30  ;;  %10168 = vmatmul.mubr.bf16.gmra.mrb[196].mxu1 %v9346_v15  ;;  %v18579_v4 = vrot.slane %v31546_v38, 2  ;;  %v9364_v29 = vsel %vm2291_vm0, %v9359_v55, %v9363_v43 }
 0x7eb   :  { %19992 = vst [vmem:[%s32009_s2 + $0x2d0] sm:$0xff] %v21998_v51  ;;  %19384 = vmatmul.mubr.bf16.gmra.mrb[196].mxu0 %v18562_v25  ;;  %10177 = vmatprep.mubr.bf16.mxu1 %v9352_v36  ;;  %v22030_v51 = vld [vmem:[%s32009_s2 + $0x328] sm:$0xff]  ;;  %v9358_v22 = vsel %vm2291_vm0, %v9353_v49, %v9357_v63  ;;  %v18574_v36 = vsel %vm4654_vm1, %v18569_v17, %v18573_v23  ;;  %v22048_v17 = vld [vmem:[%s32009_s2 + $0x358] sm:$0xff] }
 0x7ec   :  { %19993 = vst [vmem:[%s32009_s2 + $0x2d8] sm:$0xff] %v22001_v61  ;;  %19393 = vmatprep.mubr.bf16.mxu0 %v18568_v3  ;;  %v31575_v3 = vld [vmem:[%s32008_s0 + $0x3e0] ss:$8 sps:$4 sm:$0xff]   ;;  %v18580_v57 = vsel %vm4654_vm1, %v18575_v45, %v18579_v4 }
 0x7ee   :  { %v19125_v26 = vpop.f32.mrb[92].mxu0 }
 0x7ef   :  { %v22004_v50 = vadd.f32 %v22003_v10, %v19125_v26  ;;  %v19127_v41 = vpop.f32.mrb[93].mxu0  ;;  %v9361_v10 = vrot.slane %v31416_v16, 1 }
 0x7f0   :  { %v22007_v28 = vadd.f32 %v22006_v19, %v19127_v41  ;;  %v19129_v54 = vpop.f32.mrb[94].mxu0  ;;  %v9367_v41 = vrot.slane %v31429_v48, 1  ;;  %v18583_v19 = vrot.slane %v31588_v8, 2  ;;  %v22042_v48 = vld [vmem:[%s32009_s2 + $0x348] sm:$0xff] }
 0x7f1   :  { %19994 = vst [vmem:[%s32009_s2 + $0x2e0] sm:$0xff] %v22004_v50  ;;  %v22010_v14 = vadd.f32 %v22009_v7, %v19129_v54  ;;  %v19131_v1 = vpop.f32.mrb[95].mxu0  ;;  %v18577_v50 = vrot.slane %v31575_v3, 2  ;;  %v22039_v54 = vld [vmem:[%s32009_s2 + $0x340] sm:$0xff] }
 0x7f2   :  { %19995 = vst [vmem:[%s32009_s2 + $0x2e8] sm:$0xff] %v22007_v28  ;;  %v22013_v33 = vadd.f32 %v22012_v5, %v19131_v1  ;;  %10178 = vmatmul.mubr.bf16.gmra.mrb[200].mxu1 %v9350_v31  ;;  %v8660_v7 = vld [vmem:[%s32008_s0 + $0x3c0] sm:$0x11]  ;;  %v22045_v1 = vld [vmem:[%s32009_s2 + $0x350] sm:$0xff]  ;;  %v9362_v5 = vsel %vm2291_vm0, %v9357_v63, %v9361_v10  ;;  %v18584_v55 = vsel %vm4654_vm1, %v18579_v4, %v18583_v19 }
 0x7f3   :  { %19996 = vst [vmem:[%s32009_s2 + $0x2f0] sm:$0xff] %v22010_v14  ;;  %19394 = vmatmul.mubr.bf16.gmra.mrb[200].mxu0 %v18566_v18  ;;  %10187 = vmatprep.mubr.bf16.mxu1 %v9356_v12  ;;  %v17876_v31 = vld [vmem:[%s32008_s0 + $0x400] sm:$0x33]  ;;  %v18578_v12 = vsel %vm4654_vm1, %v18573_v23, %v18577_v50  ;;  %v20951_v45 = vcombine.high %v8660_v7, %v8660_v7  ;;  %v22060_v23 = vld [vmem:[%s32009_s2 + $0x378] sm:$0xff] }
 0x7f4   :  { %19997 = vst [vmem:[%s32009_s2 + $0x2f8] sm:$0xff] %v22013_v33  ;;  %19403 = vmatprep.mubr.bf16.mxu0 %v18572_v46  ;;  %v9368_v46 = vsel %vm2291_vm0, %v9363_v43, %v9367_v41  ;;  %v21660_v38 = vcombine.low %v17876_v31, %v17876_v31 }
 0x7f6   :  { %v19135_v58 = vpop.f32.mrb[96].mxu0 }
 0x7f7   :  { %v22016_v6 = vadd.f32 %v22015_v27, %v19135_v58  ;;  %v19137_v40 = vpop.f32.mrb[97].mxu0  ;;  %v21661_v58 = vcombine.high %v17876_v31, %v17876_v31 }
 0x7f8   :  { %v22019_v20 = vadd.f32 %v22018_v11, %v19137_v40  ;;  %v19139_v0 = vpop.f32.mrb[98].mxu0  ;;  %v18581_v40 = vrot.slane %v25383_v53, 2  ;;  %v9371_v11 = vrot.slane %v20951_v45, 1 }
 0x7f9   :  { %19998 = vst [vmem:[%s32009_s2 + $0x300] sm:$0xff] %v22016_v6  ;;  %v22022_v39 = vadd.f32 %v22021_v42, %v19139_v0  ;;  %v19141_v47 = vpop.f32.mrb[99].mxu0  ;;  %v9365_v6 = vrot.slane %v31458_v62, 1  ;;  %v22051_v42 = vld [vmem:[%s32009_s2 + $0x360] sm:$0xff]  ;;  %v22054_v62 = vld [vmem:[%s32009_s2 + $0x368] sm:$0xff] }
 0x7fa   :  { %19999 = vst [vmem:[%s32009_s2 + $0x308] sm:$0xff] %v22019_v20  ;;  %v22025_v44 = vadd.f32 %v22024_v2, %v19141_v47  ;;  %10188 = vmatmul.mubr.bf16.gmra.mrb[204].mxu1 %v9354_v52  ;;  %v18587_v20 = vrot.slane %v21661_v58, 2  ;;  %v22057_v2 = vld [vmem:[%s32009_s2 + $0x370] sm:$0xff]  ;;  %v9372_v43 = vsel %vm2291_vm0, %v9367_v41, %v9371_v11 }
 0x7fb   :  { %20000 = vst [vmem:[%s32009_s2 + $0x310] sm:$0xff] %v22022_v39  ;;  %19404 = vmatmul.mubr.bf16.gmra.mrb[204].mxu0 %v18570_v24  ;;  %10197 = vmatprep.mubr.bf16.mxu1 %v9360_v56  ;;  %v9366_v21 = vsel %vm2291_vm0, %v9361_v10, %v9365_v6  ;;  %v18582_v56 = vsel %vm4654_vm1, %v18577_v50, %v18581_v40 }
 0x7fc   :  { %20001 = vst [vmem:[%s32009_s2 + $0x318] sm:$0xff] %v22025_v44  ;;  %19413 = vmatprep.mubr.bf16.mxu0 %v18576_v37  ;;  %v20950_v37 = vcombine.low %v8660_v7, %v8660_v7  ;;  %v18588_v4 = vsel %vm4654_vm1, %v18583_v19, %v18587_v20 }
 0x7fe   :  { %v19145_v32 = vpop.f32.mrb[100].mxu0 }
 0x7ff   :  { %v22028_v15 = vadd.f32 %v22027_v13, %v19145_v32  ;;  %v19147_v25 = vpop.f32.mrb[101].mxu0  ;;  %v9369_v13 = vrot.slane %v20950_v37, 1 }
 0x800   :  { %v22031_v30 = vadd.f32 %v22030_v51, %v19147_v25  ;;  %v19149_v9 = vpop.f32.mrb[102].mxu0 }
 0x801   :  { %20002 = vst [vmem:[%s32009_s2 + $0x320] sm:$0xff] %v22028_v15  ;;  %v22034_v60 = vadd.f32 %v22033_v34, %v19149_v9  ;;  %v19151_v61 = vpop.f32.mrb[103].mxu0  ;;  %v18585_v15 = vrot.slane %v21660_v38, 2 }
 0x802   :  { %20003 = vst [vmem:[%s32009_s2 + $0x328] sm:$0xff] %v22031_v30  ;;  %v22037_v26 = vadd.f32 %v22036_v35, %v19151_v61  ;;  %10198 = vmatmul.mubr.bf16.gmra.mrb[208].mxu1 %v9358_v22 }
 0x803   :  { %20004 = vst [vmem:[%s32009_s2 + $0x330] sm:$0xff] %v22034_v60  ;;  %19414 = vmatmul.mubr.bf16.gmra.mrb[208].mxu0 %v18574_v36  ;;  %10207 = vmatprep.mubr.bf16.mxu1 %v9364_v29  ;;  %v9370_v60 = vsel %vm2291_vm0, %v9365_v6, %v9369_v13  ;;  %v18586_v61 = vsel %vm4654_vm1, %v18581_v40, %v18585_v15 }
 0x804   :  { %20005 = vst [vmem:[%s32009_s2 + $0x338] sm:$0xff] %v22037_v26  ;;  %19423 = vmatprep.mubr.bf16.mxu0 %v18580_v57 }
 0x806   :  { %v19155_v28 = vpop.f32.mrb[104].mxu0 }
 0x807   :  { %v22040_v16 = vadd.f32 %v22039_v54, %v19155_v28  ;;  %v19157_v18 = vpop.f32.mrb[105].mxu0 }
 0x808   :  { %v22043_v59 = vadd.f32 %v22042_v48, %v19157_v18  ;;  %v19159_v14 = vpop.f32.mrb[106].mxu0 }
 0x809   :  { %20006 = vst [vmem:[%s32009_s2 + $0x340] sm:$0xff] %v22040_v16  ;;  %v22046_v33 = vadd.f32 %v22045_v1, %v19159_v14  ;;  %v19161_v49 = vpop.f32.mrb[107].mxu0 }
 0x80a   :  { %20007 = vst [vmem:[%s32009_s2 + $0x348] sm:$0xff] %v22043_v59  ;;  %v22049_v27 = vadd.f32 %v22048_v17, %v19161_v49  ;;  %10208 = vmatmul.mubr.bf16.gmra.mrb[212].mxu1 %v9362_v5 }
 0x80b   :  { %20008 = vst [vmem:[%s32009_s2 + $0x350] sm:$0xff] %v22046_v33  ;;  %19424 = vmatmul.mubr.bf16.gmra.mrb[212].mxu0 %v18578_v12  ;;  %10217 = vmatprep.mubr.bf16.mxu1 %v9368_v46 }
 0x80c   :  { %20009 = vst [vmem:[%s32009_s2 + $0x358] sm:$0xff] %v22049_v27  ;;  %19433 = vmatprep.mubr.bf16.mxu0 %v18584_v55 }
 0x80e   :  { %v19165_v0 = vpop.f32.mrb[108].mxu0 }
 0x80f   :  { %v22052_v52 = vadd.f32 %v22051_v42, %v19165_v0  ;;  %v19167_v24 = vpop.f32.mrb[109].mxu0 }
 0x810   :  { %v22055_v39 = vadd.f32 %v22054_v62, %v19167_v24  ;;  %v19169_v47 = vpop.f32.mrb[110].mxu0 }
 0x811   :  { %20010 = vst [vmem:[%s32009_s2 + $0x360] sm:$0xff] %v22052_v52  ;;  %v22058_v44 = vadd.f32 %v22057_v2, %v19169_v47  ;;  %v19171_v63 = vpop.f32.mrb[111].mxu0 }
 0x812   :  { %20011 = vst [vmem:[%s32009_s2 + $0x368] sm:$0xff] %v22055_v39  ;;  %v22061_v32 = vadd.f32 %v22060_v23, %v19171_v63  ;;  %10218 = vmatmul.mubr.bf16.gmra.mrb[216].mxu1 %v9366_v21 }
 0x813   :  { %20012 = vst [vmem:[%s32009_s2 + $0x370] sm:$0xff] %v22058_v44  ;;  %19434 = vmatmul.mubr.bf16.gmra.mrb[216].mxu0 %v18582_v56  ;;  %10227 = vmatprep.mubr.bf16.mxu1 %v9372_v43 }
 0x814   :  { %20013 = vst [vmem:[%s32009_s2 + $0x378] sm:$0xff] %v22061_v32  ;;  %19443 = vmatprep.mubr.bf16.mxu0 %v18588_v4 }
 0x815   :  { %v9959_v25 = vpop.f32.mrb[112].mxu1 }
 0x816   :  { %v19175_v51 = vpop.f32.mrb[112].mxu0  ;;  %v9961_v9 = vpop.f32.mrb[113].mxu1 }
 0x817   :  { %v22064_v30 = vadd.f32 %v19175_v51, %v9959_v25  ;;  %v19177_v34 = vpop.f32.mrb[113].mxu0  ;;  %v9963_v36 = vpop.f32.mrb[114].mxu1 }
 0x818   :  { %v22067_v22 = vadd.f32 %v19177_v34, %v9961_v9  ;;  %v19179_v3 = vpop.f32.mrb[114].mxu0  ;;  %v9965_v29 = vpop.f32.mrb[115].mxu1 }
 0x819   :  { %20014 = vst [vmem:[%s32009_s2 + $0x380] sm:$0xff] %v22064_v30  ;;  %v22070_v35 = vadd.f32 %v19179_v3, %v9963_v36  ;;  %v19181_v57 = vpop.f32.mrb[115].mxu0 }
 0x81a   :  { %20015 = vst [vmem:[%s32009_s2 + $0x388] sm:$0xff] %v22067_v22  ;;  %v22073_v8 = vadd.f32 %v19181_v57, %v9965_v29  ;;  %10228 = vmatmul.mubr.bf16.gmra.mrb[220].mxu1 %v9370_v60 }
 0x81b   :  { %20016 = vst [vmem:[%s32009_s2 + $0x390] sm:$0xff] %v22070_v35  ;;  %19444 = vmatmul.mubr.bf16.gmra.mrb[220].mxu0 %v18586_v61 }
 0x81c   :  { %20017 = vst [vmem:[%s32009_s2 + $0x398] sm:$0xff] %v22073_v8 }
 0x81d   :  { %v9969_v26 = vpop.f32.mrb[116].mxu1 }
 0x81e   :  { %v19185_v10 = vpop.f32.mrb[116].mxu0  ;;  %v9971_v41 = vpop.f32.mrb[117].mxu1 }
 0x81f   :  { %v22076_v50 = vadd.f32 %v19185_v10, %v9969_v26  ;;  %v19187_v19 = vpop.f32.mrb[117].mxu0  ;;  %v9973_v54 = vpop.f32.mrb[118].mxu1 }
 0x820   :  { %v22079_v28 = vadd.f32 %v19187_v19, %v9971_v41  ;;  %v19189_v7 = vpop.f32.mrb[118].mxu0  ;;  %v9975_v16 = vpop.f32.mrb[119].mxu1 }
 0x821   :  { %20018 = vst [vmem:[%s32009_s2 + $0x3a0] sm:$0xff] %v22076_v50  ;;  %v22082_v31 = vadd.f32 %v19189_v7, %v9973_v54  ;;  %v19191_v18 = vpop.f32.mrb[119].mxu0 }
 0x822   :  { %20019 = vst [vmem:[%s32009_s2 + $0x3a8] sm:$0xff] %v22079_v28  ;;  %v22085_v48 = vadd.f32 %v19191_v18, %v9975_v16 }
 0x823   :  { %20020 = vst [vmem:[%s32009_s2 + $0x3b0] sm:$0xff] %v22082_v31 }
 0x824   :  { %20021 = vst [vmem:[%s32009_s2 + $0x3b8] sm:$0xff] %v22085_v48 }
 0x825   :  { %v9979_v59 = vpop.f32.mrb[120].mxu1 }
 0x826   :  { %v19195_v14 = vpop.f32.mrb[120].mxu0  ;;  %v9981_v5 = vpop.f32.mrb[121].mxu1 }
 0x827   :  { %v22088_v1 = vadd.f32 %v19195_v14, %v9979_v59  ;;  %v19197_v12 = vpop.f32.mrb[121].mxu0  ;;  %v9983_v53 = vpop.f32.mrb[122].mxu1 }
 0x828   :  { %v22091_v46 = vadd.f32 %v19197_v12, %v9981_v5  ;;  %v19199_v33 = vpop.f32.mrb[122].mxu0  ;;  %v9985_v17 = vpop.f32.mrb[123].mxu1 }
 0x829   :  { %20022 = vst [vmem:[%s32009_s2 + $0x3c0] sm:$0xff] %v22088_v1  ;;  %v22094_v49 = vadd.f32 %v19199_v33, %v9983_v53  ;;  %v19201_v55 = vpop.f32.mrb[123].mxu0 }
 0x82a   :  { %20023 = vst [vmem:[%s32009_s2 + $0x3c8] sm:$0xff] %v22091_v46  ;;  %v22097_v45 = vadd.f32 %v19201_v55, %v9985_v17 }
 0x82b   :  { %20024 = vst [vmem:[%s32009_s2 + $0x3d0] sm:$0xff] %v22094_v49 }
 0x82c   :  { %20025 = vst [vmem:[%s32009_s2 + $0x3d8] sm:$0xff] %v22097_v45 }
 0x82d   :  { %v9989_v58 = vpop.f32.mrb[124].mxu1 }
 0x82e   :  { %v19205_v27 = vpop.f32.mrb[124].mxu0  ;;  %v9991_v40 = vpop.f32.mrb[125].mxu1 }
 0x82f   :  { %v22100_v6 = vadd.f32 %v19205_v27, %v9989_v58  ;;  %v19207_v11 = vpop.f32.mrb[125].mxu0  ;;  %v9993_v0 = vpop.f32.mrb[126].mxu1 }
 0x830   :  { %v22103_v20 = vadd.f32 %v19207_v11, %v9991_v40  ;;  %v19209_v42 = vpop.f32.mrb[126].mxu0  ;;  %v9995_v24 = vpop.f32.mrb[127].mxu1 }
 0x831   :  { %20026 = vst [vmem:[%s32009_s2 + $0x3e0] sm:$0xff] %v22100_v6  ;;  %v22106_v52 = vadd.f32 %v19209_v42, %v9993_v0  ;;  %v19211_v62 = vpop.f32.mrb[127].mxu0 }
 0x832   :  { %20027 = vst [vmem:[%s32009_s2 + $0x3e8] sm:$0xff] %v22103_v20  ;;  %v22109_v21 = vadd.f32 %v19211_v62, %v9995_v24 }
 0x833   :  { %20028 = vst [vmem:[%s32009_s2 + $0x3f0] sm:$0xff] %v22106_v52 }
 0x834   :  { %20029 = vst [vmem:[%s32009_s2 + $0x3f8] sm:$0xff] %v22109_v21 }
 0x835   :  { %v9999_v39 = vpop.f32.mrb[128].mxu1 }
 0x836   :  { %v19215_v47 = vpop.f32.mrb[128].mxu0  ;;  %v10001_v56 = vpop.f32.mrb[129].mxu1 }
 0x837   :  { %v22112_v2 = vadd.f32 %v19215_v47, %v9999_v39  ;;  %v19217_v37 = vpop.f32.mrb[129].mxu0  ;;  %v10003_v44 = vpop.f32.mrb[130].mxu1 }
 0x838   :  { %v22115_v38 = vadd.f32 %v19217_v37, %v10001_v56  ;;  %v19219_v63 = vpop.f32.mrb[130].mxu0  ;;  %v10005_v43 = vpop.f32.mrb[131].mxu1 }
 0x839   :  { %20030 = vst [vmem:[%s32009_s2 + $0x400] sm:$0xff] %v22112_v2  ;;  %v22118_v23 = vadd.f32 %v19219_v63, %v10003_v44  ;;  %v19221_v4 = vpop.f32.mrb[131].mxu0 }
 0x83a   :  { %20031 = vst [vmem:[%s32009_s2 + $0x408] sm:$0xff] %v22115_v38  ;;  %v22121_v32 = vadd.f32 %v19221_v4, %v10005_v43 }
 0x83b   :  { %20032 = vst [vmem:[%s32009_s2 + $0x410] sm:$0xff] %v22118_v23 }
 0x83c   :  { %20033 = vst [vmem:[%s32009_s2 + $0x418] sm:$0xff] %v22121_v32 }
 0x83d   :  { %v10009_v13 = vpop.f32.mrb[132].mxu1 }
 0x83e   :  { %v19225_v15 = vpop.f32.mrb[132].mxu0  ;;  %v10011_v51 = vpop.f32.mrb[133].mxu1 }
 0x83f   :  { %v22124_v25 = vadd.f32 %v19225_v15, %v10009_v13  ;;  %v19227_v30 = vpop.f32.mrb[133].mxu0  ;;  %v10013_v34 = vpop.f32.mrb[134].mxu1 }
 0x840   :  { %v22127_v9 = vadd.f32 %v19227_v30, %v10011_v51  ;;  %v19229_v22 = vpop.f32.mrb[134].mxu0  ;;  %v10015_v3 = vpop.f32.mrb[135].mxu1 }
 0x841   :  { %20034 = vst [vmem:[%s32009_s2 + $0x420] sm:$0xff] %v22124_v25  ;;  %v22130_v36 = vadd.f32 %v19229_v22, %v10013_v34  ;;  %v19231_v60 = vpop.f32.mrb[135].mxu0 }
 0x842   :  { %20035 = vst [vmem:[%s32009_s2 + $0x428] sm:$0xff] %v22127_v9  ;;  %v22133_v61 = vadd.f32 %v19231_v60, %v10015_v3 }
 0x843   :  { %20036 = vst [vmem:[%s32009_s2 + $0x430] sm:$0xff] %v22130_v36 }
 0x844   :  { %20037 = vst [vmem:[%s32009_s2 + $0x438] sm:$0xff] %v22133_v61 }
 0x845   :  { %v10019_v35 = vpop.f32.mrb[136].mxu1 }
 0x846   :  { %v19235_v29 = vpop.f32.mrb[136].mxu0  ;;  %v10021_v8 = vpop.f32.mrb[137].mxu1 }
 0x847   :  { %v22136_v57 = vadd.f32 %v19235_v29, %v10019_v35  ;;  %v19237_v26 = vpop.f32.mrb[137].mxu0  ;;  %v10023_v50 = vpop.f32.mrb[138].mxu1 }
 0x848   :  { %v22139_v10 = vadd.f32 %v19237_v26, %v10021_v8  ;;  %v19239_v41 = vpop.f32.mrb[138].mxu0  ;;  %v10025_v28 = vpop.f32.mrb[139].mxu1 }
 0x849   :  { %20038 = vst [vmem:[%s32009_s2 + $0x440] sm:$0xff] %v22136_v57  ;;  %v22142_v19 = vadd.f32 %v19239_v41, %v10023_v50  ;;  %v19241_v54 = vpop.f32.mrb[139].mxu0 }
 0x84a   :  { %20039 = vst [vmem:[%s32009_s2 + $0x448] sm:$0xff] %v22139_v10  ;;  %v22145_v7 = vadd.f32 %v19241_v54, %v10025_v28 }
 0x84b   :  { %20040 = vst [vmem:[%s32009_s2 + $0x450] sm:$0xff] %v22142_v19 }
 0x84c   :  { %20041 = vst [vmem:[%s32009_s2 + $0x458] sm:$0xff] %v22145_v7 }
 0x84d   :  { %v10029_v31 = vpop.f32.mrb[140].mxu1 }
 0x84e   :  { %v19245_v16 = vpop.f32.mrb[140].mxu0  ;;  %v10031_v48 = vpop.f32.mrb[141].mxu1 }
 0x84f   :  { %v22148_v18 = vadd.f32 %v19245_v16, %v10029_v31  ;;  %v19247_v59 = vpop.f32.mrb[141].mxu0  ;;  %v10033_v1 = vpop.f32.mrb[142].mxu1 }
 0x850   :  { %v22151_v14 = vadd.f32 %v19247_v59, %v10031_v48  ;;  %v19249_v5 = vpop.f32.mrb[142].mxu0  ;;  %v10035_v46 = vpop.f32.mrb[143].mxu1 }
 0x851   :  { %20042 = vst [vmem:[%s32009_s2 + $0x460] sm:$0xff] %v22148_v18  ;;  %v22154_v12 = vadd.f32 %v19249_v5, %v10033_v1  ;;  %v19251_v53 = vpop.f32.mrb[143].mxu0 }
 0x852   :  { %20043 = vst [vmem:[%s32009_s2 + $0x468] sm:$0xff] %v22151_v14  ;;  %v22157_v33 = vadd.f32 %v19251_v53, %v10035_v46 }
 0x853   :  { %20044 = vst [vmem:[%s32009_s2 + $0x470] sm:$0xff] %v22154_v12 }
 0x854   :  { %20045 = vst [vmem:[%s32009_s2 + $0x478] sm:$0xff] %v22157_v33 }
 0x855   :  { %v10039_v49 = vpop.f32.mrb[144].mxu1 }
 0x856   :  { %v19255_v17 = vpop.f32.mrb[144].mxu0  ;;  %v10041_v45 = vpop.f32.mrb[145].mxu1 }
 0x857   :  { %v22160_v55 = vadd.f32 %v19255_v17, %v10039_v49  ;;  %v19257_v58 = vpop.f32.mrb[145].mxu0  ;;  %v10043_v6 = vpop.f32.mrb[146].mxu1 }
 0x858   :  { %v22163_v27 = vadd.f32 %v19257_v58, %v10041_v45  ;;  %v19259_v40 = vpop.f32.mrb[146].mxu0  ;;  %v10045_v20 = vpop.f32.mrb[147].mxu1 }
 0x859   :  { %20046 = vst [vmem:[%s32009_s2 + $0x480] sm:$0xff] %v22160_v55  ;;  %v22166_v11 = vadd.f32 %v19259_v40, %v10043_v6  ;;  %v19261_v0 = vpop.f32.mrb[147].mxu0 }
 0x85a   :  { %20047 = vst [vmem:[%s32009_s2 + $0x488] sm:$0xff] %v22163_v27  ;;  %v22169_v42 = vadd.f32 %v19261_v0, %v10045_v20 }
 0x85b   :  { %20048 = vst [vmem:[%s32009_s2 + $0x490] sm:$0xff] %v22166_v11 }
 0x85c   :  { %20049 = vst [vmem:[%s32009_s2 + $0x498] sm:$0xff] %v22169_v42 }
 0x85d   :  { %v10049_v52 = vpop.f32.mrb[148].mxu1 }
 0x85e   :  { %v19265_v24 = vpop.f32.mrb[148].mxu0  ;;  %v10051_v21 = vpop.f32.mrb[149].mxu1 }
 0x85f   :  { %v22172_v62 = vadd.f32 %v19265_v24, %v10049_v52  ;;  %v19267_v39 = vpop.f32.mrb[149].mxu0  ;;  %v10053_v2 = vpop.f32.mrb[150].mxu1 }
 0x860   :  { %v22175_v47 = vadd.f32 %v19267_v39, %v10051_v21  ;;  %v19269_v56 = vpop.f32.mrb[150].mxu0  ;;  %v10055_v38 = vpop.f32.mrb[151].mxu1 }
 0x861   :  { %20050 = vst [vmem:[%s32009_s2 + $0x4a0] sm:$0xff] %v22172_v62  ;;  %v22178_v37 = vadd.f32 %v19269_v56, %v10053_v2  ;;  %v19271_v44 = vpop.f32.mrb[151].mxu0 }
 0x862   :  { %20051 = vst [vmem:[%s32009_s2 + $0x4a8] sm:$0xff] %v22175_v47  ;;  %v22181_v63 = vadd.f32 %v19271_v44, %v10055_v38 }
 0x863   :  { %20052 = vst [vmem:[%s32009_s2 + $0x4b0] sm:$0xff] %v22178_v37 }
 0x864   :  { %20053 = vst [vmem:[%s32009_s2 + $0x4b8] sm:$0xff] %v22181_v63 }
 0x865   :  { %v10059_v23 = vpop.f32.mrb[152].mxu1 }
 0x866   :  { %v19275_v43 = vpop.f32.mrb[152].mxu0  ;;  %v10061_v32 = vpop.f32.mrb[153].mxu1 }
 0x867   :  { %v22184_v4 = vadd.f32 %v19275_v43, %v10059_v23  ;;  %v19277_v13 = vpop.f32.mrb[153].mxu0  ;;  %v10063_v25 = vpop.f32.mrb[154].mxu1 }
 0x868   :  { %v22187_v15 = vadd.f32 %v19277_v13, %v10061_v32  ;;  %v19279_v51 = vpop.f32.mrb[154].mxu0  ;;  %v10065_v9 = vpop.f32.mrb[155].mxu1 }
 0x869   :  { %20054 = vst [vmem:[%s32009_s2 + $0x4c0] sm:$0xff] %v22184_v4  ;;  %v22190_v30 = vadd.f32 %v19279_v51, %v10063_v25  ;;  %v19281_v34 = vpop.f32.mrb[155].mxu0 }
 0x86a   :  { %20055 = vst [vmem:[%s32009_s2 + $0x4c8] sm:$0xff] %v22187_v15  ;;  %v22193_v22 = vadd.f32 %v19281_v34, %v10065_v9 }
 0x86b   :  { %20056 = vst [vmem:[%s32009_s2 + $0x4d0] sm:$0xff] %v22190_v30 }
 0x86c   :  { %20057 = vst [vmem:[%s32009_s2 + $0x4d8] sm:$0xff] %v22193_v22 }
 0x86d   :  { %v10069_v36 = vpop.f32.mrb[156].mxu1 }
 0x86e   :  { %v19285_v3 = vpop.f32.mrb[156].mxu0  ;;  %v10071_v61 = vpop.f32.mrb[157].mxu1 }
 0x86f   :  { %v22196_v60 = vadd.f32 %v19285_v3, %v10069_v36  ;;  %v19287_v35 = vpop.f32.mrb[157].mxu0  ;;  %v10073_v57 = vpop.f32.mrb[158].mxu1 }
 0x870   :  { %v22199_v29 = vadd.f32 %v19287_v35, %v10071_v61  ;;  %v19289_v8 = vpop.f32.mrb[158].mxu0  ;;  %v10075_v10 = vpop.f32.mrb[159].mxu1 }
 0x871   :  { %20058 = vst [vmem:[%s32009_s2 + $0x4e0] sm:$0xff] %v22196_v60  ;;  %v22202_v26 = vadd.f32 %v19289_v8, %v10073_v57  ;;  %v19291_v50 = vpop.f32.mrb[159].mxu0 }
 0x872   :  { %20059 = vst [vmem:[%s32009_s2 + $0x4e8] sm:$0xff] %v22199_v29  ;;  %v22205_v41 = vadd.f32 %v19291_v50, %v10075_v10 }
 0x873   :  { %20060 = vst [vmem:[%s32009_s2 + $0x4f0] sm:$0xff] %v22202_v26 }
 0x874   :  { %20061 = vst [vmem:[%s32009_s2 + $0x4f8] sm:$0xff] %v22205_v41 }
 0x875   :  { %v10079_v19 = vpop.f32.mrb[160].mxu1 }
 0x876   :  { %v19295_v28 = vpop.f32.mrb[160].mxu0  ;;  %v10081_v7 = vpop.f32.mrb[161].mxu1 }
 0x877   :  { %v22208_v54 = vadd.f32 %v19295_v28, %v10079_v19  ;;  %v19297_v31 = vpop.f32.mrb[161].mxu0  ;;  %v10083_v18 = vpop.f32.mrb[162].mxu1 }
 0x878   :  { %v22211_v16 = vadd.f32 %v19297_v31, %v10081_v7  ;;  %v19299_v48 = vpop.f32.mrb[162].mxu0  ;;  %v10085_v14 = vpop.f32.mrb[163].mxu1 }
 0x879   :  { %20062 = vst [vmem:[%s32009_s2 + $0x500] sm:$0xff] %v22208_v54  ;;  %v22214_v59 = vadd.f32 %v19299_v48, %v10083_v18  ;;  %v19301_v1 = vpop.f32.mrb[163].mxu0 }
 0x87a   :  { %20063 = vst [vmem:[%s32009_s2 + $0x508] sm:$0xff] %v22211_v16  ;;  %v22217_v5 = vadd.f32 %v19301_v1, %v10085_v14 }
 0x87b   :  { %20064 = vst [vmem:[%s32009_s2 + $0x510] sm:$0xff] %v22214_v59 }
 0x87c   :  { %20065 = vst [vmem:[%s32009_s2 + $0x518] sm:$0xff] %v22217_v5 }
 0x87d   :  { %v10089_v12 = vpop.f32.mrb[164].mxu1 }
 0x87e   :  { %v19305_v46 = vpop.f32.mrb[164].mxu0  ;;  %v10091_v33 = vpop.f32.mrb[165].mxu1 }
 0x87f   :  { %v22220_v53 = vadd.f32 %v19305_v46, %v10089_v12  ;;  %v19307_v49 = vpop.f32.mrb[165].mxu0  ;;  %v10093_v55 = vpop.f32.mrb[166].mxu1 }
 0x880   :  { %v22223_v17 = vadd.f32 %v19307_v49, %v10091_v33  ;;  %v19309_v45 = vpop.f32.mrb[166].mxu0  ;;  %v10095_v27 = vpop.f32.mrb[167].mxu1 }
 0x881   :  { %20066 = vst [vmem:[%s32009_s2 + $0x520] sm:$0xff] %v22220_v53  ;;  %v22226_v58 = vadd.f32 %v19309_v45, %v10093_v55  ;;  %v19311_v6 = vpop.f32.mrb[167].mxu0 }
 0x882   :  { %20067 = vst [vmem:[%s32009_s2 + $0x528] sm:$0xff] %v22223_v17  ;;  %v22229_v40 = vadd.f32 %v19311_v6, %v10095_v27 }
 0x883   :  { %20068 = vst [vmem:[%s32009_s2 + $0x530] sm:$0xff] %v22226_v58 }
 0x884   :  { %20069 = vst [vmem:[%s32009_s2 + $0x538] sm:$0xff] %v22229_v40 }
 0x885   :  { %v10099_v11 = vpop.f32.mrb[168].mxu1 }
 0x886   :  { %v19315_v20 = vpop.f32.mrb[168].mxu0  ;;  %v10101_v42 = vpop.f32.mrb[169].mxu1 }
 0x887   :  { %v22232_v0 = vadd.f32 %v19315_v20, %v10099_v11  ;;  %v19317_v52 = vpop.f32.mrb[169].mxu0  ;;  %v10103_v62 = vpop.f32.mrb[170].mxu1 }
 0x888   :  { %v22235_v24 = vadd.f32 %v19317_v52, %v10101_v42  ;;  %v19319_v21 = vpop.f32.mrb[170].mxu0  ;;  %v10105_v47 = vpop.f32.mrb[171].mxu1 }
 0x889   :  { %20070 = vst [vmem:[%s32009_s2 + $0x540] sm:$0xff] %v22232_v0  ;;  %v22238_v39 = vadd.f32 %v19319_v21, %v10103_v62  ;;  %v19321_v2 = vpop.f32.mrb[171].mxu0 }
 0x88a   :  { %20071 = vst [vmem:[%s32009_s2 + $0x548] sm:$0xff] %v22235_v24  ;;  %v22241_v56 = vadd.f32 %v19321_v2, %v10105_v47 }
 0x88b   :  { %20072 = vst [vmem:[%s32009_s2 + $0x550] sm:$0xff] %v22238_v39 }
 0x88c   :  { %20073 = vst [vmem:[%s32009_s2 + $0x558] sm:$0xff] %v22241_v56 }
 0x88d   :  { %v10109_v37 = vpop.f32.mrb[172].mxu1 }
 0x88e   :  { %v19325_v38 = vpop.f32.mrb[172].mxu0  ;;  %v10111_v63 = vpop.f32.mrb[173].mxu1 }
 0x88f   :  { %v22244_v44 = vadd.f32 %v19325_v38, %v10109_v37  ;;  %v19327_v23 = vpop.f32.mrb[173].mxu0  ;;  %v10113_v4 = vpop.f32.mrb[174].mxu1 }
 0x890   :  { %v22247_v43 = vadd.f32 %v19327_v23, %v10111_v63  ;;  %v19329_v32 = vpop.f32.mrb[174].mxu0  ;;  %v10115_v15 = vpop.f32.mrb[175].mxu1 }
 0x891   :  { %20074 = vst [vmem:[%s32009_s2 + $0x560] sm:$0xff] %v22244_v44  ;;  %v22250_v13 = vadd.f32 %v19329_v32, %v10113_v4  ;;  %v19331_v25 = vpop.f32.mrb[175].mxu0 }
 0x892   :  { %20075 = vst [vmem:[%s32009_s2 + $0x568] sm:$0xff] %v22247_v43  ;;  %v22253_v51 = vadd.f32 %v19331_v25, %v10115_v15 }
 0x893   :  { %20076 = vst [vmem:[%s32009_s2 + $0x570] sm:$0xff] %v22250_v13 }
 0x894   :  { %20077 = vst [vmem:[%s32009_s2 + $0x578] sm:$0xff] %v22253_v51 }
 0x895   :  { %v10119_v30 = vpop.f32.mrb[176].mxu1 }
 0x896   :  { %v19335_v9 = vpop.f32.mrb[176].mxu0  ;;  %v10121_v22 = vpop.f32.mrb[177].mxu1 }
 0x897   :  { %v22256_v34 = vadd.f32 %v19335_v9, %v10119_v30  ;;  %v19337_v36 = vpop.f32.mrb[177].mxu0  ;;  %v10123_v60 = vpop.f32.mrb[178].mxu1 }
 0x898   :  { %v22259_v3 = vadd.f32 %v19337_v36, %v10121_v22  ;;  %v19339_v61 = vpop.f32.mrb[178].mxu0  ;;  %v10125_v29 = vpop.f32.mrb[179].mxu1 }
 0x899   :  { %20078 = vst [vmem:[%s32009_s2 + $0x580] sm:$0xff] %v22256_v34  ;;  %v22262_v35 = vadd.f32 %v19339_v61, %v10123_v60  ;;  %v19341_v57 = vpop.f32.mrb[179].mxu0 }
 0x89a   :  { %20079 = vst [vmem:[%s32009_s2 + $0x588] sm:$0xff] %v22259_v3  ;;  %v22265_v8 = vadd.f32 %v19341_v57, %v10125_v29 }
 0x89b   :  { %20080 = vst [vmem:[%s32009_s2 + $0x590] sm:$0xff] %v22262_v35 }
 0x89c   :  { %20081 = vst [vmem:[%s32009_s2 + $0x598] sm:$0xff] %v22265_v8 }
 0x89d   :  { %v10129_v26 = vpop.f32.mrb[180].mxu1 }
 0x89e   :  { %v19345_v10 = vpop.f32.mrb[180].mxu0  ;;  %v10131_v41 = vpop.f32.mrb[181].mxu1 }
 0x89f   :  { %v22268_v50 = vadd.f32 %v19345_v10, %v10129_v26  ;;  %v19347_v19 = vpop.f32.mrb[181].mxu0  ;;  %v10133_v54 = vpop.f32.mrb[182].mxu1 }
 0x8a0   :  { %v22271_v28 = vadd.f32 %v19347_v19, %v10131_v41  ;;  %v19349_v7 = vpop.f32.mrb[182].mxu0  ;;  %v10135_v16 = vpop.f32.mrb[183].mxu1 }
 0x8a1   :  { %20082 = vst [vmem:[%s32009_s2 + $0x5a0] sm:$0xff] %v22268_v50  ;;  %v22274_v31 = vadd.f32 %v19349_v7, %v10133_v54  ;;  %v19351_v18 = vpop.f32.mrb[183].mxu0 }
 0x8a2   :  { %20083 = vst [vmem:[%s32009_s2 + $0x5a8] sm:$0xff] %v22271_v28  ;;  %v22277_v48 = vadd.f32 %v19351_v18, %v10135_v16 }
 0x8a3   :  { %20084 = vst [vmem:[%s32009_s2 + $0x5b0] sm:$0xff] %v22274_v31 }
 0x8a4   :  { %20085 = vst [vmem:[%s32009_s2 + $0x5b8] sm:$0xff] %v22277_v48 }
 0x8a5   :  { %v10139_v59 = vpop.f32.mrb[184].mxu1 }
 0x8a6   :  { %v19355_v14 = vpop.f32.mrb[184].mxu0  ;;  %v10141_v5 = vpop.f32.mrb[185].mxu1 }
 0x8a7   :  { %v22280_v1 = vadd.f32 %v19355_v14, %v10139_v59  ;;  %v19357_v12 = vpop.f32.mrb[185].mxu0  ;;  %v10143_v53 = vpop.f32.mrb[186].mxu1 }
 0x8a8   :  { %v22283_v46 = vadd.f32 %v19357_v12, %v10141_v5  ;;  %v19359_v33 = vpop.f32.mrb[186].mxu0  ;;  %v10145_v17 = vpop.f32.mrb[187].mxu1 }
 0x8a9   :  { %20086 = vst [vmem:[%s32009_s2 + $0x5c0] sm:$0xff] %v22280_v1  ;;  %v22286_v49 = vadd.f32 %v19359_v33, %v10143_v53  ;;  %v19361_v55 = vpop.f32.mrb[187].mxu0 }
 0x8aa   :  { %20087 = vst [vmem:[%s32009_s2 + $0x5c8] sm:$0xff] %v22283_v46  ;;  %v22289_v45 = vadd.f32 %v19361_v55, %v10145_v17 }
 0x8ab   :  { %20088 = vst [vmem:[%s32009_s2 + $0x5d0] sm:$0xff] %v22286_v49 }
 0x8ac   :  { %20089 = vst [vmem:[%s32009_s2 + $0x5d8] sm:$0xff] %v22289_v45 }
 0x8ad   :  { %v10149_v58 = vpop.f32.mrb[188].mxu1 }
 0x8ae   :  { %v19365_v27 = vpop.f32.mrb[188].mxu0  ;;  %v10151_v40 = vpop.f32.mrb[189].mxu1 }
 0x8af   :  { %v22292_v6 = vadd.f32 %v19365_v27, %v10149_v58  ;;  %v19367_v11 = vpop.f32.mrb[189].mxu0  ;;  %v10153_v0 = vpop.f32.mrb[190].mxu1 }
 0x8b0   :  { %v22295_v20 = vadd.f32 %v19367_v11, %v10151_v40  ;;  %v19369_v42 = vpop.f32.mrb[190].mxu0  ;;  %v10155_v24 = vpop.f32.mrb[191].mxu1 }
 0x8b1   :  { %20090 = vst [vmem:[%s32009_s2 + $0x5e0] sm:$0xff] %v22292_v6  ;;  %v22298_v52 = vadd.f32 %v19369_v42, %v10153_v0  ;;  %v19371_v62 = vpop.f32.mrb[191].mxu0 }
 0x8b2   :  { %20091 = vst [vmem:[%s32009_s2 + $0x5e8] sm:$0xff] %v22295_v20  ;;  %v22301_v21 = vadd.f32 %v19371_v62, %v10155_v24 }
 0x8b3   :  { %20092 = vst [vmem:[%s32009_s2 + $0x5f0] sm:$0xff] %v22298_v52 }
 0x8b4   :  { %20093 = vst [vmem:[%s32009_s2 + $0x5f8] sm:$0xff] %v22301_v21 }
 0x8b5   :  { %v10159_v39 = vpop.f32.mrb[192].mxu1 }
 0x8b6   :  { %v19375_v47 = vpop.f32.mrb[192].mxu0  ;;  %v10161_v56 = vpop.f32.mrb[193].mxu1 }
 0x8b7   :  { %v22304_v2 = vadd.f32 %v19375_v47, %v10159_v39  ;;  %v19377_v37 = vpop.f32.mrb[193].mxu0  ;;  %v10163_v44 = vpop.f32.mrb[194].mxu1 }
 0x8b8   :  { %v22307_v38 = vadd.f32 %v19377_v37, %v10161_v56  ;;  %v19379_v63 = vpop.f32.mrb[194].mxu0  ;;  %v10165_v43 = vpop.f32.mrb[195].mxu1 }
 0x8b9   :  { %20094 = vst [vmem:[%s32009_s2 + $0x600] sm:$0xff] %v22304_v2  ;;  %v22310_v23 = vadd.f32 %v19379_v63, %v10163_v44  ;;  %v19381_v4 = vpop.f32.mrb[195].mxu0 }
 0x8ba   :  { %20095 = vst [vmem:[%s32009_s2 + $0x608] sm:$0xff] %v22307_v38  ;;  %v22313_v32 = vadd.f32 %v19381_v4, %v10165_v43 }
 0x8bb   :  { %20096 = vst [vmem:[%s32009_s2 + $0x610] sm:$0xff] %v22310_v23 }
 0x8bc   :  { %20097 = vst [vmem:[%s32009_s2 + $0x618] sm:$0xff] %v22313_v32 }
 0x8bd   :  { %v10169_v13 = vpop.f32.mrb[196].mxu1 }
 0x8be   :  { %v19385_v15 = vpop.f32.mrb[196].mxu0  ;;  %v10171_v51 = vpop.f32.mrb[197].mxu1 }
 0x8bf   :  { %v22316_v25 = vadd.f32 %v19385_v15, %v10169_v13  ;;  %v19387_v30 = vpop.f32.mrb[197].mxu0  ;;  %v10173_v34 = vpop.f32.mrb[198].mxu1 }
 0x8c0   :  { %v22319_v9 = vadd.f32 %v19387_v30, %v10171_v51  ;;  %v19389_v22 = vpop.f32.mrb[198].mxu0  ;;  %v10175_v3 = vpop.f32.mrb[199].mxu1 }
 0x8c1   :  { %20098 = vst [vmem:[%s32009_s2 + $0x620] sm:$0xff] %v22316_v25  ;;  %v22322_v36 = vadd.f32 %v19389_v22, %v10173_v34  ;;  %v19391_v60 = vpop.f32.mrb[199].mxu0 }
 0x8c2   :  { %20099 = vst [vmem:[%s32009_s2 + $0x628] sm:$0xff] %v22319_v9  ;;  %v22325_v61 = vadd.f32 %v19391_v60, %v10175_v3 }
 0x8c3   :  { %20100 = vst [vmem:[%s32009_s2 + $0x630] sm:$0xff] %v22322_v36 }
 0x8c4   :  { %20101 = vst [vmem:[%s32009_s2 + $0x638] sm:$0xff] %v22325_v61 }
 0x8c5   :  { %v10179_v35 = vpop.f32.mrb[200].mxu1 }
 0x8c6   :  { %v19395_v29 = vpop.f32.mrb[200].mxu0  ;;  %v10181_v8 = vpop.f32.mrb[201].mxu1 }
 0x8c7   :  { %v22328_v57 = vadd.f32 %v19395_v29, %v10179_v35  ;;  %v19397_v26 = vpop.f32.mrb[201].mxu0  ;;  %v10183_v50 = vpop.f32.mrb[202].mxu1 }
 0x8c8   :  { %v22331_v10 = vadd.f32 %v19397_v26, %v10181_v8  ;;  %v19399_v41 = vpop.f32.mrb[202].mxu0  ;;  %v10185_v28 = vpop.f32.mrb[203].mxu1 }
 0x8c9   :  { %20102 = vst [vmem:[%s32009_s2 + $0x640] sm:$0xff] %v22328_v57  ;;  %v22334_v19 = vadd.f32 %v19399_v41, %v10183_v50  ;;  %v19401_v54 = vpop.f32.mrb[203].mxu0 }
 0x8ca   :  { %20103 = vst [vmem:[%s32009_s2 + $0x648] sm:$0xff] %v22331_v10  ;;  %v22337_v7 = vadd.f32 %v19401_v54, %v10185_v28 }
 0x8cb   :  { %20104 = vst [vmem:[%s32009_s2 + $0x650] sm:$0xff] %v22334_v19 }
 0x8cc   :  { %20105 = vst [vmem:[%s32009_s2 + $0x658] sm:$0xff] %v22337_v7 }
 0x8cd   :  { %v10189_v31 = vpop.f32.mrb[204].mxu1 }
 0x8ce   :  { %v19405_v16 = vpop.f32.mrb[204].mxu0  ;;  %v10191_v48 = vpop.f32.mrb[205].mxu1 }
 0x8cf   :  { %v22340_v18 = vadd.f32 %v19405_v16, %v10189_v31  ;;  %v19407_v59 = vpop.f32.mrb[205].mxu0  ;;  %v10193_v1 = vpop.f32.mrb[206].mxu1 }
 0x8d0   :  { %v22343_v14 = vadd.f32 %v19407_v59, %v10191_v48  ;;  %v19409_v5 = vpop.f32.mrb[206].mxu0  ;;  %v10195_v46 = vpop.f32.mrb[207].mxu1 }
 0x8d1   :  { %20106 = vst [vmem:[%s32009_s2 + $0x660] sm:$0xff] %v22340_v18  ;;  %v22346_v12 = vadd.f32 %v19409_v5, %v10193_v1  ;;  %v19411_v53 = vpop.f32.mrb[207].mxu0 }
 0x8d2   :  { %20107 = vst [vmem:[%s32009_s2 + $0x668] sm:$0xff] %v22343_v14  ;;  %v22349_v33 = vadd.f32 %v19411_v53, %v10195_v46 }
 0x8d3   :  { %20108 = vst [vmem:[%s32009_s2 + $0x670] sm:$0xff] %v22346_v12 }
 0x8d4   :  { %20109 = vst [vmem:[%s32009_s2 + $0x678] sm:$0xff] %v22349_v33 }
 0x8d5   :  { %v10199_v49 = vpop.f32.mrb[208].mxu1 }
 0x8d6   :  { %v19415_v17 = vpop.f32.mrb[208].mxu0  ;;  %v10201_v45 = vpop.f32.mrb[209].mxu1 }
 0x8d7   :  { %v22352_v55 = vadd.f32 %v19415_v17, %v10199_v49  ;;  %v19417_v58 = vpop.f32.mrb[209].mxu0  ;;  %v10203_v6 = vpop.f32.mrb[210].mxu1 }
 0x8d8   :  { %v22355_v27 = vadd.f32 %v19417_v58, %v10201_v45  ;;  %v19419_v40 = vpop.f32.mrb[210].mxu0  ;;  %v10205_v20 = vpop.f32.mrb[211].mxu1 }
 0x8d9   :  { %20110 = vst [vmem:[%s32009_s2 + $0x680] sm:$0xff] %v22352_v55  ;;  %v22358_v11 = vadd.f32 %v19419_v40, %v10203_v6  ;;  %v19421_v0 = vpop.f32.mrb[211].mxu0 }
 0x8da   :  { %20111 = vst [vmem:[%s32009_s2 + $0x688] sm:$0xff] %v22355_v27  ;;  %v22361_v42 = vadd.f32 %v19421_v0, %v10205_v20 }
 0x8db   :  { %20112 = vst [vmem:[%s32009_s2 + $0x690] sm:$0xff] %v22358_v11 }
 0x8dc   :  { %20113 = vst [vmem:[%s32009_s2 + $0x698] sm:$0xff] %v22361_v42 }
 0x8dd   :  { %v10209_v52 = vpop.f32.mrb[212].mxu1 }
 0x8de   :  { %v19425_v24 = vpop.f32.mrb[212].mxu0  ;;  %v10211_v21 = vpop.f32.mrb[213].mxu1 }
 0x8df   :  { %v22364_v62 = vadd.f32 %v19425_v24, %v10209_v52  ;;  %v19427_v39 = vpop.f32.mrb[213].mxu0  ;;  %v10213_v2 = vpop.f32.mrb[214].mxu1 }
 0x8e0   :  { %v22367_v47 = vadd.f32 %v19427_v39, %v10211_v21  ;;  %v19429_v56 = vpop.f32.mrb[214].mxu0  ;;  %v10215_v38 = vpop.f32.mrb[215].mxu1 }
 0x8e1   :  { %20114 = vst [vmem:[%s32009_s2 + $0x6a0] sm:$0xff] %v22364_v62  ;;  %v22370_v37 = vadd.f32 %v19429_v56, %v10213_v2  ;;  %v19431_v44 = vpop.f32.mrb[215].mxu0 }
 0x8e2   :  { %20115 = vst [vmem:[%s32009_s2 + $0x6a8] sm:$0xff] %v22367_v47  ;;  %v22373_v63 = vadd.f32 %v19431_v44, %v10215_v38 }
 0x8e3   :  { %20116 = vst [vmem:[%s32009_s2 + $0x6b0] sm:$0xff] %v22370_v37 }
 0x8e4   :  { %20117 = vst [vmem:[%s32009_s2 + $0x6b8] sm:$0xff] %v22373_v63 }
 0x8e5   :  { %v10219_v23 = vpop.f32.mrb[216].mxu1 }
 0x8e6   :  { %v19435_v43 = vpop.f32.mrb[216].mxu0  ;;  %v10221_v32 = vpop.f32.mrb[217].mxu1 }
 0x8e7   :  { %v22376_v4 = vadd.f32 %v19435_v43, %v10219_v23  ;;  %v19437_v13 = vpop.f32.mrb[217].mxu0  ;;  %v10223_v25 = vpop.f32.mrb[218].mxu1 }
 0x8e8   :  { %v22379_v15 = vadd.f32 %v19437_v13, %v10221_v32  ;;  %v19439_v51 = vpop.f32.mrb[218].mxu0  ;;  %v10225_v9 = vpop.f32.mrb[219].mxu1 }
 0x8e9   :  { %20118 = vst [vmem:[%s32009_s2 + $0x6c0] sm:$0xff] %v22376_v4  ;;  %v22382_v30 = vadd.f32 %v19439_v51, %v10223_v25  ;;  %v19441_v34 = vpop.f32.mrb[219].mxu0 }
 0x8ea   :  { %20119 = vst [vmem:[%s32009_s2 + $0x6c8] sm:$0xff] %v22379_v15  ;;  %v22385_v22 = vadd.f32 %v19441_v34, %v10225_v9 }
 0x8eb   :  { %20120 = vst [vmem:[%s32009_s2 + $0x6d0] sm:$0xff] %v22382_v30 }
 0x8ec   :  { %20121 = vst [vmem:[%s32009_s2 + $0x6d8] sm:$0xff] %v22385_v22 }
 0x8ed   :  { %v10229_v36 = vpop.f32.mrb[220].mxu1 }
 0x8ee   :  { %v19445_v3 = vpop.f32.mrb[220].mxu0  ;;  %v10231_v61 = vpop.f32.mrb[221].mxu1 }
 0x8ef   :  { %v22388_v60 = vadd.f32 %v19445_v3, %v10229_v36  ;;  %v19447_v35 = vpop.f32.mrb[221].mxu0  ;;  %v10233_v57 = vpop.f32.mrb[222].mxu1 }
 0x8f0   :  { %v22391_v29 = vadd.f32 %v19447_v35, %v10231_v61  ;;  %v19449_v8 = vpop.f32.mrb[222].mxu0  ;;  %v10235_v10 = vpop.f32.mrb[223].mxu1 }
 0x8f1   :  { %20122 = vst [vmem:[%s32009_s2 + $0x6e0] sm:$0xff] %v22388_v60  ;;  %v22394_v26 = vadd.f32 %v19449_v8, %v10233_v57  ;;  %v19451_v50 = vpop.f32.mrb[223].mxu0 }
 0x8f2   :  { %20123 = vst [vmem:[%s32009_s2 + $0x6e8] sm:$0xff] %v22391_v29  ;;  %v22397_v41 = vadd.f32 %v19451_v50, %v10235_v10 }
 0x8f3   :  { %20124 = vst [vmem:[%s32009_s2 + $0x6f0] sm:$0xff] %v22394_v26 }
 0x8f4   :  { %20125 = vst [vmem:[%s32009_s2 + $0x6f8] sm:$0xff] %v22397_v41 }

</bundles_post_ra>
